<compile_context>
chip_gen: v7x
topology: tpu7x:2x2x1
jax: 0.10.0
libtpu: 0.0.40
codegen_flags: <defaults>
</compile_context>

<pallas_src>
import math
import jax
import jax.numpy as jnp
from jax.experimental import pallas as pl
from jax.experimental.pallas import tpu as pltpu


def init_params(key, in_channels, num_hidden, num_heads, out_features):
    C = in_channels
    ks = jax.random.split(key, 16)
    f32 = jnp.float32

    def rnd(k, shape, scale=0.1):
        return jax.random.normal(k, shape, dtype=f32) * scale

    return dict(
        # conv1: torch weight (4, C, 3, 3) -> (C*9, 4) so the kernel does x @ W
        w1=rnd(ks[0], (4, C, 3, 3)).reshape(4, C * 9).T,
        b1=rnd(ks[1], (1, 4)),
        # conv2 (1x1): torch weight (C, 4, 1, 1) -> (4, C)
        w2=rnd(ks[2], (C, 4)).T,
        b2=rnd(ks[3], (1, C)),
        # attention projections (bias=False), torch weight (out, in) -> (in, out)
        wq=rnd(ks[4], (num_hidden, C)).T,
        wk=rnd(ks[5], (num_hidden, C)).T,
        wv=rnd(ks[6], (num_hidden, C)).T,
        wo=rnd(ks[7], (num_hidden, num_hidden)).T,
        ln_g=jnp.ones((1, num_hidden), f32),
        ln_b=jnp.zeros((1, num_hidden), f32),
        wl1=rnd(ks[8], (128, num_hidden)).T,
        bl1=rnd(ks[9], (1, 128)),
        wl2=rnd(ks[10], (64, 128)).T,
        bl2=rnd(ks[11], (1, 64)),
        wl3=rnd(ks[12], (out_features, 64)).T,
        bl3=rnd(ks[13], (1, out_features)),
    )


def make_kernel(Bb, S, C, num_hidden, num_heads):
    C9 = C * 9
    BbS = Bb * S
    H = num_heads
    BH = Bb * H
    NH = num_hidden
    f32 = jnp.float32

    def kernel(patches_ref, xres_ref,
               w1_ref, b1_ref, w2_ref, b2_ref,
               m_ref, wvo_ref, g_ref, beta_ref,
               out_ref):
        # ---- SimpleCNN: conv1 (3x3, pad 1) as one im2col matmul over the whole
        # (Bb*S, 9C) slab (bf16 operands, f32 accumulation); conv2 (1x1) in f32.
        p = patches_ref[...].reshape(BbS, C9)                                  # bf16
        c1 = jnp.dot(p, w1_ref[...], preferred_element_type=f32) + b1_ref[...]
        c1 = jax.nn.sigmoid(c1)
        c2 = jnp.dot(c1, w2_ref[...], preferred_element_type=f32) + b2_ref[...]
        c2 = jnp.maximum(c2, 0.0)

        # residual add with x.view(B, C, S).permute(0, 2, 1)
        xin = c2 + xres_ref[...].reshape(BbS, C)                               # (BbS, C) f32
        xin3 = xin.reshape(Bb, S, C)
        # pre-transpose ONCE; reused by every head's score matmul
        xin_cs = jnp.transpose(xin3, (0, 2, 1))                                # (Bb, C, S)

        # head-batched operands: replicate activations / stack the pre-folded
        # per-head weights along a single (Bb*H) batch dim so each attention
        # stage below is exactly ONE batched dot_general (no per-head loop).
        xin_rep = jnp.broadcast_to(xin3[:, None], (Bb, H, S, C)).reshape(BH, S, C)
        xct_rep = jnp.broadcast_to(xin_cs[:, None], (Bb, H, C, S)).reshape(BH, C, S)
        m_rep = jnp.broadcast_to(m_ref[...][None], (Bb, H, C, C)).reshape(BH, C, C)
        wvo_rep = jnp.broadcast_to(wvo_ref[...][None], (Bb, H, C, NH)).reshape(BH, C, NH)

        # per head h:  scores_h = xin (Wq_h Wk_h^T / sqrt(dh)) xin^T
        #              out     += softmax(scores_h) @ (xin Wv_h Wo_h)
        t3 = jnp.einsum('bsc,bce->bse', xin_rep, m_rep,
                        preferred_element_type=f32)                            # (BH, S, C)
        s = jnp.einsum('bsc,bct->bst', t3, xct_rep,
                       preferred_element_type=f32)                             # (BH, S, S)

        # softmax over keys on one (BH*S, S) slab
        s2 = s.reshape(BH * S, S)
        s2 = s2 - jnp.max(s2, axis=-1, keepdims=True)
        e = jnp.exp(s2)
        a = e * pl.reciprocal(jnp.sum(e, axis=-1, keepdims=True), approx=True)
        a3 = a.reshape(BH, S, S)

        vpro = jnp.einsum('bsc,bcn->bsn', xin_rep, wvo_rep,
                          preferred_element_type=f32)                          # (BH, S, NH)
        o4 = jnp.einsum('bst,btn->bsn', a3, vpro,
                        preferred_element_type=f32)                            # (BH, S, NH)

        # sum over heads (== concat heads then W_o): static adds over a major dim
        o4r = o4.reshape(Bb, H, S, NH)
        o = o4r[:, 0]
        for h in range(1, H):
            o = o + o4r[:, h]                                                  # (Bb, S, NH)

        # ---- LayerNorm over the hidden dim (eps = 1e-5) ----
        o2 = o.reshape(BbS, NH)
        mu = jnp.mean(o2, axis=-1, keepdims=True)
        var = jnp.mean((o2 - mu) ** 2, axis=-1, keepdims=True)
        norm = (o2 - mu) * jax.lax.rsqrt(var + 1e-5) * g_ref[...] + beta_ref[...]

        # ---- mean pool over the sequence; the tiny MLP head runs in the wrapper ----
        out_ref[0] = jnp.mean(norm.reshape(Bb, S, NH), axis=1)                 # (Bb, NH)

    return kernel


def basenet_forward(x, params, num_heads, batch_block=4):
    B, C, H_img, W_img = x.shape
    S = H_img * W_img
    NH = params["wq"].shape[1]
    f32, bf16 = jnp.float32, jnp.bfloat16
    x = x.astype(f32)

    # glue: im2col for the 3x3 conv (padding=1) and the residual view.
    # TODO(synk): at large H,W build the 3x3 window in-kernel from a (Bb, S, C)
    # tile with shifted reads / pltpu.roll to avoid the 9x HBM inflation.
    xp = jnp.pad(x, ((0, 0), (0, 0), (1, 1), (1, 1)))
    cols = [xp[:, :, ki:ki + H_img, kj:kj + W_img] for ki in range(3) for kj in range(3)]
    patches = jnp.stack(cols, axis=2)                      # (B, C, 9, H, W)
    patches = patches.transpose(0, 3, 4, 1, 2).reshape(B, S, C * 9)
    xres = x.reshape(B, C, S).transpose(0, 2, 1)           # (B, S, C)

    # batch blocking: keep the grid length >= 2 whenever B >= 2 so the
    # "parallel" batch axis can shard across v7x's two TensorCores.
    Bb = 1 if B <= 1 else max(1, min(batch_block, B // 2))
    n_blk = -(-B // Bb)
    B_pad = n_blk * Bb
    if B_pad != B:
        patches = jnp.pad(patches, ((0, B_pad - B), (0, 0), (0, 0)))
        xres = jnp.pad(xres, ((0, B_pad - B), (0, 0), (0, 0)))
    patches = patches.astype(bf16)                         # dominant HBM input in bf16

    # fold the per-head attention weights (f32):
    #   M_h   = Wq_h Wk_h^T / sqrt(dh)   (C, C)
    #   WvO_h = Wv_h Wo_h                (C, NH)
    dh = NH // num_heads
    wq_h = params["wq"].reshape(C, num_heads, dh).transpose(1, 0, 2)   # (H, C, dh)
    wk_h = params["wk"].reshape(C, num_heads, dh).transpose(1, 0, 2)
    wv_h = params["wv"].reshape(C, num_heads, dh).transpose(1, 0, 2)
    wo_h = params["wo"].reshape(num_heads, dh, NH)                     # (H, dh, NH)
    m_all = jnp.einsum('hcd,hed->hce', wq_h, wk_h) / math.sqrt(dh)     # (H, C, C)
    wvo_all = jnp.einsum('hcd,hdn->hcn', wv_h, wo_h)                   # (H, C, NH)

    weights = [
        params["w1"].astype(bf16), params["b1"],
        params["w2"], params["b2"],
        m_all, wvo_all,
        params["ln_g"], params["ln_b"],
    ]

    def const_spec(arr):
        nd = arr.ndim
        return pl.BlockSpec(arr.shape, lambda i, _nd=nd: (0,) * _nd)

    in_specs = (
        [pl.BlockSpec((Bb, S, C * 9), lambda i: (i, 0, 0)),
         pl.BlockSpec((Bb, S, C), lambda i: (i, 0, 0))]
        + [const_spec(w) for w in weights]
    )

    kernel = make_kernel(Bb, S, C, NH, num_heads)

    pooled = pl.pallas_call(
        kernel,
        out_shape=jax.ShapeDtypeStruct((n_blk, Bb, NH), f32),
        grid_spec=pltpu.PrefetchScalarGridSpec(
            num_scalar_prefetch=0,
            grid=(n_blk,),
            in_specs=in_specs,
            out_specs=pl.BlockSpec((1, Bb, NH), lambda i: (i, 0, 0)),
        ),
        compiler_params=pltpu.CompilerParams(
            dimension_semantics=("parallel",),     # megacore-shard the batch axis
            vmem_limit_bytes=48 * 1024 * 1024,     # headroom on v7x's 64 MiB VMEM
        ),
    )(patches, xres, *weights)

    pooled = pooled.reshape(B_pad, NH)[:B]

    # MLP head on the full (B, NH) pooled tensor in plain XLA (review: three
    # serially dependent M<8 matmuls don't belong in the per-block epilogue).
    h1 = jnp.maximum(pooled @ params["wl1"] + params["bl1"], 0.0)
    h2 = jnp.maximum(h1 @ params["wl2"] + params["bl2"], 0.0)
    return jnp.maximum(h2 @ params["wl3"] + params["bl3"], 0.0)


def basenet_reference(x, params, num_heads):
    """Pure-JAX f32 reference mirroring the PyTorch forward."""
    B, C, H, W = x.shape
    S = H * W
    xp = jnp.pad(x, ((0, 0), (0, 0), (1, 1), (1, 1)))
    cols = [xp[:, :, ki:ki + H, kj:kj + W] for ki in range(3) for kj in range(3)]
    patches = jnp.stack(cols, axis=2).transpose(0, 3, 4, 1, 2).reshape(B, S, C * 9)
    xres = x.reshape(B, C, S).transpose(0, 2, 1)
    c1 = jax.nn.sigmoid(patches @ params["w1"] + params["b1"])
    c2 = jnp.maximum(c1 @ params["w2"] + params["b2"], 0.0)
    xin = c2 + xres
    q, k, v = xin @ params["wq"], xin @ params["wk"], xin @ params["wv"]
    nh = params["wq"].shape[1]
    dh = nh // num_heads
    split = lambda t: t.reshape(B, S, num_heads, dh).transpose(0, 2, 1, 3)
    qh, kh, vh = split(q), split(k), split(v)
    s = jnp.einsum("bhqd,bhkd->bhqk", qh, kh) / math.sqrt(dh)
    a = jax.nn.softmax(s, axis=-1)
    o = jnp.einsum("bhqk,bhkd->bhqd", a, vh).transpose(0, 2, 1, 3).reshape(B, S, nh)
    o = o @ params["wo"]
    mu = o.mean(-1, keepdims=True)
    var = ((o - mu) ** 2).mean(-1, keepdims=True)
    norm = (o - mu) * jax.lax.rsqrt(var + 1e-5) * params["ln_g"] + params["ln_b"]
    pooled = norm.mean(axis=1)
    h1 = jnp.maximum(pooled @ params["wl1"] + params["bl1"], 0.0)
    h2 = jnp.maximum(h1 @ params["wl2"] + params["bl2"], 0.0)
    return jnp.maximum(h2 @ params["wl3"] + params["bl3"], 0.0)


if __name__ == "__main__":
    key = jax.random.PRNGKey(0)
    kx, kp = jax.random.split(key)
    B, C, H, W = 2, 4, 16, 16          # NCHW, S = H*W = 256
    num_hidden, num_heads, out_features = 32, 4, 10
    dropout = 0.0                      # inference-mode dropout == identity

    x = jax.random.normal(kx, (B, C, H, W), dtype=jnp.float32)
    params = init_params(kp, C, num_hidden, num_heads, out_features)

    out = jax.block_until_ready(basenet_forward(x, params, num_heads))
    ref = basenet_reference(x, params, num_heads)
    assert out.shape == (B, out_features)
    # bf16 im2col operands + approx reciprocal in softmax -> relaxed tolerance
    assert bool(jnp.allclose(out, ref, atol=2e-2, rtol=2e-2)), "Pallas kernel mismatch vs reference"
    print("KERNEL_OK")
</pallas_src>

<mosaic_0001>
module attributes {stable_mosaic.version = 11 : i64} {
  func.func @kernel(%arg0: i32, %arg1: memref<1x256x36xbf16, #tpu.memory_space<vmem>>, %arg2: memref<1x256x4xf32, #tpu.memory_space<vmem>>, %arg3: memref<36x4xbf16, #tpu.memory_space<vmem>>, %arg4: memref<1x4xf32, #tpu.memory_space<vmem>>, %arg5: memref<4x4xf32, #tpu.memory_space<vmem>>, %arg6: memref<1x4xf32, #tpu.memory_space<vmem>>, %arg7: memref<4x4x4xf32, #tpu.memory_space<vmem>>, %arg8: memref<4x4x32xf32, #tpu.memory_space<vmem>>, %arg9: memref<1x32xf32, #tpu.memory_space<vmem>>, %arg10: memref<1x32xf32, #tpu.memory_space<vmem>>, %arg11: memref<1x1x32xf32, #tpu.memory_space<vmem>>) attributes {dimension_semantics = [#tpu.dimension_semantics<parallel>], iteration_bounds = array<i64: 2>, scalar_prefetch = 0 : i64, scratch_operands = 0 : i64, tpu.core_type = #tpu.core_type<tc>, window_params = [{transform_indices = @transform_0, window_bounds = array<i64: 1, 256, 36>}, {transform_indices = @transform_1, window_bounds = array<i64: 1, 256, 4>}, {pipeline_mode = #tpu.pipeline_mode<synchronous>, transform_indices = @transform_2, window_bounds = array<i64: 36, 4>}, {pipeline_mode = #tpu.pipeline_mode<synchronous>, transform_indices = @transform_3, window_bounds = array<i64: 1, 4>}, {pipeline_mode = #tpu.pipeline_mode<synchronous>, transform_indices = @transform_4, window_bounds = array<i64: 4, 4>}, {pipeline_mode = #tpu.pipeline_mode<synchronous>, transform_indices = @transform_5, window_bounds = array<i64: 1, 4>}, {pipeline_mode = #tpu.pipeline_mode<synchronous>, transform_indices = @transform_6, window_bounds = array<i64: 4, 4, 4>}, {pipeline_mode = #tpu.pipeline_mode<synchronous>, transform_indices = @transform_7, window_bounds = array<i64: 4, 4, 32>}, {pipeline_mode = #tpu.pipeline_mode<synchronous>, transform_indices = @transform_8, window_bounds = array<i64: 1, 32>}, {pipeline_mode = #tpu.pipeline_mode<synchronous>, transform_indices = @transform_9, window_bounds = array<i64: 1, 32>}, {transform_indices = @transform_10, window_bounds = array<i64: 1, 1, 32>}]} {
    %c0 = arith.constant 0 : index
    %c0_0 = arith.constant 0 : index
    %c0_1 = arith.constant 0 : index
    %0 = vector.load %arg1[%c0, %c0_0, %c0_1] : memref<1x256x36xbf16, #tpu.memory_space<vmem>>, vector<1x256x36xbf16>
    %1 = vector.shape_cast %0 : vector<1x256x36xbf16> to vector<256x36xbf16>
    %c0_2 = arith.constant 0 : index
    %c0_3 = arith.constant 0 : index
    %2 = vector.load %arg3[%c0_2, %c0_3] : memref<36x4xbf16, #tpu.memory_space<vmem>>, vector<36x4xbf16>
    %cst = arith.constant dense<0.000000e+00> : vector<256x4xf32>
    %3 = tpu.matmul %1, %2, %cst {dimension_numbers = #tpu.dot_dimension_numbers<[1], [0], [0], [1], [0, 0, 1, 1], [], []>} : vector<256x36xbf16>, vector<36x4xbf16>, vector<256x4xf32> -> vector<256x4xf32>
    %c0_4 = arith.constant 0 : index
    %c0_5 = arith.constant 0 : index
    %4 = vector.load %arg4[%c0_4, %c0_5] : memref<1x4xf32, #tpu.memory_space<vmem>>, vector<1x4xf32>
    %5 = vector.broadcast %4 : vector<1x4xf32> to vector<256x4xf32>
    %6 = arith.addf %3, %5 : vector<256x4xf32>
    %7 = arith.negf %6 : vector<256x4xf32>
    %8 = math.exp %7 : vector<256x4xf32>
    %cst_6 = arith.constant 1.000000e+00 : f32
    %9 = vector.broadcast %cst_6 : f32 to vector<256x4xf32>
    %10 = arith.addf %9, %8 : vector<256x4xf32>
    %11 = arith.divf %9, %10 : vector<256x4xf32>
    %c0_7 = arith.constant 0 : index
    %c0_8 = arith.constant 0 : index
    %12 = vector.load %arg5[%c0_7, %c0_8] : memref<4x4xf32, #tpu.memory_space<vmem>>, vector<4x4xf32>
    %cst_9 = arith.constant dense<0.000000e+00> : vector<256x4xf32>
    %13 = tpu.matmul %11, %12, %cst_9 {dimension_numbers = #tpu.dot_dimension_numbers<[1], [0], [0], [1], [0, 0, 1, 1], [], []>} : vector<256x4xf32>, vector<4x4xf32>, vector<256x4xf32> -> vector<256x4xf32>
    %c0_10 = arith.constant 0 : index
    %c0_11 = arith.constant 0 : index
    %14 = vector.load %arg6[%c0_10, %c0_11] : memref<1x4xf32, #tpu.memory_space<vmem>>, vector<1x4xf32>
    %15 = vector.broadcast %14 : vector<1x4xf32> to vector<256x4xf32>
    %16 = arith.addf %13, %15 : vector<256x4xf32>
    %cst_12 = arith.constant 0.000000e+00 : f32
    %17 = vector.broadcast %cst_12 : f32 to vector<256x4xf32>
    %18 = arith.maximumf %16, %17 : vector<256x4xf32>
    %c0_13 = arith.constant 0 : index
    %c0_14 = arith.constant 0 : index
    %c0_15 = arith.constant 0 : index
    %19 = vector.load %arg2[%c0_13, %c0_14, %c0_15] : memref<1x256x4xf32, #tpu.memory_space<vmem>>, vector<1x256x4xf32>
    %20 = vector.shape_cast %19 : vector<1x256x4xf32> to vector<256x4xf32>
    %21 = arith.addf %18, %20 : vector<256x4xf32>
    %22 = vector.shape_cast %21 : vector<256x4xf32> to vector<1x256x4xf32>
    %23 = tpu.transpose %22, [0, 2, 1] : vector<1x256x4xf32> -> vector<1x4x256xf32>
    %24 = vector.shape_cast %22 : vector<1x256x4xf32> to vector<1x1x256x4xf32>
    %25 = vector.shape_cast %24 : vector<1x1x256x4xf32> to vector<1x1x256x4xf32>
    %26 = vector.broadcast %25 : vector<1x1x256x4xf32> to vector<1x4x256x4xf32>
    %27 = vector.shape_cast %26 : vector<1x4x256x4xf32> to vector<4x256x4xf32>
    %28 = vector.shape_cast %23 : vector<1x4x256xf32> to vector<1x1x4x256xf32>
    %29 = vector.shape_cast %28 : vector<1x1x4x256xf32> to vector<1x1x4x256xf32>
    %30 = vector.broadcast %29 : vector<1x1x4x256xf32> to vector<1x4x4x256xf32>
    %31 = vector.shape_cast %30 : vector<1x4x4x256xf32> to vector<4x4x256xf32>
    %c0_16 = arith.constant 0 : index
    %c0_17 = arith.constant 0 : index
    %c0_18 = arith.constant 0 : index
    %32 = vector.load %arg7[%c0_16, %c0_17, %c0_18] : memref<4x4x4xf32, #tpu.memory_space<vmem>>, vector<4x4x4xf32>
    %33 = vector.shape_cast %32 : vector<4x4x4xf32> to vector<1x4x4x4xf32>
    %34 = vector.shape_cast %33 : vector<1x4x4x4xf32> to vector<4x4x4xf32>
    %c0_19 = arith.constant 0 : index
    %c0_20 = arith.constant 0 : index
    %c0_21 = arith.constant 0 : index
    %35 = vector.load %arg8[%c0_19, %c0_20, %c0_21] : memref<4x4x32xf32, #tpu.memory_space<vmem>>, vector<4x4x32xf32>
    %36 = vector.shape_cast %35 : vector<4x4x32xf32> to vector<1x4x4x32xf32>
    %37 = vector.shape_cast %36 : vector<1x4x4x32xf32> to vector<4x4x32xf32>
    "tpu.trace_start"() <{level = 10 : i32, message = "bsc,bce->bse"}> : () -> ()
    %cst_22 = arith.constant dense<0.000000e+00> : vector<4x256x4xf32>
    %38 = tpu.matmul %27, %34, %cst_22 {dimension_numbers = #tpu.dot_dimension_numbers<[2], [1], [1], [2], [0, 0, 0, 1, 1, 2], [0], [0]>} : vector<4x256x4xf32>, vector<4x4x4xf32>, vector<4x256x4xf32> -> vector<4x256x4xf32>
    "tpu.trace_stop"() : () -> ()
    "tpu.trace_start"() <{level = 10 : i32, message = "bsc,bct->bst"}> : () -> ()
    %cst_23 = arith.constant dense<0.000000e+00> : vector<4x256x256xf32>
    %39 = tpu.matmul %38, %31, %cst_23 {dimension_numbers = #tpu.dot_dimension_numbers<[2], [1], [1], [2], [0, 0, 0, 1, 1, 2], [0], [0]>} : vector<4x256x4xf32>, vector<4x4x256xf32>, vector<4x256x256xf32> -> vector<4x256x256xf32>
    "tpu.trace_stop"() : () -> ()
    %40 = vector.shape_cast %39 : vector<4x256x256xf32> to vector<1024x256xf32>
    %cst_24 = arith.constant dense<0xFF800000> : vector<1024xf32>
    %41 = vector.multi_reduction <maximumf>, %40, %cst_24 [1] : vector<1024x256xf32> to vector<1024xf32>
    %42 = vector.shape_cast %41 : vector<1024xf32> to vector<1024x1xf32>
    %43 = vector.broadcast %42 : vector<1024x1xf32> to vector<1024x256xf32>
    %44 = arith.subf %40, %43 : vector<1024x256xf32>
    %45 = math.exp %44 : vector<1024x256xf32>
    %cst_25 = arith.constant dense<0.000000e+00> : vector<1024xf32>
    %46 = vector.multi_reduction <add>, %45, %cst_25 [1] : vector<1024x256xf32> to vector<1024xf32>
    %47 = vector.shape_cast %46 : vector<1024xf32> to vector<1024x1xf32>
    %48 = tpu.reciprocal %47 {approx = true} : vector<1024x1xf32> -> vector<1024x1xf32>
    %49 = vector.broadcast %48 : vector<1024x1xf32> to vector<1024x256xf32>
    %50 = arith.mulf %45, %49 : vector<1024x256xf32>
    %51 = vector.shape_cast %50 : vector<1024x256xf32> to vector<4x256x256xf32>
    "tpu.trace_start"() <{level = 10 : i32, message = "bsc,bcn->bsn"}> : () -> ()
    %cst_26 = arith.constant dense<0.000000e+00> : vector<4x256x32xf32>
    %52 = tpu.matmul %27, %37, %cst_26 {dimension_numbers = #tpu.dot_dimension_numbers<[2], [1], [1], [2], [0, 0, 0, 1, 1, 2], [0], [0]>} : vector<4x256x4xf32>, vector<4x4x32xf32>, vector<4x256x32xf32> -> vector<4x256x32xf32>
    "tpu.trace_stop"() : () -> ()
    "tpu.trace_start"() <{level = 10 : i32, message = "bst,btn->bsn"}> : () -> ()
    %cst_27 = arith.constant dense<0.000000e+00> : vector<4x256x32xf32>
    %53 = tpu.matmul %51, %52, %cst_27 {dimension_numbers = #tpu.dot_dimension_numbers<[2], [1], [1], [2], [0, 0, 0, 1, 1, 2], [0], [0]>} : vector<4x256x256xf32>, vector<4x256x32xf32>, vector<4x256x32xf32> -> vector<4x256x32xf32>
    "tpu.trace_stop"() : () -> ()
    %54 = vector.shape_cast %53 : vector<4x256x32xf32> to vector<1x4x256x32xf32>
    %55 = vector.extract_strided_slice %54 {offsets = [0, 0, 0, 0], sizes = [1, 1, 256, 32], strides = [1, 1, 1, 1]} : vector<1x4x256x32xf32> to vector<1x1x256x32xf32>
    %56 = vector.shape_cast %55 : vector<1x1x256x32xf32> to vector<1x256x32xf32>
    %57 = vector.extract_strided_slice %54 {offsets = [0, 1, 0, 0], sizes = [1, 1, 256, 32], strides = [1, 1, 1, 1]} : vector<1x4x256x32xf32> to vector<1x1x256x32xf32>
    %58 = vector.shape_cast %57 : vector<1x1x256x32xf32> to vector<1x256x32xf32>
    %59 = arith.addf %56, %58 : vector<1x256x32xf32>
    %60 = vector.extract_strided_slice %54 {offsets = [0, 2, 0, 0], sizes = [1, 1, 256, 32], strides = [1, 1, 1, 1]} : vector<1x4x256x32xf32> to vector<1x1x256x32xf32>
    %61 = vector.shape_cast %60 : vector<1x1x256x32xf32> to vector<1x256x32xf32>
    %62 = arith.addf %59, %61 : vector<1x256x32xf32>
    %63 = vector.extract_strided_slice %54 {offsets = [0, 3, 0, 0], sizes = [1, 1, 256, 32], strides = [1, 1, 1, 1]} : vector<1x4x256x32xf32> to vector<1x1x256x32xf32>
    %64 = vector.shape_cast %63 : vector<1x1x256x32xf32> to vector<1x256x32xf32>
    %65 = arith.addf %62, %64 : vector<1x256x32xf32>
    %66 = vector.shape_cast %65 : vector<1x256x32xf32> to vector<256x32xf32>
    %cst_28 = arith.constant dense<0.000000e+00> : vector<256xf32>
    %67 = vector.multi_reduction <add>, %66, %cst_28 [1] : vector<256x32xf32> to vector<256xf32>
    %68 = vector.shape_cast %67 : vector<256xf32> to vector<256x1xf32>
    %cst_29 = arith.constant 3.200000e+01 : f32
    %69 = vector.broadcast %cst_29 : f32 to vector<256x1xf32>
    %70 = arith.divf %68, %69 : vector<256x1xf32>
    %71 = vector.broadcast %70 : vector<256x1xf32> to vector<256x32xf32>
    %72 = arith.subf %66, %71 : vector<256x32xf32>
    %73 = arith.mulf %72, %72 : vector<256x32xf32>
    %cst_30 = arith.constant dense<0.000000e+00> : vector<256xf32>
    %74 = vector.multi_reduction <add>, %73, %cst_30 [1] : vector<256x32xf32> to vector<256xf32>
    %75 = vector.shape_cast %74 : vector<256xf32> to vector<256x1xf32>
    %cst_31 = arith.constant 3.200000e+01 : f32
    %76 = vector.broadcast %cst_31 : f32 to vector<256x1xf32>
    %77 = arith.divf %75, %76 : vector<256x1xf32>
    %78 = vector.broadcast %70 : vector<256x1xf32> to vector<256x32xf32>
    %79 = arith.subf %66, %78 : vector<256x32xf32>
    %cst_32 = arith.constant 9.99999974E-6 : f32
    %80 = vector.broadcast %cst_32 : f32 to vector<256x1xf32>
    %81 = arith.addf %77, %80 : vector<256x1xf32>
    %82 = math.rsqrt %81 : vector<256x1xf32>
    %83 = vector.broadcast %82 : vector<256x1xf32> to vector<256x32xf32>
    %84 = arith.mulf %79, %83 : vector<256x32xf32>
    %c0_33 = arith.constant 0 : index
    %c0_34 = arith.constant 0 : index
    %85 = vector.load %arg9[%c0_33, %c0_34] : memref<1x32xf32, #tpu.memory_space<vmem>>, vector<1x32xf32>
    %86 = vector.broadcast %85 : vector<1x32xf32> to vector<256x32xf32>
    %87 = arith.mulf %84, %86 : vector<256x32xf32>
    %c0_35 = arith.constant 0 : index
    %c0_36 = arith.constant 0 : index
    %88 = vector.load %arg10[%c0_35, %c0_36] : memref<1x32xf32, #tpu.memory_space<vmem>>, vector<1x32xf32>
    %89 = vector.broadcast %88 : vector<1x32xf32> to vector<256x32xf32>
    %90 = arith.addf %87, %89 : vector<256x32xf32>
    %91 = vector.shape_cast %90 : vector<256x32xf32> to vector<1x256x32xf32>
    %cst_37 = arith.constant dense<0.000000e+00> : vector<1x32xf32>
    %92 = vector.multi_reduction <add>, %91, %cst_37 [1] : vector<1x256x32xf32> to vector<1x32xf32>
    %cst_38 = arith.constant 2.560000e+02 : f32
    %93 = vector.broadcast %cst_38 : f32 to vector<1x32xf32>
    %94 = arith.divf %92, %93 : vector<1x32xf32>
    %c0_39 = arith.constant 0 : index
    %c0_40 = arith.constant 0 : index
    %c0_41 = arith.constant 0 : index
    %95 = vector.load %arg11[%c0_39, %c0_40, %c0_41] : memref<1x1x32xf32, #tpu.memory_space<vmem>>, vector<1x1x32xf32>
    %96 = vector.shape_cast %95 : vector<1x1x32xf32> to vector<1x32xf32>
    %97 = vector.shape_cast %94 : vector<1x32xf32> to vector<1x1x32xf32>
    tpu.vector_store %arg11[%c0_39, %c0_40, %c0_41], %97 {strides = array<i32>} : memref<1x1x32xf32, #tpu.memory_space<vmem>>, vector<1x1x32xf32>,
    return
  }
  func.func @transform_0(%arg0: i32) -> (i32, i32, i32) {
    %c0_i32 = arith.constant 0 : i32
    %c0_i32_0 = arith.constant 0 : i32
    %c0_i32_1 = arith.constant 0 : i32
    return %arg0, %c0_i32, %c0_i32_0 : i32, i32, i32
  }
  func.func @transform_1(%arg0: i32) -> (i32, i32, i32) {
    %c0_i32 = arith.constant 0 : i32
    %c0_i32_0 = arith.constant 0 : i32
    %c0_i32_1 = arith.constant 0 : i32
    return %arg0, %c0_i32, %c0_i32_0 : i32, i32, i32
  }
  func.func @transform_2(%arg0: i32) -> (i32, i32) {
    %c0_i32 = arith.constant 0 : i32
    %c0_i32_0 = arith.constant 0 : i32
    %c0_i32_1 = arith.constant 0 : i32
    return %c0_i32, %c0_i32_0 : i32, i32
  }
  func.func @transform_3(%arg0: i32) -> (i32, i32) {
    %c0_i32 = arith.constant 0 : i32
    %c0_i32_0 = arith.constant 0 : i32
    %c0_i32_1 = arith.constant 0 : i32
    return %c0_i32, %c0_i32_0 : i32, i32
  }
  func.func @transform_4(%arg0: i32) -> (i32, i32) {
    %c0_i32 = arith.constant 0 : i32
    %c0_i32_0 = arith.constant 0 : i32
    %c0_i32_1 = arith.constant 0 : i32
    return %c0_i32, %c0_i32_0 : i32, i32
  }
  func.func @transform_5(%arg0: i32) -> (i32, i32) {
    %c0_i32 = arith.constant 0 : i32
    %c0_i32_0 = arith.constant 0 : i32
    %c0_i32_1 = arith.constant 0 : i32
    return %c0_i32, %c0_i32_0 : i32, i32
  }
  func.func @transform_6(%arg0: i32) -> (i32, i32, i32) {
    %c0_i32 = arith.constant 0 : i32
    %c0_i32_0 = arith.constant 0 : i32
    %c0_i32_1 = arith.constant 0 : i32
    %c0_i32_2 = arith.constant 0 : i32
    return %c0_i32, %c0_i32_0, %c0_i32_1 : i32, i32, i32
  }
  func.func @transform_7(%arg0: i32) -> (i32, i32, i32) {
    %c0_i32 = arith.constant 0 : i32
    %c0_i32_0 = arith.constant 0 : i32
    %c0_i32_1 = arith.constant 0 : i32
    %c0_i32_2 = arith.constant 0 : i32
    return %c0_i32, %c0_i32_0, %c0_i32_1 : i32, i32, i32
  }
  func.func @transform_8(%arg0: i32) -> (i32, i32) {
    %c0_i32 = arith.constant 0 : i32
    %c0_i32_0 = arith.constant 0 : i32
    %c0_i32_1 = arith.constant 0 : i32
    return %c0_i32, %c0_i32_0 : i32, i32
  }
  func.func @transform_9(%arg0: i32) -> (i32, i32) {
    %c0_i32 = arith.constant 0 : i32
    %c0_i32_0 = arith.constant 0 : i32
    %c0_i32_1 = arith.constant 0 : i32
    return %c0_i32, %c0_i32_0 : i32, i32
  }
  func.func @transform_10(%arg0: i32) -> (i32, i32, i32) {
    %c0_i32 = arith.constant 0 : i32
    %c0_i32_0 = arith.constant 0 : i32
    %c0_i32_1 = arith.constant 0 : i32
    return %arg0, %c0_i32, %c0_i32_0 : i32, i32, i32
  }
}

</mosaic_0001>

<bundles_post_ra>
// kernel: tpu_custom_call.1
= control target key start
LH: loop header
LB: loop body
LE: loop exit
PB: predicated region body
PF: predicated region fallthrough
CT: control target
= control target key end

     0   :  { %15 = vsyncpa [#allocation3], 0  ;;  %s15764_s0 = inlined_call_operand.vmem [shape: bf16[2,256,36], index: 0, kind: input, shape index: {}]   ;;  %s15765_s1 = inlined_call_operand.vmem [shape: f32[2,256,4], index: 1, kind: input, shape index: {}]   ;;  %s15766_s2 = inlined_call_operand.vmem [shape: bf16[36,4], index: 2, kind: input, shape index: {}]   ;;  %s15767_s3 = inlined_call_operand.vmem [shape: f32[1,4], index: 3, kind: input, shape index: {}]   ;;  %s15768_s4 = inlined_call_operand.vmem [shape: f32[4,4], index: 4, kind: input, shape index: {}]   ;;  %s15769_s5 = inlined_call_operand.vmem [shape: f32[1,4], index: 5, kind: input, shape index: {}]   ;;  %s15770_s6 = inlined_call_operand.vmem [shape: f32[4,4,4], index: 6, kind: input, shape index: {}]   ;;  %s15771_s7 = inlined_call_operand.vmem [shape: f32[4,4,32], index: 7, kind: input, shape index: {}]   ;;  %s15772_s8 = inlined_call_operand.vmem [shape: f32[1,32], index: 8, kind: input, shape index: {}]   ;;  %s15773_s9 = inlined_call_operand.vmem [shape: f32[1,32], index: 9, kind: input, shape index: {}]   ;;  %s15774_s10 = inlined_call_operand.hbm [shape: f32[2,1,32], index: 10, kind: output, shape index: {}]  }
   0x1   :  { %17 = vsyncpa [#allocation3 + $0x1], 0  ;;  %s11178_s13 = smov 0   ;;  %s11180_s14 = smov 0  }
   0x2   :  { %s11182_s15 = smov 0   ;;  %s11184_s16 = smov 0  }
   0x3 LB: > { %s11199_s17 = sadd.s32 4294967295, %s11118_s16   ;;  %s8328_s18 = sadd.s32 4294967294, %s11118_s16   ;;  %s11118_s16 = sphi %s11184_s16, %s17354_s16   ;;  %s11114_s15 = sphi %s11182_s15, %s17353_s15   ;;  %s11110_s14 = sphi %s11180_s14, %s17352_s14   ;;  %s11106_s13 = sphi %s11178_s13, %s17351_s13  }
   0x4   : > { %s11203_s19 = sadd.s32 1, %s11118_s16   ;;  %s250_s20 = sadd.s32 1, %s11114_s15 }
   0x5   : > { %s247_s21 = ssub.s32 %s11118_s16, %s11203_s19  ;;  %p260_p0 = scmp.ne.s32.totalorder %s11114_s15, %s11110_s14 }
   0x6   : > { %p248_p1 = scmp.eq.s32.totalorder %s247_s21, 0  ;;  %p261_p2 = scmp.eq.s32.totalorder %s11199_s17, 1 }
   0x7   : > { %p266_p3 = scmp.ne.s32.totalorder %s11110_s14, %s11106_s13  ;;  %p267_p4 = scmp.eq.s32.totalorder %s8328_s18, 1 }
   0x8   : > { %s11214_s22 = scalar_select %p248_p1, %s11114_s15, %s250_s20  }
   0x9   : > { %p11216_p5 = por %p261_p2, %p260_p0  ;;  %p11220_p6 = por %p267_p4, %p266_p3 }
   0xa   : > { %p8331_p7 = scmp.ge.s32.totalorder %s11118_s16, 1  ;;  %p325_p8 = scmp.lt.s32.totalorder %s11118_s16, 3 }
   0xc   : > { %p326_p9 = pnand %p8331_p7, %p325_p8 }
   0xe   : > { %329 = sbr.rel (%p326_p9) target bundleno = 2436 (0x984), region = 60 }
  0x15   : > { %v10077_v0 = vld [vmem:[%s15766_s2] sm:$0xff]   ;;  %v10078_v1 = vld [vmem:[%s15766_s2 + $0x8] sm:$0xff]   ;;  %p367_p10 = scmp.lt.s32.totalorder %s11199_s17, 1  ;;  %v10079_v2 = vld [vmem:[%s15766_s2 + $0x10] ss:$0 sps:$4 sm:$0x33]  }
  0x16   : > { %9161 = vmatprep.subr.bf16.mxu0 %v10077_v0  ;;  %vm566_vm0 = vcmask 1041408   ;;  %vm517_vm1 = vcmask 293888   ;;  %v923_v20 = vld [vmem:[%s15768_s4] sm:$0xf]  ;;  %vm1028_vm2 = vcmask 1043456   ;;  %vm931_vm3 = vcmask 31744  }
  0x17   : > { %9162 = vmatpush3.bf16.msra.mxu0 %v10077_v0  ;;  %s11234_s29 = scalar_select %p367_p10, %s11199_s17, 1  ;;  %v568_v4 = vsel %vm566_vm0, %v10079_v2, 0  ;;  %9199 = vmatprep.subr.msk.mxu1 %vm1028_vm2, %v923_v20  ;;  %v11285_v21 = vld [vmem:[%s15767_s3] ss:$0 sm:$0xff]  ;;  %vm7679_vm4 = vcmask 261120   ;;  %vm8246_vm5 = vcmask 253952  }
  0x18   : > { %9163 = vmatprep.subr.bf16.mxu0 %v10078_v1  ;;  %9200 = vmatpush3.msk.msra.mxu1 %vm1028_vm2, %v923_v20  ;;  %s365_s20 = sand.u32 1, %s11110_s14  }
  0x19   : > { %s8843_s12 = sshll.u32 %s11234_s29, 7  ;;  %s8844_s27 = sshll.u32 %s11234_s29, 8 }
  0x1a   : > { %s11243_s21 = scalar_lea.vmem %s15764_s0, %s8843_s12  ;;  %s11378_s18 = scalar_lea.vmem %s15765_s1, %s8844_s27 }
  0x1b   : > { %9164 = vmatpush3.bf16.msra.mxu0 %v10078_v1  ;;  %v10080_v3 = vld [vmem:[%s11243_s21] sm:$0xff]   ;;  %v10081_v5 = vld [vmem:[%s11243_s21 + $0x8] sm:$0xff]   ;;  %v10082_v6 = vld [vmem:[%s11243_s21 + $0x10] sm:$0xff]   ;;  %s366_s25 = scalar_lea.vmem [#allocation2], %s365_s20  ;;  %s8249_s11 = scalar_lea.sflag [#allocation3], %s365_s20 }
  0x1c   : > { %10035 = vmatprep.subr.msk.bf16.mxu0 %vm566_vm0, %v10079_v2  ;;  %9167 = vmatprep.mubr.msk.bf16.mxu0 %vm517_vm1, %v10080_v3  ;;  %v10083_v7 = vld [vmem:[%s11243_s21 + $0x18] sm:$0xff]   ;;  %v10084_v8 = vld [vmem:[%s11243_s21 + $0x20] sm:$0xff]   ;;  %v10085_v9 = vld [vmem:[%s11243_s21 + $0x28] sm:$0xff]   ;;  %s8261_s26 = sshll.u32 %s366_s25, 4  ;;  %s15724_s26 = int_to_ptr.vmem [resolvable:$true] %s8261_s26 }
  0x1d   : > { %v10086_v10 = vld [vmem:[%s11243_s21 + $0x30] sm:$0xff]   ;;  %v10087_v11 = vld [vmem:[%s11243_s21 + $0x38] sm:$0xff]   ;;  %v10088_v12 = vld [vmem:[%s11243_s21 + $0x40] sm:$0xff]   ;;  %s11056_s12 = scalar_lea.vmem %s15724_s26, 16 }
  0x1e   : > { %v10089_v13 = vld [vmem:[%s11243_s21 + $0x48] sm:$0xff]   ;;  %v10090_v14 = vld [vmem:[%s11243_s21 + $0x50] sm:$0xff]   ;;  %v10091_v15 = vld [vmem:[%s11243_s21 + $0x58] sm:$0xff]   ;;  %p11057_p11 = scmp.ne.s32.totalorder %s15724_s26, %s11056_s12 }
  0x1f   : > { %9166 = vmatpush3.bf16.msra.mxu0 %v568_v4  ;;  %v10092_v16 = vld [vmem:[%s11243_s21 + $0x60] sm:$0xff]   ;;  %v10093_v17 = vld [vmem:[%s11243_s21 + $0x68] sm:$0xff]   ;;  %v10094_v18 = vld [vmem:[%s11243_s21 + $0x70] sm:$0xff]  }
  0x20   : > { %v10095_v19 = vld [vmem:[%s11243_s21 + $0x78] sm:$0xff]   ;;  %s8840_s21 = sshll.u32 %s11199_s17, 4  ;;  %p11058_p12 = pnand %p11057_p11, %p11216_p5 }
  0x21   : > { %s15722_s30 = scalar_lea.hbm %s15774_s10, %s8840_s21  ;;  %s11122_s17 = smov [#allocation2]  }
  0x22   : > { %9168 = vmatmul.mubr.msk.bf16.vlgmr.msra.gmra.mrb[0].mxu0 %vm517_vm1, %v10081_v5  ;;  %p11059_p13 = pneg %p11058_p12 }
  0x23   : > { %9171 = vmatprep.mubr.msk.bf16.mxu0 %vm517_vm1, %v10082_v6 }
  0x2a   : > { %9172 = vmatmul.mubr.msk.bf16.gmra.mrb[4].mxu0 %vm517_vm1, %v10083_v7 }
  0x2b   : > { %9175 = vmatprep.mubr.msk.bf16.mxu0 %vm517_vm1, %v10084_v8 }
  0x32   : > { %9176 = vmatmul.mubr.msk.bf16.gmra.mrb[8].mxu0 %vm517_vm1, %v10085_v9 }
  0x33   : > { %9179 = vmatprep.mubr.msk.bf16.mxu0 %vm517_vm1, %v10086_v10 }
  0x3a   : > { %9180 = vmatmul.mubr.msk.bf16.gmra.mrb[12].mxu0 %vm517_vm1, %v10087_v11 }
  0x3b   : > { %9183 = vmatprep.mubr.msk.bf16.mxu0 %vm517_vm1, %v10088_v12 }
  0x42   : > { %9184 = vmatmul.mubr.msk.bf16.gmra.mrb[16].mxu0 %vm517_vm1, %v10089_v13 }
  0x43   : > { %9187 = vmatprep.mubr.msk.bf16.mxu0 %vm517_vm1, %v10090_v14 }
  0x4a   : > { %9188 = vmatmul.mubr.msk.bf16.gmra.mrb[20].mxu0 %vm517_vm1, %v10091_v15 }
  0x4b   : > { %9191 = vmatprep.mubr.msk.bf16.mxu0 %vm517_vm1, %v10092_v16 }
  0x52   : > { %9192 = vmatmul.mubr.msk.bf16.gmra.mrb[24].mxu0 %vm517_vm1, %v10093_v17 }
  0x53   : > { %9195 = vmatprep.mubr.msk.bf16.mxu0 %vm517_vm1, %v10094_v18 }
  0x5a   : > { %9196 = vmatmul.mubr.msk.bf16.gmra.mrb[28].mxu0 %vm517_vm1, %v10095_v19 }
  0xf5   : > { %v9169_v22 = vpop.f32.mrb[0].mxu0 }
  0xf6   : > { %v613_v23 = vadd.f32 %v9169_v22, %v11285_v21  ;;  %v604_v24 = vpop.f32.mrb[1].mxu0 }
  0xf7   : > { %v605_v25 = vadd.f32 %v11285_v21, %v604_v24  ;;  %v9170_v26 = vpop.f32.mrb[2].mxu0 }
  0xf8   : > { %v8374_v27 = vmul.f32 -1.442695, %v613_v23  ;;  %v616_v28 = vadd.f32 %v9170_v26, %v11285_v21  ;;  %v607_v29 = vpop.f32.mrb[3].mxu0 }
  0xf9   : > { %v8372_v30 = vmul.f32 -1.442695, %v605_v25  ;;  %v608_v31 = vadd.f32 %v11285_v21, %v607_v29 }
  0xfa   : > { %10096 = vpow2.f32 %v8374_v27  ;;  %v8375_v32 = vmul.f32 -1.442695, %v616_v28 }
  0xfb   : > { %10098 = vpow2.f32 %v8372_v30  ;;  %v8373_v33 = vmul.f32 -1.442695, %v608_v31 }
  0xfc   : > { %10100 = vpow2.f32 %v8375_v32 }
  0xfd   : > { %10102 = vpow2.f32 %v8373_v33  ;;  %v9173_v34 = vpop.f32.mrb[4].mxu0 }
  0xfe   : > { %v629_v35 = vadd.f32 %v9173_v34, %v11285_v21  ;;  %v620_v36 = vpop.f32.mrb[5].mxu0 }
  0xff   : > { %v621_v37 = vadd.f32 %v11285_v21, %v620_v36  ;;  %v9174_v38 = vpop.f32.mrb[6].mxu0 }
 0x100   : > { %v8378_v39 = vmul.f32 -1.442695, %v629_v35  ;;  %v632_v40 = vadd.f32 %v9174_v38, %v11285_v21  ;;  %v623_v41 = vpop.f32.mrb[7].mxu0 }
 0x101   : > { %v8376_v42 = vmul.f32 -1.442695, %v621_v37  ;;  %v624_v43 = vadd.f32 %v11285_v21, %v623_v41 }
 0x102   : > { %10104 = vpow2.f32 %v8378_v39  ;;  %v8379_v44 = vmul.f32 -1.442695, %v632_v40 }
 0x103   : > { %10106 = vpow2.f32 %v8376_v42  ;;  %v8377_v45 = vmul.f32 -1.442695, %v624_v43 }
 0x104   : > { %v10097_v46 = vpop.eup %10096  ;;  %10108 = vpow2.f32 %v8379_v44 }
 0x105   : > { %v10099_v47 = vpop.eup %10098  ;;  %v829_v48 = vadd.f32 1.0, %v10097_v46  ;;  %10110 = vpow2.f32 %v8377_v45  ;;  %v9177_v49 = vpop.f32.mrb[8].mxu0 }
 0x106   : > { %v10101_v50 = vpop.eup %10100  ;;  %v827_v51 = vadd.f32 1.0, %v10099_v47  ;;  %v645_v52 = vadd.f32 %v9177_v49, %v11285_v21  ;;  %v636_v53 = vpop.f32.mrb[9].mxu0 }
 0x107   : > { %v10103_v54 = vpop.eup %10102  ;;  %10112 = vrcp.f32 %v829_v48  ;;  %v830_v55 = vadd.f32 1.0, %v10101_v50  ;;  %v637_v56 = vadd.f32 %v11285_v21, %v636_v53  ;;  %v9178_v57 = vpop.f32.mrb[10].mxu0 }
 0x108   : > { %10114 = vrcp.f32 %v827_v51  ;;  %v828_v58 = vadd.f32 1.0, %v10103_v54  ;;  %v8382_v59 = vmul.f32 -1.442695, %v645_v52  ;;  %v648_v60 = vadd.f32 %v9178_v57, %v11285_v21  ;;  %v639_v61 = vpop.f32.mrb[11].mxu0 }
 0x109   : > { %10116 = vrcp.f32 %v830_v55  ;;  %v8380_v62 = vmul.f32 -1.442695, %v637_v56  ;;  %v640_v63 = vadd.f32 %v11285_v21, %v639_v61 }
 0x10a   : > { %10118 = vrcp.f32 %v828_v58  ;;  %v8383_v0 = vmul.f32 -1.442695, %v648_v60 }
 0x10b   : > { %10120 = vpow2.f32 %v8382_v59  ;;  %v8381_v1 = vmul.f32 -1.442695, %v640_v63 }
 0x10c   : > { %v10105_v2 = vpop.eup %10104  ;;  %10122 = vpow2.f32 %v8380_v62 }
 0x10d   : > { %v10107_v3 = vpop.eup %10106  ;;  %v833_v4 = vadd.f32 1.0, %v10105_v2  ;;  %10124 = vpow2.f32 %v8383_v0  ;;  %v9181_v5 = vpop.f32.mrb[12].mxu0 }
 0x10e   : > { %v10109_v6 = vpop.eup %10108  ;;  %v831_v7 = vadd.f32 1.0, %v10107_v3  ;;  %10126 = vpow2.f32 %v8381_v1  ;;  %v661_v8 = vadd.f32 %v9181_v5, %v11285_v21  ;;  %v652_v9 = vpop.f32.mrb[13].mxu0 }
 0x10f   : > { %v10111_v10 = vpop.eup %10110  ;;  %10128 = vrcp.f32 %v833_v4  ;;  %v834_v11 = vadd.f32 1.0, %v10109_v6  ;;  %v653_v12 = vadd.f32 %v11285_v21, %v652_v9  ;;  %v9182_v13 = vpop.f32.mrb[14].mxu0 }
 0x110   : > { %10130 = vrcp.f32 %v831_v7  ;;  %v832_v14 = vadd.f32 1.0, %v10111_v10  ;;  %v8386_v15 = vmul.f32 -1.442695, %v661_v8  ;;  %v664_v16 = vadd.f32 %v9182_v13, %v11285_v21  ;;  %v655_v17 = vpop.f32.mrb[15].mxu0 }
 0x111   : > { %v10113_v18 = vpop.eup %10112  ;;  %10132 = vrcp.f32 %v834_v11  ;;  %v8384_v19 = vmul.f32 -1.442695, %v653_v12  ;;  %v656_v20 = vadd.f32 %v11285_v21, %v655_v17 }
 0x112   : > { %v10115_v22 = vpop.eup %10114  ;;  %10134 = vrcp.f32 %v832_v14  ;;  %v8387_v23 = vmul.f32 -1.442695, %v664_v16 }
 0x113   : > { %v10117_v24 = vpop.eup %10116  ;;  %10136 = vpow2.f32 %v8386_v15  ;;  %v8385_v25 = vmul.f32 -1.442695, %v656_v20  ;;  %9201 = vmatprep.mubr.msk.f32.mxu1 %vm931_vm3, %v10115_v22 }
 0x114   : > { %v10119_v26 = vpop.eup %10118  ;;  %10138 = vpow2.f32 %v8384_v19 }
 0x115   : > { %v10121_v27 = vpop.eup %10120  ;;  %10140 = vpow2.f32 %v8387_v23  ;;  %v9185_v28 = vpop.f32.mrb[16].mxu0  ;;  %9202 = vmatmul.mubr.msk.f32.vlgmr.msra.gmra.mrb[0].mxu1 %vm931_vm3, %v10119_v26 }
 0x116   : > { %v10123_v29 = vpop.eup %10122  ;;  %v837_v30 = vadd.f32 1.0, %v10121_v27  ;;  %10142 = vpow2.f32 %v8385_v25  ;;  %v677_v31 = vadd.f32 %v9185_v28, %v11285_v21  ;;  %v668_v32 = vpop.f32.mrb[17].mxu0  ;;  %9204 = vmatprep.mubr.msk.f32.mxu1 %vm931_vm3, %v10113_v18 }
 0x117   : > { %v10125_v33 = vpop.eup %10124  ;;  %v835_v34 = vadd.f32 1.0, %v10123_v29  ;;  %v669_v35 = vadd.f32 %v11285_v21, %v668_v32  ;;  %v9186_v36 = vpop.f32.mrb[18].mxu0 }
 0x118   : > { %v10127_v37 = vpop.eup %10126  ;;  %10144 = vrcp.f32 %v837_v30  ;;  %v838_v38 = vadd.f32 1.0, %v10125_v33  ;;  %v8390_v39 = vmul.f32 -1.442695, %v677_v31  ;;  %v680_v40 = vadd.f32 %v9186_v36, %v11285_v21  ;;  %v671_v41 = vpop.f32.mrb[19].mxu0 }
 0x119   : > { %v10129_v42 = vpop.eup %10128  ;;  %10146 = vrcp.f32 %v835_v34  ;;  %v836_v43 = vadd.f32 1.0, %v10127_v37  ;;  %v8388_v44 = vmul.f32 -1.442695, %v669_v35  ;;  %v672_v45 = vadd.f32 %v11285_v21, %v671_v41  ;;  %9205 = vmatmul.mubr.msk.f32.gmra.mrb[2].mxu1 %vm931_vm3, %v10117_v24 }
 0x11a   : > { %v10131_v46 = vpop.eup %10130  ;;  %10148 = vrcp.f32 %v838_v38  ;;  %v8391_v47 = vmul.f32 -1.442695, %v680_v40 }
 0x11b   : > { %v10133_v48 = vpop.eup %10132  ;;  %10150 = vrcp.f32 %v836_v43  ;;  %v8389_v49 = vmul.f32 -1.442695, %v672_v45  ;;  %9207 = vmatprep.mubr.msk.f32.mxu1 %vm931_vm3, %v10131_v46 }
 0x11c   : > { %v10135_v50 = vpop.eup %10134  ;;  %10152 = vpow2.f32 %v8390_v39 }
 0x11d   : > { %v10137_v51 = vpop.eup %10136  ;;  %10154 = vpow2.f32 %v8388_v44  ;;  %v9189_v52 = vpop.f32.mrb[20].mxu0  ;;  %9208 = vmatmul.mubr.msk.f32.gmra.mrb[4].mxu1 %vm931_vm3, %v10135_v50 }
 0x11e   : > { %v10139_v53 = vpop.eup %10138  ;;  %v841_v54 = vadd.f32 1.0, %v10137_v51  ;;  %10156 = vpow2.f32 %v8391_v47  ;;  %v693_v55 = vadd.f32 %v9189_v52, %v11285_v21  ;;  %v684_v56 = vpop.f32.mrb[21].mxu0  ;;  %9210 = vmatprep.mubr.msk.f32.mxu1 %vm931_vm3, %v10129_v42 }
 0x11f   : > { %v10141_v57 = vpop.eup %10140  ;;  %v839_v58 = vadd.f32 1.0, %v10139_v53  ;;  %10158 = vpow2.f32 %v8389_v49  ;;  %v685_v59 = vadd.f32 %v11285_v21, %v684_v56  ;;  %v9190_v60 = vpop.f32.mrb[22].mxu0 }
 0x120   : > { %v10143_v61 = vpop.eup %10142  ;;  %10160 = vrcp.f32 %v841_v54  ;;  %v842_v62 = vadd.f32 1.0, %v10141_v57  ;;  %v8394_v63 = vmul.f32 -1.442695, %v693_v55  ;;  %v696_v0 = vadd.f32 %v9190_v60, %v11285_v21  ;;  %v687_v1 = vpop.f32.mrb[23].mxu0 }
 0x121   : > { %10162 = vrcp.f32 %v839_v58  ;;  %v840_v2 = vadd.f32 1.0, %v10143_v61  ;;  %v8392_v3 = vmul.f32 -1.442695, %v685_v59  ;;  %v688_v4 = vadd.f32 %v11285_v21, %v687_v1  ;;  %9211 = vmatmul.mubr.msk.f32.gmra.mrb[6].mxu1 %vm931_vm3, %v10133_v48 }
 0x122   : > { %v10145_v5 = vpop.eup %10144  ;;  %10164 = vrcp.f32 %v842_v62  ;;  %v8395_v6 = vmul.f32 -1.442695, %v696_v0 }
 0x123   : > { %v10147_v7 = vpop.eup %10146  ;;  %10166 = vrcp.f32 %v840_v2  ;;  %v8393_v8 = vmul.f32 -1.442695, %v688_v4 }
 0x124   : > { %v10149_v9 = vpop.eup %10148  ;;  %10168 = vpow2.f32 %v8394_v63  ;;  %9213 = vmatprep.mubr.msk.f32.mxu1 %vm931_vm3, %v10147_v7 }
 0x125   : > { %v10151_v10 = vpop.eup %10150  ;;  %10170 = vpow2.f32 %v8392_v3  ;;  %v9193_v11 = vpop.f32.mrb[24].mxu0 }
 0x126   : > { %v10153_v12 = vpop.eup %10152  ;;  %10172 = vpow2.f32 %v8395_v6  ;;  %v709_v13 = vadd.f32 %v9193_v11, %v11285_v21  ;;  %9214 = vmatmul.mubr.msk.f32.gmra.mrb[8].mxu1 %vm931_vm3, %v10151_v10  ;;  %v700_v14 = vpop.f32.mrb[25].mxu0 }
 0x127   : > { %v10155_v15 = vpop.eup %10154  ;;  %v845_v16 = vadd.f32 1.0, %v10153_v12  ;;  %10174 = vpow2.f32 %v8393_v8  ;;  %v701_v17 = vadd.f32 %v11285_v21, %v700_v14  ;;  %v9194_v18 = vpop.f32.mrb[26].mxu0  ;;  %9216 = vmatprep.mubr.msk.f32.mxu1 %vm931_vm3, %v10145_v5 }
 0x128   : > { %v10157_v19 = vpop.eup %10156  ;;  %v843_v20 = vadd.f32 1.0, %v10155_v15  ;;  %v712_v22 = vadd.f32 %v9194_v18, %v11285_v21  ;;  %v703_v23 = vpop.f32.mrb[27].mxu0  ;;  %v8398_v26 = vmul.f32 -1.442695, %v709_v13 }
 0x129   : > { %v10159_v24 = vpop.eup %10158  ;;  %10176 = vrcp.f32 %v845_v16  ;;  %v846_v25 = vadd.f32 1.0, %v10157_v19  ;;  %v704_v27 = vadd.f32 %v11285_v21, %v703_v23  ;;  %v8396_v30 = vmul.f32 -1.442695, %v701_v17 }
 0x12a   : > { %v10161_v28 = vpop.eup %10160  ;;  %10178 = vrcp.f32 %v843_v20  ;;  %v844_v29 = vadd.f32 1.0, %v10159_v24  ;;  %9217 = vmatmul.mubr.msk.f32.gmra.mrb[10].mxu1 %vm931_vm3, %v10149_v9  ;;  %v8399_v32 = vmul.f32 -1.442695, %v712_v22  ;;  %v1417_v24 = vld [vmem:[%s15770_s6] sm:$0xf] }
 0x12b   : > { %v10163_v31 = vpop.eup %10162  ;;  %10180 = vrcp.f32 %v846_v25  ;;  %v8397_v34 = vmul.f32 -1.442695, %v704_v27  ;;  %v1418_v25 = vld [vmem:[%s15770_s6 + $0x4] sm:$0xf]  ;;  %9249 = vmatprep.subr.msk.mxu1 %vm1028_vm2, %v1417_v24  ;;  %v1420_v27 = vld [vmem:[%s15770_s6 + $0xc] sm:$0xf] }
 0x12c   : > { %v10165_v33 = vpop.eup %10164  ;;  %10182 = vrcp.f32 %v844_v29  ;;  %9219 = vmatprep.mubr.msk.f32.mxu1 %vm931_vm3, %v10163_v31  ;;  %9299 = vmatprep.subr.msk.mxu0 %vm1028_vm2, %v1418_v25 }
 0x12d   : > { %v10167_v35 = vpop.eup %10166  ;;  %10184 = vpow2.f32 %v8398_v26  ;;  %v9197_v36 = vpop.f32.mrb[28].mxu0  ;;  %9250 = vmatpush3.msk.msra.mxu1 %vm1028_vm2, %v1417_v24  ;;  %9300 = vmatpush3.msk.msra.mxu0 %vm1028_vm2, %v1418_v25  ;;  %v1419_v26 = vld [vmem:[%s15770_s6 + $0x8] sm:$0xf] }
 0x12e   : > { %v10169_v37 = vpop.eup %10168  ;;  %10186 = vpow2.f32 %v8396_v30  ;;  %v725_v38 = vadd.f32 %v9197_v36, %v11285_v21  ;;  %9220 = vmatmul.mubr.msk.f32.gmra.mrb[12].mxu1 %vm931_vm3, %v10167_v35  ;;  %v716_v39 = vpop.f32.mrb[29].mxu0  ;;  %9349 = vmatprep.subr.msk.mxu1 %vm1028_vm2, %v1419_v26  ;;  %v1289_v35 = vld [vmem:[%s11378_s18] sm:$0xff] }
 0x12f   : > { %v10171_v40 = vpop.eup %10170  ;;  %v849_v41 = vadd.f32 1.0, %v10169_v37  ;;  %10188 = vpow2.f32 %v8399_v32  ;;  %v717_v42 = vadd.f32 %v11285_v21, %v716_v39  ;;  %v9198_v43 = vpop.f32.mrb[30].mxu0  ;;  %9222 = vmatprep.mubr.msk.f32.mxu1 %vm931_vm3, %v10161_v28  ;;  %9399 = vmatprep.subr.msk.mxu0 %vm1028_vm2, %v1420_v27  ;;  %v11373_v28 = vld [vmem:[%s15769_s5] ss:$0 sm:$0xff]  ;;  %v1290_v32 = vld [vmem:[%s11378_s18 + $0x8] sm:$0xff] }
 0x130   : > { %v10173_v44 = vpop.eup %10172  ;;  %v847_v45 = vadd.f32 1.0, %v10171_v40  ;;  %10190 = vpow2.f32 %v8397_v34  ;;  %v728_v46 = vadd.f32 %v9198_v43, %v11285_v21  ;;  %v719_v47 = vpop.f32.mrb[31].mxu0  ;;  %v8402_v50 = vmul.f32 -1.442695, %v725_v38 }
 0x131   : > { %v10175_v48 = vpop.eup %10174  ;;  %10192 = vrcp.f32 %v849_v41  ;;  %v850_v49 = vadd.f32 1.0, %v10173_v44  ;;  %v720_v51 = vadd.f32 %v11285_v21, %v719_v47  ;;  %v8400_v53 = vmul.f32 -1.442695, %v717_v42  ;;  %v1292_v42 = vld [vmem:[%s11378_s18 + $0x18] sm:$0xff] }
 0x132   : > { %10194 = vrcp.f32 %v847_v45  ;;  %v848_v52 = vadd.f32 1.0, %v10175_v48  ;;  %9223 = vmatmul.mubr.msk.f32.gmra.mrb[14].mxu1 %vm931_vm3, %v10165_v33  ;;  %v8403_v55 = vmul.f32 -1.442695, %v728_v46  ;;  %v1291_v45 = vld [vmem:[%s11378_s18 + $0x10] sm:$0xff] }
 0x133   : > { %v10177_v54 = vpop.eup %10176  ;;  %10196 = vrcp.f32 %v850_v49  ;;  %v8401_v57 = vmul.f32 -1.442695, %v720_v51 }
 0x134   : > { %v10179_v56 = vpop.eup %10178  ;;  %10198 = vrcp.f32 %v848_v52  ;;  %v1294_v52 = vld [vmem:[%s11378_s18 + $0x28] sm:$0xff] }
 0x135   : > { %v10181_v58 = vpop.eup %10180  ;;  %10200 = vpow2.f32 %v8402_v50  ;;  %9225 = vmatprep.mubr.msk.f32.mxu1 %vm931_vm3, %v10179_v56 }
 0x136   : > { %v10183_v59 = vpop.eup %10182  ;;  %10202 = vpow2.f32 %v8400_v53 }
 0x137   : > { %v10185_v60 = vpop.eup %10184  ;;  %10204 = vpow2.f32 %v8403_v55  ;;  %9226 = vmatmul.mubr.msk.f32.gmra.mrb[16].mxu1 %vm931_vm3, %v10183_v59  ;;  %v1293_v55 = vld [vmem:[%s11378_s18 + $0x20] sm:$0xff] }
 0x138   : > { %v10187_v21 = vpop.eup %10186  ;;  %v853_v61 = vadd.f32 1.0, %v10185_v60  ;;  %10206 = vpow2.f32 %v8401_v57  ;;  %9228 = vmatprep.mubr.msk.f32.mxu1 %vm931_vm3, %v10177_v54 }
 0x139   : > { %v10189_v62 = vpop.eup %10188  ;;  %v851_v63 = vadd.f32 1.0, %v10187_v21 }
 0x13a   : > { %v10191_v0 = vpop.eup %10190  ;;  %v854_v2 = vadd.f32 1.0, %v10189_v62 }
 0x13b   : > { %v10193_v1 = vpop.eup %10192  ;;  %10208 = vrcp.f32 %v851_v63  ;;  %v852_v3 = vadd.f32 1.0, %v10191_v0  ;;  %9229 = vmatmul.mubr.msk.f32.gmra.mrb[18].mxu1 %vm931_vm3, %v10181_v58  ;;  %v1295_v0 = vld [vmem:[%s11378_s18 + $0x30] sm:$0xff] }
 0x13c   : > { %v10195_v4 = vpop.eup %10194  ;;  %10210 = vrcp.f32 %v853_v61  ;;  %v1296_v61 = vld [vmem:[%s11378_s18 + $0x38] sm:$0xff] }
 0x13d   : > { %v10197_v5 = vpop.eup %10196  ;;  %10212 = vrcp.f32 %v852_v3  ;;  %9231 = vmatprep.mubr.msk.f32.mxu1 %vm931_vm3, %v10195_v4 }
 0x13e   : > { %v10199_v6 = vpop.eup %10198  ;;  %10214 = vrcp.f32 %v854_v2 }
 0x13f   : > { %v10201_v7 = vpop.eup %10200  ;;  %9232 = vmatmul.mubr.msk.f32.gmra.mrb[20].mxu1 %vm931_vm3, %v10199_v6 }
 0x140   : > { %v10203_v8 = vpop.eup %10202  ;;  %v857_v9 = vadd.f32 1.0, %v10201_v7  ;;  %9234 = vmatprep.mubr.msk.f32.mxu1 %vm931_vm3, %v10193_v1  ;;  %v1298_v7 = vld [vmem:[%s11378_s18 + $0x48] sm:$0xff] }
 0x141   : > { %v10205_v10 = vpop.eup %10204  ;;  %v855_v11 = vadd.f32 1.0, %v10203_v8 }
 0x142   : > { %v10207_v12 = vpop.eup %10206  ;;  %v858_v13 = vadd.f32 1.0, %v10205_v10  ;;  %v1297_v10 = vld [vmem:[%s11378_s18 + $0x40] sm:$0xff] }
 0x143   : > { %10216 = vrcp.f32 %v855_v11  ;;  %v856_v14 = vadd.f32 1.0, %v10207_v12  ;;  %9235 = vmatmul.mubr.msk.f32.gmra.mrb[22].mxu1 %vm931_vm3, %v10197_v5 }
 0x144   : > { %10218 = vrcp.f32 %v857_v9 }
 0x145   : > { %v10209_v15 = vpop.eup %10208  ;;  %10220 = vrcp.f32 %v856_v14 }
 0x146   : > { %v10211_v16 = vpop.eup %10210  ;;  %9237 = vmatprep.mubr.msk.f32.mxu1 %vm931_vm3, %v10209_v15  ;;  %10222 = vrcp.f32 %v858_v13 }
 0x147   : > { %v10213_v17 = vpop.eup %10212 }
 0x148   : > { %9238 = vmatmul.mubr.msk.f32.gmra.mrb[24].mxu1 %vm931_vm3, %v10213_v17  ;;  %v10215_v18 = vpop.eup %10214  ;;  %v1300_v17 = vld [vmem:[%s11378_s18 + $0x58] sm:$0xff] }
 0x149   : > { %9240 = vmatprep.mubr.msk.f32.mxu1 %vm931_vm3, %v10211_v16 }
 0x14c   : > { %9241 = vmatmul.mubr.msk.f32.gmra.mrb[26].mxu1 %vm931_vm3, %v10215_v18 }
 0x14d   : > { %v10217_v19 = vpop.eup %10216 }
 0x14e   : > { %v10219_v20 = vpop.eup %10218  ;;  %9243 = vmatprep.mubr.msk.f32.mxu1 %vm931_vm3, %v10217_v19 }
 0x14f   : > { %v10221_v22 = vpop.eup %10220 }
 0x150   : > { %9244 = vmatmul.mubr.msk.f32.gmra.mrb[28].mxu1 %vm931_vm3, %v10221_v22  ;;  %v10223_v23 = vpop.eup %10222 }
 0x151   : > { %9246 = vmatprep.mubr.msk.f32.mxu1 %vm931_vm3, %v10219_v20  ;;  %v1299_v20 = vld [vmem:[%s11378_s18 + $0x50] sm:$0xff] }
 0x154   : > { %9247 = vmatmul.mubr.msk.f32.gmra.mrb[30].mxu1 %vm931_vm3, %v10223_v23 }
 0x1e8   : > { %v9203_v29 = vpop.f32.mrb[0].mxu1 }
 0x1e9   : > { %v1104_v30 = vadd.f32 %v9203_v29, %v11373_v28  ;;  %v1098_v31 = vpop.f32.mrb[1].mxu1  ;;  %v1302_v29 = vld [vmem:[%s11378_s18 + $0x68] sm:$0xff] }
 0x1ea   : > { %v1099_v33 = vadd.f32 %v11373_v28, %v1098_v31 }
 0x1eb   : > { %v1258_v34 = vmax.f32 %v1104_v30, 0.0 }
 0x1ec   : > { %v1257_v36 = vmax.f32 %v1099_v33, 0.0  ;;  %v9206_v37 = vpop.f32.mrb[2].mxu1 }
 0x1ed   : > { %v11384_v38 = vadd.f32 %v1290_v32, %v1258_v34  ;;  %v1114_v39 = vadd.f32 %v9206_v37, %v11373_v28  ;;  %v1108_v40 = vpop.f32.mrb[3].mxu1  ;;  %v1301_v32 = vld [vmem:[%s11378_s18 + $0x60] sm:$0xff] }
 0x1ee   : > { %v11387_v41 = vadd.f32 %v1289_v35, %v1257_v36  ;;  %v1109_v43 = vadd.f32 %v11373_v28, %v1108_v40  ;;  %v1304_v40 = vld [vmem:[%s11378_s18 + $0x78] sm:$0xff] }
 0x1ef   : > { %16270 = vst [vmem:[#allocation5_spill] sm:$0xff] %v11384_v38  ;;  %v1260_v44 = vmax.f32 %v1114_v39, 0.0 }
 0x1f0   : > { %16271 = vst [vmem:[#allocation6_spill] sm:$0xff] %v11387_v41  ;;  %v1259_v46 = vmax.f32 %v1109_v43, 0.0  ;;  %v9209_v47 = vpop.f32.mrb[4].mxu1  ;;  %1353 = vxpose.xlu1.b32.start [1/16] (narrow) %v11387_v41, 8  ;;  %9251 = vmatprep.mubr.msk.f32.mxu1 %vm931_vm3, %v11387_v41 }
 0x1f1   : > { %v11395_v48 = vadd.f32 %v1292_v42, %v1260_v44  ;;  %v1124_v49 = vadd.f32 %v9209_v47, %v11373_v28  ;;  %9301 = vmatprep.mubr.msk.f32.mxu0 %vm931_vm3, %v11387_v41  ;;  %v1118_v50 = vpop.f32.mrb[5].mxu1  ;;  %9252 = vmatmul.mubr.msk.f32.vlgmr.msra.gmra.mrb[32].mxu1 %vm931_vm3, %v11384_v38  ;;  %v1303_v44 = vld [vmem:[%s11378_s18 + $0x70] sm:$0xff] }
 0x1f2   : > { %v11402_v51 = vadd.f32 %v1291_v45, %v1259_v46  ;;  %v1119_v53 = vadd.f32 %v11373_v28, %v1118_v50  ;;  %9302 = vmatmul.mubr.msk.f32.vlgmr.msra.gmra.mrb[32].mxu0 %vm931_vm3, %v11384_v38  ;;  %9350 = vmatpush3.msk.msra.mxu1 %vm1028_vm2, %v1419_v26 }
 0x1f3   : > { %16272 = vst [vmem:[#allocation7_spill] sm:$0xff] %v11395_v48  ;;  %v1262_v54 = vmax.f32 %v1124_v49, 0.0  ;;  %9400 = vmatpush3.msk.msra.mxu0 %vm1028_vm2, %v1420_v27 }
 0x1f4   : > { %16273 = vst [vmem:[#allocation8_spill] sm:$0xff] %v11402_v51  ;;  %v1261_v56 = vmax.f32 %v1119_v53, 0.0  ;;  %v9212_v57 = vpop.f32.mrb[6].mxu1  ;;  %1354 = vxpose.xlu1.b32.cont [2/16] (narrow) %v11384_v38, 8  ;;  %9254 = vmatprep.mubr.msk.f32.mxu1 %vm931_vm3, %v11402_v51  ;;  %v1306_v53 = vld [vmem:[%s11378_s18 + $0x88] sm:$0xff] }
 0x1f5   : > { %v11414_v58 = vadd.f32 %v1294_v52, %v1262_v54  ;;  %v1134_v59 = vadd.f32 %v9212_v57, %v11373_v28  ;;  %9304 = vmatprep.mubr.msk.f32.mxu0 %vm931_vm3, %v11402_v51  ;;  %v1128_v60 = vpop.f32.mrb[7].mxu1  ;;  %9255 = vmatmul.mubr.msk.f32.gmra.mrb[34].mxu1 %vm931_vm3, %v11395_v48 }
 0x1f6   : > { %v11421_v21 = vadd.f32 %v1293_v55, %v1261_v56  ;;  %v1129_v62 = vadd.f32 %v11373_v28, %v1128_v60  ;;  %9305 = vmatmul.mubr.msk.f32.gmra.mrb[34].mxu0 %vm931_vm3, %v11395_v48  ;;  %v1305_v56 = vld [vmem:[%s11378_s18 + $0x80] sm:$0xff] }
 0x1f7   : > { %16274 = vst [vmem:[#allocation9_spill] sm:$0xff] %v11414_v58  ;;  %v1264_v63 = vmax.f32 %v1134_v59, 0.0 }
 0x1f8   : > { %16275 = vst [vmem:[#allocation10_spill] sm:$0xff] %v11421_v21  ;;  %v1263_v1 = vmax.f32 %v1129_v62, 0.0  ;;  %1355 = vxpose.xlu1.b32.cont [3/16] (narrow) %v11402_v51, 8  ;;  %9257 = vmatprep.mubr.msk.f32.mxu1 %vm931_vm3, %v11421_v21 }
 0x1f9   : > { %v11431_v2 = vadd.f32 %v1296_v61, %v1264_v63  ;;  %v9215_v3 = vpop.f32.mrb[8].mxu1  ;;  %9307 = vmatprep.mubr.msk.f32.mxu0 %vm931_vm3, %v11421_v21  ;;  %9258 = vmatmul.mubr.msk.f32.gmra.mrb[36].mxu1 %vm931_vm3, %v11414_v58 }
 0x1fa   : > { %v11437_v4 = vadd.f32 %v1295_v0, %v1263_v1  ;;  %v1144_v5 = vadd.f32 %v9215_v3, %v11373_v28  ;;  %v1138_v6 = vpop.f32.mrb[9].mxu1  ;;  %9308 = vmatmul.mubr.msk.f32.gmra.mrb[36].mxu0 %vm931_vm3, %v11414_v58  ;;  %v1308_v0 = vld [vmem:[%s11378_s18 + $0x98] sm:$0xff] }
 0x1fb   : > { %16276 = vst [vmem:[#allocation11_spill] sm:$0xff] %v11431_v2  ;;  %v1139_v8 = vadd.f32 %v11373_v28, %v1138_v6 }
 0x1fc   : > { %16277 = vst [vmem:[#allocation12_spill] sm:$0xff] %v11437_v4  ;;  %v1266_v9 = vmax.f32 %v1144_v5, 0.0  ;;  %1356 = vxpose.xlu1.b32.cont [4/16] (narrow) %v11395_v48, 8  ;;  %9260 = vmatprep.mubr.msk.f32.mxu1 %vm931_vm3, %v11437_v4  ;;  %v1307_v5 = vld [vmem:[%s11378_s18 + $0x90] sm:$0xff] }
 0x1fd   : > { %v1265_v11 = vmax.f32 %v1139_v8, 0.0  ;;  %v9218_v12 = vpop.f32.mrb[10].mxu1  ;;  %9310 = vmatprep.mubr.msk.f32.mxu0 %vm931_vm3, %v11437_v4  ;;  %9261 = vmatmul.mubr.msk.f32.gmra.mrb[38].mxu1 %vm931_vm3, %v11431_v2 }
 0x1fe   : > { %v11452_v13 = vadd.f32 %v1298_v7, %v1266_v9  ;;  %v1154_v14 = vadd.f32 %v9218_v12, %v11373_v28  ;;  %v1148_v15 = vpop.f32.mrb[11].mxu1  ;;  %9311 = vmatmul.mubr.msk.f32.gmra.mrb[38].mxu0 %vm931_vm3, %v11431_v2  ;;  %v1310_v12 = vld [vmem:[%s11378_s18 + $0xa8] sm:$0xff] }
 0x1ff   : > { %v11457_v16 = vadd.f32 %v1297_v10, %v1265_v11  ;;  %v1149_v18 = vadd.f32 %v11373_v28, %v1148_v15 }
 0x200   : > { %16278 = vst [vmem:[#allocation13_spill] sm:$0xff] %v11452_v13  ;;  %v1268_v19 = vmax.f32 %v1154_v14, 0.0  ;;  %1357 = vxpose.xlu1.b32.cont [5/16] (narrow) %v11421_v21, 8 }
 0x201   : > { %16279 = vst [vmem:[#allocation14_spill] sm:$0xff] %v11457_v16  ;;  %v1267_v22 = vmax.f32 %v1149_v18, 0.0  ;;  %v9221_v23 = vpop.f32.mrb[12].mxu1  ;;  %9263 = vmatprep.mubr.msk.f32.mxu1 %vm931_vm3, %v11457_v16  ;;  %9313 = vmatprep.mubr.msk.f32.mxu0 %vm931_vm3, %v11457_v16 }
 0x202   : > { %v11467_v24 = vadd.f32 %v1300_v17, %v1268_v19  ;;  %v1164_v25 = vadd.f32 %v9221_v23, %v11373_v28  ;;  %v1158_v26 = vpop.f32.mrb[13].mxu1  ;;  %9264 = vmatmul.mubr.msk.f32.gmra.mrb[40].mxu1 %vm931_vm3, %v11452_v13  ;;  %9314 = vmatmul.mubr.msk.f32.gmra.mrb[40].mxu0 %vm931_vm3, %v11452_v13  ;;  %v1309_v17 = vld [vmem:[%s11378_s18 + $0xa0] sm:$0xff] }
 0x203   : > { %v11474_v27 = vadd.f32 %v1299_v20, %v1267_v22  ;;  %v1159_v30 = vadd.f32 %v11373_v28, %v1158_v26  ;;  %v1312_v26 = vld [vmem:[%s11378_s18 + $0xb8] sm:$0xff] }
 0x204   : > { %16280 = vst [vmem:[#allocation15_spill] sm:$0xff] %v11467_v24  ;;  %v1270_v31 = vmax.f32 %v1164_v25, 0.0  ;;  %1358 = vxpose.xlu1.b32.cont [6/16] (narrow) %v11414_v58, 8 }
 0x205   : > { %16281 = vst [vmem:[#allocation16_spill] sm:$0xff] %v11474_v27  ;;  %v1269_v33 = vmax.f32 %v1159_v30, 0.0  ;;  %v9224_v34 = vpop.f32.mrb[14].mxu1  ;;  %9266 = vmatprep.mubr.msk.f32.mxu1 %vm931_vm3, %v11474_v27  ;;  %9316 = vmatprep.mubr.msk.f32.mxu0 %vm931_vm3, %v11474_v27 }
 0x206   : > { %v11484_v35 = vadd.f32 %v1302_v29, %v1270_v31  ;;  %v1174_v36 = vadd.f32 %v9224_v34, %v11373_v28  ;;  %v1168_v37 = vpop.f32.mrb[15].mxu1  ;;  %9267 = vmatmul.mubr.msk.f32.gmra.mrb[42].mxu1 %vm931_vm3, %v11467_v24  ;;  %9317 = vmatmul.mubr.msk.f32.gmra.mrb[42].mxu0 %vm931_vm3, %v11467_v24  ;;  %v1311_v31 = vld [vmem:[%s11378_s18 + $0xb0] sm:$0xff] }
 0x207   : > { %v11491_v39 = vadd.f32 %v1301_v32, %v1269_v33  ;;  %v1169_v42 = vadd.f32 %v11373_v28, %v1168_v37 }
 0x208   : > { %16282 = vst [vmem:[#allocation17_spill] sm:$0xff] %v11484_v35  ;;  %v1272_v43 = vmax.f32 %v1174_v36, 0.0  ;;  %1359 = vxpose.xlu1.b32.cont [7/16] (narrow) %v11437_v4, 8 }
 0x209   : > { %16283 = vst [vmem:[#allocation18_spill] sm:$0xff] %v11491_v39  ;;  %v1271_v45 = vmax.f32 %v1169_v42, 0.0  ;;  %9269 = vmatprep.mubr.msk.f32.mxu1 %vm931_vm3, %v11491_v39  ;;  %9319 = vmatprep.mubr.msk.f32.mxu0 %vm931_vm3, %v11491_v39  ;;  %v1314_v42 = vld [vmem:[%s11378_s18 + $0xc8] sm:$0xff] }
 0x20a   : > { %v11501_v46 = vadd.f32 %v1304_v40, %v1272_v43  ;;  %v9227_v47 = vpop.f32.mrb[16].mxu1  ;;  %9270 = vmatmul.mubr.msk.f32.gmra.mrb[44].mxu1 %vm931_vm3, %v11484_v35  ;;  %9320 = vmatmul.mubr.msk.f32.gmra.mrb[44].mxu0 %vm931_vm3, %v11484_v35 }
 0x20b   : > { %v11507_v49 = vadd.f32 %v1303_v44, %v1271_v45  ;;  %v1184_v50 = vadd.f32 %v9227_v47, %v11373_v28  ;;  %v1178_v52 = vpop.f32.mrb[17].mxu1  ;;  %v1313_v45 = vld [vmem:[%s11378_s18 + $0xc0] sm:$0xff] }
 0x20c   : > { %16284 = vst [vmem:[#allocation19_spill] sm:$0xff] %v11501_v46  ;;  %v1179_v54 = vadd.f32 %v11373_v28, %v1178_v52  ;;  %1360 = vxpose.xlu1.b32.cont [8/16] (narrow) %v11431_v2, 8 }
 0x20d   : > { %16285 = vst [vmem:[#allocation20_spill] sm:$0xff] %v11507_v49  ;;  %v1274_v55 = vmax.f32 %v1184_v50, 0.0  ;;  %9272 = vmatprep.mubr.msk.f32.mxu1 %vm931_vm3, %v11507_v49  ;;  %9322 = vmatprep.mubr.msk.f32.mxu0 %vm931_vm3, %v11507_v49 }
 0x20e   : > { %v1273_v57 = vmax.f32 %v1179_v54, 0.0  ;;  %v9230_v59 = vpop.f32.mrb[18].mxu1  ;;  %9273 = vmatmul.mubr.msk.f32.gmra.mrb[46].mxu1 %vm931_vm3, %v11501_v46  ;;  %9323 = vmatmul.mubr.msk.f32.gmra.mrb[46].mxu0 %vm931_vm3, %v11501_v46 }
 0x20f   : > { %v11522_v60 = vadd.f32 %v1306_v53, %v1274_v55  ;;  %v1194_v61 = vadd.f32 %v9230_v59, %v11373_v28  ;;  %v1188_v62 = vpop.f32.mrb[19].mxu1 }
 0x210   : > { %v11525_v63 = vadd.f32 %v1305_v56, %v1273_v57  ;;  %v1189_v1 = vadd.f32 %v11373_v28, %v1188_v62  ;;  %1361 = vxpose.xlu1.b32.cont [9/16] (narrow) %v11457_v16, 8  ;;  %v1316_v56 = vld [vmem:[%s11378_s18 + $0xd8] sm:$0xff] }
 0x211   : > { %16286 = vst [vmem:[#allocation21_spill] sm:$0xff] %v11522_v60  ;;  %v1276_v3 = vmax.f32 %v1194_v61, 0.0  ;;  %v1315_v61 = vld [vmem:[%s11378_s18 + $0xd0] sm:$0xff] }
 0x212   : > { %16287 = vst [vmem:[#allocation22_spill] sm:$0xff] %v11525_v63  ;;  %v1275_v6 = vmax.f32 %v1189_v1, 0.0  ;;  %v9233_v7 = vpop.f32.mrb[20].mxu1  ;;  %9275 = vmatprep.mubr.msk.f32.mxu1 %vm931_vm3, %v11525_v63  ;;  %9325 = vmatprep.mubr.msk.f32.mxu0 %vm931_vm3, %v11525_v63 }
 0x213   : > { %v11535_v8 = vadd.f32 %v1308_v0, %v1276_v3  ;;  %v1204_v9 = vadd.f32 %v9233_v7, %v11373_v28  ;;  %v1198_v10 = vpop.f32.mrb[21].mxu1  ;;  %9276 = vmatmul.mubr.msk.f32.gmra.mrb[48].mxu1 %vm931_vm3, %v11522_v60  ;;  %9326 = vmatmul.mubr.msk.f32.gmra.mrb[48].mxu0 %vm931_vm3, %v11522_v60  ;;  %v1318_v7 = vld [vmem:[%s11378_s18 + $0xe8] sm:$0xff] }
 0x214   : > { %v11542_v11 = vadd.f32 %v1307_v5, %v1275_v6  ;;  %v1199_v14 = vadd.f32 %v11373_v28, %v1198_v10  ;;  %1362 = vxpose.xlu1.b32.cont [10/16] (narrow) %v11452_v13, 8  ;;  %1385 = vxpose.xlu0.b32.start [1/16] (narrow) %v11525_v63, 8 }
 0x215   : > { %16288 = vst [vmem:[#allocation23_spill] sm:$0xff] %v11535_v8  ;;  %v1278_v15 = vmax.f32 %v1204_v9, 0.0 }
 0x216   : > { %16289 = vst [vmem:[#allocation24_spill] sm:$0xff] %v11542_v11  ;;  %v1277_v18 = vmax.f32 %v1199_v14, 0.0  ;;  %v9236_v19 = vpop.f32.mrb[22].mxu1  ;;  %9278 = vmatprep.mubr.msk.f32.mxu1 %vm931_vm3, %v11542_v11  ;;  %9328 = vmatprep.mubr.msk.f32.mxu0 %vm931_vm3, %v11542_v11 }
 0x217   : > { %v11553_v20 = vadd.f32 %v1310_v12, %v1278_v15  ;;  %v1214_v22 = vadd.f32 %v9236_v19, %v11373_v28  ;;  %v1208_v23 = vpop.f32.mrb[23].mxu1  ;;  %9279 = vmatmul.mubr.msk.f32.gmra.mrb[50].mxu1 %vm931_vm3, %v11535_v8  ;;  %9329 = vmatmul.mubr.msk.f32.gmra.mrb[50].mxu0 %vm931_vm3, %v11535_v8  ;;  %v1317_v12 = vld [vmem:[%s11378_s18 + $0xe0] sm:$0xff] }
 0x218   : > { %v11560_v25 = vadd.f32 %v1309_v17, %v1277_v18  ;;  %v1209_v29 = vadd.f32 %v11373_v28, %v1208_v23  ;;  %1363 = vxpose.xlu1.b32.cont [11/16] (narrow) %v11474_v27, 8  ;;  %1386 = vxpose.xlu0.b32.cont [2/16] (narrow) %v11522_v60, 8  ;;  %v1320_v23 = vld [vmem:[%s11378_s18 + $0xf8] sm:$0xff] }
 0x219   : > { %16290 = vst [vmem:[#allocation25_spill] sm:$0xff] %v11553_v20  ;;  %v1280_v30 = vmax.f32 %v1214_v22, 0.0 }
 0x21a   : > { %16291 = vst [vmem:[#allocation26_spill] sm:$0xff] %v11560_v25  ;;  %v1279_v32 = vmax.f32 %v1209_v29, 0.0  ;;  %9281 = vmatprep.mubr.msk.f32.mxu1 %vm931_vm3, %v11560_v25  ;;  %9331 = vmatprep.mubr.msk.f32.mxu0 %vm931_vm3, %v11560_v25 }
 0x21b   : > { %v11571_v33 = vadd.f32 %v1312_v26, %v1280_v30  ;;  %v9239_v34 = vpop.f32.mrb[24].mxu1  ;;  %9282 = vmatmul.mubr.msk.f32.gmra.mrb[52].mxu1 %vm931_vm3, %v11553_v20  ;;  %9332 = vmatmul.mubr.msk.f32.gmra.mrb[52].mxu0 %vm931_vm3, %v11553_v20  ;;  %v1319_v30 = vld [vmem:[%s11378_s18 + $0xf0] sm:$0xff]  ;;  %s11060_s18 = sshll.u32 %s11122_s17, 4  ;;  %s11061_s18 = int_to_ptr.vmem [resolvable:$false] %s11060_s18 }
 0x21c   : > { %v11577_v36 = vadd.f32 %v1311_v31, %v1279_v32  ;;  %v1224_v37 = vadd.f32 %v9239_v34, %v11373_v28  ;;  %v1218_v40 = vpop.f32.mrb[25].mxu1  ;;  %1364 = vxpose.xlu1.b32.cont [12/16] (narrow) %v11467_v24, 8  ;;  %1387 = vxpose.xlu0.b32.cont [3/16] (narrow) %v11542_v11, 8  ;;  %v15878_v34 = vmov 0.0   ;;  %s11062_s29 = scalar_lea.vmem %s11061_s18, 32  ;;  %p11063_p0 = scmp.lt.s32.totalorder %s15724_s26, %s11061_s18 }
 0x21d   : > { %16292 = vst [vmem:[#allocation27_spill] sm:$0xff] %v11571_v33  ;;  %v1219_v43 = vadd.f32 %v11373_v28, %v1218_v40  ;;  %p11064_p1 = scmp.lt.s32.totalorder %s11062_s29, %s11056_s12 }
 0x21e   : > { %16293 = vst [vmem:[#allocation28_spill] sm:$0xff] %v11577_v36  ;;  %v1282_v44 = vmax.f32 %v1224_v37, 0.0  ;;  %9284 = vmatprep.mubr.msk.f32.mxu1 %vm931_vm3, %v11577_v36  ;;  %9334 = vmatprep.mubr.msk.f32.mxu0 %vm931_vm3, %v11577_v36 }
 0x21f   : > { %v1281_v47 = vmax.f32 %v1219_v43, 0.0  ;;  %v9242_v50 = vpop.f32.mrb[26].mxu1  ;;  %9285 = vmatmul.mubr.msk.f32.gmra.mrb[54].mxu1 %vm931_vm3, %v11571_v33  ;;  %9335 = vmatmul.mubr.msk.f32.gmra.mrb[54].mxu0 %vm931_vm3, %v11571_v33  ;;  %p11065_p2 = por %p11064_p1, %p11063_p0 }
 0x220   : > { %v11593_v52 = vadd.f32 %v1314_v42, %v1282_v44  ;;  %v1234_v53 = vadd.f32 %v9242_v50, %v11373_v28  ;;  %v1228_v54 = vpop.f32.mrb[27].mxu1  ;;  %1365 = vxpose.xlu1.b32.cont [13/16] (narrow) %v11491_v39, 8  ;;  %1388 = vxpose.xlu0.b32.cont [4/16] (narrow) %v11535_v8, 8 }
 0x221   : > { %v11598_v55 = vadd.f32 %v1313_v45, %v1281_v47  ;;  %v1229_v57 = vadd.f32 %v11373_v28, %v1228_v54  ;;  %v11819_v45 = vld [vmem:[%s15771_s7] sm:$0xf]  ;;  %p11066_p3 = pnand %p11065_p2, %p11059_p13 }
 0x222   : > { %16294 = vst [vmem:[#allocation29_spill] sm:$0xff] %v11593_v52  ;;  %v1284_v59 = vmax.f32 %v1234_v53, 0.0 }
 0x223   : > { %16295 = vst [vmem:[#allocation30_spill] sm:$0xff] %v11598_v55  ;;  %v1283_v62 = vmax.f32 %v1229_v57, 0.0  ;;  %v9245_v0 = vpop.f32.mrb[28].mxu1  ;;  %9287 = vmatprep.mubr.msk.f32.mxu1 %vm931_vm3, %v11598_v55  ;;  %9337 = vmatprep.mubr.msk.f32.mxu0 %vm931_vm3, %v11598_v55 }
 0x224   : > { %v11607_v1 = vadd.f32 %v1316_v56, %v1284_v59  ;;  %v1244_v3 = vadd.f32 %v9245_v0, %v11373_v28  ;;  %v1238_v5 = vpop.f32.mrb[29].mxu1  ;;  %9288 = vmatmul.mubr.msk.f32.gmra.mrb[56].mxu1 %vm931_vm3, %v11593_v52  ;;  %9338 = vmatmul.mubr.msk.f32.gmra.mrb[56].mxu0 %vm931_vm3, %v11593_v52 }
 0x225   : > { %v11614_v6 = vadd.f32 %v1315_v61, %v1283_v62  ;;  %v1239_v9 = vadd.f32 %v11373_v28, %v1238_v5  ;;  %1366 = vxpose.xlu1.b32.cont [14/16] (narrow) %v11484_v35, 8  ;;  %1389 = vxpose.xlu0.b32.cont [5/16] (narrow) %v11560_v25, 8 }
 0x226   : > { %16296 = vst [vmem:[#allocation31_spill] sm:$0xff] %v11607_v1  ;;  %v1286_v10 = vmax.f32 %v1244_v3, 0.0 }
 0x227   : > { %16297 = vst [vmem:[#allocation32_spill] sm:$0xff] %v11614_v6  ;;  %v1285_v14 = vmax.f32 %v1239_v9, 0.0  ;;  %v9248_v15 = vpop.f32.mrb[30].mxu1  ;;  %9290 = vmatprep.mubr.msk.f32.mxu1 %vm931_vm3, %v11614_v6  ;;  %9340 = vmatprep.mubr.msk.f32.mxu0 %vm931_vm3, %v11614_v6 }
 0x228   : > { %v11625_v17 = vadd.f32 %v1318_v7, %v1286_v10  ;;  %v1254_v18 = vadd.f32 %v9248_v15, %v11373_v28  ;;  %v1248_v19 = vpop.f32.mrb[31].mxu1  ;;  %9291 = vmatmul.mubr.msk.f32.gmra.mrb[58].mxu1 %vm931_vm3, %v11607_v1  ;;  %9341 = vmatmul.mubr.msk.f32.gmra.mrb[58].mxu0 %vm931_vm3, %v11607_v1 }
 0x229   : > { %v11632_v22 = vadd.f32 %v1317_v12, %v1285_v14  ;;  %v1249_v26 = vadd.f32 %v11373_v28, %v1248_v19  ;;  %1367 = vxpose.xlu1.b32.cont [15/16] (narrow) %v11507_v49, 8  ;;  %1390 = vxpose.xlu0.b32.cont [6/16] (narrow) %v11553_v20, 8 }
 0x22a   : > { %16298 = vst [vmem:[#allocation33_spill] sm:$0xff] %v11625_v17  ;;  %v1288_v29 = vmax.f32 %v1254_v18, 0.0 }
 0x22b   : > { %16299 = vst [vmem:[#allocation34_spill] sm:$0xff] %v11632_v22  ;;  %v1287_v31 = vmax.f32 %v1249_v26, 0.0  ;;  %9293 = vmatprep.mubr.msk.f32.mxu1 %vm931_vm3, %v11632_v22  ;;  %9343 = vmatprep.mubr.msk.f32.mxu0 %vm931_vm3, %v11632_v22 }
 0x22c   : > { %v11643_v32 = vadd.f32 %v1320_v23, %v1288_v29  ;;  %9294 = vmatmul.mubr.msk.f32.gmra.mrb[60].mxu1 %vm931_vm3, %v11625_v17  ;;  %9344 = vmatmul.mubr.msk.f32.gmra.mrb[60].mxu0 %vm931_vm3, %v11625_v17 }
 0x22d   : > { %v11649_v28 = vadd.f32 %v1319_v30, %v1287_v31  ;;  %1368 = vxpose.xlu1.b32.end [16/16] (narrow) %v11501_v46, 8  ;;  %1391 = vxpose.xlu0.b32.cont [7/16] (narrow) %v11577_v36, 8 }
 0x22e   : > { %16300 = vst [vmem:[#allocation35_spill] sm:$0xff] %v11643_v32 }
 0x22f   : > { %16301 = vst [vmem:[#allocation36_spill] sm:$0xff] %v11649_v28  ;;  %9296 = vmatprep.mubr.msk.f32.mxu1 %vm931_vm3, %v11649_v28  ;;  %9346 = vmatprep.mubr.msk.f32.mxu0 %vm931_vm3, %v11649_v28 }
 0x230   : > { %9297 = vmatmul.mubr.msk.f32.gmra.mrb[62].mxu1 %vm931_vm3, %v11643_v32  ;;  %9347 = vmatmul.mubr.msk.f32.gmra.mrb[62].mxu0 %vm931_vm3, %v11643_v32 }
 0x231   : > { %9351 = vmatprep.mubr.msk.f32.mxu1 %vm931_vm3, %v11387_v41  ;;  %9401 = vmatprep.mubr.msk.f32.mxu0 %vm931_vm3, %v11387_v41 }
 0x232   : > { %1392 = vxpose.xlu0.b32.cont [8/16] (narrow) %v11571_v33, 8 }
 0x234   : > { %9352 = vmatmul.mubr.msk.f32.vlgmr.msra.gmra.mrb[64].mxu1 %vm931_vm3, %v11384_v38  ;;  %9402 = vmatmul.mubr.msk.f32.vlgmr.msra.gmra.mrb[64].mxu0 %vm931_vm3, %v11384_v38 }
 0x235   : > { %9354 = vmatprep.mubr.msk.f32.mxu1 %vm931_vm3, %v11402_v51  ;;  %9404 = vmatprep.mubr.msk.f32.mxu0 %vm931_vm3, %v11402_v51 }
 0x236   : > { %1393 = vxpose.xlu0.b32.cont [9/16] (narrow) %v11598_v55, 8 }
 0x238   : > { %9355 = vmatmul.mubr.msk.f32.gmra.mrb[66].mxu1 %vm931_vm3, %v11395_v48  ;;  %9405 = vmatmul.mubr.msk.f32.gmra.mrb[66].mxu0 %vm931_vm3, %v11395_v48 }
 0x239   : > { %9357 = vmatprep.mubr.msk.f32.mxu1 %vm931_vm3, %v11421_v21  ;;  %9407 = vmatprep.mubr.msk.f32.mxu0 %vm931_vm3, %v11421_v21 }
 0x23a   : > { %1394 = vxpose.xlu0.b32.cont [10/16] (narrow) %v11593_v52, 8 }
 0x23c   : > { %9358 = vmatmul.mubr.msk.f32.gmra.mrb[68].mxu1 %vm931_vm3, %v11414_v58  ;;  %9408 = vmatmul.mubr.msk.f32.gmra.mrb[68].mxu0 %vm931_vm3, %v11414_v58 }
 0x23d   : > { %9360 = vmatprep.mubr.msk.f32.mxu1 %vm931_vm3, %v11437_v4  ;;  %9410 = vmatprep.mubr.msk.f32.mxu0 %vm931_vm3, %v11437_v4 }
 0x23e   : > { %1395 = vxpose.xlu0.b32.cont [11/16] (narrow) %v11614_v6, 8 }
 0x240   : > { %9361 = vmatmul.mubr.msk.f32.gmra.mrb[70].mxu1 %vm931_vm3, %v11431_v2  ;;  %9411 = vmatmul.mubr.msk.f32.gmra.mrb[70].mxu0 %vm931_vm3, %v11431_v2 }
 0x241   : > { %9363 = vmatprep.mubr.msk.f32.mxu1 %vm931_vm3, %v11457_v16  ;;  %9413 = vmatprep.mubr.msk.f32.mxu0 %vm931_vm3, %v11457_v16 }
 0x242   : > { %1396 = vxpose.xlu0.b32.cont [12/16] (narrow) %v11607_v1, 8 }
 0x244   : > { %9364 = vmatmul.mubr.msk.f32.gmra.mrb[72].mxu1 %vm931_vm3, %v11452_v13  ;;  %9414 = vmatmul.mubr.msk.f32.gmra.mrb[72].mxu0 %vm931_vm3, %v11452_v13 }
 0x245   : > { %9366 = vmatprep.mubr.msk.f32.mxu1 %vm931_vm3, %v11474_v27  ;;  %9416 = vmatprep.mubr.msk.f32.mxu0 %vm931_vm3, %v11474_v27 }
 0x246   : > { %1397 = vxpose.xlu0.b32.cont [13/16] (narrow) %v11632_v22, 8 }
 0x248   : > { %9367 = vmatmul.mubr.msk.f32.gmra.mrb[74].mxu1 %vm931_vm3, %v11467_v24  ;;  %9417 = vmatmul.mubr.msk.f32.gmra.mrb[74].mxu0 %vm931_vm3, %v11467_v24 }
 0x249   : > { %9369 = vmatprep.mubr.msk.f32.mxu1 %vm931_vm3, %v11491_v39  ;;  %9419 = vmatprep.mubr.msk.f32.mxu0 %vm931_vm3, %v11491_v39 }
 0x24a   : > { %1398 = vxpose.xlu0.b32.cont [14/16] (narrow) %v11625_v17, 8 }
 0x24c   : > { %9370 = vmatmul.mubr.msk.f32.gmra.mrb[76].mxu1 %vm931_vm3, %v11484_v35  ;;  %9420 = vmatmul.mubr.msk.f32.gmra.mrb[76].mxu0 %vm931_vm3, %v11484_v35 }
 0x24d   : > { %9372 = vmatprep.mubr.msk.f32.mxu1 %vm931_vm3, %v11507_v49  ;;  %9422 = vmatprep.mubr.msk.f32.mxu0 %vm931_vm3, %v11507_v49 }
 0x24e   : > { %1399 = vxpose.xlu0.b32.cont [15/16] (narrow) %v11649_v28, 8 }
 0x250   : > { %9373 = vmatmul.mubr.msk.f32.gmra.mrb[78].mxu1 %vm931_vm3, %v11501_v46  ;;  %9423 = vmatmul.mubr.msk.f32.gmra.mrb[78].mxu0 %vm931_vm3, %v11501_v46 }
 0x251   : > { %9375 = vmatprep.mubr.msk.f32.mxu1 %vm931_vm3, %v11525_v63  ;;  %9425 = vmatprep.mubr.msk.f32.mxu0 %vm931_vm3, %v11525_v63 }
 0x252   : > { %1400 = vxpose.xlu0.b32.end [16/16] (narrow) %v11643_v32, 8 }
 0x254   : > { %9376 = vmatmul.mubr.msk.f32.gmra.mrb[80].mxu1 %vm931_vm3, %v11522_v60  ;;  %9426 = vmatmul.mubr.msk.f32.gmra.mrb[80].mxu0 %vm931_vm3, %v11522_v60 }
 0x255   : > { %9378 = vmatprep.mubr.msk.f32.mxu1 %vm931_vm3, %v11542_v11  ;;  %9428 = vmatprep.mubr.msk.f32.mxu0 %vm931_vm3, %v11542_v11 }
 0x258   : > { %9379 = vmatmul.mubr.msk.f32.gmra.mrb[82].mxu1 %vm931_vm3, %v11535_v8  ;;  %9429 = vmatmul.mubr.msk.f32.gmra.mrb[82].mxu0 %vm931_vm3, %v11535_v8 }
 0x259   : > { %9381 = vmatprep.mubr.msk.f32.mxu1 %vm931_vm3, %v11560_v25  ;;  %9431 = vmatprep.mubr.msk.f32.mxu0 %vm931_vm3, %v11560_v25 }
 0x25c   : > { %9382 = vmatmul.mubr.msk.f32.gmra.mrb[84].mxu1 %vm931_vm3, %v11553_v20  ;;  %9432 = vmatmul.mubr.msk.f32.gmra.mrb[84].mxu0 %vm931_vm3, %v11553_v20 }
 0x25d   : > { %9384 = vmatprep.mubr.msk.f32.mxu1 %vm931_vm3, %v11577_v36  ;;  %9434 = vmatprep.mubr.msk.f32.mxu0 %vm931_vm3, %v11577_v36 }
 0x260   : > { %9385 = vmatmul.mubr.msk.f32.gmra.mrb[86].mxu1 %vm931_vm3, %v11571_v33  ;;  %9435 = vmatmul.mubr.msk.f32.gmra.mrb[86].mxu0 %vm931_vm3, %v11571_v33 }
 0x261   : > { %9387 = vmatprep.mubr.msk.f32.mxu1 %vm931_vm3, %v11598_v55  ;;  %9437 = vmatprep.mubr.msk.f32.mxu0 %vm931_vm3, %v11598_v55 }
 0x264   : > { %9388 = vmatmul.mubr.msk.f32.gmra.mrb[88].mxu1 %vm931_vm3, %v11593_v52  ;;  %9438 = vmatmul.mubr.msk.f32.gmra.mrb[88].mxu0 %vm931_vm3, %v11593_v52 }
 0x265   : > { %9390 = vmatprep.mubr.msk.f32.mxu1 %vm931_vm3, %v11614_v6  ;;  %9440 = vmatprep.mubr.msk.f32.mxu0 %vm931_vm3, %v11614_v6 }
 0x268   : > { %9391 = vmatmul.mubr.msk.f32.gmra.mrb[90].mxu1 %vm931_vm3, %v11607_v1  ;;  %9441 = vmatmul.mubr.msk.f32.gmra.mrb[90].mxu0 %vm931_vm3, %v11607_v1 }
 0x269   : > { %9393 = vmatprep.mubr.msk.f32.mxu1 %vm931_vm3, %v11632_v22  ;;  %9443 = vmatprep.mubr.msk.f32.mxu0 %vm931_vm3, %v11632_v22 }
 0x26c   : > { %9394 = vmatmul.mubr.msk.f32.gmra.mrb[92].mxu1 %vm931_vm3, %v11625_v17  ;;  %9444 = vmatmul.mubr.msk.f32.gmra.mrb[92].mxu0 %vm931_vm3, %v11625_v17 }
 0x26d   : > { %9396 = vmatprep.mubr.msk.f32.mxu1 %vm931_vm3, %v11649_v28  ;;  %9446 = vmatprep.mubr.msk.f32.mxu0 %vm931_vm3, %v11649_v28 }
 0x270   : > { %9397 = vmatmul.mubr.msk.f32.gmra.mrb[94].mxu1 %vm931_vm3, %v11643_v32  ;;  %9447 = vmatmul.mubr.msk.f32.gmra.mrb[94].mxu0 %vm931_vm3, %v11643_v32 }
 0x271   : > { %2599 = vmatprep.mubr.f32.mxu0 %v15878_v34  ;;  %3491 = vmatprep.mubr.f32.mxu1 %v15878_v34  ;;  %v11800_v37 = vpop.trf.xlu1 }
 0x296   : > { %v11802_v40 = vpop.trf.xlu0 }
 0x297   : > { %8570 = vmatprep.subr.msk.mxu0 %vm1028_vm2, %v11802_v40  ;;  %9841 = vmatprep.subr.msk.mxu1 %vm1028_vm2, %v11802_v40 }
 0x298   : > { %8571 = vmatpush1.msk.msra.mxu0 %vm1028_vm2, %v11800_v37  ;;  %9842 = vmatpush1.msk.msra.mxu1 %vm1028_vm2, %v11800_v37 }
 0x299   : > { %8604 = vmatprep.subr.msk.mxu0 %vm1028_vm2, %v11802_v40  ;;  %9449 = vmatprep.subr.msk.mxu1 %vm1028_vm2, %v11819_v45 }
 0x2c4   : > { %v9253_v42 = vpop.f32.mrb[32].mxu1 }
 0x2c5   : > { %v11814_v43 = vpop.f32.mrb[32].mxu0  ;;  %v1590_v44 = vpop.f32.mrb[33].mxu1 }
 0x2c6   : > { %v11821_v47 = vpop.f32.mrb[33].mxu0  ;;  %8572 = vmatmul.mubr.msk.f32.vlgmr.msra.gmra.mrb[96].mxu0 %vm931_vm3, %v1590_v44 }
 0x2c7   : > { %8605 = vmatpush1.msk.msra.mxu0 %vm1028_vm2, %v11800_v37  ;;  %2605 = vmatprep.mubr.f32.mxu0 %v15878_v34 }
 0x2c8   : > { %8638 = vmatprep.subr.msk.mxu0 %vm1028_vm2, %v11802_v40  ;;  %v9256_v50 = vpop.f32.mrb[34].mxu1 }
 0x2c9   : > { %v11831_v53 = vpop.f32.mrb[34].mxu0  ;;  %v1600_v54 = vpop.f32.mrb[35].mxu1 }
 0x2ca   : > { %v11833_v56 = vpop.f32.mrb[35].mxu0  ;;  %8573 = vmatmul.mubr.msk.f32.gmra.mrb[98].mxu0 %vm931_vm3, %v9253_v42 }
 0x2cb   : > { %2611 = vmatprep.mubr.f32.mxu0 %v15878_v34 }
 0x2cc   : > { %v9259_v57 = vpop.f32.mrb[36].mxu1 }
 0x2cd   : > { %v11837_v59 = vpop.f32.mrb[36].mxu0  ;;  %v1610_v61 = vpop.f32.mrb[37].mxu1 }
 0x2ce   : > { %8574 = vmatmul.mubr.msk.f32.gmra.mrb[100].mxu0 %vm931_vm3, %v1600_v54  ;;  %v11840_v62 = vpop.f32.mrb[37].mxu0 }
 0x2cf   : > { %2617 = vmatprep.mubr.f32.mxu0 %v15878_v34 }
 0x2d0   : > { %v9262_v0 = vpop.f32.mrb[38].mxu1 }
 0x2d1   : > { %v11843_v3 = vpop.f32.mrb[38].mxu0  ;;  %v1620_v5 = vpop.f32.mrb[39].mxu1 }
 0x2d2   : > { %v11845_v7 = vpop.f32.mrb[39].mxu0  ;;  %8575 = vmatmul.mubr.msk.f32.gmra.mrb[102].mxu0 %vm931_vm3, %v9256_v50 }
 0x2d3   : > { %2623 = vmatprep.mubr.f32.mxu0 %v15878_v34 }
 0x2d5   : > { %v9265_v9 = vpop.f32.mrb[40].mxu1  ;;  %v11849_v10 = vpop.f32.mrb[40].mxu0 }
 0x2d6   : > { %8576 = vmatmul.mubr.msk.f32.gmra.mrb[104].mxu0 %vm931_vm3, %v1610_v61  ;;  %v1630_v12 = vpop.f32.mrb[41].mxu1  ;;  %v11852_v14 = vpop.f32.mrb[41].mxu0 }
 0x2d7   : > { %2629 = vmatprep.mubr.f32.mxu0 %v15878_v34 }
 0x2d9   : > { %v9268_v15 = vpop.f32.mrb[42].mxu1  ;;  %v11855_v18 = vpop.f32.mrb[42].mxu0 }
 0x2da   : > { %8577 = vmatmul.mubr.msk.f32.gmra.mrb[106].mxu0 %vm931_vm3, %v9259_v57  ;;  %v1640_v19 = vpop.f32.mrb[43].mxu1  ;;  %v11858_v23 = vpop.f32.mrb[43].mxu0 }
 0x2db   : > { %2635 = vmatprep.mubr.f32.mxu0 %v15878_v34 }
 0x2dd   : > { %v9271_v26 = vpop.f32.mrb[44].mxu1  ;;  %v11861_v29 = vpop.f32.mrb[44].mxu0 }
 0x2de   : > { %16302 = vst [vmem:[#allocation37_spill] sm:$0xff] %v11861_v29  ;;  %8578 = vmatmul.mubr.msk.f32.gmra.mrb[108].mxu0 %vm931_vm3, %v1620_v5  ;;  %v1650_v30 = vpop.f32.mrb[45].mxu1  ;;  %v11864_v31 = vpop.f32.mrb[45].mxu0 }
 0x2df   : > { %16303 = vst [vmem:[#allocation38_spill] sm:$0xff] %v11864_v31  ;;  %2641 = vmatprep.mubr.f32.mxu0 %v15878_v34 }
 0x2e1   : > { %v9274_v42 = vpop.f32.mrb[46].mxu1  ;;  %v11867_v44 = vpop.f32.mrb[46].mxu0 }
 0x2e2   : > { %16304 = vst [vmem:[#allocation39_spill] sm:$0xff] %v11867_v44  ;;  %8579 = vmatmul.mubr.msk.f32.gmra.mrb[110].mxu0 %vm931_vm3, %v9262_v0  ;;  %v1660_v50 = vpop.f32.mrb[47].mxu1  ;;  %v11870_v54 = vpop.f32.mrb[47].mxu0 }
 0x2e3   : > { %16305 = vst [vmem:[#allocation40_spill] sm:$0xff] %v11870_v54  ;;  %2647 = vmatprep.mubr.f32.mxu0 %v15878_v34 }
 0x2e6   : > { %8580 = vmatmul.mubr.msk.f32.gmra.mrb[112].mxu0 %vm931_vm3, %v1630_v12  ;;  %v9277_v57 = vpop.f32.mrb[48].mxu1  ;;  %v11874_v61 = vpop.f32.mrb[48].mxu0 }
 0x2e7   : > { %16306 = vst [vmem:[#allocation41_spill] sm:$0xff] %v11874_v61  ;;  %2653 = vmatprep.mubr.f32.mxu0 %v15878_v34  ;;  %v1670_v5 = vpop.f32.mrb[49].mxu1  ;;  %v11877_v32 = vpop.f32.mrb[49].mxu0 }
 0x2e8   : > { %16307 = vst [vmem:[#allocation42_spill] sm:$0xff] %v11877_v32 }
 0x2ea   : > { %8581 = vmatmul.mubr.msk.f32.gmra.mrb[114].mxu0 %vm931_vm3, %v9265_v9  ;;  %v9280_v44 = vpop.f32.mrb[50].mxu1  ;;  %v11880_v28 = vpop.f32.mrb[50].mxu0 }
 0x2eb   : > { %16308 = vst [vmem:[#allocation43_spill] sm:$0xff] %v11880_v28  ;;  %2659 = vmatprep.mubr.f32.mxu0 %v15878_v34  ;;  %v1680_v0 = vpop.f32.mrb[51].mxu1  ;;  %v11883_v17 = vpop.f32.mrb[51].mxu0 }
 0x2ec   : > { %16309 = vst [vmem:[#allocation44_spill] sm:$0xff] %v11883_v17 }
 0x2ee   : > { %8582 = vmatmul.mubr.msk.f32.gmra.mrb[116].mxu0 %vm931_vm3, %v1640_v19  ;;  %v11886_v12 = vpop.f32.mrb[52].mxu1  ;;  %v11888_v61 = vpop.f32.mrb[52].mxu0 }
 0x2ef   : > { %16310 = vst [vmem:[#allocation45_spill] sm:$0xff] %v11888_v61  ;;  %2665 = vmatprep.mubr.f32.mxu0 %v15878_v34  ;;  %v1690_v54 = vpop.f32.mrb[53].mxu1  ;;  %v11891_v32 = vpop.f32.mrb[53].mxu0 }
 0x2f0   : > { %16311 = vst [vmem:[#allocation46_spill] sm:$0xff] %v11891_v32 }
 0x2f2   : > { %8583 = vmatmul.mubr.msk.f32.gmra.mrb[118].mxu0 %vm931_vm3, %v9268_v15  ;;  %v11894_v9 = vpop.f32.mrb[54].mxu1  ;;  %v11896_v28 = vpop.f32.mrb[54].mxu0 }
 0x2f3   : > { %16312 = vst [vmem:[#allocation47_spill] sm:$0xff] %v11896_v28  ;;  %2671 = vmatprep.mubr.f32.mxu0 %v15878_v34  ;;  %v1700_v17 = vpop.f32.mrb[55].mxu1  ;;  %v11899_v22 = vpop.f32.mrb[55].mxu0 }
 0x2f4   : > { %16313 = vst [vmem:[#allocation48_spill] sm:$0xff] %v11899_v22 }
 0x2f6   : > { %8584 = vmatmul.mubr.msk.f32.gmra.mrb[120].mxu0 %vm931_vm3, %v1650_v30 }
 0x2f7   : > { %2677 = vmatprep.mubr.f32.mxu0 %v15878_v34  ;;  %v11903_v19 = vpop.f32.mrb[56].mxu1  ;;  %v11905_v61 = vpop.f32.mrb[56].mxu0 }
 0x2f8   : > { %16314 = vst [vmem:[#allocation49_spill] sm:$0xff] %v11905_v61  ;;  %v11907_v32 = vpop.f32.mrb[57].mxu1  ;;  %v11909_v15 = vpop.f32.mrb[57].mxu0 }
 0x2f9   : > { %16315 = vst [vmem:[#allocation50_spill] sm:$0xff] %v11909_v15 }
 0x2fa   : > { %8585 = vmatmul.mubr.msk.f32.gmra.mrb[122].mxu0 %vm931_vm3, %v9271_v26 }
 0x2fb   : > { %2683 = vmatprep.mubr.f32.mxu0 %v15878_v34  ;;  %v11913_v28 = vpop.f32.mrb[58].mxu1  ;;  %v11915_v1 = vpop.f32.mrb[58].mxu0 }
 0x2fc   : > { %16316 = vst [vmem:[#allocation51_spill] sm:$0xff] %v11915_v1  ;;  %v11917_v22 = vpop.f32.mrb[59].mxu1  ;;  %v11919_v30 = vpop.f32.mrb[59].mxu0 }
 0x2fd   : > { %16317 = vst [vmem:[#allocation52_spill] sm:$0xff] %v11919_v30 }
 0x2fe   : > { %8586 = vmatmul.mubr.msk.f32.gmra.mrb[124].mxu0 %vm931_vm3, %v1660_v50 }
 0x2ff   : > { %v11922_v29 = vpop.f32.mrb[60].mxu1  ;;  %v11924_v61 = vpop.f32.mrb[60].mxu0  ;;  %2689 = vmatprep.mubr.f32.mxu0 %v15878_v34 }
 0x300   : > { %16318 = vst [vmem:[#allocation53_spill] sm:$0xff] %v11924_v61  ;;  %v11927_v15 = vpop.f32.mrb[61].mxu1  ;;  %v11929_v26 = vpop.f32.mrb[61].mxu0 }
 0x301   : > { %16319 = vst [vmem:[#allocation54_spill] sm:$0xff] %v11929_v26 }
 0x302   : > { %8587 = vmatmul.mubr.msk.f32.gmra.mrb[126].mxu0 %vm931_vm3, %v9274_v42 }
 0x303   : > { %v11932_v6 = vpop.f32.mrb[62].mxu1  ;;  %v11934_v1 = vpop.f32.mrb[62].mxu0  ;;  %2695 = vmatprep.mubr.f32.mxu0 %v15878_v34 }
 0x304   : > { %16320 = vst [vmem:[#allocation55_spill] sm:$0xff] %v11934_v1  ;;  %v11937_v30 = vpop.f32.mrb[63].mxu1  ;;  %v11939_v50 = vpop.f32.mrb[63].mxu0 }
 0x305   : > { %16321 = vst [vmem:[#allocation56_spill] sm:$0xff] %v11939_v50 }
 0x306   : > { %8588 = vmatmul.mubr.msk.f32.gmra.mrb[128].mxu0 %vm931_vm3, %v1670_v5 }
 0x307   : > { %v11942_v61 = vpop.f32.mrb[64].mxu1  ;;  %v11944_v52 = vpop.f32.mrb[64].mxu0  ;;  %2701 = vmatprep.mubr.f32.mxu0 %v15878_v34 }
 0x308   : > { %16322 = vst [vmem:[#allocation57_spill] sm:$0xff] %v11942_v61  ;;  %16323 = vst [vmem:[#allocation58_spill] sm:$0xff] %v11944_v52  ;;  %v11947_v26 = vpop.f32.mrb[65].mxu1  ;;  %v11949_v42 = vpop.f32.mrb[65].mxu0 }
 0x309   : > { %16324 = vst [vmem:[#allocation59_spill] sm:$0xff] %v11949_v42 }
 0x30a   : > { %8589 = vmatmul.mubr.msk.f32.gmra.mrb[130].mxu0 %vm931_vm3, %v9277_v57 }
 0x30b   : > { %v11952_v1 = vpop.f32.mrb[66].mxu1  ;;  %v11954_v31 = vpop.f32.mrb[66].mxu0  ;;  %2707 = vmatprep.mubr.f32.mxu0 %v15878_v34 }
 0x30c   : > { %16325 = vst [vmem:[#allocation60_spill] sm:$0xff] %v11952_v1  ;;  %16326 = vst [vmem:[#allocation61_spill] sm:$0xff] %v11954_v31  ;;  %v11957_v50 = vpop.f32.mrb[67].mxu1  ;;  %v11959_v5 = vpop.f32.mrb[67].mxu0 }
 0x30d   : > { %16327 = vst [vmem:[#allocation62_spill] sm:$0xff] %v11959_v5 }
 0x30e   : > { %8590 = vmatmul.mubr.msk.f32.gmra.mrb[132].mxu0 %vm931_vm3, %v1680_v0 }
 0x30f   : > { %v11962_v52 = vpop.f32.mrb[68].mxu1  ;;  %v11964_v61 = vpop.f32.mrb[68].mxu0  ;;  %2713 = vmatprep.mubr.f32.mxu0 %v15878_v34 }
 0x310   : > { %16328 = vst [vmem:[#allocation63_spill] sm:$0xff] %v11962_v52  ;;  %16329 = vst [vmem:[#allocation64_spill] sm:$0xff] %v11964_v61  ;;  %v11967_v42 = vpop.f32.mrb[69].mxu1  ;;  %v11969_v57 = vpop.f32.mrb[69].mxu0 }
 0x311   : > { %16330 = vst [vmem:[#allocation65_spill] sm:$0xff] %v11969_v57 }
 0x312   : > { %8591 = vmatmul.mubr.msk.f32.gmra.mrb[134].mxu0 %vm931_vm3, %v9280_v44 }
 0x313   : > { %v11972_v31 = vpop.f32.mrb[70].mxu1  ;;  %v11974_v1 = vpop.f32.mrb[70].mxu0  ;;  %2719 = vmatprep.mubr.f32.mxu0 %v15878_v34 }
 0x314   : > { %16331 = vst [vmem:[#allocation66_spill] sm:$0xff] %v11972_v31  ;;  %16332 = vst [vmem:[#allocation67_spill] sm:$0xff] %v11974_v1  ;;  %v11977_v5 = vpop.f32.mrb[71].mxu1  ;;  %v11979_v0 = vpop.f32.mrb[71].mxu0 }
 0x315   : > { %16333 = vst [vmem:[#allocation68_spill] sm:$0xff] %v11979_v0 }
 0x316   : > { %8592 = vmatmul.mubr.msk.f32.gmra.mrb[136].mxu0 %vm931_vm3, %v1690_v54 }
 0x317   : > { %v11982_v61 = vpop.f32.mrb[72].mxu1  ;;  %v11984_v52 = vpop.f32.mrb[72].mxu0  ;;  %2725 = vmatprep.mubr.f32.mxu0 %v15878_v34 }
 0x318   : > { %16334 = vst [vmem:[#allocation69_spill] sm:$0xff] %v11982_v61  ;;  %16335 = vst [vmem:[#allocation70_spill] sm:$0xff] %v11984_v52  ;;  %v11987_v57 = vpop.f32.mrb[73].mxu1  ;;  %v11989_v44 = vpop.f32.mrb[73].mxu0 }
 0x319   : > { %16336 = vst [vmem:[#allocation71_spill] sm:$0xff] %v11989_v44 }
 0x31a   : > { %8593 = vmatmul.mubr.msk.f32.gmra.mrb[138].mxu0 %vm931_vm3, %v11886_v12 }
 0x31b   : > { %v11993_v1 = vpop.f32.mrb[74].mxu1  ;;  %v11995_v31 = vpop.f32.mrb[74].mxu0  ;;  %2731 = vmatprep.mubr.f32.mxu0 %v15878_v34 }
 0x31c   : > { %16337 = vst [vmem:[#allocation72_spill] sm:$0xff] %v11993_v1  ;;  %16338 = vst [vmem:[#allocation73_spill] sm:$0xff] %v11995_v31  ;;  %v11998_v54 = vpop.f32.mrb[75].mxu1  ;;  %v12000_v0 = vpop.f32.mrb[75].mxu0 }
 0x31d   : > { %16339 = vst [vmem:[#allocation74_spill] sm:$0xff] %v12000_v0 }
 0x31e   : > { %8594 = vmatmul.mubr.msk.f32.gmra.mrb[140].mxu0 %vm931_vm3, %v1700_v17 }
 0x31f   : > { %v12003_v52 = vpop.f32.mrb[76].mxu1  ;;  %v12005_v61 = vpop.f32.mrb[76].mxu0  ;;  %2737 = vmatprep.mubr.f32.mxu0 %v15878_v34 }
 0x320   : > { %16340 = vst [vmem:[#allocation75_spill] sm:$0xff] %v12003_v52  ;;  %16341 = vst [vmem:[#allocation76_spill] sm:$0xff] %v12005_v61  ;;  %v12008_v44 = vpop.f32.mrb[77].mxu1  ;;  %v12010_v12 = vpop.f32.mrb[77].mxu0 }
 0x321   : > { %16342 = vst [vmem:[#allocation77_spill] sm:$0xff] %v12010_v12 }
 0x322   : > { %8595 = vmatmul.mubr.msk.f32.gmra.mrb[142].mxu0 %vm931_vm3, %v11894_v9 }
 0x323   : > { %v12014_v31 = vpop.f32.mrb[78].mxu1  ;;  %v12016_v1 = vpop.f32.mrb[78].mxu0  ;;  %2743 = vmatprep.mubr.f32.mxu0 %v15878_v34 }
 0x324   : > { %16343 = vst [vmem:[#allocation78_spill] sm:$0xff] %v12014_v31  ;;  %16344 = vst [vmem:[#allocation79_spill] sm:$0xff] %v12016_v1  ;;  %v12019_v17 = vpop.f32.mrb[79].mxu1  ;;  %v12021_v0 = vpop.f32.mrb[79].mxu0 }
 0x325   : > { %16345 = vst [vmem:[#allocation80_spill] sm:$0xff] %v12021_v0 }
 0x326   : > { %8596 = vmatmul.mubr.msk.f32.gmra.mrb[144].mxu0 %vm931_vm3, %v11907_v32 }
 0x327   : > { %v12025_v61 = vpop.f32.mrb[80].mxu1  ;;  %v12027_v52 = vpop.f32.mrb[80].mxu0  ;;  %2749 = vmatprep.mubr.f32.mxu0 %v15878_v34 }
 0x328   : > { %16346 = vst [vmem:[#allocation81_spill] sm:$0xff] %v12025_v61  ;;  %16347 = vst [vmem:[#allocation82_spill] sm:$0xff] %v12027_v52  ;;  %v12030_v9 = vpop.f32.mrb[81].mxu1  ;;  %v12032_v12 = vpop.f32.mrb[81].mxu0 }
 0x329   : > { %16348 = vst [vmem:[#allocation83_spill] sm:$0xff] %v12032_v12 }
 0x32a   : > { %8597 = vmatmul.mubr.msk.f32.gmra.mrb[146].mxu0 %vm931_vm3, %v11903_v19 }
 0x32b   : > { %v12036_v1 = vpop.f32.mrb[82].mxu1  ;;  %v12038_v31 = vpop.f32.mrb[82].mxu0  ;;  %2755 = vmatprep.mubr.f32.mxu0 %v15878_v34 }
 0x32c   : > { %16349 = vst [vmem:[#allocation84_spill] sm:$0xff] %v12036_v1  ;;  %16350 = vst [vmem:[#allocation85_spill] sm:$0xff] %v12038_v31  ;;  %v12041_v32 = vpop.f32.mrb[83].mxu1  ;;  %v12043_v0 = vpop.f32.mrb[83].mxu0 }
 0x32d   : > { %16351 = vst [vmem:[#allocation86_spill] sm:$0xff] %v12043_v0 }
 0x32e   : > { %8598 = vmatmul.mubr.msk.f32.gmra.mrb[148].mxu0 %vm931_vm3, %v11917_v22 }
 0x32f   : > { %v12047_v52 = vpop.f32.mrb[84].mxu1  ;;  %v12049_v61 = vpop.f32.mrb[84].mxu0  ;;  %2761 = vmatprep.mubr.f32.mxu0 %v15878_v34 }
 0x330   : > { %16352 = vst [vmem:[#allocation87_spill] sm:$0xff] %v12047_v52  ;;  %16353 = vst [vmem:[#allocation88_spill] sm:$0xff] %v12049_v61  ;;  %v12052_v19 = vpop.f32.mrb[85].mxu1  ;;  %v12054_v12 = vpop.f32.mrb[85].mxu0 }
 0x331   : > { %16354 = vst [vmem:[#allocation89_spill] sm:$0xff] %v12054_v12 }
 0x332   : > { %8599 = vmatmul.mubr.msk.f32.gmra.mrb[150].mxu0 %vm931_vm3, %v11913_v28 }
 0x333   : > { %v12058_v31 = vpop.f32.mrb[86].mxu1  ;;  %v12060_v1 = vpop.f32.mrb[86].mxu0  ;;  %2767 = vmatprep.mubr.f32.mxu0 %v15878_v34 }
 0x334   : > { %16355 = vst [vmem:[#allocation90_spill] sm:$0xff] %v12058_v31  ;;  %16356 = vst [vmem:[#allocation91_spill] sm:$0xff] %v12060_v1  ;;  %v12063_v22 = vpop.f32.mrb[87].mxu1  ;;  %v12065_v0 = vpop.f32.mrb[87].mxu0 }
 0x335   : > { %16357 = vst [vmem:[#allocation92_spill] sm:$0xff] %v12065_v0 }
 0x336   : > { %8600 = vmatmul.mubr.msk.f32.gmra.mrb[152].mxu0 %vm931_vm3, %v11927_v15 }
 0x337   : > { %v12069_v61 = vpop.f32.mrb[88].mxu1  ;;  %v12071_v52 = vpop.f32.mrb[88].mxu0  ;;  %2773 = vmatprep.mubr.f32.mxu0 %v15878_v34 }
 0x338   : > { %16358 = vst [vmem:[#allocation93_spill] sm:$0xff] %v12069_v61  ;;  %16359 = vst [vmem:[#allocation94_spill] sm:$0xff] %v12071_v52  ;;  %v12074_v28 = vpop.f32.mrb[89].mxu1  ;;  %v12076_v12 = vpop.f32.mrb[89].mxu0 }
 0x339   : > { %16360 = vst [vmem:[#allocation95_spill] sm:$0xff] %v12076_v12 }
 0x33a   : > { %8601 = vmatmul.mubr.msk.f32.gmra.mrb[154].mxu0 %vm931_vm3, %v11922_v29 }
 0x33b   : > { %v12080_v1 = vpop.f32.mrb[90].mxu1  ;;  %v12082_v31 = vpop.f32.mrb[90].mxu0  ;;  %2779 = vmatprep.mubr.f32.mxu0 %v15878_v34 }
 0x33c   : > { %16361 = vst [vmem:[#allocation96_spill] sm:$0xff] %v12080_v1  ;;  %16362 = vst [vmem:[#allocation97_spill] sm:$0xff] %v12082_v31  ;;  %v12085_v15 = vpop.f32.mrb[91].mxu1  ;;  %v12087_v0 = vpop.f32.mrb[91].mxu0 }
 0x33d   : > { %16363 = vst [vmem:[#allocation98_spill] sm:$0xff] %v12087_v0 }
 0x33e   : > { %8602 = vmatmul.mubr.msk.f32.gmra.mrb[156].mxu0 %vm931_vm3, %v11937_v30  ;;  %v1423_v30 = vld [vmem:[%s15771_s7 + $0x8] sm:$0xf] }
 0x33f   : > { %v12091_v52 = vpop.f32.mrb[92].mxu1  ;;  %v12093_v61 = vpop.f32.mrb[92].mxu0  ;;  %2785 = vmatprep.mubr.f32.mxu0 %v15878_v34 }
 0x340   : > { %16364 = vst [vmem:[#allocation99_spill] sm:$0xff] %v12093_v61  ;;  %v12096_v29 = vpop.f32.mrb[93].mxu1  ;;  %v12098_v12 = vpop.f32.mrb[93].mxu0 }
 0x341   : > { %16365 = vst [vmem:[#allocation100_spill] sm:$0xff] %v12098_v12 }
 0x342   : > { %8603 = vmatmul.mubr.msk.f32.gmra.mrb[158].mxu0 %vm931_vm3, %v11932_v6  ;;  %v16368_v6 = vld [vmem:[#allocation38_spill] sm:$0xff] }
 0x343   : > { %v9398_v31 = vpop.f32.mrb[94].mxu1  ;;  %v12102_v1 = vpop.f32.mrb[94].mxu0  ;;  %2952 = vmatprep.mubr.f32.mxu0 %v15878_v34 }
 0x344   : > { %16366 = vst [vmem:[#allocation101_spill] sm:$0xff] %v12102_v1  ;;  %v12108_v0 = vpop.f32.mrb[95].mxu1  ;;  %v12110_v61 = vpop.f32.mrb[95].mxu0  ;;  %8671 = vmatmul.mubr.msk.f32.vlgmr.msra.gmra.mrb[96].mxu1 %vm931_vm3, %v9398_v31  ;;  %v16383_v31 = vld [vmem:[#allocation46_spill] sm:$0xff]  ;;  %v16403_v1 = vld [vmem:[#allocation72_spill] sm:$0xff] }
 0x345   : > { %16367 = vst [vmem:[#allocation102_spill] sm:$0xff] %v12110_v61  ;;  %9451 = vmatprep.mubr.msk.f32.mxu1 %vm931_vm3, %v11387_v41  ;;  %9450 = vmatpush3.msk.msra.mxu1 %vm1028_vm2, %v11819_v45  ;;  %v16371_v45 = vld [vmem:[#allocation37_spill] sm:$0xff] }
 0x346   : > { %8606 = vmatmul.mubr.msk.f32.vlgmr.msra.gmra.mrb[160].mxu0 %vm931_vm3, %v11821_v47  ;;  %9549 = vmatprep.subr.msk.mxu1 %vm1028_vm2, %v1423_v30  ;;  %v16372_v47 = vld [vmem:[#allocation31_spill] sm:$0xff] }
 0x347   : > { %8639 = vmatpush1.msk.msra.mxu0 %vm1028_vm2, %v11800_v37  ;;  %2958 = vmatprep.mubr.f32.mxu0 %v15878_v34 }
 0x348   : > { %9452 = vmatmul.mubr.msk.f32.vlgmr.msra.gmra.mrb[98].mxu1 %vm931_vm3, %v11384_v38  ;;  %8672 = vmatprep.subr.msk.mxu0 %vm1028_vm2, %v11802_v40  ;;  %v16369_v40 = vld [vmem:[#allocation29_spill] sm:$0xff] }
 0x349   : > { %9454 = vmatprep.mubr.msk.f32.mxu1 %vm931_vm3, %v11402_v51  ;;  %9550 = vmatpush3.msk.msra.mxu1 %vm1028_vm2, %v1423_v30 }
 0x34a   : > { %8607 = vmatmul.mubr.msk.f32.gmra.mrb[162].mxu0 %vm931_vm3, %v11814_v43  ;;  %v16370_v43 = vld [vmem:[#allocation32_spill] sm:$0xff] }
 0x34b   : > { %2964 = vmatprep.mubr.f32.mxu0 %v15878_v34 }
 0x34c   : > { %9455 = vmatmul.mubr.msk.f32.gmra.mrb[100].mxu1 %vm931_vm3, %v11395_v48 }
 0x34d   : > { %9457 = vmatprep.mubr.msk.f32.mxu1 %vm931_vm3, %v11421_v21 }
 0x34e   : > { %8608 = vmatmul.mubr.msk.f32.gmra.mrb[164].mxu0 %vm931_vm3, %v11833_v56  ;;  %v16374_v56 = vld [vmem:[#allocation40_spill] sm:$0xff] }
 0x34f   : > { %2970 = vmatprep.mubr.f32.mxu0 %v15878_v34 }
 0x350   : > { %9458 = vmatmul.mubr.msk.f32.gmra.mrb[102].mxu1 %vm931_vm3, %v11414_v58 }
 0x351   : > { %9460 = vmatprep.mubr.msk.f32.mxu1 %vm931_vm3, %v11437_v4 }
 0x352   : > { %8609 = vmatmul.mubr.msk.f32.gmra.mrb[166].mxu0 %vm931_vm3, %v11831_v53  ;;  %v16373_v53 = vld [vmem:[#allocation34_spill] sm:$0xff] }
 0x353   : > { %2976 = vmatprep.mubr.f32.mxu0 %v15878_v34 }
 0x354   : > { %9461 = vmatmul.mubr.msk.f32.gmra.mrb[104].mxu1 %vm931_vm3, %v11431_v2 }
 0x355   : > { %9463 = vmatprep.mubr.msk.f32.mxu1 %vm931_vm3, %v11457_v16 }
 0x356   : > { %8610 = vmatmul.mubr.msk.f32.gmra.mrb[168].mxu0 %vm931_vm3, %v11840_v62  ;;  %v16376_v62 = vld [vmem:[#allocation36_spill] sm:$0xff] }
 0x357   : > { %2982 = vmatprep.mubr.f32.mxu0 %v15878_v34 }
 0x358   : > { %9464 = vmatmul.mubr.msk.f32.gmra.mrb[106].mxu1 %vm931_vm3, %v11452_v13 }
 0x359   : > { %9466 = vmatprep.mubr.msk.f32.mxu1 %vm931_vm3, %v11474_v27 }
 0x35a   : > { %8611 = vmatmul.mubr.msk.f32.gmra.mrb[170].mxu0 %vm931_vm3, %v11837_v59  ;;  %v16375_v59 = vld [vmem:[#allocation33_spill] sm:$0xff] }
 0x35b   : > { %2988 = vmatprep.mubr.f32.mxu0 %v15878_v34 }
 0x35c   : > { %9467 = vmatmul.mubr.msk.f32.gmra.mrb[108].mxu1 %vm931_vm3, %v11467_v24 }
 0x35d   : > { %9469 = vmatprep.mubr.msk.f32.mxu1 %vm931_vm3, %v11491_v39 }
 0x35e   : > { %8612 = vmatmul.mubr.msk.f32.gmra.mrb[172].mxu0 %vm931_vm3, %v11845_v7  ;;  %v16378_v7 = vld [vmem:[#allocation35_spill] sm:$0xff] }
 0x35f   : > { %2994 = vmatprep.mubr.f32.mxu0 %v15878_v34 }
 0x360   : > { %9470 = vmatmul.mubr.msk.f32.gmra.mrb[110].mxu1 %vm931_vm3, %v11484_v35 }
 0x361   : > { %9472 = vmatprep.mubr.msk.f32.mxu1 %vm931_vm3, %v11507_v49 }
 0x362   : > { %8613 = vmatmul.mubr.msk.f32.gmra.mrb[174].mxu0 %vm931_vm3, %v11843_v3  ;;  %v16377_v3 = vld [vmem:[#allocation39_spill] sm:$0xff] }
 0x363   : > { %3000 = vmatprep.mubr.f32.mxu0 %v15878_v34 }
 0x364   : > { %9473 = vmatmul.mubr.msk.f32.gmra.mrb[112].mxu1 %vm931_vm3, %v11501_v46 }
 0x365   : > { %9475 = vmatprep.mubr.msk.f32.mxu1 %vm931_vm3, %v11525_v63 }
 0x366   : > { %8614 = vmatmul.mubr.msk.f32.gmra.mrb[176].mxu0 %vm931_vm3, %v11852_v14  ;;  %v16380_v14 = vld [vmem:[#allocation41_spill] sm:$0xff] }
 0x367   : > { %3006 = vmatprep.mubr.f32.mxu0 %v15878_v34 }
 0x368   : > { %9476 = vmatmul.mubr.msk.f32.gmra.mrb[114].mxu1 %vm931_vm3, %v11522_v60 }
 0x369   : > { %9478 = vmatprep.mubr.msk.f32.mxu1 %vm931_vm3, %v11542_v11 }
 0x36a   : > { %8615 = vmatmul.mubr.msk.f32.gmra.mrb[178].mxu0 %vm931_vm3, %v11849_v10  ;;  %v16379_v10 = vld [vmem:[#allocation42_spill] sm:$0xff] }
 0x36b   : > { %3012 = vmatprep.mubr.f32.mxu0 %v15878_v34 }
 0x36c   : > { %9479 = vmatmul.mubr.msk.f32.gmra.mrb[116].mxu1 %vm931_vm3, %v11535_v8 }
 0x36d   : > { %9481 = vmatprep.mubr.msk.f32.mxu1 %vm931_vm3, %v11560_v25 }
 0x36e   : > { %8616 = vmatmul.mubr.msk.f32.gmra.mrb[180].mxu0 %vm931_vm3, %v11858_v23  ;;  %v16382_v23 = vld [vmem:[#allocation43_spill] sm:$0xff] }
 0x36f   : > { %3018 = vmatprep.mubr.f32.mxu0 %v15878_v34 }
 0x370   : > { %9482 = vmatmul.mubr.msk.f32.gmra.mrb[118].mxu1 %vm931_vm3, %v11553_v20 }
 0x371   : > { %9484 = vmatprep.mubr.msk.f32.mxu1 %vm931_vm3, %v11577_v36 }
 0x372   : > { %8617 = vmatmul.mubr.msk.f32.gmra.mrb[182].mxu0 %vm931_vm3, %v11855_v18  ;;  %v16381_v18 = vld [vmem:[#allocation44_spill] sm:$0xff] }
 0x373   : > { %3024 = vmatprep.mubr.f32.mxu0 %v15878_v34 }
 0x374   : > { %9485 = vmatmul.mubr.msk.f32.gmra.mrb[120].mxu1 %vm931_vm3, %v11571_v33 }
 0x375   : > { %9487 = vmatprep.mubr.msk.f32.mxu1 %vm931_vm3, %v11598_v55 }
 0x376   : > { %8618 = vmatmul.mubr.msk.f32.gmra.mrb[184].mxu0 %vm931_vm3, %v16368_v6 }
 0x377   : > { %3030 = vmatprep.mubr.f32.mxu0 %v15878_v34 }
 0x378   : > { %9488 = vmatmul.mubr.msk.f32.gmra.mrb[122].mxu1 %vm931_vm3, %v16369_v40 }
 0x379   : > { %9490 = vmatprep.mubr.msk.f32.mxu1 %vm931_vm3, %v16370_v43 }
 0x37a   : > { %8619 = vmatmul.mubr.msk.f32.gmra.mrb[186].mxu0 %vm931_vm3, %v16371_v45  ;;  %v16384_v45 = vld [vmem:[#allocation45_spill] sm:$0xff] }
 0x37b   : > { %3036 = vmatprep.mubr.f32.mxu0 %v15878_v34 }
 0x37c   : > { %9491 = vmatmul.mubr.msk.f32.gmra.mrb[124].mxu1 %vm931_vm3, %v16372_v47 }
 0x37d   : > { %9493 = vmatprep.mubr.msk.f32.mxu1 %vm931_vm3, %v16373_v53 }
 0x37e   : > { %8620 = vmatmul.mubr.msk.f32.gmra.mrb[188].mxu0 %vm931_vm3, %v16374_v56 }
 0x37f   : > { %3042 = vmatprep.mubr.f32.mxu0 %v15878_v34 }
 0x380   : > { %9494 = vmatmul.mubr.msk.f32.gmra.mrb[126].mxu1 %vm931_vm3, %v16375_v59 }
 0x381   : > { %9496 = vmatprep.mubr.msk.f32.mxu1 %vm931_vm3, %v16376_v62 }
 0x382   : > { %8621 = vmatmul.mubr.msk.f32.gmra.mrb[190].mxu0 %vm931_vm3, %v16377_v3 }
 0x383   : > { %3048 = vmatprep.mubr.f32.mxu0 %v15878_v34 }
 0x384   : > { %9497 = vmatmul.mubr.msk.f32.gmra.mrb[128].mxu1 %vm931_vm3, %v16378_v7 }
 0x385   : > { %9551 = vmatprep.mubr.msk.f32.mxu1 %vm931_vm3, %v11387_v41 }
 0x386   : > { %8622 = vmatmul.mubr.msk.f32.gmra.mrb[192].mxu0 %vm931_vm3, %v16379_v10 }
 0x387   : > { %3054 = vmatprep.mubr.f32.mxu0 %v15878_v34 }
 0x388   : > { %9552 = vmatmul.mubr.msk.f32.vlgmr.msra.gmra.mrb[130].mxu1 %vm931_vm3, %v11384_v38 }
 0x389   : > { %9554 = vmatprep.mubr.msk.f32.mxu1 %vm931_vm3, %v11402_v51  ;;  %v16399_v51 = vld [vmem:[#allocation69_spill] sm:$0xff] }
 0x38a   : > { %8623 = vmatmul.mubr.msk.f32.gmra.mrb[194].mxu0 %vm931_vm3, %v16380_v14  ;;  %v16385_v14 = vld [vmem:[#allocation48_spill] sm:$0xff] }
 0x38b   : > { %3060 = vmatprep.mubr.f32.mxu0 %v15878_v34 }
 0x38c   : > { %9555 = vmatmul.mubr.msk.f32.gmra.mrb[132].mxu1 %vm931_vm3, %v11395_v48 }
 0x38d   : > { %9557 = vmatprep.mubr.msk.f32.mxu1 %vm931_vm3, %v11421_v21 }
 0x38e   : > { %8624 = vmatmul.mubr.msk.f32.gmra.mrb[196].mxu0 %vm931_vm3, %v16381_v18  ;;  %v15789_v18 = vmov 0.0|0.0  }
 0x38f   : > { %3066 = vmatprep.mubr.f32.mxu0 %v15878_v34  ;;  %9649 = vmatprep.subr.bf16.mxu1 %v15789_v18 }
 0x390   : > { %9558 = vmatmul.mubr.msk.f32.gmra.mrb[134].mxu1 %vm931_vm3, %v11414_v58  ;;  %v16398_v58 = vld [vmem:[#allocation66_spill] sm:$0xff] }
 0x391   : > { %9560 = vmatprep.mubr.msk.f32.mxu1 %vm931_vm3, %v11437_v4 }
 0x392   : > { %8625 = vmatmul.mubr.msk.f32.gmra.mrb[198].mxu0 %vm931_vm3, %v16382_v23 }
 0x393   : > { %3072 = vmatprep.mubr.f32.mxu0 %v15878_v34 }
 0x394   : > { %9561 = vmatmul.mubr.msk.f32.gmra.mrb[136].mxu1 %vm931_vm3, %v11431_v2 }
 0x395   : > { %9563 = vmatprep.mubr.msk.f32.mxu1 %vm931_vm3, %v11457_v16  ;;  %v16397_v16 = vld [vmem:[#allocation63_spill] sm:$0xff] }
 0x396   : > { %8626 = vmatmul.mubr.msk.f32.gmra.mrb[200].mxu0 %vm931_vm3, %v16383_v31 }
 0x397   : > { %3078 = vmatprep.mubr.f32.mxu0 %v15878_v34 }
 0x398   : > { %9564 = vmatmul.mubr.msk.f32.gmra.mrb[138].mxu1 %vm931_vm3, %v11452_v13 }
 0x399   : > { %9566 = vmatprep.mubr.msk.f32.mxu1 %vm931_vm3, %v11474_v27  ;;  %v12270_v30 = vpop.f32.mrb[96].mxu0 }
 0x39a   : > { %v12272_v6 = vpop.f32.mrb[97].mxu0  ;;  %8627 = vmatmul.mubr.msk.f32.gmra.mrb[202].mxu0 %vm931_vm3, %v16384_v45 }
 0x39b   : > { %v3851_v56 = vmax.f32 %v12270_v30, %v12272_v6  ;;  %3084 = vmatprep.mubr.f32.mxu0 %v15878_v34 }
 0x39c   : > { %9567 = vmatmul.mubr.msk.f32.gmra.mrb[140].mxu1 %vm931_vm3, %v11467_v24  ;;  %v16396_v24 = vld [vmem:[#allocation60_spill] sm:$0xff] }
 0x39d   : > { %9569 = vmatprep.mubr.msk.f32.mxu1 %vm931_vm3, %v11491_v39  ;;  %3852 = vmax.xlane.f32.xlu0 %v3851_v56  ;;  %v12283_v3 = vpop.f32.mrb[98].mxu0  ;;  %v16386_v56 = vld [vmem:[#allocation47_spill] sm:$0xff] }
 0x39e   : > { %v12285_v10 = vpop.f32.mrb[99].mxu0  ;;  %8628 = vmatmul.mubr.msk.f32.gmra.mrb[204].mxu0 %vm931_vm3, %v16385_v14 }
 0x39f   : > { %v3854_v23 = vmax.f32 %v12283_v3, %v12285_v10  ;;  %3090 = vmatprep.mubr.f32.mxu0 %v15878_v34 }
 0x3a0   : > { %9570 = vmatmul.mubr.msk.f32.gmra.mrb[142].mxu1 %vm931_vm3, %v11484_v35 }
 0x3a1   : > { %9572 = vmatprep.mubr.msk.f32.mxu1 %vm931_vm3, %v11507_v49  ;;  %3855 = vmax.xlane.f32.xlu1 %v3854_v23  ;;  %v12297_v31 = vpop.f32.mrb[100].mxu0  ;;  %v16387_v49 = vld [vmem:[#allocation50_spill] sm:$0xff] }
 0x3a2   : > { %v12299_v45 = vpop.f32.mrb[101].mxu0  ;;  %8629 = vmatmul.mubr.msk.f32.gmra.mrb[206].mxu0 %vm931_vm3, %v16386_v56 }
 0x3a3   : > { %v3857_v14 = vmax.f32 %v12297_v31, %v12299_v45  ;;  %3096 = vmatprep.mubr.f32.mxu0 %v15878_v34 }
 0x3a4   : > { %9573 = vmatmul.mubr.msk.f32.gmra.mrb[144].mxu1 %vm931_vm3, %v11501_v46  ;;  %v16388_v46 = vld [vmem:[#allocation49_spill] sm:$0xff] }
 0x3a5   : > { %9575 = vmatprep.mubr.msk.f32.mxu1 %vm931_vm3, %v11525_v63  ;;  %3858 = vmax.xlane.f32.xlu1 %v3857_v14  ;;  %v12310_v23 = vpop.f32.mrb[102].mxu0 }
 0x3a6   : > { %v12312_v18 = vpop.f32.mrb[103].mxu0  ;;  %8630 = vmatmul.mubr.msk.f32.gmra.mrb[208].mxu0 %vm931_vm3, %v16387_v49 }
 0x3a7   : > { %v3860_v56 = vmax.f32 %v12310_v23, %v12312_v18  ;;  %3102 = vmatprep.mubr.f32.mxu0 %v15878_v34 }
 0x3a8   : > { %9576 = vmatmul.mubr.msk.f32.gmra.mrb[146].mxu1 %vm931_vm3, %v11522_v60  ;;  %v16389_v60 = vld [vmem:[#allocation52_spill] sm:$0xff] }
 0x3a9   : > { %9578 = vmatprep.mubr.msk.f32.mxu1 %vm931_vm3, %v11542_v11  ;;  %3861 = vmax.xlane.f32.xlu1 %v3860_v56  ;;  %v12323_v14 = vpop.f32.mrb[104].mxu0 }
 0x3aa   : > { %v12325_v63 = vpop.f32.mrb[105].mxu0  ;;  %8631 = vmatmul.mubr.msk.f32.gmra.mrb[210].mxu0 %vm931_vm3, %v16388_v46 }
 0x3ab   : > { %v3863_v49 = vmax.f32 %v12323_v14, %v12325_v63  ;;  %3108 = vmatprep.mubr.f32.mxu0 %v15878_v34 }
 0x3ac   : > { %9579 = vmatmul.mubr.msk.f32.gmra.mrb[148].mxu1 %vm931_vm3, %v11535_v8  ;;  %v16390_v8 = vld [vmem:[#allocation51_spill] sm:$0xff] }
 0x3ad   : > { %9581 = vmatprep.mubr.msk.f32.mxu1 %vm931_vm3, %v11560_v25  ;;  %3864 = vmax.xlane.f32.xlu0 %v3863_v49  ;;  %v12336_v56 = vpop.f32.mrb[106].mxu0 }
 0x3ae   : > { %v12338_v11 = vpop.f32.mrb[107].mxu0  ;;  %8632 = vmatmul.mubr.msk.f32.gmra.mrb[212].mxu0 %vm931_vm3, %v16389_v60 }
 0x3af   : > { %v3866_v46 = vmax.f32 %v12336_v56, %v12338_v11  ;;  %3114 = vmatprep.mubr.f32.mxu0 %v15878_v34 }
 0x3b0   : > { %9582 = vmatmul.mubr.msk.f32.gmra.mrb[150].mxu1 %vm931_vm3, %v11553_v20  ;;  %v16391_v20 = vld [vmem:[#allocation54_spill] sm:$0xff] }
 0x3b1   : > { %9584 = vmatprep.mubr.msk.f32.mxu1 %vm931_vm3, %v11577_v36  ;;  %3867 = vmax.xlane.f32.xlu1 %v3866_v46  ;;  %v12349_v49 = vpop.f32.mrb[108].mxu0 }
 0x3b2   : > { %v12351_v25 = vpop.f32.mrb[109].mxu0  ;;  %8633 = vmatmul.mubr.msk.f32.gmra.mrb[214].mxu0 %vm931_vm3, %v16390_v8 }
 0x3b3   : > { %v3869_v60 = vmax.f32 %v12349_v49, %v12351_v25  ;;  %3120 = vmatprep.mubr.f32.mxu0 %v15878_v34 }
 0x3b4   : > { %9585 = vmatmul.mubr.msk.f32.gmra.mrb[152].mxu1 %vm931_vm3, %v11571_v33  ;;  %v16392_v33 = vld [vmem:[#allocation53_spill] sm:$0xff] }
 0x3b5   : > { %9587 = vmatprep.mubr.msk.f32.mxu1 %vm931_vm3, %v11598_v55  ;;  %3870 = vmax.xlane.f32.xlu0 %v3869_v60  ;;  %v12362_v46 = vpop.f32.mrb[110].mxu0 }
 0x3b6   : > { %v12364_v36 = vpop.f32.mrb[111].mxu0  ;;  %8634 = vmatmul.mubr.msk.f32.gmra.mrb[216].mxu0 %vm931_vm3, %v16391_v20 }
 0x3b7   : > { %v3872_v8 = vmax.f32 %v12362_v46, %v12364_v36  ;;  %3126 = vmatprep.mubr.f32.mxu0 %v15878_v34 }
 0x3b8   : > { %9588 = vmatmul.mubr.msk.f32.gmra.mrb[154].mxu1 %vm931_vm3, %v16369_v40  ;;  %v16393_v40 = vld [vmem:[#allocation56_spill] sm:$0xff] }
 0x3b9   : > { %9590 = vmatprep.mubr.msk.f32.mxu1 %vm931_vm3, %v16370_v43  ;;  %3873 = vmax.xlane.f32.xlu1 %v3872_v8  ;;  %v12375_v60 = vpop.f32.mrb[112].mxu0 }
 0x3ba   : > { %v12377_v55 = vpop.f32.mrb[113].mxu0  ;;  %8635 = vmatmul.mubr.msk.f32.gmra.mrb[218].mxu0 %vm931_vm3, %v16392_v33 }
 0x3bb   : > { %v3875_v20 = vmax.f32 %v12375_v60, %v12377_v55  ;;  %3132 = vmatprep.mubr.f32.mxu0 %v15878_v34 }
 0x3bc   : > { %9591 = vmatmul.mubr.msk.f32.gmra.mrb[156].mxu1 %vm931_vm3, %v16372_v47  ;;  %v16394_v47 = vld [vmem:[#allocation55_spill] sm:$0xff] }
 0x3bd   : > { %9593 = vmatprep.mubr.msk.f32.mxu1 %vm931_vm3, %v16373_v53  ;;  %3876 = vmax.xlane.f32.xlu0 %v3875_v20  ;;  %v12388_v8 = vpop.f32.mrb[114].mxu0 }
 0x3be   : > { %v12390_v43 = vpop.f32.mrb[115].mxu0  ;;  %8636 = vmatmul.mubr.msk.f32.gmra.mrb[220].mxu0 %vm931_vm3, %v16393_v40 }
 0x3bf   : > { %v3878_v33 = vmax.f32 %v12388_v8, %v12390_v43  ;;  %3138 = vmatprep.mubr.f32.mxu0 %v15878_v34 }
 0x3c0   : > { %9594 = vmatmul.mubr.msk.f32.gmra.mrb[158].mxu1 %vm931_vm3, %v16375_v59 }
 0x3c1   : > { %9596 = vmatprep.mubr.msk.f32.mxu1 %vm931_vm3, %v16376_v62  ;;  %3879 = vmax.xlane.f32.xlu1 %v3878_v33  ;;  %v12401_v20 = vpop.f32.mrb[116].mxu0 }
 0x3c2   : > { %v12403_v53 = vpop.f32.mrb[117].mxu0  ;;  %8637 = vmatmul.mubr.msk.f32.gmra.mrb[222].mxu0 %vm931_vm3, %v16394_v47 }
 0x3c3   : > { %v3881_v40 = vmax.f32 %v12401_v20, %v12403_v53  ;;  %3305 = vmatprep.mubr.f32.mxu0 %v15878_v34 }
 0x3c4   : > { %9597 = vmatmul.mubr.msk.f32.gmra.mrb[160].mxu1 %vm931_vm3, %v16378_v7 }
 0x3c5   : > { %3882 = vmax.xlane.f32.xlu0 %v3881_v40  ;;  %v12412_v59 = vpop.f32.mrb[118].mxu0  ;;  %v16395_v40 = vld [vmem:[#allocation57_spill] sm:$0xff] }
 0x3c6   : > { %v12414_v62 = vpop.f32.mrb[119].mxu0  ;;  %8640 = vmatmul.mubr.msk.f32.vlgmr.msra.gmra.mrb[224].mxu0 %vm931_vm3, %v11947_v26 }
 0x3c7   : > { %8673 = vmatpush1.msk.msra.mxu0 %vm1028_vm2, %v11800_v37  ;;  %v3884_v47 = vmax.f32 %v12412_v59, %v12414_v62  ;;  %3311 = vmatprep.mubr.f32.mxu0 %v15878_v34 }
 0x3c9   : > { %3885 = vmax.xlane.f32.xlu1 %v3884_v47  ;;  %v12423_v33 = vpop.f32.mrb[120].mxu0 }
 0x3ca   : > { %v12425_v7 = vpop.f32.mrb[121].mxu0  ;;  %8641 = vmatmul.mubr.msk.f32.gmra.mrb[226].mxu0 %vm931_vm3, %v16395_v40 }
 0x3cb   : > { %v3887_v35 = vmax.f32 %v12423_v33, %v12425_v7  ;;  %3317 = vmatprep.mubr.f32.mxu0 %v15878_v34 }
 0x3cd   : > { %3888 = vmax.xlane.f32.xlu0 %v3887_v35  ;;  %v12432_v37 = vpop.f32.mrb[122].mxu0 }
 0x3ce   : > { %v12434_v26 = vpop.f32.mrb[123].mxu0  ;;  %8642 = vmatmul.mubr.msk.f32.gmra.mrb[228].mxu0 %vm931_vm3, %v11957_v50 }
 0x3cf   : > { %v3890_v47 = vmax.f32 %v12432_v37, %v12434_v26  ;;  %3323 = vmatprep.mubr.f32.mxu0 %v15878_v34 }
 0x3d1   : > { %3891 = vmax.xlane.f32.xlu1 %v3890_v47  ;;  %v12441_v40 = vpop.f32.mrb[124].mxu0 }
 0x3d2   : > { %v12443_v39 = vpop.f32.mrb[125].mxu0  ;;  %8643 = vmatmul.mubr.msk.f32.gmra.mrb[230].mxu0 %vm931_vm3, %v16396_v24 }
 0x3d3   : > { %v3893_v35 = vmax.f32 %v12441_v40, %v12443_v39  ;;  %3329 = vmatprep.mubr.f32.mxu0 %v15878_v34 }
 0x3d5   : > { %3894 = vmax.xlane.f32.xlu0 %v3893_v35  ;;  %v12450_v50 = vpop.f32.mrb[126].mxu0 }
 0x3d6   : > { %v12452_v27 = vpop.f32.mrb[127].mxu0  ;;  %8644 = vmatmul.mubr.msk.f32.gmra.mrb[232].mxu0 %vm931_vm3, %v11967_v42 }
 0x3d7   : > { %v3896_v47 = vmax.f32 %v12450_v50, %v12452_v27  ;;  %3335 = vmatprep.mubr.f32.mxu0 %v15878_v34 }
 0x3d9   : > { %3897 = vmax.xlane.f32.xlu1 %v3896_v47  ;;  %v12459_v24 = vpop.f32.mrb[128].mxu0 }
 0x3da   : > { %v12461_v13 = vpop.f32.mrb[129].mxu0  ;;  %8645 = vmatmul.mubr.msk.f32.gmra.mrb[234].mxu0 %vm931_vm3, %v16397_v16 }
 0x3db   : > { %v3899_v35 = vmax.f32 %v12459_v24, %v12461_v13  ;;  %3341 = vmatprep.mubr.f32.mxu0 %v15878_v34 }
 0x3dd   : > { %3900 = vmax.xlane.f32.xlu0 %v3899_v35  ;;  %v12468_v42 = vpop.f32.mrb[130].mxu0 }
 0x3de   : > { %v12470_v2 = vpop.f32.mrb[131].mxu0  ;;  %8646 = vmatmul.mubr.msk.f32.gmra.mrb[236].mxu0 %vm931_vm3, %v11977_v5 }
 0x3df   : > { %v3902_v47 = vmax.f32 %v12468_v42, %v12470_v2  ;;  %3347 = vmatprep.mubr.f32.mxu0 %v15878_v34 }
 0x3e1   : > { %3903 = vmax.xlane.f32.xlu1 %v3902_v47  ;;  %v12477_v16 = vpop.f32.mrb[132].mxu0 }
 0x3e2   : > { %v12479_v4 = vpop.f32.mrb[133].mxu0  ;;  %8647 = vmatmul.mubr.msk.f32.gmra.mrb[238].mxu0 %vm931_vm3, %v16398_v58 }
 0x3e3   : > { %v3905_v35 = vmax.f32 %v12477_v16, %v12479_v4  ;;  %3353 = vmatprep.mubr.f32.mxu0 %v15878_v34 }
 0x3e5   : > { %3906 = vmax.xlane.f32.xlu0 %v3905_v35  ;;  %v12486_v5 = vpop.f32.mrb[134].mxu0 }
 0x3e6   : > { %v12488_v21 = vpop.f32.mrb[135].mxu0  ;;  %8648 = vmatmul.mubr.msk.f32.gmra.mrb[240].mxu0 %vm931_vm3, %v11987_v57 }
 0x3e7   : > { %v3908_v47 = vmax.f32 %v12486_v5, %v12488_v21  ;;  %3359 = vmatprep.mubr.f32.mxu0 %v15878_v34 }
 0x3e9   : > { %3909 = vmax.xlane.f32.xlu1 %v3908_v47  ;;  %v12495_v58 = vpop.f32.mrb[136].mxu0 }
 0x3ea   : > { %v12497_v48 = vpop.f32.mrb[137].mxu0  ;;  %8649 = vmatmul.mubr.msk.f32.gmra.mrb[242].mxu0 %vm931_vm3, %v16399_v51 }
 0x3eb   : > { %v3911_v35 = vmax.f32 %v12495_v58, %v12497_v48  ;;  %3365 = vmatprep.mubr.f32.mxu0 %v15878_v34 }
 0x3ed   : > { %3912 = vmax.xlane.f32.xlu0 %v3911_v35  ;;  %v12504_v57 = vpop.f32.mrb[138].mxu0 }
 0x3ee   : > { %v12506_v38 = vpop.f32.mrb[139].mxu0  ;;  %8650 = vmatmul.mubr.msk.f32.gmra.mrb[244].mxu0 %vm931_vm3, %v11998_v54 }
 0x3ef   : > { %16400 = vst [vmem:[#allocation38_spill] sm:$0xff] %v12506_v38  ;;  %v3914_v47 = vmax.f32 %v12504_v57, %v12506_v38  ;;  %3371 = vmatprep.mubr.f32.mxu0 %v15878_v34 }
 0x3f1   : > { %3915 = vmax.xlane.f32.xlu1 %v3914_v47  ;;  %v12513_v51 = vpop.f32.mrb[140].mxu0 }
 0x3f2   : > { %16401 = vst [vmem:[#allocation37_spill] sm:$0xff] %v12513_v51  ;;  %v12515_v41 = vpop.f32.mrb[141].mxu0  ;;  %8651 = vmatmul.mubr.msk.f32.gmra.mrb[246].mxu0 %vm931_vm3, %v16403_v1 }
 0x3f3   : > { %16402 = vst [vmem:[#allocation40_spill] sm:$0xff] %v12515_v41  ;;  %v3917_v35 = vmax.f32 %v12513_v51, %v12515_v41  ;;  %3377 = vmatprep.mubr.f32.mxu0 %v15878_v34  ;;  %v16408_v41 = vld [vmem:[#allocation75_spill] sm:$0xff] }
 0x3f5   : > { %3918 = vmax.xlane.f32.xlu0 %v3917_v35  ;;  %v12522_v54 = vpop.f32.mrb[142].mxu0 }
 0x3f6   : > { %16404 = vst [vmem:[#allocation39_spill] sm:$0xff] %v12522_v54  ;;  %v12524_v61 = vpop.f32.mrb[143].mxu0  ;;  %8652 = vmatmul.mubr.msk.f32.gmra.mrb[248].mxu0 %vm931_vm3, %v12008_v44 }
 0x3f7   : > { %16405 = vst [vmem:[#allocation42_spill] sm:$0xff] %v12524_v61  ;;  %v3920_v47 = vmax.f32 %v12522_v54, %v12524_v61  ;;  %3383 = vmatprep.mubr.f32.mxu0 %v15878_v34 }
 0x3f9   : > { %3921 = vmax.xlane.f32.xlu0 %v3920_v47  ;;  %v12531_v1 = vpop.f32.mrb[144].mxu0 }
 0x3fa   : > { %16406 = vst [vmem:[#allocation41_spill] sm:$0xff] %v12531_v1  ;;  %v12533_v12 = vpop.f32.mrb[145].mxu0  ;;  %8653 = vmatmul.mubr.msk.f32.gmra.mrb[250].mxu0 %vm931_vm3, %v16408_v41 }
 0x3fb   : > { %16407 = vst [vmem:[#allocation44_spill] sm:$0xff] %v12533_v12  ;;  %v3923_v35 = vmax.f32 %v12531_v1, %v12533_v12  ;;  %3389 = vmatprep.mubr.f32.mxu0 %v15878_v34  ;;  %v16413_v12 = vld [vmem:[#allocation78_spill] sm:$0xff] }
 0x3fd   : > { %3924 = vmax.xlane.f32.xlu0 %v3923_v35  ;;  %v12540_v44 = vpop.f32.mrb[146].mxu0 }
 0x3fe   : > { %16409 = vst [vmem:[#allocation43_spill] sm:$0xff] %v12540_v44  ;;  %v12542_v51 = vpop.f32.mrb[147].mxu0  ;;  %8654 = vmatmul.mubr.msk.f32.gmra.mrb[252].mxu0 %vm931_vm3, %v12019_v17 }
 0x3ff   : > { %16410 = vst [vmem:[#allocation46_spill] sm:$0xff] %v12542_v51  ;;  %v3926_v47 = vmax.f32 %v12540_v44, %v12542_v51  ;;  %3395 = vmatprep.mubr.f32.mxu0 %v15878_v34 }
 0x401   : > { %3927 = vmax.xlane.f32.xlu0 %v3926_v47  ;;  %v12549_v41 = vpop.f32.mrb[148].mxu0 }
 0x402   : > { %16411 = vst [vmem:[#allocation45_spill] sm:$0xff] %v12549_v41  ;;  %v12551_v61 = vpop.f32.mrb[149].mxu0  ;;  %8655 = vmatmul.mubr.msk.f32.gmra.mrb[254].mxu0 %vm931_vm3, %v16413_v12  ;;  %v12570_v12 = vld [vmem:[%s15771_s7 + $0x4] sm:$0xf] }
 0x403   : > { %16412 = vst [vmem:[#allocation48_spill] sm:$0xff] %v12551_v61  ;;  %v3929_v35 = vmax.f32 %v12549_v41, %v12551_v61  ;;  %3401 = vmatprep.mubr.f32.mxu0 %v15878_v34  ;;  %9499 = vmatprep.subr.msk.mxu0 %vm1028_vm2, %v12570_v12  ;;  %v16418_v41 = vld [vmem:[#allocation81_spill] sm:$0xff] }
 0x405   : > { %3930 = vmax.xlane.f32.xlu0 %v3929_v35  ;;  %v12558_v17 = vpop.f32.mrb[150].mxu0 }
 0x406   : > { %16414 = vst [vmem:[#allocation47_spill] sm:$0xff] %v12558_v17  ;;  %v12560_v1 = vpop.f32.mrb[151].mxu0  ;;  %8656 = vmatmul.mubr.msk.f32.gmra.mrb[0].mxu0 %vm931_vm3, %v12030_v9 }
 0x407   : > { %16415 = vst [vmem:[#allocation50_spill] sm:$0xff] %v12560_v1  ;;  %v3932_v47 = vmax.f32 %v12558_v17, %v12560_v1  ;;  %3407 = vmatprep.mubr.f32.mxu0 %v15878_v34 }
 0x409   : > { %3933 = vmax.xlane.f32.xlu0 %v3932_v47  ;;  %v12572_v61 = vpop.f32.mrb[152].mxu0 }
 0x40a   : > { %16416 = vst [vmem:[#allocation49_spill] sm:$0xff] %v12572_v61  ;;  %v12576_v35 = vpop.f32.mrb[153].mxu0  ;;  %8657 = vmatmul.mubr.msk.f32.gmra.mrb[2].mxu0 %vm931_vm3, %v16418_v41 }
 0x40b   : > { %16417 = vst [vmem:[#allocation52_spill] sm:$0xff] %v12576_v35  ;;  %v3935_v9 = vmax.f32 %v12572_v61, %v12576_v35  ;;  %3413 = vmatprep.mubr.f32.mxu0 %v15878_v34  ;;  %v16423_v35 = vld [vmem:[#allocation84_spill] sm:$0xff] }
 0x40d   : > { %3936 = vmax.xlane.f32.xlu0 %v3935_v9  ;;  %v12583_v1 = vpop.f32.mrb[154].mxu0 }
 0x40e   : > { %16419 = vst [vmem:[#allocation51_spill] sm:$0xff] %v12583_v1  ;;  %v12585_v17 = vpop.f32.mrb[155].mxu0  ;;  %8658 = vmatmul.mubr.msk.f32.gmra.mrb[4].mxu0 %vm931_vm3, %v12041_v32 }
 0x40f   : > { %16420 = vst [vmem:[#allocation54_spill] sm:$0xff] %v12585_v17  ;;  %v3938_v47 = vmax.f32 %v12583_v1, %v12585_v17  ;;  %3419 = vmatprep.mubr.f32.mxu0 %v15878_v34  ;;  %v16430_v1 = vld [vmem:[#allocation87_spill] sm:$0xff] }
 0x411   : > { %3939 = vmax.xlane.f32.xlu0 %v3938_v47  ;;  %v12592_v41 = vpop.f32.mrb[156].mxu0 }
 0x412   : > { %16421 = vst [vmem:[#allocation53_spill] sm:$0xff] %v12592_v41  ;;  %v12594_v51 = vpop.f32.mrb[157].mxu0  ;;  %8659 = vmatmul.mubr.msk.f32.gmra.mrb[6].mxu0 %vm931_vm3, %v16423_v35 }
 0x413   : > { %16422 = vst [vmem:[#allocation56_spill] sm:$0xff] %v12594_v51  ;;  %v3941_v9 = vmax.f32 %v12592_v41, %v12594_v51  ;;  %3425 = vmatprep.mubr.f32.mxu0 %v15878_v34 }
 0x415   : > { %3942 = vmax.xlane.f32.xlu0 %v3941_v9  ;;  %v12601_v32 = vpop.f32.mrb[158].mxu0 }
 0x416   : > { %16424 = vst [vmem:[#allocation55_spill] sm:$0xff] %v12601_v32  ;;  %v12603_v61 = vpop.f32.mrb[159].mxu0  ;;  %8660 = vmatmul.mubr.msk.f32.gmra.mrb[8].mxu0 %vm931_vm3, %v12052_v19 }
 0x417   : > { %16425 = vst [vmem:[#allocation57_spill] sm:$0xff] %v12603_v61  ;;  %v12607_v47 = vpop.f32.mrb[96].mxu1  ;;  %v3944_v17 = vmax.f32 %v12601_v32, %v12603_v61  ;;  %3431 = vmatprep.mubr.f32.mxu0 %v15878_v34 }
 0x418   : > { %16426 = vst [vmem:[#allocation60_spill] sm:$0xff] %v12607_v47  ;;  %v12612_v35 = vpop.f32.mrb[97].mxu1  ;;  %v16433_v47 = vmov 0.0|0.0  }
 0x419   : > { %16427 = vst [vmem:[#allocation63_spill] sm:$0xff] %v12612_v35  ;;  %3945 = vmax.xlane.f32.xlu0 %v3944_v17  ;;  %v12616_v9 = vpop.f32.mrb[160].mxu0 }
 0x41a   : > { %16428 = vst [vmem:[#allocation66_spill] sm:$0xff] %v12616_v9  ;;  %v12618_v41 = vpop.f32.mrb[161].mxu0  ;;  %8661 = vmatmul.mubr.msk.f32.gmra.mrb[10].mxu0 %vm931_vm3, %v16430_v1 }
 0x41b   : > { %16429 = vst [vmem:[#allocation69_spill] sm:$0xff] %v12618_v41  ;;  %v9453_v19 = vpop.f32.mrb[98].mxu1  ;;  %v3947_v44 = vmax.f32 %v12616_v9, %v12618_v41  ;;  %3437 = vmatprep.mubr.f32.mxu0 %v15878_v34 }
 0x41c   : > { %v5840_v61 = vpop.f32.mrb[99].mxu1 }
 0x41d   : > { %v9650_v32 = vpack.c.bf16 %v9453_v19, %v5840_v61  ;;  %3948 = vmax.xlane.f32.xlu0 %v3947_v44  ;;  %v12625_v54 = vpop.f32.mrb[162].mxu0  ;;  %v16436_v19 = vld [vmem:[#allocation90_spill] sm:$0xff] }
 0x41e   : > { %16431 = vst [vmem:[#allocation72_spill] sm:$0xff] %v12625_v54  ;;  %v12627_v51 = vpop.f32.mrb[163].mxu0  ;;  %8662 = vmatmul.mubr.msk.f32.gmra.mrb[12].mxu0 %vm931_vm3, %v12063_v22 }
 0x41f   : > { %16432 = vst [vmem:[#allocation75_spill] sm:$0xff] %v12627_v51  ;;  %v9456_v17 = vpop.f32.mrb[100].mxu1  ;;  %9651 = vmatpush1.bf16.msra.mxu1 %v9650_v32  ;;  %v3950_v1 = vmax.f32 %v12625_v54, %v12627_v51  ;;  %3443 = vmatprep.mubr.f32.mxu0 %v15878_v34 }
 0x420   : > { %v5850_v35 = vpop.f32.mrb[101].mxu1  ;;  %9652 = vmatprep.subr.bf16.mxu1 %v16433_v47 }
 0x421   : > { %v9653_v41 = vpack.c.bf16 %v9456_v17, %v5850_v35  ;;  %3951 = vmax.xlane.f32.xlu0 %v3950_v1  ;;  %v12635_v61 = vpop.f32.mrb[164].mxu0 }
 0x422   : > { %16434 = vst [vmem:[#allocation78_spill] sm:$0xff] %v12635_v61  ;;  %v12637_v44 = vpop.f32.mrb[165].mxu0  ;;  %8663 = vmatmul.mubr.msk.f32.gmra.mrb[14].mxu0 %vm931_vm3, %v16436_v19 }
 0x423   : > { %16435 = vst [vmem:[#allocation81_spill] sm:$0xff] %v12637_v44  ;;  %v9459_v22 = vpop.f32.mrb[102].mxu1  ;;  %9654 = vmatpush1.bf16.msra.mxu1 %v9653_v41  ;;  %v3953_v32 = vmax.f32 %v12635_v61, %v12637_v44  ;;  %3449 = vmatprep.mubr.f32.mxu0 %v15878_v34  ;;  %v16439_v61 = vld [vmem:[#allocation93_spill] sm:$0xff] }
 0x424   : > { %v5860_v51 = vpop.f32.mrb[103].mxu1  ;;  %9655 = vmatprep.subr.bf16.mxu1 %v16433_v47 }
 0x425   : > { %v9656_v54 = vpack.c.bf16 %v9459_v22, %v5860_v51  ;;  %3954 = vmax.xlane.f32.xlu0 %v3953_v32  ;;  %v12645_v35 = vpop.f32.mrb[166].mxu0 }
 0x426   : > { %16437 = vst [vmem:[#allocation84_spill] sm:$0xff] %v12645_v35  ;;  %v12647_v17 = vpop.f32.mrb[167].mxu0  ;;  %8664 = vmatmul.mubr.msk.f32.gmra.mrb[16].mxu0 %vm931_vm3, %v12074_v28 }
 0x427   : > { %16438 = vst [vmem:[#allocation87_spill] sm:$0xff] %v12647_v17  ;;  %v9462_v1 = vpop.f32.mrb[104].mxu1  ;;  %9657 = vmatpush1.bf16.msra.mxu1 %v9656_v54  ;;  %v3956_v41 = vmax.f32 %v12645_v35, %v12647_v17  ;;  %3455 = vmatprep.mubr.f32.mxu0 %v15878_v34  ;;  %v16440_v35 = vmov 0.0  }
 0x428   : > { %v5870_v19 = vpop.f32.mrb[105].mxu1  ;;  %9658 = vmatprep.subr.bf16.mxu1 %v16433_v47 }
 0x429   : > { %v9659_v44 = vpack.c.bf16 %v9462_v1, %v5870_v19  ;;  %3957 = vmax.xlane.f32.xlu0 %v3956_v41  ;;  %v12655_v51 = vpop.f32.mrb[168].mxu0 }
 0x42a   : > { %v3853_v22 = vpop.xlane.xlu0 %3852  ;;  %v12657_v32 = vpop.f32.mrb[169].mxu0  ;;  %8665 = vmatmul.mubr.msk.f32.gmra.mrb[18].mxu0 %vm931_vm3, %v16439_v61 }
 0x42b   : > { %v9465_v28 = vpop.f32.mrb[106].mxu1  ;;  %9660 = vmatpush1.bf16.msra.mxu1 %v9659_v44  ;;  %v4235_v54 = vsub.f32 %v12270_v30, %v3853_v22  ;;  %v4236_v17 = vsub.f32 %v12272_v6, %v3853_v22  ;;  %v3959_v34 = vmax.f32 %v12655_v51, %v12657_v32  ;;  %3461 = vmatprep.mubr.f32.mxu0 %v16440_v35 }
 0x42c   : > { %v5880_v1 = vpop.f32.mrb[107].mxu1  ;;  %9661 = vmatprep.subr.bf16.mxu1 %v16433_v47 }
 0x42d   : > { %v9662_v41 = vpack.c.bf16 %v9465_v28, %v5880_v1  ;;  %v4491_v19 = vmul.f32 1.442695, %v4235_v54  ;;  %v4493_v9 = vmul.f32 1.442695, %v4236_v17  ;;  %3960 = vmax.xlane.f32.xlu0 %v3959_v34  ;;  %v12667_v38 = vpop.f32.mrb[170].mxu0 }
 0x42e   : > { %v3856_v61 = vpop.xlane.xlu1 %3855  ;;  %v12669_v44 = vpop.f32.mrb[171].mxu0  ;;  %8666 = vmatmul.mubr.msk.f32.gmra.mrb[20].mxu0 %vm931_vm3, %v12085_v15 }
 0x42f   : > { %10224 = vpow2.f32 %v4491_v19  ;;  %v9468_v30 = vpop.f32.mrb[108].mxu1  ;;  %9663 = vmatpush1.bf16.msra.mxu1 %v9662_v41  ;;  %v4237_v6 = vsub.f32 %v12283_v3, %v3856_v61  ;;  %v4238_v22 = vsub.f32 %v12285_v10, %v3856_v61  ;;  %v3962_v28 = vmax.f32 %v12667_v38, %v12669_v44  ;;  %3467 = vmatprep.mubr.f32.mxu0 %v16440_v35  ;;  %v16441_v3 = vld [vmem:[#allocation96_spill] sm:$0xff] }
 0x430   : > { %10226 = vpow2.f32 %v4493_v9  ;;  %v5890_v34 = vpop.f32.mrb[109].mxu1  ;;  %9664 = vmatprep.subr.bf16.mxu1 %v16433_v47 }
 0x431   : > { %v9665_v17 = vpack.c.bf16 %v9468_v30, %v5890_v34  ;;  %v4495_v54 = vmul.f32 1.442695, %v4237_v6  ;;  %v4497_v1 = vmul.f32 1.442695, %v4238_v22  ;;  %3963 = vmax.xlane.f32.xlu0 %v3962_v28  ;;  %v12679_v15 = vpop.f32.mrb[172].mxu0 }
 0x432   : > { %v3859_v41 = vpop.xlane.xlu1 %3858  ;;  %v12681_v19 = vpop.f32.mrb[173].mxu0  ;;  %8667 = vmatmul.mubr.msk.f32.gmra.mrb[22].mxu0 %vm931_vm3, %v16441_v3 }
 0x433   : > { %10228 = vpow2.f32 %v4495_v54  ;;  %v9471_v10 = vpop.f32.mrb[110].mxu1  ;;  %9666 = vmatpush1.bf16.msra.mxu1 %v9665_v17  ;;  %v4239_v9 = vsub.f32 %v12297_v31, %v3859_v41  ;;  %v4240_v61 = vsub.f32 %v12299_v45, %v3859_v41  ;;  %v3965_v30 = vmax.f32 %v12679_v15, %v12681_v19  ;;  %3473 = vmatprep.mubr.f32.mxu0 %v16440_v35 }
 0x434   : > { %10230 = vpow2.f32 %v4497_v1  ;;  %v5900_v6 = vpop.f32.mrb[111].mxu1  ;;  %9667 = vmatprep.subr.bf16.mxu1 %v16433_v47 }
 0x435   : > { %v9668_v22 = vpack.c.bf16 %v9471_v10, %v5900_v6  ;;  %v4499_v28 = vmul.f32 1.442695, %v4239_v9  ;;  %v4501_v34 = vmul.f32 1.442695, %v4240_v61  ;;  %3966 = vmax.xlane.f32.xlu0 %v3965_v30  ;;  %v12691_v54 = vpop.f32.mrb[174].mxu0 }
 0x436   : > { %v3862_v17 = vpop.xlane.xlu1 %3861  ;;  %v12693_v3 = vpop.f32.mrb[175].mxu0  ;;  %8668 = vmatmul.mubr.msk.f32.gmra.mrb[24].mxu0 %vm931_vm3, %v12096_v29 }
 0x437   : > { %10232 = vpow2.f32 %v4499_v28  ;;  %v9474_v31 = vpop.f32.mrb[112].mxu1  ;;  %9669 = vmatpush1.bf16.msra.mxu1 %v9668_v22  ;;  %v4241_v45 = vsub.f32 %v12310_v23, %v3862_v17  ;;  %v4242_v1 = vsub.f32 %v12312_v18, %v3862_v17  ;;  %v3968_v41 = vmax.f32 %v12691_v54, %v12693_v3  ;;  %3479 = vmatprep.mubr.f32.mxu0 %v16440_v35 }
 0x438   : > { %10234 = vpow2.f32 %v4501_v34  ;;  %v5910_v10 = vpop.f32.mrb[113].mxu1  ;;  %9670 = vmatprep.subr.bf16.mxu1 %v16433_v47 }
 0x439   : > { %v12703_v9 = vpop.eup %10224  ;;  %v9671_v61 = vpack.c.bf16 %v9474_v31, %v5910_v10  ;;  %v4503_v29 = vmul.f32 1.442695, %v4241_v45  ;;  %v4505_v30 = vmul.f32 1.442695, %v4242_v1  ;;  %3969 = vmax.xlane.f32.xlu0 %v3968_v41  ;;  %v12705_v6 = vpop.f32.mrb[176].mxu0 }
 0x43a   : > { %16442 = vst [vmem:[#allocation90_spill] sm:$0xff] %v12703_v9  ;;  %v12707_v23 = vpop.eup %10226  ;;  %v3865_v18 = vpop.xlane.xlu0 %3864  ;;  %8669 = vmatmul.mubr.msk.f32.gmra.mrb[26].mxu0 %vm931_vm3, %v12091_v52 }
 0x43b   : > { %v12709_v22 = vpop.f32.mrb[177].mxu0  ;;  %10236 = vpow2.f32 %v4503_v29  ;;  %v9477_v28 = vpop.f32.mrb[114].mxu1  ;;  %9672 = vmatpush1.bf16.msra.mxu1 %v9671_v61  ;;  %v4243_v34 = vsub.f32 %v12323_v14, %v3865_v18  ;;  %v4244_v17 = vsub.f32 %v12325_v63, %v3865_v18  ;;  %v5003_v31 = vadd.f32 %v12707_v23, %v12703_v9  ;;  %3485 = vmatprep.mubr.f32.mxu0 %v16440_v35 }
 0x43c   : > { %10238 = vpow2.f32 %v4505_v30  ;;  %v5920_v45 = vpop.f32.mrb[115].mxu1  ;;  %9673 = vmatprep.subr.bf16.mxu1 %v16433_v47  ;;  %v3971_v1 = vmax.f32 %v12705_v6, %v12709_v22 }
 0x43d   : > { %v12721_v52 = vpop.eup %10228  ;;  %v9674_v41 = vpack.c.bf16 %v9477_v28, %v5920_v45  ;;  %v4507_v10 = vmul.f32 1.442695, %v4243_v34  ;;  %v4509_v61 = vmul.f32 1.442695, %v4244_v17  ;;  %5004 = vadd.xlane.f32.xlu1 %v5003_v31  ;;  %v12723_v14 = vpop.f32.mrb[178].mxu0 }
 0x43e   : > { %16443 = vst [vmem:[#allocation93_spill] sm:$0xff] %v12721_v52  ;;  %v12725_v63 = vpop.eup %10230  ;;  %3972 = vmax.xlane.f32.xlu0 %v3971_v1  ;;  %v3868_v29 = vpop.xlane.xlu1 %3867  ;;  %8670 = vmatmul.mubr.msk.f32.gmra.mrb[28].mxu0 %vm931_vm3, %v12108_v0 }
 0x43f   : > { %16444 = vst [vmem:[#allocation96_spill] sm:$0xff] %v12725_v63  ;;  %v12727_v18 = vpop.f32.mrb[179].mxu0  ;;  %10240 = vpow2.f32 %v4507_v10  ;;  %v9480_v30 = vpop.f32.mrb[116].mxu1  ;;  %9675 = vmatpush1.bf16.msra.mxu1 %v9674_v41  ;;  %v4245_v9 = vsub.f32 %v12336_v56, %v3868_v29  ;;  %v4246_v28 = vsub.f32 %v12338_v11, %v3868_v29  ;;  %v5006_v34 = vadd.f32 %v12725_v63, %v12721_v52 }
 0x440   : > { %3658 = vmatprep.mubr.f32.mxu0 %v16440_v35  ;;  %10242 = vpow2.f32 %v4509_v61  ;;  %v5930_v17 = vpop.f32.mrb[117].mxu1  ;;  %9676 = vmatprep.subr.bf16.mxu1 %v16433_v47  ;;  %v3974_v31 = vmax.f32 %v12723_v14, %v12727_v18  ;;  %v16446_v61 = vld [vmem:[#allocation59_spill] sm:$0xff] }
 0x441   : > { %v12739_v0 = vpop.eup %10232  ;;  %v9677_v45 = vpack.c.bf16 %v9480_v30, %v5930_v17  ;;  %v4511_v1 = vmul.f32 1.442695, %v4245_v9  ;;  %v4513_v41 = vmul.f32 1.442695, %v4246_v28  ;;  %5007 = vadd.xlane.f32.xlu1 %v5006_v34  ;;  %v12741_v56 = vpop.f32.mrb[180].mxu0 }
 0x442   : > { %16445 = vst [vmem:[#allocation103_spill] sm:$0xff] %v12739_v0  ;;  %v12743_v11 = vpop.eup %10234  ;;  %3975 = vmax.xlane.f32.xlu0 %v3974_v31  ;;  %v3871_v10 = vpop.xlane.xlu0 %3870  ;;  %8674 = vmatmul.mubr.msk.f32.vlgmr.msra.gmra.mrb[30].mxu0 %vm931_vm3, %v16446_v61  ;;  %v16449_v61 = vld [vmem:[#allocation58_spill] sm:$0xff] }
 0x443   : > { %v12745_v29 = vpop.f32.mrb[181].mxu0  ;;  %10244 = vpow2.f32 %v4511_v1  ;;  %v9483_v52 = vpop.f32.mrb[118].mxu1  ;;  %9678 = vmatpush1.bf16.msra.mxu1 %v9677_v45  ;;  %v4247_v63 = vsub.f32 %v12349_v49, %v3871_v10  ;;  %v4248_v9 = vsub.f32 %v12351_v25, %v3871_v10  ;;  %v5009_v30 = vadd.f32 %v12743_v11, %v12739_v0  ;;  %3664 = vmatprep.mubr.f32.mxu0 %v16440_v35 }
 0x444   : > { %10246 = vpow2.f32 %v4513_v41  ;;  %v5940_v28 = vpop.f32.mrb[119].mxu1  ;;  %9679 = vmatprep.subr.bf16.mxu1 %v16433_v47  ;;  %v3977_v34 = vmax.f32 %v12741_v56, %v12745_v29  ;;  %9500 = vmatpush3.msk.msra.mxu0 %vm1028_vm2, %v12570_v12 }
 0x445   : > { %v12759_v17 = vpop.eup %10236  ;;  %v9680_v49 = vpack.c.bf16 %v9483_v52, %v5940_v28  ;;  %v4515_v31 = vmul.f32 1.442695, %v4247_v63  ;;  %v4517_v25 = vmul.f32 1.442695, %v4248_v9  ;;  %5010 = vadd.xlane.f32.xlu1 %v5009_v30  ;;  %v12761_v45 = vpop.f32.mrb[182].mxu0 }
 0x446   : > { %16447 = vst [vmem:[#allocation59_spill] sm:$0xff] %v12759_v17  ;;  %v12763_v1 = vpop.eup %10238  ;;  %3978 = vmax.xlane.f32.xlu0 %v3977_v34  ;;  %v3874_v41 = vpop.xlane.xlu1 %3873  ;;  %8675 = vmatmul.mubr.msk.f32.gmra.mrb[32].mxu0 %vm931_vm3, %v16449_v61 }
 0x447   : > { %16448 = vst [vmem:[#allocation104_spill] sm:$0xff] %v12763_v1  ;;  %v12765_v10 = vpop.f32.mrb[183].mxu0  ;;  %10248 = vpow2.f32 %v4515_v31  ;;  %v9486_v0 = vpop.f32.mrb[120].mxu1  ;;  %9681 = vmatpush1.bf16.msra.mxu1 %v9680_v49  ;;  %v4249_v12 = vsub.f32 %v12362_v46, %v3874_v41  ;;  %v4250_v52 = vsub.f32 %v12364_v36, %v3874_v41  ;;  %v5012_v63 = vadd.f32 %v12763_v1, %v12759_v17 }
 0x448   : > { %3670 = vmatprep.mubr.f32.mxu0 %v16440_v35  ;;  %10250 = vpow2.f32 %v4517_v25  ;;  %v5950_v9 = vpop.f32.mrb[121].mxu1  ;;  %9682 = vmatprep.subr.bf16.mxu1 %v16433_v47  ;;  %v3980_v30 = vmax.f32 %v12761_v45, %v12765_v10  ;;  %v16452_v25 = vld [vmem:[#allocation62_spill] sm:$0xff] }
 0x449   : > { %v12777_v28 = vpop.eup %10240  ;;  %v9683_v34 = vpack.c.bf16 %v9486_v0, %v5950_v9  ;;  %v4519_v49 = vmul.f32 1.442695, %v4249_v12  ;;  %v4521_v31 = vmul.f32 1.442695, %v4250_v52  ;;  %5013 = vadd.xlane.f32.xlu1 %v5012_v63  ;;  %v12779_v46 = vpop.f32.mrb[184].mxu0 }
 0x44a   : > { %16450 = vst [vmem:[#allocation58_spill] sm:$0xff] %v12777_v28  ;;  %v12781_v36 = vpop.eup %10242  ;;  %3981 = vmax.xlane.f32.xlu0 %v3980_v30  ;;  %v3877_v41 = vpop.xlane.xlu0 %3876  ;;  %8676 = vmatmul.mubr.msk.f32.gmra.mrb[34].mxu0 %vm931_vm3, %v16452_v25 }
 0x44b   : > { %16451 = vst [vmem:[#allocation105_spill] sm:$0xff] %v12781_v36  ;;  %v12783_v61 = vpop.f32.mrb[185].mxu0  ;;  %10252 = vpow2.f32 %v4519_v49  ;;  %v9489_v17 = vpop.f32.mrb[122].mxu1  ;;  %9684 = vmatpush1.bf16.msra.mxu1 %v9683_v34  ;;  %v4251_v1 = vsub.f32 %v12375_v60, %v3877_v41  ;;  %v4252_v0 = vsub.f32 %v12377_v55, %v3877_v41  ;;  %v5015_v12 = vadd.f32 %v12781_v36, %v12777_v28 }
 0x44c   : > { %3676 = vmatprep.mubr.f32.mxu0 %v16440_v35  ;;  %10254 = vpow2.f32 %v4521_v31  ;;  %v5960_v52 = vpop.f32.mrb[123].mxu1  ;;  %9685 = vmatprep.subr.bf16.mxu1 %v16433_v47  ;;  %v3983_v63 = vmax.f32 %v12779_v46, %v12783_v61  ;;  %v16455_v31 = vld [vmem:[#allocation61_spill] sm:$0xff] }
 0x44d   : > { %v12795_v9 = vpop.eup %10244  ;;  %v9686_v30 = vpack.c.bf16 %v9489_v17, %v5960_v52  ;;  %v4523_v34 = vmul.f32 1.442695, %v4251_v1  ;;  %v4525_v49 = vmul.f32 1.442695, %v4252_v0  ;;  %5016 = vadd.xlane.f32.xlu1 %v5015_v12  ;;  %v12797_v60 = vpop.f32.mrb[186].mxu0 }
 0x44e   : > { %16453 = vst [vmem:[#allocation62_spill] sm:$0xff] %v12795_v9  ;;  %v12799_v55 = vpop.eup %10246  ;;  %3984 = vmax.xlane.f32.xlu0 %v3983_v63  ;;  %v3880_v41 = vpop.xlane.xlu1 %3879  ;;  %8677 = vmatmul.mubr.msk.f32.gmra.mrb[36].mxu0 %vm931_vm3, %v16455_v31 }
 0x44f   : > { %16454 = vst [vmem:[#allocation106_spill] sm:$0xff] %v12799_v55  ;;  %v12801_v25 = vpop.f32.mrb[187].mxu0  ;;  %10256 = vpow2.f32 %v4523_v34  ;;  %v9492_v28 = vpop.f32.mrb[124].mxu1  ;;  %9687 = vmatpush1.bf16.msra.mxu1 %v9686_v30  ;;  %v4253_v36 = vsub.f32 %v12388_v8, %v3880_v41  ;;  %v4254_v17 = vsub.f32 %v12390_v43, %v3880_v41  ;;  %v5018_v1 = vadd.f32 %v12799_v55, %v12795_v9 }
 0x450   : > { %3682 = vmatprep.mubr.f32.mxu0 %v16440_v35  ;;  %10258 = vpow2.f32 %v4525_v49  ;;  %v5970_v0 = vpop.f32.mrb[125].mxu1  ;;  %9688 = vmatprep.subr.bf16.mxu1 %v16433_v47  ;;  %v3986_v12 = vmax.f32 %v12797_v60, %v12801_v25  ;;  %v16458_v49 = vld [vmem:[#allocation65_spill] sm:$0xff] }
 0x451   : > { %v12813_v52 = vpop.eup %10248  ;;  %v9689_v63 = vpack.c.bf16 %v9492_v28, %v5970_v0  ;;  %v4527_v30 = vmul.f32 1.442695, %v4253_v36  ;;  %v4529_v34 = vmul.f32 1.442695, %v4254_v17  ;;  %5019 = vadd.xlane.f32.xlu1 %v5018_v1  ;;  %v12815_v8 = vpop.f32.mrb[188].mxu0 }
 0x452   : > { %16456 = vst [vmem:[#allocation61_spill] sm:$0xff] %v12813_v52  ;;  %v12817_v43 = vpop.eup %10250  ;;  %3987 = vmax.xlane.f32.xlu0 %v3986_v12  ;;  %v3883_v41 = vpop.xlane.xlu0 %3882  ;;  %8678 = vmatmul.mubr.msk.f32.gmra.mrb[38].mxu0 %vm931_vm3, %v16458_v49 }
 0x453   : > { %16457 = vst [vmem:[#allocation107_spill] sm:$0xff] %v12817_v43  ;;  %v12819_v31 = vpop.f32.mrb[189].mxu0  ;;  %10260 = vpow2.f32 %v4527_v30  ;;  %v9495_v9 = vpop.f32.mrb[126].mxu1  ;;  %9690 = vmatpush1.bf16.msra.mxu1 %v9689_v63  ;;  %v4255_v55 = vsub.f32 %v12401_v20, %v3883_v41  ;;  %v4256_v28 = vsub.f32 %v12403_v53, %v3883_v41  ;;  %v5021_v36 = vadd.f32 %v12817_v43, %v12813_v52 }
 0x454   : > { %3688 = vmatprep.mubr.f32.mxu0 %v16440_v35  ;;  %10262 = vpow2.f32 %v4529_v34  ;;  %v5980_v17 = vpop.f32.mrb[127].mxu1  ;;  %9691 = vmatprep.subr.bf16.mxu1 %v16433_v47  ;;  %v3989_v1 = vmax.f32 %v12815_v8, %v12819_v31  ;;  %v16460_v34 = vld [vmem:[#allocation64_spill] sm:$0xff] }
 0x455   : > { %v12831_v0 = vpop.eup %10252  ;;  %v9692_v12 = vpack.c.bf16 %v9495_v9, %v5980_v17  ;;  %v4531_v63 = vmul.f32 1.442695, %v4255_v55  ;;  %v4533_v30 = vmul.f32 1.442695, %v4256_v28  ;;  %5022 = vadd.xlane.f32.xlu1 %v5021_v36  ;;  %v12833_v20 = vpop.f32.mrb[190].mxu0 }
 0x456   : > { %16459 = vst [vmem:[#allocation65_spill] sm:$0xff] %v12831_v0  ;;  %v12835_v53 = vpop.eup %10254  ;;  %3990 = vmax.xlane.f32.xlu0 %v3989_v1  ;;  %v3886_v41 = vpop.xlane.xlu1 %3885  ;;  %8679 = vmatmul.mubr.msk.f32.gmra.mrb[40].mxu0 %vm931_vm3, %v16460_v34 }
 0x457   : > { %v12837_v49 = vpop.f32.mrb[191].mxu0  ;;  %10264 = vpow2.f32 %v4531_v63  ;;  %v9498_v52 = vpop.f32.mrb[128].mxu1  ;;  %9693 = vmatpush1.bf16.msra.mxu1 %v9692_v12  ;;  %v4257_v43 = vsub.f32 %v12412_v59, %v3886_v41  ;;  %v4258_v9 = vsub.f32 %v12414_v62, %v3886_v41  ;;  %v5024_v55 = vadd.f32 %v12835_v53, %v12831_v0  ;;  %3694 = vmatprep.mubr.f32.mxu0 %v16440_v35 }
 0x458   : > { %10266 = vpow2.f32 %v4533_v30  ;;  %v5990_v28 = vpop.f32.mrb[129].mxu1  ;;  %9694 = vmatprep.subr.bf16.mxu1 %v16433_v47  ;;  %v3992_v36 = vmax.f32 %v12833_v20, %v12837_v49  ;;  %v16463_v30 = vld [vmem:[#allocation68_spill] sm:$0xff] }
 0x459   : > { %v12849_v17 = vpop.eup %10256  ;;  %v9695_v1 = vpack.c.bf16 %v9498_v52, %v5990_v28  ;;  %v4535_v12 = vmul.f32 1.442695, %v4257_v43  ;;  %v4537_v63 = vmul.f32 1.442695, %v4258_v9  ;;  %5025 = vadd.xlane.f32.xlu1 %v5024_v55  ;;  %v12851_v59 = vpop.f32.mrb[192].mxu0 }
 0x45a   : > { %16461 = vst [vmem:[#allocation64_spill] sm:$0xff] %v12849_v17  ;;  %v12853_v62 = vpop.eup %10258  ;;  %3993 = vmax.xlane.f32.xlu0 %v3992_v36  ;;  %v3889_v41 = vpop.xlane.xlu0 %3888  ;;  %8680 = vmatmul.mubr.msk.f32.gmra.mrb[42].mxu0 %vm931_vm3, %v16463_v30 }
 0x45b   : > { %16462 = vst [vmem:[#allocation108_spill] sm:$0xff] %v12853_v62  ;;  %v12855_v34 = vpop.f32.mrb[193].mxu0  ;;  %10268 = vpow2.f32 %v4535_v12  ;;  %v12859_v0 = vpop.f32.mrb[130].mxu1  ;;  %9696 = vmatpush1.bf16.msra.mxu1 %v9695_v1  ;;  %v4259_v52 = vsub.f32 %v12423_v33, %v3889_v41  ;;  %v4260_v43 = vsub.f32 %v12425_v7, %v3889_v41  ;;  %v5027_v9 = vadd.f32 %v12853_v62, %v12849_v17  ;;  %v16468_v17 = vld [vmem:[#allocation67_spill] sm:$0xff] }
 0x45c   : > { %16464 = vst [vmem:[#allocation68_spill] sm:$0xff] %v12859_v0  ;;  %3700 = vmatprep.mubr.f32.mxu0 %v16440_v35  ;;  %10270 = vpow2.f32 %v4537_v63  ;;  %v12866_v55 = vpop.f32.mrb[131].mxu1  ;;  %v3995_v28 = vmax.f32 %v12851_v59, %v12855_v34  ;;  %9697 = vmatprep.subr.bf16.mxu1 %v16433_v47  ;;  %v16473_v0 = vld [vmem:[#allocation71_spill] sm:$0xff] }
 0x45d   : > { %16465 = vst [vmem:[#allocation109_spill] sm:$0xff] %v12866_v55  ;;  %v12871_v36 = vpop.eup %10260  ;;  %v4539_v1 = vmul.f32 1.442695, %v4259_v52  ;;  %v4541_v7 = vmul.f32 1.442695, %v4260_v43  ;;  %5028 = vadd.xlane.f32.xlu1 %v5027_v9  ;;  %v12875_v12 = vpop.f32.mrb[194].mxu0 }
 0x45e   : > { %16466 = vst [vmem:[#allocation110_spill] sm:$0xff] %v12871_v36  ;;  %v12877_v41 = vpop.eup %10262  ;;  %3996 = vmax.xlane.f32.xlu0 %v3995_v28  ;;  %v3892_v63 = vpop.xlane.xlu1 %3891  ;;  %8681 = vmatmul.mubr.msk.f32.gmra.mrb[44].mxu0 %vm931_vm3, %v16468_v17 }
 0x45f   : > { %16467 = vst [vmem:[#allocation111_spill] sm:$0xff] %v12877_v41  ;;  %v12879_v30 = vpop.f32.mrb[195].mxu0  ;;  %10272 = vpow2.f32 %v4539_v1  ;;  %v12883_v47 = vpop.f32.mrb[132].mxu1  ;;  %v4261_v62 = vsub.f32 %v12432_v37, %v3892_v63  ;;  %v4262_v52 = vsub.f32 %v12434_v26, %v3892_v63  ;;  %v5030_v43 = vadd.f32 %v12877_v41, %v12871_v36  ;;  %3706 = vmatprep.mubr.f32.mxu0 %v16440_v35 }
 0x460   : > { %16469 = vst [vmem:[#allocation67_spill] sm:$0xff] %v12883_v47  ;;  %10274 = vpow2.f32 %v4541_v7  ;;  %v12890_v9 = vpop.f32.mrb[133].mxu1  ;;  %v3998_v28 = vmax.f32 %v12875_v12, %v12879_v30  ;;  %v16478_v47 = vld [vmem:[#allocation70_spill] sm:$0xff] }
 0x461   : > { %16470 = vst [vmem:[#allocation112_spill] sm:$0xff] %v12890_v9  ;;  %v12894_v33 = vpop.eup %10264  ;;  %v4543_v1 = vmul.f32 1.442695, %v4261_v62  ;;  %v4545_v37 = vmul.f32 1.442695, %v4262_v52  ;;  %5031 = vadd.xlane.f32.xlu1 %v5030_v43  ;;  %v12898_v26 = vpop.f32.mrb[196].mxu0 }
 0x462   : > { %16471 = vst [vmem:[#allocation113_spill] sm:$0xff] %v12894_v33  ;;  %v12900_v63 = vpop.eup %10266  ;;  %3999 = vmax.xlane.f32.xlu0 %v3998_v28  ;;  %v3895_v55 = vpop.xlane.xlu0 %3894  ;;  %8682 = vmatmul.mubr.msk.f32.gmra.mrb[46].mxu0 %vm931_vm3, %v16473_v0 }
 0x463   : > { %16472 = vst [vmem:[#allocation114_spill] sm:$0xff] %v12900_v63  ;;  %v12902_v7 = vpop.f32.mrb[197].mxu0  ;;  %10276 = vpow2.f32 %v4543_v1  ;;  %v12906_v36 = vpop.f32.mrb[134].mxu1  ;;  %v4263_v41 = vsub.f32 %v12441_v40, %v3895_v55  ;;  %v4264_v62 = vsub.f32 %v12443_v39, %v3895_v55  ;;  %v5033_v52 = vadd.f32 %v12900_v63, %v12894_v33  ;;  %3712 = vmatprep.mubr.f32.mxu0 %v16440_v35 }
 0x464   : > { %16474 = vst [vmem:[#allocation71_spill] sm:$0xff] %v12906_v36  ;;  %10278 = vpow2.f32 %v4545_v37  ;;  %v12913_v43 = vpop.f32.mrb[135].mxu1  ;;  %v4001_v28 = vmax.f32 %v12898_v26, %v12902_v7  ;;  %v16483_v36 = vld [vmem:[#allocation74_spill] sm:$0xff] }
 0x465   : > { %16475 = vst [vmem:[#allocation115_spill] sm:$0xff] %v12913_v43  ;;  %v12917_v17 = vpop.eup %10268  ;;  %v4547_v1 = vmul.f32 1.442695, %v4263_v41  ;;  %v4549_v40 = vmul.f32 1.442695, %v4264_v62  ;;  %5034 = vadd.xlane.f32.xlu1 %v5033_v52  ;;  %v12921_v39 = vpop.f32.mrb[198].mxu0 }
 0x466   : > { %16476 = vst [vmem:[#allocation116_spill] sm:$0xff] %v12917_v17  ;;  %v12923_v55 = vpop.eup %10270  ;;  %4002 = vmax.xlane.f32.xlu0 %v4001_v28  ;;  %v3898_v9 = vpop.xlane.xlu1 %3897  ;;  %8683 = vmatmul.mubr.msk.f32.gmra.mrb[48].mxu0 %vm931_vm3, %v16478_v47 }
 0x467   : > { %16477 = vst [vmem:[#allocation117_spill] sm:$0xff] %v12923_v55  ;;  %v12925_v37 = vpop.f32.mrb[199].mxu0  ;;  %10280 = vpow2.f32 %v4547_v1  ;;  %v12929_v33 = vpop.f32.mrb[136].mxu1  ;;  %v4265_v63 = vsub.f32 %v12450_v50, %v3898_v9  ;;  %v4266_v41 = vsub.f32 %v12452_v27, %v3898_v9  ;;  %v5036_v62 = vadd.f32 %v12923_v55, %v12917_v17  ;;  %3718 = vmatprep.mubr.f32.mxu0 %v16440_v35 }
 0x468   : > { %16479 = vst [vmem:[#allocation70_spill] sm:$0xff] %v12929_v33  ;;  %10282 = vpow2.f32 %v4549_v40  ;;  %v12936_v52 = vpop.f32.mrb[137].mxu1  ;;  %v4004_v28 = vmax.f32 %v12921_v39, %v12925_v37  ;;  %v16488_v33 = vld [vmem:[#allocation73_spill] sm:$0xff] }
 0x469   : > { %16480 = vst [vmem:[#allocation118_spill] sm:$0xff] %v12936_v52  ;;  %v12940_v0 = vpop.eup %10272  ;;  %v4551_v1 = vmul.f32 1.442695, %v4265_v63  ;;  %v4553_v50 = vmul.f32 1.442695, %v4266_v41  ;;  %5037 = vadd.xlane.f32.xlu1 %v5036_v62  ;;  %v12944_v27 = vpop.f32.mrb[200].mxu0 }
 0x46a   : > { %16481 = vst [vmem:[#allocation119_spill] sm:$0xff] %v12940_v0  ;;  %v12946_v9 = vpop.eup %10274  ;;  %4005 = vmax.xlane.f32.xlu0 %v4004_v28  ;;  %v3901_v43 = vpop.xlane.xlu0 %3900  ;;  %8684 = vmatmul.mubr.msk.f32.gmra.mrb[50].mxu0 %vm931_vm3, %v16483_v36 }
 0x46b   : > { %16482 = vst [vmem:[#allocation120_spill] sm:$0xff] %v12946_v9  ;;  %v12948_v40 = vpop.f32.mrb[201].mxu0  ;;  %10284 = vpow2.f32 %v4551_v1  ;;  %v12952_v17 = vpop.f32.mrb[138].mxu1  ;;  %v4267_v55 = vsub.f32 %v12459_v24, %v3901_v43  ;;  %v4268_v63 = vsub.f32 %v12461_v13, %v3901_v43  ;;  %v5039_v41 = vadd.f32 %v12946_v9, %v12940_v0  ;;  %3724 = vmatprep.mubr.f32.mxu0 %v16440_v35 }
 0x46c   : > { %16484 = vst [vmem:[#allocation74_spill] sm:$0xff] %v12952_v17  ;;  %10286 = vpow2.f32 %v4553_v50  ;;  %v12959_v62 = vpop.f32.mrb[139].mxu1  ;;  %v4007_v28 = vmax.f32 %v12944_v27, %v12948_v40  ;;  %v16493_v17 = vld [vmem:[#allocation77_spill] sm:$0xff] }
 0x46d   : > { %16485 = vst [vmem:[#allocation121_spill] sm:$0xff] %v12959_v62  ;;  %v12963_v47 = vpop.eup %10276  ;;  %v4555_v1 = vmul.f32 1.442695, %v4267_v55  ;;  %v4557_v24 = vmul.f32 1.442695, %v4268_v63  ;;  %5040 = vadd.xlane.f32.xlu1 %v5039_v41  ;;  %v12967_v13 = vpop.f32.mrb[202].mxu0 }
 0x46e   : > { %16486 = vst [vmem:[#allocation122_spill] sm:$0xff] %v12963_v47  ;;  %v12969_v43 = vpop.eup %10278  ;;  %4008 = vmax.xlane.f32.xlu0 %v4007_v28  ;;  %v3904_v52 = vpop.xlane.xlu1 %3903  ;;  %8685 = vmatmul.mubr.msk.f32.gmra.mrb[52].mxu0 %vm931_vm3, %v16488_v33 }
 0x46f   : > { %16487 = vst [vmem:[#allocation123_spill] sm:$0xff] %v12969_v43  ;;  %v12971_v50 = vpop.f32.mrb[203].mxu0  ;;  %10288 = vpow2.f32 %v4555_v1  ;;  %v12975_v0 = vpop.f32.mrb[140].mxu1  ;;  %v4269_v9 = vsub.f32 %v12468_v42, %v3904_v52  ;;  %v4270_v55 = vsub.f32 %v12470_v2, %v3904_v52  ;;  %v5042_v63 = vadd.f32 %v12969_v43, %v12963_v47  ;;  %3730 = vmatprep.mubr.f32.mxu0 %v16440_v35 }
 0x470   : > { %16489 = vst [vmem:[#allocation73_spill] sm:$0xff] %v12975_v0  ;;  %10290 = vpow2.f32 %v4557_v24  ;;  %v12982_v41 = vpop.f32.mrb[141].mxu1  ;;  %v4010_v28 = vmax.f32 %v12967_v13, %v12971_v50  ;;  %v16498_v0 = vld [vmem:[#allocation76_spill] sm:$0xff] }
 0x471   : > { %16490 = vst [vmem:[#allocation124_spill] sm:$0xff] %v12982_v41  ;;  %v12986_v36 = vpop.eup %10280  ;;  %v4559_v1 = vmul.f32 1.442695, %v4269_v9  ;;  %v4561_v42 = vmul.f32 1.442695, %v4270_v55  ;;  %5043 = vadd.xlane.f32.xlu1 %v5042_v63  ;;  %v12990_v2 = vpop.f32.mrb[204].mxu0 }
 0x472   : > { %16491 = vst [vmem:[#allocation125_spill] sm:$0xff] %v12986_v36  ;;  %v12992_v52 = vpop.eup %10282  ;;  %4011 = vmax.xlane.f32.xlu0 %v4010_v28  ;;  %v3907_v62 = vpop.xlane.xlu0 %3906  ;;  %8686 = vmatmul.mubr.msk.f32.gmra.mrb[54].mxu0 %vm931_vm3, %v16493_v17 }
 0x473   : > { %16492 = vst [vmem:[#allocation126_spill] sm:$0xff] %v12992_v52  ;;  %v12994_v24 = vpop.f32.mrb[205].mxu0  ;;  %10292 = vpow2.f32 %v4559_v1  ;;  %v12998_v47 = vpop.f32.mrb[142].mxu1  ;;  %v4271_v43 = vsub.f32 %v12477_v16, %v3907_v62  ;;  %v4272_v9 = vsub.f32 %v12479_v4, %v3907_v62  ;;  %v5045_v55 = vadd.f32 %v12992_v52, %v12986_v36  ;;  %3736 = vmatprep.mubr.f32.mxu0 %v16440_v35 }
 0x474   : > { %16494 = vst [vmem:[#allocation77_spill] sm:$0xff] %v12998_v47  ;;  %10294 = vpow2.f32 %v4561_v42  ;;  %v13005_v63 = vpop.f32.mrb[143].mxu1  ;;  %v4013_v28 = vmax.f32 %v12990_v2, %v12994_v24  ;;  %v16505_v47 = vld [vmem:[#allocation80_spill] sm:$0xff] }
 0x475   : > { %16495 = vst [vmem:[#allocation127_spill] sm:$0xff] %v13005_v63  ;;  %v13009_v33 = vpop.eup %10284  ;;  %v4563_v1 = vmul.f32 1.442695, %v4271_v43  ;;  %v4565_v16 = vmul.f32 1.442695, %v4272_v9  ;;  %5046 = vadd.xlane.f32.xlu1 %v5045_v55  ;;  %v13013_v4 = vpop.f32.mrb[206].mxu0 }
 0x476   : > { %16496 = vst [vmem:[#allocation128_spill] sm:$0xff] %v13009_v33  ;;  %v13015_v62 = vpop.eup %10286  ;;  %4014 = vmax.xlane.f32.xlu0 %v4013_v28  ;;  %v3910_v41 = vpop.xlane.xlu1 %3909  ;;  %8687 = vmatmul.mubr.msk.f32.gmra.mrb[56].mxu0 %vm931_vm3, %v16498_v0 }
 0x477   : > { %16497 = vst [vmem:[#allocation129_spill] sm:$0xff] %v13015_v62  ;;  %v13017_v42 = vpop.f32.mrb[207].mxu0  ;;  %10296 = vpow2.f32 %v4563_v1  ;;  %v13021_v36 = vpop.f32.mrb[144].mxu1  ;;  %v4273_v52 = vsub.f32 %v12486_v5, %v3910_v41  ;;  %v4274_v43 = vsub.f32 %v12488_v21, %v3910_v41  ;;  %v5048_v9 = vadd.f32 %v13015_v62, %v13009_v33  ;;  %3742 = vmatprep.mubr.f32.mxu0 %v16440_v35 }
 0x478   : > { %16499 = vst [vmem:[#allocation76_spill] sm:$0xff] %v13021_v36  ;;  %10298 = vpow2.f32 %v4565_v16  ;;  %v13028_v55 = vpop.f32.mrb[145].mxu1  ;;  %v4016_v28 = vmax.f32 %v13013_v4, %v13017_v42  ;;  %v16512_v36 = vld [vmem:[#allocation79_spill] sm:$0xff] }
 0x479   : > { %16500 = vst [vmem:[#allocation130_spill] sm:$0xff] %v13028_v55  ;;  %v13032_v17 = vpop.eup %10288  ;;  %v4567_v1 = vmul.f32 1.442695, %v4273_v52  ;;  %v4569_v5 = vmul.f32 1.442695, %v4274_v43  ;;  %5049 = vadd.xlane.f32.xlu1 %v5048_v9  ;;  %v13036_v21 = vpop.f32.mrb[208].mxu0 }
 0x47a   : > { %16501 = vst [vmem:[#allocation131_spill] sm:$0xff] %v13032_v17  ;;  %16502 = vst [vmem:[#allocation132_spill] sm:$0xff] %v13036_v21  ;;  %v13038_v41 = vpop.eup %10290  ;;  %4017 = vmax.xlane.f32.xlu0 %v4016_v28  ;;  %v3913_v63 = vpop.xlane.xlu0 %3912  ;;  %8688 = vmatmul.mubr.msk.f32.gmra.mrb[58].mxu0 %vm931_vm3, %v16505_v47  ;;  %v16514_v47 = vld [vmem:[#allocation38_spill] sm:$0xff] }
 0x47b   : > { %16503 = vst [vmem:[#allocation133_spill] sm:$0xff] %v13038_v41  ;;  %v13040_v16 = vpop.f32.mrb[209].mxu0  ;;  %10300 = vpow2.f32 %v4567_v1  ;;  %v13044_v33 = vpop.f32.mrb[146].mxu1  ;;  %v4275_v62 = vsub.f32 %v12495_v58, %v3913_v63  ;;  %v4276_v52 = vsub.f32 %v12497_v48, %v3913_v63  ;;  %v5051_v43 = vadd.f32 %v13038_v41, %v13032_v17  ;;  %3748 = vmatprep.mubr.f32.mxu0 %v16440_v35 }
 0x47c   : > { %16504 = vst [vmem:[#allocation134_spill] sm:$0xff] %v13040_v16  ;;  %16506 = vst [vmem:[#allocation80_spill] sm:$0xff] %v13044_v33  ;;  %10302 = vpow2.f32 %v4569_v5  ;;  %v13051_v9 = vpop.f32.mrb[147].mxu1  ;;  %v4019_v28 = vmax.f32 %v13036_v21, %v13040_v16 }
 0x47d   : > { %16507 = vst [vmem:[#allocation135_spill] sm:$0xff] %v13051_v9  ;;  %v13055_v0 = vpop.eup %10292  ;;  %v4571_v1 = vmul.f32 1.442695, %v4275_v62  ;;  %v4573_v58 = vmul.f32 1.442695, %v4276_v52  ;;  %5052 = vadd.xlane.f32.xlu1 %v5051_v43  ;;  %v13059_v48 = vpop.f32.mrb[210].mxu0 }
 0x47e   : > { %16508 = vst [vmem:[#allocation136_spill] sm:$0xff] %v13055_v0  ;;  %16509 = vst [vmem:[#allocation137_spill] sm:$0xff] %v13059_v48  ;;  %v13061_v63 = vpop.eup %10294  ;;  %4020 = vmax.xlane.f32.xlu0 %v4019_v28  ;;  %v3916_v55 = vpop.xlane.xlu1 %3915  ;;  %8689 = vmatmul.mubr.msk.f32.gmra.mrb[60].mxu0 %vm931_vm3, %v16512_v36  ;;  %v16523_v36 = vld [vmem:[#allocation40_spill] sm:$0xff] }
 0x47f   : > { %16510 = vst [vmem:[#allocation138_spill] sm:$0xff] %v13061_v63  ;;  %v13063_v5 = vpop.f32.mrb[211].mxu0  ;;  %10304 = vpow2.f32 %v4571_v1  ;;  %v13067_v17 = vpop.f32.mrb[148].mxu1  ;;  %v4277_v41 = vsub.f32 %v12504_v57, %v3916_v55  ;;  %v4278_v62 = vsub.f32 %v16514_v47, %v3916_v55  ;;  %v5054_v52 = vadd.f32 %v13061_v63, %v13055_v0  ;;  %3754 = vmatprep.mubr.f32.mxu0 %v16440_v35  ;;  %v16520_v0 = vld [vmem:[#allocation83_spill] sm:$0xff] }
 0x480   : > { %16511 = vst [vmem:[#allocation139_spill] sm:$0xff] %v13063_v5  ;;  %16513 = vst [vmem:[#allocation79_spill] sm:$0xff] %v13067_v17  ;;  %10306 = vpow2.f32 %v4573_v58  ;;  %v13074_v43 = vpop.f32.mrb[149].mxu1  ;;  %v4022_v28 = vmax.f32 %v13059_v48, %v13063_v5  ;;  %v16522_v5 = vld [vmem:[#allocation37_spill] sm:$0xff] }
 0x481   : > { %16515 = vst [vmem:[#allocation38_spill] sm:$0xff] %v13074_v43  ;;  %v13078_v9 = vpop.eup %10296  ;;  %v4575_v1 = vmul.f32 1.442695, %v4277_v41  ;;  %v4577_v57 = vmul.f32 1.442695, %v4278_v62  ;;  %5055 = vadd.xlane.f32.xlu1 %v5054_v52  ;;  %v13082_v55 = vpop.f32.mrb[212].mxu0 }
 0x482   : > { %16516 = vst [vmem:[#allocation140_spill] sm:$0xff] %v13078_v9  ;;  %16517 = vst [vmem:[#allocation141_spill] sm:$0xff] %v13082_v55  ;;  %v13084_v47 = vpop.eup %10298  ;;  %4023 = vmax.xlane.f32.xlu0 %v4022_v28  ;;  %v3919_v33 = vpop.xlane.xlu0 %3918  ;;  %8690 = vmatmul.mubr.msk.f32.gmra.mrb[62].mxu0 %vm931_vm3, %v16520_v0  ;;  %v13100_v52 = vld [vmem:[%s15771_s7 + $0xc] sm:$0xf] }
 0x483   : > { %16518 = vst [vmem:[#allocation142_spill] sm:$0xff] %v13084_v47  ;;  %v13086_v58 = vpop.f32.mrb[213].mxu0  ;;  %10308 = vpow2.f32 %v4575_v1  ;;  %v13090_v63 = vpop.f32.mrb[150].mxu1  ;;  %v4279_v48 = vsub.f32 %v16522_v5, %v3919_v33  ;;  %v4280_v41 = vsub.f32 %v16523_v36, %v3919_v33  ;;  %v5057_v62 = vadd.f32 %v13084_v47, %v13078_v9  ;;  %3760 = vmatprep.mubr.f32.mxu0 %v16440_v35  ;;  %v16529_v47 = vld [vmem:[#allocation82_spill] sm:$0xff] }
 0x484   : > { %16519 = vst [vmem:[#allocation143_spill] sm:$0xff] %v13086_v58  ;;  %16521 = vst [vmem:[#allocation83_spill] sm:$0xff] %v13090_v63  ;;  %10310 = vpow2.f32 %v4577_v57  ;;  %v13102_v28 = vpop.f32.mrb[151].mxu1  ;;  %v4025_v0 = vmax.f32 %v13082_v55, %v13086_v58  ;;  %9599 = vmatprep.subr.msk.mxu0 %vm1028_vm2, %v13100_v52  ;;  %v16531_v55 = vld [vmem:[#allocation39_spill] sm:$0xff]  ;;  %v16532_v5 = vld [vmem:[#allocation42_spill] sm:$0xff] }
 0x485   : > { %16524 = vst [vmem:[#allocation37_spill] sm:$0xff] %v13102_v28  ;;  %v13108_v33 = vpop.eup %10300  ;;  %v4579_v36 = vmul.f32 1.442695, %v4279_v48  ;;  %v4581_v1 = vmul.f32 1.442695, %v4280_v41  ;;  %5058 = vadd.xlane.f32.xlu1 %v5057_v62  ;;  %v13112_v43 = vpop.f32.mrb[214].mxu0 }
 0x486   : > { %16525 = vst [vmem:[#allocation40_spill] sm:$0xff] %v13108_v33  ;;  %16526 = vst [vmem:[#allocation144_spill] sm:$0xff] %v13112_v43  ;;  %v13114_v17 = vpop.eup %10302  ;;  %4026 = vmax.xlane.f32.xlu0 %v4025_v0  ;;  %v3922_v57 = vpop.xlane.xlu0 %3921  ;;  %8691 = vmatmul.mubr.msk.f32.gmra.mrb[64].mxu0 %vm931_vm3, %v16529_v47  ;;  %v16541_v47 = vld [vmem:[#allocation44_spill] sm:$0xff] }
 0x487   : > { %16527 = vst [vmem:[#allocation145_spill] sm:$0xff] %v13114_v17  ;;  %v13116_v9 = vpop.f32.mrb[215].mxu0  ;;  %10312 = vpow2.f32 %v4579_v36  ;;  %v13120_v58 = vpop.f32.mrb[152].mxu1  ;;  %v4281_v16 = vsub.f32 %v16531_v55, %v3922_v57  ;;  %v4282_v48 = vsub.f32 %v16532_v5, %v3922_v57  ;;  %v5060_v41 = vadd.f32 %v13114_v17, %v13108_v33  ;;  %3766 = vmatprep.mubr.f32.mxu0 %v16440_v35  ;;  %v16538_v33 = vld [vmem:[#allocation86_spill] sm:$0xff] }
 0x488   : > { %16528 = vst [vmem:[#allocation146_spill] sm:$0xff] %v13116_v9  ;;  %16530 = vst [vmem:[#allocation82_spill] sm:$0xff] %v13120_v58  ;;  %10314 = vpow2.f32 %v4581_v1  ;;  %v13127_v62 = vpop.f32.mrb[153].mxu1  ;;  %v4028_v0 = vmax.f32 %v13112_v43, %v13116_v9  ;;  %v16540_v9 = vld [vmem:[#allocation41_spill] sm:$0xff] }
 0x489   : > { %16533 = vst [vmem:[#allocation39_spill] sm:$0xff] %v13127_v62  ;;  %v13131_v28 = vpop.eup %10304  ;;  %v4583_v36 = vmul.f32 1.442695, %v4281_v16  ;;  %v4585_v55 = vmul.f32 1.442695, %v4282_v48  ;;  %5061 = vadd.xlane.f32.xlu1 %v5060_v41  ;;  %v13135_v5 = vpop.f32.mrb[216].mxu0 }
 0x48a   : > { %16534 = vst [vmem:[#allocation42_spill] sm:$0xff] %v13131_v28  ;;  %16535 = vst [vmem:[#allocation147_spill] sm:$0xff] %v13135_v5  ;;  %v13137_v57 = vpop.eup %10306  ;;  %4029 = vmax.xlane.f32.xlu0 %v4028_v0  ;;  %v3925_v63 = vpop.xlane.xlu0 %3924  ;;  %8692 = vmatmul.mubr.msk.f32.gmra.mrb[66].mxu0 %vm931_vm3, %v16538_v33 }
 0x48b   : > { %16536 = vst [vmem:[#allocation148_spill] sm:$0xff] %v13137_v57  ;;  %v13139_v1 = vpop.f32.mrb[217].mxu0  ;;  %10316 = vpow2.f32 %v4583_v36  ;;  %v13143_v17 = vpop.f32.mrb[154].mxu1  ;;  %v4283_v43 = vsub.f32 %v16540_v9, %v3925_v63  ;;  %v4284_v16 = vsub.f32 %v16541_v47, %v3925_v63  ;;  %3772 = vmatprep.mubr.f32.mxu0 %v16440_v35  ;;  %v5063_v0 = vadd.f32 %v13137_v57, %v13131_v28  ;;  %v16548_v28 = vld [vmem:[#allocation43_spill] sm:$0xff] }
 0x48c   : > { %16537 = vst [vmem:[#allocation149_spill] sm:$0xff] %v13139_v1  ;;  %16539 = vst [vmem:[#allocation86_spill] sm:$0xff] %v13143_v17  ;;  %v4031_v48 = vmax.f32 %v13135_v5, %v13139_v1  ;;  %10318 = vpow2.f32 %v4585_v55  ;;  %v13150_v41 = vpop.f32.mrb[155].mxu1  ;;  %v16549_v5 = vld [vmem:[#allocation46_spill] sm:$0xff] }
 0x48d   : > { %16542 = vst [vmem:[#allocation41_spill] sm:$0xff] %v13150_v41  ;;  %v13154_v62 = vpop.eup %10308  ;;  %v4587_v36 = vmul.f32 1.442695, %v4283_v43  ;;  %v4589_v9 = vmul.f32 1.442695, %v4284_v16  ;;  %v13158_v58 = vpop.f32.mrb[218].mxu0  ;;  %5064 = vadd.xlane.f32.xlu1 %v5063_v0 }
 0x48e   : > { %16543 = vst [vmem:[#allocation44_spill] sm:$0xff] %v13154_v62  ;;  %16544 = vst [vmem:[#allocation150_spill] sm:$0xff] %v13158_v58  ;;  %v13160_v63 = vpop.eup %10310  ;;  %4032 = vmax.xlane.f32.xlu0 %v4031_v48  ;;  %v3928_v47 = vpop.xlane.xlu0 %3927  ;;  %v16550_v16 = vld [vmem:[#allocation85_spill] sm:$0xff] }
 0x48f   : > { %16545 = vst [vmem:[#allocation151_spill] sm:$0xff] %v13160_v63  ;;  %v13162_v55 = vpop.f32.mrb[219].mxu0  ;;  %10320 = vpow2.f32 %v4587_v36  ;;  %v13164_v1 = vpop.f32.mrb[156].mxu1  ;;  %v4285_v57 = vsub.f32 %v16548_v28, %v3928_v47  ;;  %v4286_v21 = vsub.f32 %v16549_v5, %v3928_v47  ;;  %8693 = vmatmul.mubr.msk.f32.gmra.mrb[68].mxu0 %vm931_vm3, %v16550_v16  ;;  %v5066_v48 = vadd.f32 %v13160_v63, %v13154_v62  ;;  %v16557_v62 = vld [vmem:[#allocation45_spill] sm:$0xff] }
 0x490   : > { %16546 = vst [vmem:[#allocation152_spill] sm:$0xff] %v13162_v55  ;;  %16547 = vst [vmem:[#allocation153_spill] sm:$0xff] %v13164_v1  ;;  %v4034_v43 = vmax.f32 %v13158_v58, %v13162_v55  ;;  %10322 = vpow2.f32 %v4589_v9  ;;  %v13172_v33 = vpop.f32.mrb[157].mxu1  ;;  %3778 = vmatprep.mubr.f32.mxu0 %v16440_v35  ;;  %v16558_v55 = vld [vmem:[#allocation48_spill] sm:$0xff] }
 0x491   : > { %16551 = vst [vmem:[#allocation43_spill] sm:$0xff] %v13172_v33  ;;  %v13177_v0 = vpop.eup %10312  ;;  %v4591_v5 = vmul.f32 1.442695, %v4285_v57  ;;  %v4593_v36 = vmul.f32 1.442695, %v4286_v21  ;;  %v13181_v47 = vpop.f32.mrb[220].mxu0  ;;  %5067 = vadd.xlane.f32.xlu1 %v5066_v48 }
 0x492   : > { %16552 = vst [vmem:[#allocation46_spill] sm:$0xff] %v13177_v0  ;;  %16553 = vst [vmem:[#allocation85_spill] sm:$0xff] %v13181_v47  ;;  %v13183_v41 = vpop.eup %10314  ;;  %4035 = vmax.xlane.f32.xlu0 %v4034_v43  ;;  %v3931_v9 = vpop.xlane.xlu0 %3930  ;;  %v16559_v21 = vld [vmem:[#allocation89_spill] sm:$0xff] }
 0x493   : > { %16554 = vst [vmem:[#allocation154_spill] sm:$0xff] %v13183_v41  ;;  %v13185_v16 = vpop.f32.mrb[221].mxu0  ;;  %10324 = vpow2.f32 %v4591_v5  ;;  %v13187_v17 = vpop.f32.mrb[158].mxu1  ;;  %v4287_v63 = vsub.f32 %v16557_v62, %v3931_v9  ;;  %v4288_v58 = vsub.f32 %v16558_v55, %v3931_v9  ;;  %8694 = vmatmul.mubr.msk.f32.gmra.mrb[70].mxu0 %vm931_vm3, %v16559_v21  ;;  %v5069_v43 = vadd.f32 %v13183_v41, %v13177_v0  ;;  %v16566_v0 = vld [vmem:[#allocation47_spill] sm:$0xff] }
 0x494   : > { %16555 = vst [vmem:[#allocation155_spill] sm:$0xff] %v13185_v16  ;;  %16556 = vst [vmem:[#allocation156_spill] sm:$0xff] %v13187_v17  ;;  %v4037_v57 = vmax.f32 %v13181_v47, %v13185_v16  ;;  %10326 = vpow2.f32 %v4593_v36  ;;  %v13195_v28 = vpop.f32.mrb[159].mxu1  ;;  %3784 = vmatprep.mubr.f32.mxu0 %v16440_v35  ;;  %v16567_v16 = vld [vmem:[#allocation50_spill] sm:$0xff]  ;;  %v16572_v17 = vld [vmem:[#allocation49_spill] sm:$0xff] }
 0x495   : > { %16560 = vst [vmem:[#allocation45_spill] sm:$0xff] %v13195_v28  ;;  %v13200_v48 = vpop.eup %10316  ;;  %v4595_v55 = vmul.f32 1.442695, %v4287_v63  ;;  %v4597_v5 = vmul.f32 1.442695, %v4288_v58  ;;  %v13204_v9 = vpop.f32.mrb[222].mxu0  ;;  %5070 = vadd.xlane.f32.xlu1 %v5069_v43 }
 0x496   : > { %16561 = vst [vmem:[#allocation48_spill] sm:$0xff] %v13200_v48  ;;  %16562 = vst [vmem:[#allocation89_spill] sm:$0xff] %v13204_v9  ;;  %v13206_v33 = vpop.eup %10318  ;;  %4038 = vmax.xlane.f32.xlu0 %v4037_v57  ;;  %v3934_v36 = vpop.xlane.xlu0 %3933  ;;  %v16568_v58 = vld [vmem:[#allocation88_spill] sm:$0xff] }
 0x497   : > { %16563 = vst [vmem:[#allocation157_spill] sm:$0xff] %v13206_v33  ;;  %v13208_v21 = vpop.f32.mrb[223].mxu0  ;;  %10328 = vpow2.f32 %v4595_v55  ;;  %v13210_v1 = vpop.f32.mrb[160].mxu1  ;;  %v4289_v41 = vsub.f32 %v16566_v0, %v3934_v36  ;;  %v4290_v47 = vsub.f32 %v16567_v16, %v3934_v36  ;;  %8695 = vmatmul.mubr.msk.f32.gmra.mrb[72].mxu0 %vm931_vm3, %v16568_v58  ;;  %v5072_v57 = vadd.f32 %v13206_v33, %v13200_v48  ;;  %v16573_v33 = vld [vmem:[#allocation52_spill] sm:$0xff] }
 0x498   : > { %16564 = vst [vmem:[#allocation158_spill] sm:$0xff] %v13208_v21  ;;  %16565 = vst [vmem:[#allocation159_spill] sm:$0xff] %v13210_v1  ;;  %v4040_v63 = vmax.f32 %v13204_v9, %v13208_v21  ;;  %10330 = vpow2.f32 %v4597_v5  ;;  %v13218_v62 = vpop.f32.mrb[161].mxu1  ;;  %3790 = vmatprep.mubr.f32.mxu0 %v16440_v35  ;;  %v16574_v0 = vld [vmem:[#allocation92_spill] sm:$0xff] }
 0x499   : > { %16569 = vst [vmem:[#allocation47_spill] sm:$0xff] %v13218_v62  ;;  %v13223_v43 = vpop.eup %10320  ;;  %v4599_v16 = vmul.f32 1.442695, %v4289_v41  ;;  %v4601_v55 = vmul.f32 1.442695, %v4290_v47  ;;  %v13227_v36 = vpop.f32.mrb[224].mxu0  ;;  %5073 = vadd.xlane.f32.xlu1 %v5072_v57 }
 0x49a   : > { %16570 = vst [vmem:[#allocation50_spill] sm:$0xff] %v13223_v43  ;;  %v13229_v28 = vpop.eup %10322  ;;  %4041 = vmax.xlane.f32.xlu0 %v4040_v63  ;;  %v3937_v5 = vpop.xlane.xlu0 %3936  ;;  %v16580_v62 = vld [vmem:[#allocation54_spill] sm:$0xff] }
 0x49b   : > { %16571 = vst [vmem:[#allocation88_spill] sm:$0xff] %v13229_v28  ;;  %v13231_v58 = vpop.f32.mrb[225].mxu0  ;;  %10332 = vpow2.f32 %v4599_v16  ;;  %v4291_v48 = vsub.f32 %v16572_v17, %v3937_v5  ;;  %v4292_v21 = vsub.f32 %v16573_v33, %v3937_v5  ;;  %8696 = vmatmul.mubr.msk.f32.gmra.mrb[74].mxu0 %vm931_vm3, %v16574_v0  ;;  %v5075_v41 = vadd.f32 %v13229_v28, %v13223_v43  ;;  %v16579_v0 = vld [vmem:[#allocation51_spill] sm:$0xff] }
 0x49c   : > { %v4043_v9 = vmax.f32 %v13227_v36, %v13231_v58  ;;  %10334 = vpow2.f32 %v4601_v55  ;;  %3796 = vmatprep.mubr.f32.mxu0 %v16440_v35  ;;  %v16581_v28 = vld [vmem:[#allocation91_spill] sm:$0xff] }
 0x49d   : > { %v13242_v47 = vpop.eup %10324  ;;  %v4603_v63 = vmul.f32 1.442695, %v4291_v48  ;;  %v4605_v57 = vmul.f32 1.442695, %v4292_v21  ;;  %v13244_v16 = vpop.f32.mrb[226].mxu0  ;;  %5076 = vadd.xlane.f32.xlu1 %v5075_v41 }
 0x49e   : > { %16575 = vst [vmem:[#allocation49_spill] sm:$0xff] %v13242_v47  ;;  %16576 = vst [vmem:[#allocation52_spill] sm:$0xff] %v13244_v16  ;;  %v13246_v17 = vpop.eup %10326  ;;  %4044 = vmax.xlane.f32.xlu0 %v4043_v9  ;;  %v3940_v33 = vpop.xlane.xlu0 %3939 }
 0x49f   : > { %16577 = vst [vmem:[#allocation92_spill] sm:$0xff] %v13246_v17  ;;  %v13248_v5 = vpop.f32.mrb[227].mxu0  ;;  %10336 = vpow2.f32 %v4603_v63  ;;  %v4293_v55 = vsub.f32 %v16579_v0, %v3940_v33  ;;  %v4294_v1 = vsub.f32 %v16580_v62, %v3940_v33  ;;  %8697 = vmatmul.mubr.msk.f32.gmra.mrb[76].mxu0 %vm931_vm3, %v16581_v28  ;;  %v5078_v48 = vadd.f32 %v13246_v17, %v13242_v47  ;;  %v16586_v28 = vld [vmem:[#allocation53_spill] sm:$0xff] }
 0x4a0   : > { %16578 = vst [vmem:[#allocation160_spill] sm:$0xff] %v13248_v5  ;;  %v4046_v43 = vmax.f32 %v13244_v16, %v13248_v5  ;;  %10338 = vpow2.f32 %v4605_v57  ;;  %3802 = vmatprep.mubr.f32.mxu0 %v16440_v35  ;;  %v16587_v5 = vld [vmem:[#allocation56_spill] sm:$0xff]  ;;  %v16588_v16 = vld [vmem:[#allocation95_spill] sm:$0xff] }
 0x4a1   : > { %v13259_v9 = vpop.eup %10328  ;;  %v4607_v21 = vmul.f32 1.442695, %v4293_v55  ;;  %v4609_v41 = vmul.f32 1.442695, %v4294_v1  ;;  %v13261_v63 = vpop.f32.mrb[228].mxu0  ;;  %5079 = vadd.xlane.f32.xlu1 %v5078_v48 }
 0x4a2   : > { %16582 = vst [vmem:[#allocation51_spill] sm:$0xff] %v13259_v9  ;;  %16583 = vst [vmem:[#allocation54_spill] sm:$0xff] %v13261_v63  ;;  %v13263_v0 = vpop.eup %10330  ;;  %4047 = vmax.xlane.f32.xlu0 %v4046_v43  ;;  %v3943_v62 = vpop.xlane.xlu0 %3942 }
 0x4a3   : > { %16584 = vst [vmem:[#allocation91_spill] sm:$0xff] %v13263_v0  ;;  %v13265_v33 = vpop.f32.mrb[229].mxu0  ;;  %10340 = vpow2.f32 %v4607_v21  ;;  %v4295_v57 = vsub.f32 %v16586_v28, %v3943_v62  ;;  %v4296_v47 = vsub.f32 %v16587_v5, %v3943_v62  ;;  %8698 = vmatmul.mubr.msk.f32.gmra.mrb[78].mxu0 %vm931_vm3, %v16588_v16  ;;  %v5081_v1 = vadd.f32 %v13263_v0, %v13259_v9  ;;  %v16593_v16 = vld [vmem:[#allocation55_spill] sm:$0xff] }
 0x4a4   : > { %16585 = vst [vmem:[#allocation161_spill] sm:$0xff] %v13265_v33  ;;  %v4049_v17 = vmax.f32 %v13261_v63, %v13265_v33  ;;  %10342 = vpow2.f32 %v4609_v41  ;;  %3808 = vmatprep.mubr.f32.mxu0 %v16440_v35  ;;  %v16594_v33 = vld [vmem:[#allocation57_spill] sm:$0xff]  ;;  %v16595_v63 = vld [vmem:[#allocation94_spill] sm:$0xff] }
 0x4a5   : > { %v13276_v43 = vpop.eup %10332  ;;  %v4611_v55 = vmul.f32 1.442695, %v4295_v57  ;;  %v4613_v48 = vmul.f32 1.442695, %v4296_v47  ;;  %v13278_v21 = vpop.f32.mrb[230].mxu0  ;;  %5082 = vadd.xlane.f32.xlu1 %v5081_v1 }
 0x4a6   : > { %16589 = vst [vmem:[#allocation53_spill] sm:$0xff] %v13276_v43  ;;  %16590 = vst [vmem:[#allocation56_spill] sm:$0xff] %v13278_v21  ;;  %v13280_v28 = vpop.eup %10334  ;;  %4050 = vmax.xlane.f32.xlu0 %v4049_v17  ;;  %v3946_v5 = vpop.xlane.xlu0 %3945 }
 0x4a7   : > { %16591 = vst [vmem:[#allocation95_spill] sm:$0xff] %v13280_v28  ;;  %v13282_v62 = vpop.f32.mrb[231].mxu0  ;;  %10344 = vpow2.f32 %v4611_v55  ;;  %v4297_v41 = vsub.f32 %v16593_v16, %v3946_v5  ;;  %v4298_v9 = vsub.f32 %v16594_v33, %v3946_v5  ;;  %8699 = vmatmul.mubr.msk.f32.gmra.mrb[80].mxu0 %vm931_vm3, %v16595_v63  ;;  %v5084_v47 = vadd.f32 %v13280_v28, %v13276_v43  ;;  %v16600_v63 = vld [vmem:[#allocation66_spill] sm:$0xff] }
 0x4a8   : > { %16592 = vst [vmem:[#allocation162_spill] sm:$0xff] %v13282_v62  ;;  %v4052_v0 = vmax.f32 %v13278_v21, %v13282_v62  ;;  %10346 = vpow2.f32 %v4613_v48  ;;  %3814 = vmatprep.mubr.f32.mxu0 %v16440_v35  ;;  %v16601_v62 = vld [vmem:[#allocation69_spill] sm:$0xff]  ;;  %v16602_v21 = vld [vmem:[#allocation98_spill] sm:$0xff] }
 0x4a9   : > { %v13293_v17 = vpop.eup %10336  ;;  %v4615_v57 = vmul.f32 1.442695, %v4297_v41  ;;  %v4617_v1 = vmul.f32 1.442695, %v4298_v9  ;;  %v13295_v55 = vpop.f32.mrb[232].mxu0  ;;  %5085 = vadd.xlane.f32.xlu1 %v5084_v47 }
 0x4aa   : > { %16596 = vst [vmem:[#allocation55_spill] sm:$0xff] %v13293_v17  ;;  %16597 = vst [vmem:[#allocation57_spill] sm:$0xff] %v13295_v55  ;;  %v13297_v16 = vpop.eup %10338  ;;  %4053 = vmax.xlane.f32.xlu0 %v4052_v0  ;;  %v3949_v33 = vpop.xlane.xlu0 %3948 }
 0x4ab   : > { %16598 = vst [vmem:[#allocation94_spill] sm:$0xff] %v13297_v16  ;;  %v13299_v5 = vpop.f32.mrb[233].mxu0  ;;  %10348 = vpow2.f32 %v4615_v57  ;;  %v4299_v48 = vsub.f32 %v16600_v63, %v3949_v33  ;;  %v4300_v43 = vsub.f32 %v16601_v62, %v3949_v33  ;;  %8700 = vmatmul.mubr.msk.f32.gmra.mrb[82].mxu0 %vm931_vm3, %v16602_v21  ;;  %v5087_v9 = vadd.f32 %v13297_v16, %v13293_v17  ;;  %v16607_v21 = vld [vmem:[#allocation72_spill] sm:$0xff] }
 0x4ac   : > { %16599 = vst [vmem:[#allocation163_spill] sm:$0xff] %v13299_v5  ;;  %v4055_v28 = vmax.f32 %v13295_v55, %v13299_v5  ;;  %10350 = vpow2.f32 %v4617_v1  ;;  %3820 = vmatprep.mubr.f32.mxu0 %v16440_v35  ;;  %v16608_v5 = vld [vmem:[#allocation75_spill] sm:$0xff]  ;;  %v16609_v55 = vld [vmem:[#allocation97_spill] sm:$0xff] }
 0x4ad   : > { %v13310_v0 = vpop.eup %10340  ;;  %v4619_v41 = vmul.f32 1.442695, %v4299_v48  ;;  %v4621_v47 = vmul.f32 1.442695, %v4300_v43  ;;  %v13312_v57 = vpop.f32.mrb[234].mxu0  ;;  %5088 = vadd.xlane.f32.xlu1 %v5087_v9 }
 0x4ae   : > { %16603 = vst [vmem:[#allocation66_spill] sm:$0xff] %v13310_v0  ;;  %16604 = vst [vmem:[#allocation69_spill] sm:$0xff] %v13312_v57  ;;  %v13314_v63 = vpop.eup %10342  ;;  %4056 = vmax.xlane.f32.xlu0 %v4055_v28  ;;  %v3952_v62 = vpop.xlane.xlu0 %3951 }
 0x4af   : > { %16605 = vst [vmem:[#allocation98_spill] sm:$0xff] %v13314_v63  ;;  %v13316_v33 = vpop.f32.mrb[235].mxu0  ;;  %10352 = vpow2.f32 %v4619_v41  ;;  %v4301_v1 = vsub.f32 %v16607_v21, %v3952_v62  ;;  %v4302_v17 = vsub.f32 %v16608_v5, %v3952_v62  ;;  %8701 = vmatmul.mubr.msk.f32.gmra.mrb[84].mxu0 %vm931_vm3, %v16609_v55  ;;  %v5090_v43 = vadd.f32 %v13314_v63, %v13310_v0  ;;  %v16614_v55 = vld [vmem:[#allocation78_spill] sm:$0xff] }
 0x4b0   : > { %16606 = vst [vmem:[#allocation164_spill] sm:$0xff] %v13316_v33  ;;  %v4058_v16 = vmax.f32 %v13312_v57, %v13316_v33  ;;  %10354 = vpow2.f32 %v4621_v47  ;;  %3826 = vmatprep.mubr.f32.mxu0 %v16440_v35  ;;  %v16615_v33 = vld [vmem:[#allocation81_spill] sm:$0xff]  ;;  %v16616_v57 = vld [vmem:[#allocation100_spill] sm:$0xff] }
 0x4b1   : > { %v13327_v28 = vpop.eup %10344  ;;  %v4623_v48 = vmul.f32 1.442695, %v4301_v1  ;;  %v4625_v9 = vmul.f32 1.442695, %v4302_v17  ;;  %v13329_v41 = vpop.f32.mrb[236].mxu0  ;;  %5091 = vadd.xlane.f32.xlu1 %v5090_v43 }
 0x4b2   : > { %16610 = vst [vmem:[#allocation72_spill] sm:$0xff] %v13327_v28  ;;  %16611 = vst [vmem:[#allocation75_spill] sm:$0xff] %v13329_v41  ;;  %v13331_v21 = vpop.eup %10346  ;;  %4059 = vmax.xlane.f32.xlu0 %v4058_v16  ;;  %v3955_v5 = vpop.xlane.xlu0 %3954 }
 0x4b3   : > { %16612 = vst [vmem:[#allocation97_spill] sm:$0xff] %v13331_v21  ;;  %v13333_v62 = vpop.f32.mrb[237].mxu0  ;;  %10356 = vpow2.f32 %v4623_v48  ;;  %v4303_v47 = vsub.f32 %v16614_v55, %v3955_v5  ;;  %v4304_v0 = vsub.f32 %v16615_v33, %v3955_v5  ;;  %8702 = vmatmul.mubr.msk.f32.gmra.mrb[86].mxu0 %vm931_vm3, %v16616_v57  ;;  %v5093_v17 = vadd.f32 %v13331_v21, %v13327_v28  ;;  %v16619_v57 = vld [vmem:[#allocation84_spill] sm:$0xff] }
 0x4b4   : > { %16613 = vst [vmem:[#allocation165_spill] sm:$0xff] %v13333_v62  ;;  %v4061_v63 = vmax.f32 %v13329_v41, %v13333_v62  ;;  %10358 = vpow2.f32 %v4625_v9  ;;  %3832 = vmatprep.mubr.f32.mxu0 %v16440_v35  ;;  %v16620_v62 = vld [vmem:[#allocation87_spill] sm:$0xff] }
 0x4b5   : > { %v13344_v16 = vpop.eup %10348  ;;  %v4627_v1 = vmul.f32 1.442695, %v4303_v47  ;;  %v4629_v43 = vmul.f32 1.442695, %v4304_v0  ;;  %v13346_v48 = vpop.f32.mrb[238].mxu0  ;;  %5094 = vadd.xlane.f32.xlu1 %v5093_v17  ;;  %v16621_v41 = vld [vmem:[#allocation99_spill] sm:$0xff] }
 0x4b6   : > { %16617 = vst [vmem:[#allocation78_spill] sm:$0xff] %v13344_v16  ;;  %v13348_v55 = vpop.eup %10350  ;;  %4062 = vmax.xlane.f32.xlu0 %v4061_v63  ;;  %v3958_v33 = vpop.xlane.xlu0 %3957 }
 0x4b7   : > { %16618 = vst [vmem:[#allocation81_spill] sm:$0xff] %v13348_v55  ;;  %v13350_v5 = vpop.f32.mrb[239].mxu0  ;;  %10360 = vpow2.f32 %v4627_v1  ;;  %v4305_v9 = vsub.f32 %v16619_v57, %v3958_v33  ;;  %v4306_v28 = vsub.f32 %v16620_v62, %v3958_v33  ;;  %8703 = vmatmul.mubr.msk.f32.gmra.mrb[88].mxu0 %vm931_vm3, %v16621_v41  ;;  %v5096_v0 = vadd.f32 %v13348_v55, %v13344_v16  ;;  %v16625_v55 = vld [vmem:[#allocation102_spill] sm:$0xff] }
 0x4b8   : > { %v4064_v21 = vmax.f32 %v13346_v48, %v13350_v5  ;;  %10362 = vpow2.f32 %v4629_v43  ;;  %3838 = vmatprep.mubr.f32.mxu0 %v16440_v35 }
 0x4b9   : > { %v13361_v63 = vpop.eup %10352  ;;  %v4631_v47 = vmul.f32 1.442695, %v4305_v9  ;;  %v4633_v17 = vmul.f32 1.442695, %v4306_v28  ;;  %v13363_v1 = vpop.f32.mrb[240].mxu0  ;;  %5097 = vadd.xlane.f32.xlu1 %v5096_v0 }
 0x4ba   : > { %16622 = vst [vmem:[#allocation100_spill] sm:$0xff] %v13361_v63  ;;  %v13365_v57 = vpop.eup %10354  ;;  %4065 = vmax.xlane.f32.xlu0 %v4064_v21  ;;  %v3961_v62 = vpop.xlane.xlu0 %3960 }
 0x4bb   : > { %16623 = vst [vmem:[#allocation84_spill] sm:$0xff] %v13365_v57  ;;  %v13367_v33 = vpop.f32.mrb[241].mxu0  ;;  %10364 = vpow2.f32 %v4631_v47  ;;  %v4307_v41 = vsub.f32 %v12655_v51, %v3961_v62  ;;  %v4308_v43 = vsub.f32 %v12657_v32, %v3961_v62  ;;  %8704 = vmatmul.mubr.msk.f32.gmra.mrb[90].mxu0 %vm931_vm3, %v16625_v55  ;;  %v5099_v28 = vadd.f32 %v13365_v57, %v13361_v63  ;;  %v16630_v63 = vld [vmem:[#allocation101_spill] sm:$0xff] }
 0x4bc   : > { %16624 = vst [vmem:[#allocation87_spill] sm:$0xff] %v13367_v33  ;;  %v4067_v16 = vmax.f32 %v13363_v1, %v13367_v33  ;;  %10366 = vpow2.f32 %v4633_v17  ;;  %3844 = vmatprep.mubr.f32.mxu0 %v16440_v35 }
 0x4bd   : > { %v13378_v21 = vpop.eup %10356  ;;  %v4635_v9 = vmul.f32 1.442695, %v4307_v41  ;;  %v4637_v0 = vmul.f32 1.442695, %v4308_v43  ;;  %v13380_v47 = vpop.f32.mrb[242].mxu0  ;;  %5100 = vadd.xlane.f32.xlu1 %v5099_v28  ;;  %v16631_v41 = vld [vmem:[#allocation6_spill] sm:$0xff] }
 0x4be   : > { %16626 = vst [vmem:[#allocation99_spill] sm:$0xff] %v13378_v21  ;;  %16627 = vst [vmem:[#allocation102_spill] sm:$0xff] %v13380_v47  ;;  %v13382_v51 = vpop.eup %10358  ;;  %4068 = vmax.xlane.f32.xlu0 %v4067_v16  ;;  %v3964_v32 = vpop.xlane.xlu0 %3963 }
 0x4bf   : > { %16628 = vst [vmem:[#allocation166_spill] sm:$0xff] %v13382_v51  ;;  %v13384_v62 = vpop.f32.mrb[243].mxu0  ;;  %10368 = vpow2.f32 %v4635_v9  ;;  %v4309_v55 = vsub.f32 %v12667_v38, %v3964_v32  ;;  %v4310_v17 = vsub.f32 %v12669_v44, %v3964_v32  ;;  %8705 = vmatmul.mubr.msk.f32.gmra.mrb[92].mxu0 %vm931_vm3, %v16630_v63  ;;  %v5102_v16 = vadd.f32 %v13382_v51, %v13378_v21  ;;  %v16636_v51 = vld [vmem:[#allocation5_spill] sm:$0xff] }
 0x4c0   : > { %16629 = vst [vmem:[#allocation167_spill] sm:$0xff] %v13384_v62  ;;  %v4070_v35 = vmax.f32 %v13380_v47, %v13384_v62  ;;  %10370 = vpow2.f32 %v4637_v0  ;;  %9501 = vmatprep.mubr.msk.f32.mxu0 %vm931_vm3, %v16631_v41 }
 0x4c1   : > { %v13396_v43 = vpop.eup %10360  ;;  %v4639_v28 = vmul.f32 1.442695, %v4309_v55  ;;  %v4641_v9 = vmul.f32 1.442695, %v4310_v17  ;;  %v13398_v38 = vpop.f32.mrb[244].mxu0  ;;  %5103 = vadd.xlane.f32.xlu1 %v5102_v16  ;;  %v16637_v55 = vld [vmem:[#allocation8_spill] sm:$0xff] }
 0x4c2   : > { %16632 = vst [vmem:[#allocation101_spill] sm:$0xff] %v13396_v43  ;;  %16633 = vst [vmem:[#allocation6_spill] sm:$0xff] %v13398_v38  ;;  %v13400_v44 = vpop.eup %10362  ;;  %4071 = vmax.xlane.f32.xlu0 %v4070_v35  ;;  %v3967_v32 = vpop.xlane.xlu0 %3966 }
 0x4c3   : > { %16634 = vst [vmem:[#allocation168_spill] sm:$0xff] %v13400_v44  ;;  %v13402_v57 = vpop.f32.mrb[245].mxu0  ;;  %10372 = vpow2.f32 %v4639_v28  ;;  %v4311_v63 = vsub.f32 %v12679_v15, %v3967_v32  ;;  %v4312_v0 = vsub.f32 %v12681_v19, %v3967_v32  ;;  %9502 = vmatmul.mubr.msk.f32.vlgmr.msra.gmra.mrb[94].mxu0 %vm931_vm3, %v16636_v51  ;;  %v5105_v17 = vadd.f32 %v13400_v44, %v13396_v43  ;;  %v16642_v44 = vld [vmem:[#allocation7_spill] sm:$0xff] }
 0x4c4   : > { %16635 = vst [vmem:[#allocation169_spill] sm:$0xff] %v13402_v57  ;;  %v4073_v21 = vmax.f32 %v13398_v38, %v13402_v57  ;;  %10374 = vpow2.f32 %v4641_v9  ;;  %9504 = vmatprep.mubr.msk.f32.mxu0 %vm931_vm3, %v16637_v55  ;;  %9600 = vmatpush3.msk.msra.mxu0 %vm1028_vm2, %v13100_v52  ;;  %v16648_v38 = vld [vmem:[#allocation9_spill] sm:$0xff] }
 0x4c5   : > { %v13416_v35 = vpop.eup %10364  ;;  %v4643_v15 = vmul.f32 1.442695, %v4311_v63  ;;  %v4645_v19 = vmul.f32 1.442695, %v4312_v0  ;;  %v13418_v16 = vpop.f32.mrb[246].mxu0  ;;  %5106 = vadd.xlane.f32.xlu1 %v5105_v17  ;;  %v16643_v63 = vld [vmem:[#allocation10_spill] sm:$0xff] }
 0x4c6   : > { %16638 = vst [vmem:[#allocation5_spill] sm:$0xff] %v13416_v35  ;;  %16639 = vst [vmem:[#allocation8_spill] sm:$0xff] %v13418_v16  ;;  %v13420_v28 = vpop.eup %10366  ;;  %4074 = vmax.xlane.f32.xlu0 %v4073_v21  ;;  %v3970_v9 = vpop.xlane.xlu0 %3969 }
 0x4c7   : > { %16640 = vst [vmem:[#allocation170_spill] sm:$0xff] %v13420_v28  ;;  %v13422_v32 = vpop.f32.mrb[247].mxu0  ;;  %10376 = vpow2.f32 %v4643_v15  ;;  %v4313_v57 = vsub.f32 %v12691_v54, %v3970_v9  ;;  %v4314_v43 = vsub.f32 %v12693_v3, %v3970_v9  ;;  %9505 = vmatmul.mubr.msk.f32.gmra.mrb[96].mxu0 %vm931_vm3, %v16642_v44  ;;  %v5108_v21 = vadd.f32 %v13420_v28, %v13416_v35  ;;  %v16649_v35 = vld [vmem:[#allocation12_spill] sm:$0xff] }
 0x4c8   : > { %16641 = vst [vmem:[#allocation171_spill] sm:$0xff] %v13422_v32  ;;  %v4076_v52 = vmax.f32 %v13418_v16, %v13422_v32  ;;  %10378 = vpow2.f32 %v4645_v19  ;;  %9507 = vmatprep.mubr.msk.f32.mxu0 %vm931_vm3, %v16643_v63 }
 0x4c9   : > { %v13434_v0 = vpop.eup %10368  ;;  %v4647_v17 = vmul.f32 1.442695, %v4313_v57  ;;  %v4649_v15 = vmul.f32 1.442695, %v4314_v43  ;;  %v13436_v54 = vpop.f32.mrb[248].mxu0  ;;  %5109 = vadd.xlane.f32.xlu1 %v5108_v21 }
 0x4ca   : > { %16644 = vst [vmem:[#allocation7_spill] sm:$0xff] %v13434_v0  ;;  %16645 = vst [vmem:[#allocation10_spill] sm:$0xff] %v13436_v54  ;;  %v13438_v3 = vpop.eup %10370  ;;  %v5005_v9 = vpop.xlane.xlu1 %5004  ;;  %4077 = vmax.xlane.f32.xlu0 %v4076_v52 }
 0x4cb   : > { %16646 = vst [vmem:[#allocation172_spill] sm:$0xff] %v13438_v3  ;;  %v13440_v32 = vpop.f32.mrb[249].mxu0  ;;  %10380 = vpow2.f32 %v4647_v17  ;;  %v3973_v19 = vpop.xlane.xlu0 %3972  ;;  %9508 = vmatmul.mubr.msk.f32.gmra.mrb[98].mxu0 %vm931_vm3, %v16648_v38  ;;  %v5111_v57 = vadd.f32 %v13438_v3, %v13434_v0 }
 0x4cc   : > { %16647 = vst [vmem:[#allocation173_spill] sm:$0xff] %v13440_v32  ;;  %v4079_v16 = vmax.f32 %v13436_v54, %v13440_v32  ;;  %10382 = vpow2.f32 %v4649_v15  ;;  %v4315_v43 = vsub.f32 %v12705_v6, %v3973_v19  ;;  %v4316_v21 = vsub.f32 %v12709_v22, %v3973_v19  ;;  %9510 = vmatprep.mubr.msk.f32.mxu0 %vm931_vm3, %v16649_v35  ;;  %v16654_v19 = vld [vmem:[#allocation11_spill] sm:$0xff] }
 0x4cd   : > { %v13452_v52 = vpop.eup %10372  ;;  %10384 = vrcp.f32 %v5005_v9  ;;  %v13454_v17 = vpop.f32.mrb[250].mxu0  ;;  %5112 = vadd.xlane.f32.xlu1 %v5111_v57 }
 0x4ce   : > { %16650 = vst [vmem:[#allocation9_spill] sm:$0xff] %v13452_v52  ;;  %16651 = vst [vmem:[#allocation12_spill] sm:$0xff] %v13454_v17  ;;  %v13456_v28 = vpop.eup %10374  ;;  %v4651_v32 = vmul.f32 1.442695, %v4315_v43  ;;  %v4653_v54 = vmul.f32 1.442695, %v4316_v21  ;;  %v5008_v62 = vpop.xlane.xlu1 %5007  ;;  %4080 = vmax.xlane.f32.xlu0 %v4079_v16 }
 0x4cf   : > { %16652 = vst [vmem:[#allocation174_spill] sm:$0xff] %v13456_v28  ;;  %v13458_v15 = vpop.f32.mrb[251].mxu0  ;;  %10386 = vrcp.f32 %v5008_v62  ;;  %v3976_v6 = vpop.xlane.xlu0 %3975  ;;  %9511 = vmatmul.mubr.msk.f32.gmra.mrb[100].mxu0 %vm931_vm3, %v16654_v19  ;;  %v5114_v9 = vadd.f32 %v13456_v28, %v13452_v52  ;;  %v16655_v21 = vld [vmem:[#allocation14_spill] sm:$0xff] }
 0x4d0   : > { %16653 = vst [vmem:[#allocation175_spill] sm:$0xff] %v13458_v15  ;;  %v4082_v22 = vmax.f32 %v13454_v17, %v13458_v15  ;;  %10388 = vpow2.f32 %v4651_v32  ;;  %v4317_v43 = vsub.f32 %v12723_v14, %v3976_v6  ;;  %v4318_v57 = vsub.f32 %v12727_v18, %v3976_v6  ;;  %9513 = vmatprep.mubr.msk.f32.mxu0 %vm931_vm3, %v16655_v21  ;;  %v16660_v6 = vld [vmem:[#allocation13_spill] sm:$0xff] }
 0x4d1   : > { %v13470_v16 = vpop.eup %10376  ;;  %10390 = vpow2.f32 %v4653_v54  ;;  %v13472_v62 = vpop.f32.mrb[252].mxu0  ;;  %5115 = vadd.xlane.f32.xlu1 %v5114_v9 }
 0x4d2   : > { %16656 = vst [vmem:[#allocation11_spill] sm:$0xff] %v13470_v16  ;;  %16657 = vst [vmem:[#allocation14_spill] sm:$0xff] %v13472_v62  ;;  %v13474_v0 = vpop.eup %10378  ;;  %v4655_v3 = vmul.f32 1.442695, %v4317_v43  ;;  %v4657_v15 = vmul.f32 1.442695, %v4318_v57  ;;  %v5011_v17 = vpop.xlane.xlu1 %5010  ;;  %4083 = vmax.xlane.f32.xlu0 %v4082_v22 }
 0x4d3   : > { %16658 = vst [vmem:[#allocation176_spill] sm:$0xff] %v13474_v0  ;;  %v13476_v32 = vpop.f32.mrb[253].mxu0  ;;  %10392 = vrcp.f32 %v5011_v17  ;;  %v3979_v14 = vpop.xlane.xlu0 %3978  ;;  %9514 = vmatmul.mubr.msk.f32.gmra.mrb[102].mxu0 %vm931_vm3, %v16660_v6  ;;  %v5117_v54 = vadd.f32 %v13474_v0, %v13470_v16  ;;  %v16661_v57 = vld [vmem:[#allocation16_spill] sm:$0xff]  ;;  %v16666_v16 = vld [vmem:[#allocation15_spill] sm:$0xff]  ;;  %v16668_v0 = vld [vmem:[#allocation90_spill] sm:$0xff] }
 0x4d4   : > { %16659 = vst [vmem:[#allocation177_spill] sm:$0xff] %v13476_v32  ;;  %v4085_v18 = vmax.f32 %v13472_v62, %v13476_v32  ;;  %10394 = vpow2.f32 %v4655_v3  ;;  %v4319_v43 = vsub.f32 %v12741_v56, %v3979_v14  ;;  %v4320_v9 = vsub.f32 %v12745_v29, %v3979_v14  ;;  %9516 = vmatprep.mubr.msk.f32.mxu0 %vm931_vm3, %v16661_v57 }
 0x4d5   : > { %v13488_v22 = vpop.eup %10380  ;;  %10396 = vpow2.f32 %v4657_v15  ;;  %v13490_v17 = vpop.f32.mrb[254].mxu0  ;;  %5118 = vadd.xlane.f32.xlu1 %v5117_v54 }
 0x4d6   : > { %16662 = vst [vmem:[#allocation13_spill] sm:$0xff] %v13488_v22  ;;  %16663 = vst [vmem:[#allocation16_spill] sm:$0xff] %v13490_v17  ;;  %v13492_v52 = vpop.eup %10382  ;;  %v4659_v28 = vmul.f32 1.442695, %v4319_v43  ;;  %v4661_v32 = vmul.f32 1.442695, %v4320_v9  ;;  %v5014_v62 = vpop.xlane.xlu1 %5013  ;;  %4086 = vmax.xlane.f32.xlu0 %v4085_v18 }
 0x4d7   : > { %16664 = vst [vmem:[#allocation178_spill] sm:$0xff] %v13492_v52  ;;  %v13494_v3 = vpop.f32.mrb[255].mxu0  ;;  %v10385_v56 = vpop.eup %10384  ;;  %10398 = vrcp.f32 %v5014_v62  ;;  %9517 = vmatmul.mubr.msk.f32.gmra.mrb[104].mxu0 %vm931_vm3, %v16666_v16  ;;  %v5120_v15 = vadd.f32 %v13492_v52, %v13488_v22  ;;  %v16667_v18 = vld [vmem:[#allocation18_spill] sm:$0xff] }
 0x4d8   : > { %16665 = vst [vmem:[#allocation179_spill] sm:$0xff] %v13494_v3  ;;  %v3982_v29 = vpop.xlane.xlu0 %3981  ;;  %v4088_v14 = vmax.f32 %v13490_v17, %v13494_v3  ;;  %10400 = vpow2.f32 %v4659_v28  ;;  %9519 = vmatprep.mubr.msk.f32.mxu0 %vm931_vm3, %v16667_v18  ;;  %v5516_v62 = vmul.f32 %v10385_v56, %v12707_v23  ;;  %v5515_v3 = vmul.f32 %v10385_v56, %v16668_v0 }
 0x4d9   : > { %v4321_v43 = vsub.f32 %v12761_v45, %v3982_v29  ;;  %v4322_v54 = vsub.f32 %v12765_v10, %v3982_v29  ;;  %v10387_v9 = vpop.eup %10386  ;;  %10402 = vpow2.f32 %v4661_v32  ;;  %v13508_v17 = vpop.f32.mrb[0].mxu0  ;;  %5121 = vadd.xlane.f32.xlu1 %v5120_v15  ;;  %v16670_v10 = vld [vmem:[#allocation96_spill] sm:$0xff]  ;;  %v16672_v32 = vld [vmem:[#allocation93_spill] sm:$0xff] }
 0x4da   : > { %v13510_v47 = vpop.eup %10388  ;;  %6747 = vmatprep.mubr.f32.mxu1 %v5516_v62  ;;  %v5017_v45 = vpop.xlane.xlu1 %5016  ;;  %v5518_v29 = vmul.f32 %v10387_v9, %v16670_v10  ;;  %4089 = vmax.xlane.f32.xlu0 %v4088_v14  ;;  %v5517_v56 = vmul.f32 %v10387_v9, %v16672_v32  ;;  %v16674_v14 = vld [vmem:[#allocation20_spill] sm:$0xff] }
 0x4db   : > { %16669 = vst [vmem:[#allocation15_spill] sm:$0xff] %v13510_v47  ;;  %v4663_v33 = vmul.f32 1.442695, %v4321_v43  ;;  %v4665_v22 = vmul.f32 1.442695, %v4322_v54  ;;  %v13512_v28 = vpop.f32.mrb[1].mxu0  ;;  %v13515_v52 = vpop.eup %10390  ;;  %6748 = vmatmul.mubr.f32.vlgmr.msra.gmra.mrb[162].mxu1 %v5515_v3  ;;  %10404 = vrcp.f32 %v5017_v45 }
 0x4dc   : > { %16671 = vst [vmem:[#allocation18_spill] sm:$0xff] %v13515_v52  ;;  %v3985_v23 = vpop.xlane.xlu0 %3984  ;;  %v4091_v0 = vmax.f32 %v13508_v17, %v13512_v28  ;;  %v16673_v54 = vld [vmem:[#allocation17_spill] sm:$0xff]  ;;  %6752 = vmatprep.mubr.f32.mxu1 %v5518_v29  ;;  %v5123_v3 = vadd.f32 %v13515_v52, %v13510_v47  ;;  %v16679_v47 = vld [vmem:[#allocation103_spill] sm:$0xff] }
 0x4dd   : > { %10406 = vpow2.f32 %v4663_v33  ;;  %v4323_v43 = vsub.f32 %v12779_v46, %v3985_v23  ;;  %v4324_v15 = vsub.f32 %v12783_v61, %v3985_v23  ;;  %9520 = vmatmul.mubr.msk.f32.gmra.mrb[106].mxu0 %vm931_vm3, %v16673_v54  ;;  %v10393_v62 = vpop.eup %10392  ;;  %v13528_v45 = vpop.f32.mrb[2].mxu0 }
 0x4de   : > { %10408 = vpow2.f32 %v4665_v22  ;;  %9522 = vmatprep.mubr.msk.f32.mxu0 %vm931_vm3, %v16674_v14  ;;  %16675 = vst [vmem:[#allocation90_spill] sm:$0xff] %v13528_v45  ;;  %v13530_v9 = vpop.eup %10394  ;;  %5124 = vadd.xlane.f32.xlu1 %v5123_v3  ;;  %v5020_v61 = vpop.xlane.xlu1 %5019  ;;  %v5520_v29 = vmul.f32 %v10393_v62, %v12743_v11  ;;  %v5519_v52 = vmul.f32 %v10393_v62, %v16679_v47  ;;  %v16680_v3 = vld [vmem:[#allocation19_spill] sm:$0xff] }
 0x4df   : > { %16676 = vst [vmem:[#allocation96_spill] sm:$0xff] %v13530_v9  ;;  %v4667_v33 = vmul.f32 1.442695, %v4323_v43  ;;  %v4669_v46 = vmul.f32 1.442695, %v4324_v15  ;;  %v13532_v10 = vpop.f32.mrb[3].mxu0  ;;  %v13535_v23 = vpop.eup %10396  ;;  %6753 = vmatmul.mubr.f32.gmra.mrb[164].mxu1 %v5517_v56  ;;  %10410 = vrcp.f32 %v5020_v61  ;;  %4092 = vmax.xlane.f32.xlu0 %v4091_v0 }
 0x4e0   : > { %16677 = vst [vmem:[#allocation93_spill] sm:$0xff] %v13532_v10  ;;  %16678 = vst [vmem:[#allocation17_spill] sm:$0xff] %v13535_v23  ;;  %v3988_v22 = vpop.xlane.xlu0 %3987  ;;  %v4094_v32 = vmax.f32 %v13528_v45, %v13532_v10  ;;  %6757 = vmatprep.mubr.f32.mxu1 %v5520_v29  ;;  %v5126_v11 = vadd.f32 %v13535_v23, %v13530_v9  ;;  %v16681_v0 = vld [vmem:[#allocation22_spill] sm:$0xff]  ;;  %v16687_v23 = vld [vmem:[#allocation59_spill] sm:$0xff] }
 0x4e1   : > { %10412 = vpow2.f32 %v4667_v33  ;;  %v4325_v43 = vsub.f32 %v12797_v60, %v3988_v22  ;;  %v4326_v15 = vsub.f32 %v12801_v25, %v3988_v22  ;;  %9523 = vmatmul.mubr.msk.f32.gmra.mrb[108].mxu0 %vm931_vm3, %v16680_v3  ;;  %v10399_v56 = vpop.eup %10398  ;;  %v13548_v61 = vpop.f32.mrb[4].mxu0  ;;  %v16685_v22 = vld [vmem:[#allocation104_spill] sm:$0xff] }
 0x4e2   : > { %10414 = vpow2.f32 %v4669_v46  ;;  %9525 = vmatprep.mubr.msk.f32.mxu0 %vm931_vm3, %v16681_v0  ;;  %16682 = vst [vmem:[#allocation20_spill] sm:$0xff] %v13548_v61  ;;  %v13550_v47 = vpop.eup %10400  ;;  %5127 = vadd.xlane.f32.xlu1 %v5126_v11  ;;  %v5023_v25 = vpop.xlane.xlu1 %5022  ;;  %v5522_v29 = vmul.f32 %v10399_v56, %v16685_v22  ;;  %v5521_v45 = vmul.f32 %v10399_v56, %v16687_v23  ;;  %v16688_v11 = vld [vmem:[#allocation21_spill] sm:$0xff] }
 0x4e3   : > { %16683 = vst [vmem:[#allocation103_spill] sm:$0xff] %v13550_v47  ;;  %v4671_v62 = vmul.f32 1.442695, %v4325_v43  ;;  %v4673_v60 = vmul.f32 1.442695, %v4326_v15  ;;  %v13552_v33 = vpop.f32.mrb[5].mxu0  ;;  %v13555_v10 = vpop.eup %10402  ;;  %6758 = vmatmul.mubr.f32.gmra.mrb[166].mxu1 %v5519_v52  ;;  %10416 = vrcp.f32 %v5023_v25  ;;  %4095 = vmax.xlane.f32.xlu0 %v4094_v32 }
 0x4e4   : > { %16684 = vst [vmem:[#allocation19_spill] sm:$0xff] %v13552_v33  ;;  %16686 = vst [vmem:[#allocation22_spill] sm:$0xff] %v13555_v10  ;;  %v3991_v46 = vpop.xlane.xlu0 %3990  ;;  %v4097_v9 = vmax.f32 %v13548_v61, %v13552_v33  ;;  %6762 = vmatprep.mubr.f32.mxu1 %v5522_v29  ;;  %v5129_v52 = vadd.f32 %v13555_v10, %v13550_v47  ;;  %v16689_v32 = vld [vmem:[#allocation24_spill] sm:$0xff]  ;;  %v16695_v10 = vld [vmem:[#allocation58_spill] sm:$0xff] }
 0x4e5   : > { %10418 = vpow2.f32 %v4671_v62  ;;  %v4327_v43 = vsub.f32 %v12815_v8, %v3991_v46  ;;  %v4328_v15 = vsub.f32 %v12819_v31, %v3991_v46  ;;  %9526 = vmatmul.mubr.msk.f32.gmra.mrb[110].mxu0 %vm931_vm3, %v16688_v11  ;;  %v10405_v25 = vpop.eup %10404  ;;  %v13568_v22 = vpop.f32.mrb[6].mxu0  ;;  %v16693_v46 = vld [vmem:[#allocation105_spill] sm:$0xff] }
 0x4e6   : > { %10420 = vpow2.f32 %v4673_v60  ;;  %9528 = vmatprep.mubr.msk.f32.mxu0 %vm931_vm3, %v16689_v32  ;;  %16690 = vst [vmem:[#allocation104_spill] sm:$0xff] %v13568_v22  ;;  %5130 = vadd.xlane.f32.xlu1 %v5129_v52  ;;  %v5026_v31 = vpop.xlane.xlu1 %5025  ;;  %v13572_v62 = vpop.f32.mrb[7].mxu0  ;;  %v5524_v29 = vmul.f32 %v10405_v25, %v16693_v46  ;;  %v5523_v61 = vmul.f32 %v10405_v25, %v16695_v10  ;;  %v16696_v52 = vld [vmem:[#allocation23_spill] sm:$0xff] }
 0x4e7   : > { %v13570_v23 = vpop.eup %10406  ;;  %v4675_v56 = vmul.f32 1.442695, %v4327_v43  ;;  %v4677_v8 = vmul.f32 1.442695, %v4328_v15  ;;  %16692 = vst [vmem:[#allocation21_spill] sm:$0xff] %v13572_v62  ;;  %6763 = vmatmul.mubr.f32.gmra.mrb[168].mxu1 %v5521_v45  ;;  %10422 = vrcp.f32 %v5026_v31  ;;  %4098 = vmax.xlane.f32.xlu0 %v4097_v9  ;;  %v4100_v47 = vmax.f32 %v13568_v22, %v13572_v62  ;;  %v16697_v9 = vld [vmem:[#allocation26_spill] sm:$0xff] }
 0x4e8   : > { %16691 = vst [vmem:[#allocation59_spill] sm:$0xff] %v13570_v23  ;;  %v13575_v33 = vpop.eup %10408  ;;  %v3994_v60 = vpop.xlane.xlu0 %3993  ;;  %6767 = vmatprep.mubr.f32.mxu1 %v5524_v29 }
 0x4e9   : > { %16694 = vst [vmem:[#allocation24_spill] sm:$0xff] %v13575_v33  ;;  %10424 = vpow2.f32 %v4675_v56  ;;  %v4329_v43 = vsub.f32 %v12833_v20, %v3994_v60  ;;  %v4330_v15 = vsub.f32 %v12837_v49, %v3994_v60  ;;  %9529 = vmatmul.mubr.msk.f32.gmra.mrb[112].mxu0 %vm931_vm3, %v16696_v52  ;;  %v5132_v45 = vadd.f32 %v13575_v33, %v13570_v23  ;;  %v10411_v31 = vpop.eup %10410  ;;  %v13588_v46 = vpop.f32.mrb[8].mxu0  ;;  %v16701_v60 = vld [vmem:[#allocation106_spill] sm:$0xff] }
 0x4ea   : > { %10426 = vpow2.f32 %v4677_v8  ;;  %9531 = vmatprep.mubr.msk.f32.mxu0 %vm931_vm3, %v16697_v9  ;;  %16698 = vst [vmem:[#allocation105_spill] sm:$0xff] %v13588_v46  ;;  %v5029_v49 = vpop.xlane.xlu1 %5028  ;;  %v13592_v56 = vpop.f32.mrb[9].mxu0  ;;  %v5526_v29 = vmul.f32 %v10411_v31, %v16701_v60  ;;  %v16703_v33 = vld [vmem:[#allocation62_spill] sm:$0xff] }
 0x4eb   : > { %v13590_v10 = vpop.eup %10412  ;;  %v4679_v25 = vmul.f32 1.442695, %v4329_v43  ;;  %v4681_v20 = vmul.f32 1.442695, %v4330_v15  ;;  %5133 = vadd.xlane.f32.xlu1 %v5132_v45  ;;  %16700 = vst [vmem:[#allocation23_spill] sm:$0xff] %v13592_v56  ;;  %6768 = vmatmul.mubr.f32.gmra.mrb[170].mxu1 %v5523_v61  ;;  %10428 = vrcp.f32 %v5029_v49  ;;  %v4103_v23 = vmax.f32 %v13588_v46, %v13592_v56  ;;  %v16704_v45 = vld [vmem:[#allocation25_spill] sm:$0xff] }
 0x4ec   : > { %16699 = vst [vmem:[#allocation58_spill] sm:$0xff] %v13590_v10  ;;  %v13595_v62 = vpop.eup %10414  ;;  %4101 = vmax.xlane.f32.xlu0 %v4100_v47  ;;  %v3997_v8 = vpop.xlane.xlu0 %3996  ;;  %v5525_v22 = vmul.f32 %v10411_v31, %v16703_v33  ;;  %6772 = vmatprep.mubr.f32.mxu1 %v5526_v29  ;;  %v16705_v47 = vld [vmem:[#allocation28_spill] sm:$0xff] }
 0x4ed   : > { %16702 = vst [vmem:[#allocation26_spill] sm:$0xff] %v13595_v62  ;;  %10430 = vpow2.f32 %v4679_v25  ;;  %v4331_v43 = vsub.f32 %v12851_v59, %v3997_v8  ;;  %v4332_v15 = vsub.f32 %v12855_v34, %v3997_v8  ;;  %9532 = vmatmul.mubr.msk.f32.gmra.mrb[114].mxu0 %vm931_vm3, %v16704_v45  ;;  %v5135_v61 = vadd.f32 %v13595_v62, %v13590_v10  ;;  %v10417_v49 = vpop.eup %10416  ;;  %v13608_v60 = vpop.f32.mrb[10].mxu0  ;;  %v16708_v8 = vld [vmem:[#allocation107_spill] sm:$0xff]  ;;  %v16710_v62 = vld [vmem:[#allocation61_spill] sm:$0xff] }
 0x4ee   : > { %10432 = vpow2.f32 %v4681_v20  ;;  %9534 = vmatprep.mubr.msk.f32.mxu0 %vm931_vm3, %v16705_v47  ;;  %v5032_v34 = vpop.xlane.xlu1 %5031  ;;  %v13612_v25 = vpop.f32.mrb[11].mxu0  ;;  %v5528_v29 = vmul.f32 %v10417_v49, %v16708_v8  ;;  %v5527_v46 = vmul.f32 %v10417_v49, %v16710_v62 }
 0x4ef   : > { %v13610_v33 = vpop.eup %10418  ;;  %v4683_v31 = vmul.f32 1.442695, %v4331_v43  ;;  %v4685_v59 = vmul.f32 1.442695, %v4332_v15  ;;  %5136 = vadd.xlane.f32.xlu1 %v5135_v61  ;;  %16707 = vst [vmem:[#allocation62_spill] sm:$0xff] %v13612_v25  ;;  %6773 = vmatmul.mubr.f32.gmra.mrb[172].mxu1 %v5525_v22  ;;  %10434 = vrcp.f32 %v5032_v34  ;;  %v4106_v10 = vmax.f32 %v13608_v60, %v13612_v25  ;;  %v16711_v61 = vld [vmem:[#allocation27_spill] sm:$0xff] }
 0x4f0   : > { %16706 = vst [vmem:[#allocation106_spill] sm:$0xff] %v13610_v33  ;;  %v13615_v56 = vpop.eup %10420  ;;  %4104 = vmax.xlane.f32.xlu0 %v4103_v23  ;;  %v4000_v20 = vpop.xlane.xlu0 %3999  ;;  %6777 = vmatprep.mubr.f32.mxu1 %v5528_v29  ;;  %v16712_v23 = vld [vmem:[#allocation30_spill] sm:$0xff] }
 0x4f1   : > { %16709 = vst [vmem:[#allocation25_spill] sm:$0xff] %v13615_v56  ;;  %10436 = vpow2.f32 %v4683_v31  ;;  %v4333_v43 = vsub.f32 %v12875_v12, %v4000_v20  ;;  %v4334_v15 = vsub.f32 %v12879_v30, %v4000_v20  ;;  %9535 = vmatmul.mubr.msk.f32.gmra.mrb[116].mxu0 %vm931_vm3, %v16711_v61  ;;  %v5138_v22 = vadd.f32 %v13615_v56, %v13610_v33  ;;  %v10423_v34 = vpop.eup %10422  ;;  %v13628_v8 = vpop.f32.mrb[12].mxu0  ;;  %v16717_v56 = vld [vmem:[#allocation65_spill] sm:$0xff] }
 0x4f2   : > { %10438 = vpow2.f32 %v4685_v59  ;;  %9537 = vmatprep.mubr.msk.f32.mxu0 %vm931_vm3, %v16712_v23  ;;  %16713 = vst [vmem:[#allocation28_spill] sm:$0xff] %v13628_v8  ;;  %v5035_v30 = vpop.xlane.xlu1 %5034  ;;  %v13632_v31 = vpop.f32.mrb[13].mxu0  ;;  %v5530_v29 = vmul.f32 %v10423_v34, %v12835_v53  ;;  %v5529_v25 = vmul.f32 %v10423_v34, %v16717_v56 }
 0x4f3   : > { %v13630_v62 = vpop.eup %10424  ;;  %v4687_v49 = vmul.f32 1.442695, %v4333_v43  ;;  %v4689_v12 = vmul.f32 1.442695, %v4334_v15  ;;  %5139 = vadd.xlane.f32.xlu1 %v5138_v22  ;;  %16715 = vst [vmem:[#allocation61_spill] sm:$0xff] %v13632_v31  ;;  %6778 = vmatmul.mubr.f32.gmra.mrb[174].mxu1 %v5527_v46  ;;  %10440 = vrcp.f32 %v5035_v30  ;;  %v4109_v33 = vmax.f32 %v13628_v8, %v13632_v31  ;;  %v16718_v22 = vld [vmem:[#allocation29_spill] sm:$0xff] }
 0x4f4   : > { %16714 = vst [vmem:[#allocation107_spill] sm:$0xff] %v13630_v62  ;;  %v13635_v20 = vpop.eup %10426  ;;  %4107 = vmax.xlane.f32.xlu0 %v4106_v10  ;;  %v4003_v59 = vpop.xlane.xlu0 %4002  ;;  %6782 = vmatprep.mubr.f32.mxu1 %v5530_v29  ;;  %v16719_v10 = vld [vmem:[#allocation32_spill] sm:$0xff] }
 0x4f5   : > { %16716 = vst [vmem:[#allocation27_spill] sm:$0xff] %v13635_v20  ;;  %10442 = vpow2.f32 %v4687_v49  ;;  %v4335_v43 = vsub.f32 %v12898_v26, %v4003_v59  ;;  %v4336_v15 = vsub.f32 %v12902_v7, %v4003_v59  ;;  %9538 = vmatmul.mubr.msk.f32.gmra.mrb[118].mxu0 %vm931_vm3, %v16718_v22  ;;  %v5141_v53 = vadd.f32 %v13635_v20, %v13630_v62  ;;  %v10429_v46 = vpop.eup %10428  ;;  %v13648_v30 = vpop.f32.mrb[14].mxu0  ;;  %v16723_v59 = vld [vmem:[#allocation108_spill] sm:$0xff] }
 0x4f6   : > { %10444 = vpow2.f32 %v4689_v12  ;;  %9540 = vmatprep.mubr.msk.f32.mxu0 %vm931_vm3, %v16719_v10  ;;  %16720 = vst [vmem:[#allocation30_spill] sm:$0xff] %v13648_v30  ;;  %v5038_v7 = vpop.xlane.xlu1 %5037  ;;  %v13652_v49 = vpop.f32.mrb[15].mxu0  ;;  %v5532_v29 = vmul.f32 %v10429_v46, %v16723_v59  ;;  %v16725_v20 = vld [vmem:[#allocation64_spill] sm:$0xff] }
 0x4f7   : > { %v13650_v56 = vpop.eup %10430  ;;  %v4691_v34 = vmul.f32 1.442695, %v4335_v43  ;;  %v4693_v26 = vmul.f32 1.442695, %v4336_v15  ;;  %5142 = vadd.xlane.f32.xlu1 %v5141_v53  ;;  %16722 = vst [vmem:[#allocation29_spill] sm:$0xff] %v13652_v49  ;;  %6783 = vmatmul.mubr.f32.gmra.mrb[176].mxu1 %v5529_v25  ;;  %10446 = vrcp.f32 %v5038_v7  ;;  %v4112_v62 = vmax.f32 %v13648_v30, %v13652_v49  ;;  %v16726_v53 = vld [vmem:[#allocation31_spill] sm:$0xff] }
 0x4f8   : > { %16721 = vst [vmem:[#allocation65_spill] sm:$0xff] %v13650_v56  ;;  %v13655_v31 = vpop.eup %10432  ;;  %4110 = vmax.xlane.f32.xlu0 %v4109_v33  ;;  %v4006_v12 = vpop.xlane.xlu0 %4005  ;;  %v5531_v8 = vmul.f32 %v10429_v46, %v16725_v20  ;;  %6787 = vmatprep.mubr.f32.mxu1 %v5532_v29  ;;  %v16727_v33 = vld [vmem:[#allocation34_spill] sm:$0xff] }
 0x4f9   : > { %16724 = vst [vmem:[#allocation32_spill] sm:$0xff] %v13655_v31  ;;  %10448 = vpow2.f32 %v4691_v34  ;;  %v4337_v43 = vsub.f32 %v12921_v39, %v4006_v12  ;;  %v4338_v15 = vsub.f32 %v12925_v37, %v4006_v12  ;;  %9541 = vmatmul.mubr.msk.f32.gmra.mrb[120].mxu0 %vm931_vm3, %v16726_v53  ;;  %v5144_v25 = vadd.f32 %v13655_v31, %v13650_v56  ;;  %v10435_v7 = vpop.eup %10434  ;;  %v13668_v59 = vpop.f32.mrb[16].mxu0  ;;  %v16731_v12 = vld [vmem:[#allocation111_spill] sm:$0xff]  ;;  %v16733_v31 = vld [vmem:[#allocation110_spill] sm:$0xff] }
 0x4fa   : > { %10450 = vpow2.f32 %v4693_v26  ;;  %9543 = vmatprep.mubr.msk.f32.mxu0 %vm931_vm3, %v16727_v33  ;;  %16728 = vst [vmem:[#allocation108_spill] sm:$0xff] %v13668_v59  ;;  %v5041_v37 = vpop.xlane.xlu1 %5040  ;;  %v13672_v34 = vpop.f32.mrb[17].mxu0  ;;  %v5534_v29 = vmul.f32 %v10435_v7, %v16731_v12  ;;  %v5533_v30 = vmul.f32 %v10435_v7, %v16733_v31 }
 0x4fb   : > { %v13670_v20 = vpop.eup %10436  ;;  %v4695_v46 = vmul.f32 1.442695, %v4337_v43  ;;  %v4697_v39 = vmul.f32 1.442695, %v4338_v15  ;;  %5145 = vadd.xlane.f32.xlu1 %v5144_v25  ;;  %16730 = vst [vmem:[#allocation31_spill] sm:$0xff] %v13672_v34  ;;  %6788 = vmatmul.mubr.f32.gmra.mrb[178].mxu1 %v5531_v8  ;;  %10452 = vrcp.f32 %v5041_v37  ;;  %v4115_v56 = vmax.f32 %v13668_v59, %v13672_v34  ;;  %v16734_v25 = vld [vmem:[#allocation33_spill] sm:$0xff] }
 0x4fc   : > { %16729 = vst [vmem:[#allocation64_spill] sm:$0xff] %v13670_v20  ;;  %v13675_v49 = vpop.eup %10438  ;;  %4113 = vmax.xlane.f32.xlu0 %v4112_v62  ;;  %v4009_v26 = vpop.xlane.xlu0 %4008  ;;  %6792 = vmatprep.mubr.f32.mxu1 %v5534_v29  ;;  %v16735_v62 = vld [vmem:[#allocation36_spill] sm:$0xff] }
 0x4fd   : > { %16732 = vst [vmem:[#allocation34_spill] sm:$0xff] %v13675_v49  ;;  %10454 = vpow2.f32 %v4695_v46  ;;  %v4339_v43 = vsub.f32 %v12944_v27, %v4009_v26  ;;  %v4340_v15 = vsub.f32 %v12948_v40, %v4009_v26  ;;  %9544 = vmatmul.mubr.msk.f32.gmra.mrb[122].mxu0 %vm931_vm3, %v16734_v25  ;;  %v5147_v8 = vadd.f32 %v13675_v49, %v13670_v20  ;;  %v10441_v37 = vpop.eup %10440  ;;  %v13688_v12 = vpop.f32.mrb[18].mxu0  ;;  %v16737_v26 = vld [vmem:[#allocation114_spill] sm:$0xff]  ;;  %v16739_v49 = vld [vmem:[#allocation113_spill] sm:$0xff] }
 0x4fe   : > { %10456 = vpow2.f32 %v4697_v39  ;;  %9546 = vmatprep.mubr.msk.f32.mxu0 %vm931_vm3, %v16735_v62  ;;  %v5044_v40 = vpop.xlane.xlu1 %5043  ;;  %v13692_v46 = vpop.f32.mrb[19].mxu0  ;;  %v5536_v29 = vmul.f32 %v10441_v37, %v16737_v26  ;;  %v5535_v59 = vmul.f32 %v10441_v37, %v16739_v49  ;;  %v16742_v26 = vld [vmem:[#allocation117_spill] sm:$0xff] }
 0x4ff   : > { %v13690_v31 = vpop.eup %10442  ;;  %v4699_v7 = vmul.f32 1.442695, %v4339_v43  ;;  %v4701_v27 = vmul.f32 1.442695, %v4340_v15  ;;  %5148 = vadd.xlane.f32.xlu1 %v5147_v8  ;;  %6793 = vmatmul.mubr.f32.gmra.mrb[180].mxu1 %v5533_v30  ;;  %10458 = vrcp.f32 %v5044_v40  ;;  %v4118_v20 = vmax.f32 %v13688_v12, %v13692_v46  ;;  %v16740_v8 = vld [vmem:[#allocation35_spill] sm:$0xff] }
 0x500   : > { %16736 = vst [vmem:[#allocation111_spill] sm:$0xff] %v13690_v31  ;;  %v13695_v34 = vpop.eup %10444  ;;  %4116 = vmax.xlane.f32.xlu0 %v4115_v56  ;;  %v4012_v39 = vpop.xlane.xlu0 %4011  ;;  %6797 = vmatprep.mubr.f32.mxu1 %v5536_v29 }
 0x501   : > { %16738 = vst [vmem:[#allocation110_spill] sm:$0xff] %v13695_v34  ;;  %10460 = vpow2.f32 %v4699_v7  ;;  %v4341_v43 = vsub.f32 %v12967_v13, %v4012_v39  ;;  %v4342_v15 = vsub.f32 %v12971_v50, %v4012_v39  ;;  %9547 = vmatmul.mubr.msk.f32.gmra.mrb[124].mxu0 %vm931_vm3, %v16740_v8  ;;  %v5150_v30 = vadd.f32 %v13695_v34, %v13690_v31  ;;  %v10447_v40 = vpop.eup %10446  ;;  %v13708_v56 = vpop.f32.mrb[20].mxu0  ;;  %v16744_v31 = vld [vmem:[#allocation116_spill] sm:$0xff] }
 0x502   : > { %10462 = vpow2.f32 %v4701_v27  ;;  %9601 = vmatprep.mubr.msk.f32.mxu0 %vm931_vm3, %v16631_v41  ;;  %v5047_v50 = vpop.xlane.xlu1 %5046  ;;  %v13712_v7 = vpop.f32.mrb[21].mxu0  ;;  %v5538_v29 = vmul.f32 %v10447_v40, %v16742_v26  ;;  %v5537_v34 = vmul.f32 %v10447_v40, %v16744_v31 }
 0x503   : > { %v13710_v49 = vpop.eup %10448  ;;  %v4703_v37 = vmul.f32 1.442695, %v4341_v43  ;;  %v4705_v13 = vmul.f32 1.442695, %v4342_v15  ;;  %5151 = vadd.xlane.f32.xlu1 %v5150_v30  ;;  %6798 = vmatmul.mubr.f32.gmra.mrb[182].mxu1 %v5535_v59  ;;  %10464 = vrcp.f32 %v5047_v50  ;;  %v4121_v41 = vmax.f32 %v13708_v56, %v13712_v7 }
 0x504   : > { %16741 = vst [vmem:[#allocation33_spill] sm:$0xff] %v13710_v49  ;;  %v13715_v39 = vpop.eup %10450  ;;  %4119 = vmax.xlane.f32.xlu0 %v4118_v20  ;;  %v4015_v27 = vpop.xlane.xlu0 %4014  ;;  %6802 = vmatprep.mubr.f32.mxu1 %v5538_v29  ;;  %v16748_v29 = vld [vmem:[#allocation119_spill] sm:$0xff] }
 0x505   : > { %16743 = vst [vmem:[#allocation36_spill] sm:$0xff] %v13715_v39  ;;  %10466 = vpow2.f32 %v4703_v37  ;;  %v4343_v43 = vsub.f32 %v12990_v2, %v4015_v27  ;;  %v4344_v15 = vsub.f32 %v12994_v24, %v4015_v27  ;;  %9602 = vmatmul.mubr.msk.f32.vlgmr.msra.gmra.mrb[126].mxu0 %vm931_vm3, %v16636_v51  ;;  %v5153_v59 = vadd.f32 %v13715_v39, %v13710_v49  ;;  %v10453_v30 = vpop.eup %10452  ;;  %v13728_v20 = vpop.f32.mrb[22].mxu0  ;;  %v16746_v51 = vld [vmem:[#allocation120_spill] sm:$0xff]  ;;  %v16781_v49 = vld [vmem:[#allocation149_spill] sm:$0xff] }
 0x506   : > { %10468 = vpow2.f32 %v4705_v13  ;;  %9604 = vmatprep.mubr.msk.f32.mxu0 %vm931_vm3, %v16637_v55  ;;  %v5050_v24 = vpop.xlane.xlu1 %5049  ;;  %v13732_v37 = vpop.f32.mrb[23].mxu0  ;;  %v5540_v50 = vmul.f32 %v10453_v30, %v16746_v51  ;;  %v5539_v27 = vmul.f32 %v10453_v30, %v16748_v29 }
 0x507   : > { %v13730_v31 = vpop.eup %10454  ;;  %v4707_v40 = vmul.f32 1.442695, %v4343_v43  ;;  %v4709_v2 = vmul.f32 1.442695, %v4344_v15  ;;  %5154 = vadd.xlane.f32.xlu1 %v5153_v59  ;;  %6803 = vmatmul.mubr.f32.gmra.mrb[184].mxu1 %v5537_v34  ;;  %10470 = vrcp.f32 %v5050_v24  ;;  %v4124_v55 = vmax.f32 %v13728_v20, %v13732_v37 }
 0x508   : > { %16745 = vst [vmem:[#allocation114_spill] sm:$0xff] %v13730_v31  ;;  %v13735_v26 = vpop.eup %10456  ;;  %4122 = vmax.xlane.f32.xlu0 %v4121_v41  ;;  %v4018_v13 = vpop.xlane.xlu0 %4017  ;;  %6807 = vmatprep.mubr.f32.mxu1 %v5540_v50 }
 0x509   : > { %16747 = vst [vmem:[#allocation113_spill] sm:$0xff] %v13735_v26  ;;  %10472 = vpow2.f32 %v4707_v40  ;;  %v4345_v43 = vsub.f32 %v13013_v4, %v4018_v13  ;;  %v4346_v15 = vsub.f32 %v13017_v42, %v4018_v13  ;;  %9605 = vmatmul.mubr.msk.f32.gmra.mrb[128].mxu0 %vm931_vm3, %v16642_v44  ;;  %v5156_v34 = vadd.f32 %v13735_v26, %v13730_v31  ;;  %v10459_v59 = vpop.eup %10458  ;;  %v13748_v41 = vpop.f32.mrb[24].mxu0  ;;  %v16750_v44 = vld [vmem:[#allocation123_spill] sm:$0xff]  ;;  %v16752_v13 = vld [vmem:[#allocation122_spill] sm:$0xff]  ;;  %v16779_v26 = vld [vmem:[#allocation136_spill] sm:$0xff] }
 0x50a   : > { %10474 = vpow2.f32 %v4709_v2  ;;  %9607 = vmatprep.mubr.msk.f32.mxu0 %vm931_vm3, %v16643_v63  ;;  %v5053_v42 = vpop.xlane.xlu1 %5052  ;;  %v13752_v24 = vpop.f32.mrb[25].mxu0  ;;  %v5542_v51 = vmul.f32 %v10459_v59, %v16750_v44  ;;  %v5541_v29 = vmul.f32 %v10459_v59, %v16752_v13 }
 0x50b   : > { %v13750_v30 = vpop.eup %10460  ;;  %v4711_v40 = vmul.f32 1.442695, %v4345_v43  ;;  %v4713_v4 = vmul.f32 1.442695, %v4346_v15  ;;  %5157 = vadd.xlane.f32.xlu1 %v5156_v34  ;;  %6808 = vmatmul.mubr.f32.gmra.mrb[186].mxu1 %v5539_v27  ;;  %10476 = vrcp.f32 %v5053_v42  ;;  %v4127_v63 = vmax.f32 %v13748_v41, %v13752_v24  ;;  %v16753_v43 = vld [vmem:[#allocation132_spill] sm:$0xff]  ;;  %v16754_v34 = vld [vmem:[#allocation134_spill] sm:$0xff] }
 0x50c   : > { %16749 = vst [vmem:[#allocation35_spill] sm:$0xff] %v13750_v30  ;;  %v13755_v50 = vpop.eup %10462  ;;  %4125 = vmax.xlane.f32.xlu0 %v4124_v55  ;;  %v4021_v2 = vpop.xlane.xlu0 %4020  ;;  %6812 = vmatprep.mubr.f32.mxu1 %v5542_v51 }
 0x50d   : > { %16751 = vst [vmem:[#allocation117_spill] sm:$0xff] %v13755_v50  ;;  %10478 = vpow2.f32 %v4711_v40  ;;  %v4347_v15 = vsub.f32 %v16753_v43, %v4021_v2  ;;  %v4348_v31 = vsub.f32 %v16754_v34, %v4021_v2  ;;  %9608 = vmatmul.mubr.msk.f32.gmra.mrb[130].mxu0 %vm931_vm3, %v16648_v38  ;;  %v5159_v27 = vadd.f32 %v13755_v50, %v13750_v30  ;;  %v10465_v42 = vpop.eup %10464  ;;  %v13768_v55 = vpop.f32.mrb[26].mxu0  ;;  %v16756_v38 = vld [vmem:[#allocation126_spill] sm:$0xff]  ;;  %v16758_v34 = vld [vmem:[#allocation125_spill] sm:$0xff] }
 0x50e   : > { %10480 = vpow2.f32 %v4713_v4  ;;  %9610 = vmatprep.mubr.msk.f32.mxu0 %vm931_vm3, %v16649_v35  ;;  %v5056_v2 = vpop.xlane.xlu1 %5055  ;;  %v13772_v13 = vpop.f32.mrb[27].mxu0  ;;  %v5544_v51 = vmul.f32 %v10465_v42, %v16756_v38  ;;  %v5543_v30 = vmul.f32 %v10465_v42, %v16758_v34 }
 0x50f   : > { %v13770_v59 = vpop.eup %10466  ;;  %v4715_v40 = vmul.f32 1.442695, %v4347_v15  ;;  %v4717_v44 = vmul.f32 1.442695, %v4348_v31  ;;  %5160 = vadd.xlane.f32.xlu1 %v5159_v27  ;;  %6813 = vmatmul.mubr.f32.gmra.mrb[188].mxu1 %v5541_v29  ;;  %10482 = vrcp.f32 %v5056_v2  ;;  %v4130_v35 = vmax.f32 %v13768_v55, %v13772_v13  ;;  %v16759_v15 = vld [vmem:[#allocation137_spill] sm:$0xff]  ;;  %v16760_v27 = vld [vmem:[#allocation139_spill] sm:$0xff] }
 0x510   : > { %16755 = vst [vmem:[#allocation116_spill] sm:$0xff] %v13770_v59  ;;  %v13775_v43 = vpop.eup %10468  ;;  %4128 = vmax.xlane.f32.xlu0 %v4127_v63  ;;  %v4024_v4 = vpop.xlane.xlu0 %4023  ;;  %6817 = vmatprep.mubr.f32.mxu1 %v5544_v51 }
 0x511   : > { %16757 = vst [vmem:[#allocation120_spill] sm:$0xff] %v13775_v43  ;;  %10484 = vpow2.f32 %v4715_v40  ;;  %v4349_v31 = vsub.f32 %v16759_v15, %v4024_v4  ;;  %v4350_v50 = vsub.f32 %v16760_v27, %v4024_v4  ;;  %9611 = vmatmul.mubr.msk.f32.gmra.mrb[132].mxu0 %vm931_vm3, %v16654_v19  ;;  %v5162_v29 = vadd.f32 %v13775_v43, %v13770_v59  ;;  %v10471_v2 = vpop.eup %10470  ;;  %v13788_v63 = vpop.f32.mrb[28].mxu0  ;;  %v16762_v19 = vld [vmem:[#allocation129_spill] sm:$0xff]  ;;  %v16764_v27 = vld [vmem:[#allocation128_spill] sm:$0xff] }
 0x512   : > { %10486 = vpow2.f32 %v4717_v44  ;;  %9613 = vmatprep.mubr.msk.f32.mxu0 %vm931_vm3, %v16655_v21  ;;  %v5059_v4 = vpop.xlane.xlu1 %5058  ;;  %v13792_v34 = vpop.f32.mrb[29].mxu0  ;;  %v5546_v51 = vmul.f32 %v10471_v2, %v16762_v19  ;;  %v5545_v59 = vmul.f32 %v10471_v2, %v16764_v27 }
 0x513   : > { %v13790_v42 = vpop.eup %10472  ;;  %v4719_v40 = vmul.f32 1.442695, %v4349_v31  ;;  %v4721_v38 = vmul.f32 1.442695, %v4350_v50  ;;  %5163 = vadd.xlane.f32.xlu1 %v5162_v29  ;;  %6818 = vmatmul.mubr.f32.gmra.mrb[190].mxu1 %v5543_v30  ;;  %10488 = vrcp.f32 %v5059_v4  ;;  %v4133_v21 = vmax.f32 %v13788_v63, %v13792_v34  ;;  %v16765_v31 = vld [vmem:[#allocation141_spill] sm:$0xff]  ;;  %v16766_v29 = vld [vmem:[#allocation143_spill] sm:$0xff] }
 0x514   : > { %16761 = vst [vmem:[#allocation119_spill] sm:$0xff] %v13790_v42  ;;  %v13795_v15 = vpop.eup %10474  ;;  %4131 = vmax.xlane.f32.xlu0 %v4130_v35  ;;  %v4027_v44 = vpop.xlane.xlu0 %4026  ;;  %6822 = vmatprep.mubr.f32.mxu1 %v5546_v51 }
 0x515   : > { %16763 = vst [vmem:[#allocation123_spill] sm:$0xff] %v13795_v15  ;;  %10490 = vpow2.f32 %v4719_v40  ;;  %v4351_v50 = vsub.f32 %v16765_v31, %v4027_v44  ;;  %v4352_v43 = vsub.f32 %v16766_v29, %v4027_v44  ;;  %9614 = vmatmul.mubr.msk.f32.gmra.mrb[134].mxu0 %vm931_vm3, %v16660_v6  ;;  %v5165_v30 = vadd.f32 %v13795_v15, %v13790_v42  ;;  %v10477_v4 = vpop.eup %10476  ;;  %v13808_v35 = vpop.f32.mrb[30].mxu0  ;;  %v16768_v6 = vld [vmem:[#allocation133_spill] sm:$0xff]  ;;  %v16770_v29 = vld [vmem:[#allocation131_spill] sm:$0xff] }
 0x516   : > { %10492 = vpow2.f32 %v4721_v38  ;;  %9616 = vmatprep.mubr.msk.f32.mxu0 %vm931_vm3, %v16661_v57  ;;  %v5062_v44 = vpop.xlane.xlu1 %5061  ;;  %v13812_v27 = vpop.f32.mrb[31].mxu0  ;;  %v5548_v51 = vmul.f32 %v10477_v4, %v16768_v6  ;;  %v5547_v42 = vmul.f32 %v10477_v4, %v16770_v29  ;;  %v16774_v29 = vld [vmem:[#allocation138_spill] sm:$0xff] }
 0x517   : > { %v13810_v2 = vpop.eup %10478  ;;  %v4723_v40 = vmul.f32 1.442695, %v4351_v50  ;;  %v4725_v19 = vmul.f32 1.442695, %v4352_v43  ;;  %5166 = vadd.xlane.f32.xlu1 %v5165_v30  ;;  %6823 = vmatmul.mubr.f32.gmra.mrb[192].mxu1 %v5545_v59  ;;  %10494 = vrcp.f32 %v5062_v44  ;;  %v4139_v57 = vmax.f32 %v13808_v35, %v13812_v27  ;;  %v16771_v50 = vld [vmem:[#allocation144_spill] sm:$0xff]  ;;  %v16772_v30 = vld [vmem:[#allocation146_spill] sm:$0xff] }
 0x518   : > { %16767 = vst [vmem:[#allocation122_spill] sm:$0xff] %v13810_v2  ;;  %v13815_v31 = vpop.eup %10480  ;;  %4134 = vmax.xlane.f32.xlu0 %v4133_v21  ;;  %v4030_v38 = vpop.xlane.xlu0 %4029  ;;  %6827 = vmatprep.mubr.f32.mxu1 %v5548_v51 }
 0x519   : > { %16769 = vst [vmem:[#allocation132_spill] sm:$0xff] %v13815_v31  ;;  %10496 = vpow2.f32 %v4723_v40  ;;  %v4353_v43 = vsub.f32 %v16771_v50, %v4030_v38  ;;  %v4354_v15 = vsub.f32 %v16772_v30, %v4030_v38  ;;  %9617 = vmatmul.mubr.msk.f32.gmra.mrb[136].mxu0 %vm931_vm3, %v16666_v16  ;;  %v5168_v59 = vadd.f32 %v13815_v31, %v13810_v2  ;;  %v10483_v44 = vpop.eup %10482  ;;  %v13828_v21 = vpop.f32.mrb[32].mxu0  ;;  %v16776_v30 = vld [vmem:[#allocation60_spill] sm:$0xff] }
 0x51a   : > { %10498 = vpow2.f32 %v4725_v19  ;;  %9619 = vmatprep.mubr.msk.f32.mxu0 %vm931_vm3, %v16667_v18  ;;  %v13832_v38 = vpop.f32.mrb[33].mxu0  ;;  %v5550_v16 = vmul.f32 %v10483_v44, %v16774_v29  ;;  %v5065_v50 = vpop.xlane.xlu1 %5064  ;;  %v16777_v19 = vld [vmem:[#allocation63_spill] sm:$0xff] }
 0x51b   : > { %v13830_v4 = vpop.eup %10484  ;;  %v4727_v40 = vmul.f32 1.442695, %v4353_v43  ;;  %v4729_v6 = vmul.f32 1.442695, %v4354_v15  ;;  %5169 = vadd.xlane.f32.xlu1 %v5168_v59  ;;  %6828 = vmatmul.mubr.f32.gmra.mrb[194].mxu1 %v5547_v42  ;;  %v16778_v2 = vmax.f32 %v16776_v30, %v16777_v19  ;;  %v4142_v31 = vmax.f32 %v13828_v21, %v13832_v38  ;;  %v16780_v15 = vld [vmem:[#allocation147_spill] sm:$0xff] }
 0x51c   : > { %16773 = vst [vmem:[#allocation134_spill] sm:$0xff] %v13830_v4  ;;  %v13835_v51 = vpop.eup %10486  ;;  %v4033_v18 = vpop.xlane.xlu0 %4032  ;;  %v5549_v43 = vmul.f32 %v10483_v44, %v16779_v26  ;;  %6832 = vmatprep.mubr.f32.mxu1 %v5550_v16 }
 0x51d   : > { %16775 = vst [vmem:[#allocation126_spill] sm:$0xff] %v13835_v51  ;;  %4137 = vmax.xlane.f32.xlu0 %v16778_v2  ;;  %10500 = vpow2.f32 %v4727_v40  ;;  %v4355_v59 = vsub.f32 %v16780_v15, %v4033_v18  ;;  %v4356_v39 = vsub.f32 %v16781_v49, %v4033_v18  ;;  %9620 = vmatmul.mubr.msk.f32.gmra.mrb[138].mxu0 %vm931_vm3, %v16673_v54  ;;  %v10489_v29 = vpop.eup %10488  ;;  %v13851_v2 = vpop.f32.mrb[34].mxu0  ;;  %v16783_v54 = vld [vmem:[#allocation142_spill] sm:$0xff] }
 0x51e   : > { %v5171_v42 = vadd.f32 %v13835_v51, %v13830_v4  ;;  %10502 = vpow2.f32 %v4729_v6  ;;  %9622 = vmatprep.mubr.msk.f32.mxu0 %vm931_vm3, %v16674_v14  ;;  %v13855_v49 = vpop.f32.mrb[35].mxu0  ;;  %v5552_v16 = vmul.f32 %v10489_v29, %v16783_v54  ;;  %v5068_v15 = vpop.xlane.xlu1 %5067  ;;  %v16785_v4 = vld [vmem:[#allocation140_spill] sm:$0xff] }
 0x51f   : > { %v13853_v26 = vpop.eup %10490  ;;  %10504 = vrcp.f32 %v5065_v50  ;;  %v4731_v44 = vmul.f32 1.442695, %v4355_v59  ;;  %v4733_v40 = vmul.f32 1.442695, %v4356_v39  ;;  %6833 = vmatmul.mubr.f32.gmra.mrb[196].mxu1 %v5549_v43  ;;  %v4145_v14 = vmax.f32 %v13851_v2, %v13855_v49  ;;  %v16786_v50 = vld [vmem:[#allocation150_spill] sm:$0xff]  ;;  %v16787_v39 = vld [vmem:[#allocation152_spill] sm:$0xff] }
 0x520   : > { %16782 = vst [vmem:[#allocation125_spill] sm:$0xff] %v13853_v26  ;;  %5172 = vadd.xlane.f32.xlu1 %v5171_v42  ;;  %v13858_v18 = vpop.eup %10492  ;;  %v4036_v6 = vpop.xlane.xlu0 %4035  ;;  %v5551_v51 = vmul.f32 %v10489_v29, %v16785_v4  ;;  %6837 = vmatprep.mubr.f32.mxu1 %v5552_v16 }
 0x521   : > { %16784 = vst [vmem:[#allocation137_spill] sm:$0xff] %v13858_v18  ;;  %4140 = vmax.xlane.f32.xlu0 %v4139_v57  ;;  %10506 = vpow2.f32 %v4731_v44  ;;  %v4357_v59 = vsub.f32 %v16786_v50, %v4036_v6  ;;  %v4358_v42 = vsub.f32 %v16787_v39, %v4036_v6  ;;  %9623 = vmatmul.mubr.msk.f32.gmra.mrb[140].mxu0 %vm931_vm3, %v16680_v3  ;;  %v10495_v54 = vpop.eup %10494  ;;  %v13871_v57 = vpop.f32.mrb[36].mxu0  ;;  %v16789_v3 = vld [vmem:[#allocation145_spill] sm:$0xff] }
 0x522   : > { %v5174_v43 = vadd.f32 %v13858_v18, %v13853_v26  ;;  %10508 = vpow2.f32 %v4733_v40  ;;  %9625 = vmatprep.mubr.msk.f32.mxu0 %vm931_vm3, %v16681_v0  ;;  %v13875_v6 = vpop.f32.mrb[37].mxu0  ;;  %v5554_v16 = vmul.f32 %v10495_v54, %v16789_v3  ;;  %v5071_v39 = vpop.xlane.xlu1 %5070  ;;  %v16791_v26 = vld [vmem:[#allocation40_spill] sm:$0xff] }
 0x523   : > { %v13873_v4 = vpop.eup %10496  ;;  %10510 = vrcp.f32 %v5068_v15  ;;  %v4735_v29 = vmul.f32 1.442695, %v4357_v59  ;;  %v4737_v44 = vmul.f32 1.442695, %v4358_v42  ;;  %6838 = vmatmul.mubr.f32.gmra.mrb[198].mxu1 %v5551_v51  ;;  %v4148_v0 = vmax.f32 %v13871_v57, %v13875_v6  ;;  %v16792_v15 = vld [vmem:[#allocation85_spill] sm:$0xff]  ;;  %v16793_v42 = vld [vmem:[#allocation155_spill] sm:$0xff] }
 0x524   : > { %16788 = vst [vmem:[#allocation139_spill] sm:$0xff] %v13873_v4  ;;  %5175 = vadd.xlane.f32.xlu1 %v5174_v43  ;;  %v13878_v50 = vpop.eup %10498  ;;  %v4039_v40 = vpop.xlane.xlu0 %4038  ;;  %v5553_v18 = vmul.f32 %v10495_v54, %v16791_v26  ;;  %6842 = vmatprep.mubr.f32.mxu1 %v5554_v16 }
 0x525   : > { %16790 = vst [vmem:[#allocation129_spill] sm:$0xff] %v13878_v50  ;;  %4143 = vmax.xlane.f32.xlu0 %v4142_v31  ;;  %10512 = vpow2.f32 %v4735_v29  ;;  %v4359_v59 = vsub.f32 %v16792_v15, %v4039_v40  ;;  %v4360_v43 = vsub.f32 %v16793_v42, %v4039_v40  ;;  %9626 = vmatmul.mubr.msk.f32.gmra.mrb[142].mxu0 %vm931_vm3, %v16688_v11  ;;  %v13891_v31 = vpop.f32.mrb[38].mxu0  ;;  %v16796_v15 = vld [vmem:[#allocation89_spill] sm:$0xff] }
 0x526   : > { %v5177_v51 = vadd.f32 %v13878_v50, %v13873_v4  ;;  %10514 = vpow2.f32 %v4737_v44  ;;  %9628 = vmatprep.mubr.msk.f32.mxu0 %vm931_vm3, %v16689_v32  ;;  %v13895_v29 = vpop.f32.mrb[39].mxu0  ;;  %v5074_v11 = vpop.xlane.xlu1 %5073  ;;  %v16797_v4 = vld [vmem:[#allocation158_spill] sm:$0xff] }
 0x527   : > { %v13893_v3 = vpop.eup %10500  ;;  %10516 = vrcp.f32 %v5071_v39  ;;  %v4739_v26 = vmul.f32 1.442695, %v4359_v59  ;;  %v4741_v54 = vmul.f32 1.442695, %v4360_v43  ;;  %6843 = vmatmul.mubr.f32.gmra.mrb[200].mxu1 %v5553_v18  ;;  %v4151_v44 = vmax.f32 %v13891_v31, %v13895_v29  ;;  %v16798_v18 = vld [vmem:[#allocation148_spill] sm:$0xff]  ;;  %v16799_v43 = vld [vmem:[#allocation42_spill] sm:$0xff] }
 0x528   : > { %16794 = vst [vmem:[#allocation128_spill] sm:$0xff] %v13893_v3  ;;  %5178 = vadd.xlane.f32.xlu1 %v5177_v51  ;;  %v13897_v40 = vpop.eup %10502  ;;  %v4042_v16 = vpop.xlane.xlu0 %4041 }
 0x529   : > { %16795 = vst [vmem:[#allocation141_spill] sm:$0xff] %v13897_v40  ;;  %4146 = vmax.xlane.f32.xlu0 %v4145_v14  ;;  %v10505_v32 = vpop.eup %10504  ;;  %10518 = vpow2.f32 %v4739_v26  ;;  %v4361_v42 = vsub.f32 %v16796_v15, %v4042_v16  ;;  %v4362_v39 = vsub.f32 %v16797_v4, %v4042_v16  ;;  %9629 = vmatmul.mubr.msk.f32.gmra.mrb[144].mxu0 %vm931_vm3, %v16696_v52  ;;  %v13911_v50 = vpop.f32.mrb[40].mxu0 }
 0x52a   : > { %v5180_v59 = vadd.f32 %v13897_v40, %v13893_v3  ;;  %10520 = vpow2.f32 %v4741_v54  ;;  %9631 = vmatprep.mubr.msk.f32.mxu0 %vm931_vm3, %v16697_v9  ;;  %v5556_v14 = vmul.f32 %v10505_v32, %v16798_v18  ;;  %v5555_v51 = vmul.f32 %v10505_v32, %v16799_v43  ;;  %v13915_v52 = vpop.f32.mrb[41].mxu0  ;;  %v5077_v54 = vpop.xlane.xlu1 %5076 }
 0x52b   : > { %v13913_v26 = vpop.eup %10506  ;;  %10522 = vrcp.f32 %v5074_v11  ;;  %v4743_v4 = vmul.f32 1.442695, %v4361_v42  ;;  %v4745_v16 = vmul.f32 1.442695, %v4362_v39  ;;  %v4154_v18 = vmax.f32 %v13911_v50, %v13915_v52 }
 0x52c   : > { %16800 = vst [vmem:[#allocation143_spill] sm:$0xff] %v13913_v26  ;;  %5181 = vadd.xlane.f32.xlu1 %v5180_v59  ;;  %v13917_v15 = vpop.eup %10508  ;;  %6847 = vmatprep.mubr.f32.mxu1 %v5556_v14  ;;  %v4045_v9 = vpop.xlane.xlu0 %4044  ;;  %v16803_v59 = vld [vmem:[#allocation44_spill] sm:$0xff] }
 0x52d   : > { %16801 = vst [vmem:[#allocation133_spill] sm:$0xff] %v13917_v15  ;;  %4149 = vmax.xlane.f32.xlu0 %v4148_v0  ;;  %v10511_v32 = vpop.eup %10510  ;;  %10524 = vpow2.f32 %v4743_v4  ;;  %6848 = vmatmul.mubr.f32.gmra.mrb[202].mxu1 %v5555_v51  ;;  %v4363_v43 = vsub.f32 %v13227_v36, %v4045_v9  ;;  %v4364_v11 = vsub.f32 %v13231_v58, %v4045_v9  ;;  %v16802_v0 = vld [vmem:[#allocation151_spill] sm:$0xff]  ;;  %v13931_v4 = vpop.f32.mrb[42].mxu0 }
 0x52e   : > { %9632 = vmatmul.mubr.msk.f32.gmra.mrb[146].mxu0 %vm931_vm3, %v16704_v45  ;;  %v5183_v42 = vadd.f32 %v13917_v15, %v13913_v26  ;;  %10526 = vpow2.f32 %v4745_v16  ;;  %v5558_v39 = vmul.f32 %v10511_v32, %v16802_v0  ;;  %v5557_v14 = vmul.f32 %v10511_v32, %v16803_v59  ;;  %v13935_v45 = vpop.f32.mrb[43].mxu0  ;;  %v5080_v16 = vpop.xlane.xlu1 %5079  ;;  %v16806_v59 = vld [vmem:[#allocation52_spill] sm:$0xff] }
 0x52f   : > { %9634 = vmatprep.mubr.msk.f32.mxu0 %vm931_vm3, %v16705_v47  ;;  %v13933_v51 = vpop.eup %10512  ;;  %10528 = vrcp.f32 %v5077_v54  ;;  %v4747_v36 = vmul.f32 1.442695, %v4363_v43  ;;  %v4749_v58 = vmul.f32 1.442695, %v4364_v11  ;;  %v4157_v0 = vmax.f32 %v13931_v4, %v13935_v45  ;;  %v16807_v54 = vld [vmem:[#allocation160_spill] sm:$0xff] }
 0x530   : > { %16804 = vst [vmem:[#allocation131_spill] sm:$0xff] %v13933_v51  ;;  %5184 = vadd.xlane.f32.xlu1 %v5183_v42  ;;  %v13937_v9 = vpop.eup %10514  ;;  %6852 = vmatprep.mubr.f32.mxu1 %v5558_v39  ;;  %v4048_v47 = vpop.xlane.xlu0 %4047  ;;  %v16809_v39 = vld [vmem:[#allocation46_spill] sm:$0xff] }
 0x531   : > { %16805 = vst [vmem:[#allocation144_spill] sm:$0xff] %v13937_v9  ;;  %4152 = vmax.xlane.f32.xlu0 %v4151_v44  ;;  %v10517_v32 = vpop.eup %10516  ;;  %10530 = vpow2.f32 %v4747_v36  ;;  %6853 = vmatmul.mubr.f32.gmra.mrb[204].mxu1 %v5557_v14  ;;  %v4365_v26 = vsub.f32 %v16806_v59, %v4048_v47  ;;  %v4366_v43 = vsub.f32 %v16807_v54, %v4048_v47  ;;  %v16808_v44 = vld [vmem:[#allocation154_spill] sm:$0xff]  ;;  %v13951_v36 = vpop.f32.mrb[44].mxu0 }
 0x532   : > { %9635 = vmatmul.mubr.msk.f32.gmra.mrb[148].mxu0 %vm931_vm3, %v16711_v61  ;;  %v5186_v11 = vadd.f32 %v13937_v9, %v13933_v51  ;;  %10532 = vpow2.f32 %v4749_v58  ;;  %v5560_v42 = vmul.f32 %v10517_v32, %v16808_v44  ;;  %v5559_v15 = vmul.f32 %v10517_v32, %v16809_v39  ;;  %v13955_v61 = vpop.f32.mrb[45].mxu0  ;;  %v5083_v58 = vpop.xlane.xlu1 %5082  ;;  %v16812_v39 = vld [vmem:[#allocation54_spill] sm:$0xff] }
 0x533   : > { %9637 = vmatprep.mubr.msk.f32.mxu0 %vm931_vm3, %v16712_v23  ;;  %v13953_v14 = vpop.eup %10518  ;;  %10534 = vrcp.f32 %v5080_v16  ;;  %v4751_v47 = vmul.f32 1.442695, %v4365_v26  ;;  %v4753_v59 = vmul.f32 1.442695, %v4366_v43  ;;  %v4160_v44 = vmax.f32 %v13951_v36, %v13955_v61  ;;  %v16813_v16 = vld [vmem:[#allocation161_spill] sm:$0xff] }
 0x534   : > { %16810 = vst [vmem:[#allocation146_spill] sm:$0xff] %v13953_v14  ;;  %5187 = vadd.xlane.f32.xlu1 %v5186_v11  ;;  %v13957_v54 = vpop.eup %10520  ;;  %6857 = vmatprep.mubr.f32.mxu1 %v5560_v42  ;;  %v4051_v23 = vpop.xlane.xlu0 %4050  ;;  %v16815_v42 = vld [vmem:[#allocation48_spill] sm:$0xff] }
 0x535   : > { %16811 = vst [vmem:[#allocation138_spill] sm:$0xff] %v13957_v54  ;;  %4155 = vmax.xlane.f32.xlu0 %v4154_v18  ;;  %v10523_v32 = vpop.eup %10522  ;;  %10536 = vpow2.f32 %v4751_v47  ;;  %6858 = vmatmul.mubr.f32.gmra.mrb[206].mxu1 %v5559_v15  ;;  %v4367_v51 = vsub.f32 %v16812_v39, %v4051_v23  ;;  %v4368_v26 = vsub.f32 %v16813_v16, %v4051_v23  ;;  %v16814_v18 = vld [vmem:[#allocation157_spill] sm:$0xff]  ;;  %v13971_v47 = vpop.f32.mrb[46].mxu0 }
 0x536   : > { %9638 = vmatmul.mubr.msk.f32.gmra.mrb[150].mxu0 %vm931_vm3, %v16718_v22  ;;  %v5189_v43 = vadd.f32 %v13957_v54, %v13953_v14  ;;  %10538 = vpow2.f32 %v4753_v59  ;;  %v5562_v11 = vmul.f32 %v10523_v32, %v16814_v18  ;;  %v5561_v9 = vmul.f32 %v10523_v32, %v16815_v42  ;;  %v13975_v22 = vpop.f32.mrb[47].mxu0  ;;  %v5086_v59 = vpop.xlane.xlu1 %5085  ;;  %v16818_v42 = vld [vmem:[#allocation56_spill] sm:$0xff] }
 0x537   : > { %9640 = vmatprep.mubr.msk.f32.mxu0 %vm931_vm3, %v16719_v10  ;;  %v13973_v15 = vpop.eup %10524  ;;  %10540 = vrcp.f32 %v5083_v58  ;;  %v4755_v23 = vmul.f32 1.442695, %v4367_v51  ;;  %v4757_v39 = vmul.f32 1.442695, %v4368_v26  ;;  %v4163_v18 = vmax.f32 %v13971_v47, %v13975_v22  ;;  %v16819_v58 = vld [vmem:[#allocation162_spill] sm:$0xff] }
 0x538   : > { %16816 = vst [vmem:[#allocation60_spill] sm:$0xff] %v13973_v15  ;;  %5190 = vadd.xlane.f32.xlu1 %v5189_v43  ;;  %v13977_v16 = vpop.eup %10526  ;;  %6862 = vmatprep.mubr.f32.mxu1 %v5562_v11  ;;  %v4054_v10 = vpop.xlane.xlu0 %4053  ;;  %v16821_v11 = vld [vmem:[#allocation50_spill] sm:$0xff] }
 0x539   : > { %16817 = vst [vmem:[#allocation63_spill] sm:$0xff] %v13977_v16  ;;  %4158 = vmax.xlane.f32.xlu0 %v4157_v0  ;;  %v10529_v32 = vpop.eup %10528  ;;  %10542 = vpow2.f32 %v4755_v23  ;;  %6863 = vmatmul.mubr.f32.gmra.mrb[208].mxu1 %v5561_v9  ;;  %v4369_v14 = vsub.f32 %v16818_v42, %v4054_v10  ;;  %v4370_v51 = vsub.f32 %v16819_v58, %v4054_v10  ;;  %v16820_v0 = vld [vmem:[#allocation88_spill] sm:$0xff]  ;;  %v13991_v23 = vpop.f32.mrb[48].mxu0 }
 0x53a   : > { %9641 = vmatmul.mubr.msk.f32.gmra.mrb[152].mxu0 %vm931_vm3, %v16726_v53  ;;  %v5192_v26 = vadd.f32 %v13977_v16, %v13973_v15  ;;  %10544 = vpow2.f32 %v4757_v39  ;;  %v5564_v43 = vmul.f32 %v10529_v32, %v16820_v0  ;;  %v5563_v54 = vmul.f32 %v10529_v32, %v16821_v11  ;;  %v13995_v53 = vpop.f32.mrb[49].mxu0  ;;  %v5089_v39 = vpop.xlane.xlu1 %5088  ;;  %v16824_v11 = vld [vmem:[#allocation57_spill] sm:$0xff] }
 0x53b   : > { %9643 = vmatprep.mubr.msk.f32.mxu0 %vm931_vm3, %v16727_v33  ;;  %v13993_v9 = vpop.eup %10530  ;;  %10546 = vrcp.f32 %v5086_v59  ;;  %v4759_v10 = vmul.f32 1.442695, %v4369_v14  ;;  %v4761_v42 = vmul.f32 1.442695, %v4370_v51  ;;  %v4166_v0 = vmax.f32 %v13991_v23, %v13995_v53  ;;  %v16825_v59 = vld [vmem:[#allocation163_spill] sm:$0xff] }
 0x53c   : > { %16822 = vst [vmem:[#allocation136_spill] sm:$0xff] %v13993_v9  ;;  %5193 = vadd.xlane.f32.xlu1 %v5192_v26  ;;  %v13997_v58 = vpop.eup %10532  ;;  %6867 = vmatprep.mubr.f32.mxu1 %v5564_v43  ;;  %v4057_v33 = vpop.xlane.xlu0 %4056  ;;  %v16827_v43 = vld [vmem:[#allocation49_spill] sm:$0xff] }
 0x53d   : > { %16823 = vst [vmem:[#allocation147_spill] sm:$0xff] %v13997_v58  ;;  %4161 = vmax.xlane.f32.xlu0 %v4160_v44  ;;  %v10535_v32 = vpop.eup %10534  ;;  %10548 = vpow2.f32 %v4759_v10  ;;  %6868 = vmatmul.mubr.f32.gmra.mrb[210].mxu1 %v5563_v54  ;;  %v4371_v15 = vsub.f32 %v16824_v11, %v4057_v33  ;;  %v4372_v14 = vsub.f32 %v16825_v59, %v4057_v33  ;;  %v16826_v44 = vld [vmem:[#allocation92_spill] sm:$0xff]  ;;  %v14011_v10 = vpop.f32.mrb[50].mxu0 }
 0x53e   : > { %9644 = vmatmul.mubr.msk.f32.gmra.mrb[154].mxu0 %vm931_vm3, %v16734_v25  ;;  %v5195_v51 = vadd.f32 %v13997_v58, %v13993_v9  ;;  %10550 = vpow2.f32 %v4761_v42  ;;  %v5566_v26 = vmul.f32 %v10535_v32, %v16826_v44  ;;  %v5565_v16 = vmul.f32 %v10535_v32, %v16827_v43  ;;  %v14015_v25 = vpop.f32.mrb[51].mxu0  ;;  %v5092_v42 = vpop.xlane.xlu1 %5091  ;;  %v16831_v43 = vld [vmem:[#allocation69_spill] sm:$0xff] }
 0x53f   : > { %9646 = vmatprep.mubr.msk.f32.mxu0 %vm931_vm3, %v16735_v62  ;;  %v14013_v54 = vpop.eup %10536  ;;  %10552 = vrcp.f32 %v5089_v39  ;;  %v4763_v33 = vmul.f32 1.442695, %v4371_v15  ;;  %v4765_v11 = vmul.f32 1.442695, %v4372_v14  ;;  %16829 = vst [vmem:[#allocation142_spill] sm:$0xff] %v14015_v25  ;;  %v4169_v44 = vmax.f32 %v14011_v10, %v14015_v25  ;;  %v16832_v39 = vld [vmem:[#allocation164_spill] sm:$0xff] }
 0x540   : > { %16828 = vst [vmem:[#allocation149_spill] sm:$0xff] %v14013_v54  ;;  %5196 = vadd.xlane.f32.xlu1 %v5195_v51  ;;  %v14017_v59 = vpop.eup %10538  ;;  %6872 = vmatprep.mubr.f32.mxu1 %v5566_v26  ;;  %v4060_v62 = vpop.xlane.xlu0 %4059  ;;  %v16833_v51 = vld [vmem:[#allocation91_spill] sm:$0xff] }
 0x541   : > { %16830 = vst [vmem:[#allocation140_spill] sm:$0xff] %v14017_v59  ;;  %4164 = vmax.xlane.f32.xlu0 %v4163_v18  ;;  %v10541_v32 = vpop.eup %10540  ;;  %10554 = vpow2.f32 %v4763_v33  ;;  %6873 = vmatmul.mubr.f32.gmra.mrb[212].mxu1 %v5565_v16  ;;  %v4373_v9 = vsub.f32 %v16831_v43, %v4060_v62  ;;  %v4374_v15 = vsub.f32 %v16832_v39, %v4060_v62  ;;  %v16834_v26 = vld [vmem:[#allocation51_spill] sm:$0xff]  ;;  %v14029_v3 = vpop.f32.mrb[52].mxu0 }
 0x542   : > { %9647 = vmatmul.mubr.msk.f32.gmra.mrb[156].mxu0 %vm931_vm3, %v16740_v8  ;;  %v5198_v14 = vadd.f32 %v14017_v59, %v14013_v54  ;;  %10556 = vpow2.f32 %v4765_v11  ;;  %v5568_v18 = vmul.f32 %v10541_v32, %v16833_v51  ;;  %v5567_v58 = vmul.f32 %v10541_v32, %v16834_v26  ;;  %v14033_v62 = vpop.f32.mrb[53].mxu0  ;;  %v5095_v8 = vpop.xlane.xlu1 %5094  ;;  %v16838_v51 = vld [vmem:[#allocation75_spill] sm:$0xff] }
 0x543   : > { %v14031_v40 = vpop.eup %10542  ;;  %10558 = vrcp.f32 %v5092_v42  ;;  %v4767_v16 = vmul.f32 1.442695, %v4373_v9  ;;  %v4769_v33 = vmul.f32 1.442695, %v4374_v15  ;;  %16836 = vst [vmem:[#allocation152_spill] sm:$0xff] %v14033_v62  ;;  %v4172_v39 = vmax.f32 %v14029_v3, %v14033_v62  ;;  %v16839_v42 = vld [vmem:[#allocation165_spill] sm:$0xff] }
 0x544   : > { %16835 = vst [vmem:[#allocation150_spill] sm:$0xff] %v14031_v40  ;;  %5199 = vadd.xlane.f32.xlu1 %v5198_v14  ;;  %v14035_v43 = vpop.eup %10544  ;;  %6877 = vmatprep.mubr.f32.mxu1 %v5568_v18  ;;  %v4063_v11 = vpop.xlane.xlu0 %4062  ;;  %v16840_v14 = vld [vmem:[#allocation95_spill] sm:$0xff]  ;;  %v16841_v18 = vld [vmem:[#allocation53_spill] sm:$0xff] }
 0x545   : > { %16837 = vst [vmem:[#allocation145_spill] sm:$0xff] %v14035_v43  ;;  %4167 = vmax.xlane.f32.xlu0 %v4166_v0  ;;  %v10547_v32 = vpop.eup %10546  ;;  %10560 = vpow2.f32 %v4767_v16  ;;  %6878 = vmatmul.mubr.f32.gmra.mrb[214].mxu1 %v5567_v58  ;;  %v4375_v26 = vsub.f32 %v16838_v51, %v4063_v11  ;;  %v4376_v9 = vsub.f32 %v16839_v42, %v4063_v11  ;;  %v14045_v0 = vpop.f32.mrb[54].mxu0 }
 0x546   : > { %v5201_v15 = vadd.f32 %v14035_v43, %v14031_v40  ;;  %10562 = vpow2.f32 %v4769_v33  ;;  %v5570_v54 = vmul.f32 %v10547_v32, %v16840_v14  ;;  %v5569_v59 = vmul.f32 %v10547_v32, %v16841_v18  ;;  %16842 = vst [vmem:[#allocation40_spill] sm:$0xff] %v14045_v0  ;;  %v14049_v58 = vpop.f32.mrb[55].mxu0  ;;  %v5098_v11 = vpop.xlane.xlu1 %5097 }
 0x547   : > { %v14047_v25 = vpop.eup %10548  ;;  %10564 = vrcp.f32 %v5095_v8  ;;  %v4771_v62 = vmul.f32 1.442695, %v4375_v26  ;;  %v4773_v16 = vmul.f32 1.442695, %v4376_v9  ;;  %16844 = vst [vmem:[#allocation155_spill] sm:$0xff] %v14049_v58  ;;  %v4175_v42 = vmax.f32 %v14045_v0, %v14049_v58  ;;  %v16846_v9 = vld [vmem:[#allocation94_spill] sm:$0xff] }
 0x548   : > { %16843 = vst [vmem:[#allocation85_spill] sm:$0xff] %v14047_v25  ;;  %5202 = vadd.xlane.f32.xlu1 %v5201_v15  ;;  %v14051_v51 = vpop.eup %10550  ;;  %6882 = vmatprep.mubr.f32.mxu1 %v5570_v54  ;;  %v4066_v33 = vpop.xlane.xlu0 %4065  ;;  %v16847_v54 = vld [vmem:[#allocation55_spill] sm:$0xff] }
 0x549   : > { %16845 = vst [vmem:[#allocation89_spill] sm:$0xff] %v14051_v51  ;;  %4170 = vmax.xlane.f32.xlu0 %v4169_v44  ;;  %v10553_v32 = vpop.eup %10552  ;;  %10566 = vpow2.f32 %v4771_v62  ;;  %6883 = vmatmul.mubr.f32.gmra.mrb[216].mxu1 %v5569_v59  ;;  %v4377_v14 = vsub.f32 %v13346_v48, %v4066_v33  ;;  %v4378_v8 = vsub.f32 %v13350_v5, %v4066_v33  ;;  %v14061_v44 = vpop.f32.mrb[56].mxu0 }
 0x54a   : > { %v5204_v26 = vadd.f32 %v14051_v51, %v14047_v25  ;;  %10568 = vpow2.f32 %v4773_v16  ;;  %v5572_v15 = vmul.f32 %v10553_v32, %v16846_v9  ;;  %v5571_v18 = vmul.f32 %v10553_v32, %v16847_v54  ;;  %16848 = vst [vmem:[#allocation158_spill] sm:$0xff] %v14061_v44  ;;  %v14065_v59 = vpop.f32.mrb[57].mxu0  ;;  %v5101_v5 = vpop.xlane.xlu1 %5100 }
 0x54b   : > { %v14063_v40 = vpop.eup %10554  ;;  %10570 = vrcp.f32 %v5098_v11  ;;  %v4775_v43 = vmul.f32 1.442695, %v4377_v14  ;;  %v4777_v62 = vmul.f32 1.442695, %v4378_v8  ;;  %16850 = vst [vmem:[#allocation42_spill] sm:$0xff] %v14065_v59  ;;  %v4178_v33 = vmax.f32 %v14061_v44, %v14065_v59  ;;  %v16852_v11 = vld [vmem:[#allocation87_spill] sm:$0xff] }
 0x54c   : > { %16849 = vst [vmem:[#allocation148_spill] sm:$0xff] %v14063_v40  ;;  %5205 = vadd.xlane.f32.xlu1 %v5204_v26  ;;  %v14067_v48 = vpop.eup %10556  ;;  %6887 = vmatprep.mubr.f32.mxu1 %v5572_v15  ;;  %v4069_v16 = vpop.xlane.xlu0 %4068  ;;  %v16853_v26 = vld [vmem:[#allocation98_spill] sm:$0xff] }
 0x54d   : > { %16851 = vst [vmem:[#allocation151_spill] sm:$0xff] %v14067_v48  ;;  %4173 = vmax.xlane.f32.xlu0 %v4172_v39  ;;  %v10559_v32 = vpop.eup %10558  ;;  %10572 = vpow2.f32 %v4775_v43  ;;  %6888 = vmatmul.mubr.f32.gmra.mrb[218].mxu1 %v5571_v18  ;;  %v4379_v9 = vsub.f32 %v13363_v1, %v4069_v16  ;;  %v4380_v14 = vsub.f32 %v16852_v11, %v4069_v16  ;;  %v16854_v15 = vld [vmem:[#allocation66_spill] sm:$0xff]  ;;  %v14077_v39 = vpop.f32.mrb[58].mxu0 }
 0x54e   : > { %v5207_v8 = vadd.f32 %v14067_v48, %v14063_v40  ;;  %10574 = vpow2.f32 %v4777_v62  ;;  %v5574_v54 = vmul.f32 %v10559_v32, %v16853_v26  ;;  %v5573_v25 = vmul.f32 %v10559_v32, %v16854_v15  ;;  %16855 = vst [vmem:[#allocation44_spill] sm:$0xff] %v14077_v39  ;;  %v14081_v18 = vpop.f32.mrb[59].mxu0  ;;  %v14085_v16 = vpop.xlane.xlu1 %5103  ;;  %v16859_v26 = vld [vmem:[#allocation102_spill] sm:$0xff]  ;;  %v16861_v15 = vld [vmem:[#allocation97_spill] sm:$0xff]  ;;  %v16862_v40 = vld [vmem:[#allocation72_spill] sm:$0xff] }
 0x54f   : > { %v14079_v51 = vpop.eup %10560  ;;  %10576 = vrcp.f32 %v5101_v5  ;;  %v4779_v59 = vmul.f32 1.442695, %v4379_v9  ;;  %v4781_v43 = vmul.f32 1.442695, %v4380_v14  ;;  %16857 = vst [vmem:[#allocation160_spill] sm:$0xff] %v14081_v18  ;;  %v4181_v32 = vmax.f32 %v14077_v39, %v14081_v18  ;;  %v16860_v9 = vld [vmem:[#allocation167_spill] sm:$0xff] }
 0x550   : > { %16856 = vst [vmem:[#allocation52_spill] sm:$0xff] %v14079_v51  ;;  %5208 = vadd.xlane.f32.xlu1 %v5207_v8  ;;  %v14083_v1 = vpop.eup %10562  ;;  %6892 = vmatprep.mubr.f32.mxu1 %v5574_v54  ;;  %v4072_v62 = vpop.xlane.xlu0 %4071 }
 0x551   : > { %16858 = vst [vmem:[#allocation154_spill] sm:$0xff] %v14083_v1  ;;  %4176 = vmax.xlane.f32.xlu0 %v4175_v42  ;;  %v10565_v11 = vpop.eup %10564  ;;  %10578 = vpow2.f32 %v4779_v59  ;;  %6893 = vmatmul.mubr.f32.gmra.mrb[220].mxu1 %v5573_v25  ;;  %v4381_v5 = vsub.f32 %v16859_v26, %v4072_v62  ;;  %v4382_v14 = vsub.f32 %v16860_v9, %v4072_v62  ;;  %v14095_v42 = vpop.f32.mrb[60].mxu0 }
 0x552   : > { %v5210_v8 = vadd.f32 %v14083_v1, %v14079_v51  ;;  %10580 = vpow2.f32 %v4781_v43  ;;  %v5576_v54 = vmul.f32 %v10565_v11, %v16861_v15  ;;  %v5575_v48 = vmul.f32 %v10565_v11, %v16862_v40  ;;  %16863 = vst [vmem:[#allocation46_spill] sm:$0xff] %v14095_v42  ;;  %v14099_v25 = vpop.f32.mrb[61].mxu0  ;;  %v14103_v62 = vpop.xlane.xlu1 %5106  ;;  %v16867_v11 = vld [vmem:[#allocation6_spill] sm:$0xff]  ;;  %v16869_v15 = vld [vmem:[#allocation81_spill] sm:$0xff] }
 0x553   : > { %v14097_v44 = vpop.eup %10566  ;;  %v4783_v18 = vmul.f32 1.442695, %v4381_v5  ;;  %v4785_v39 = vmul.f32 1.442695, %v4382_v14  ;;  %16865 = vst [vmem:[#allocation161_spill] sm:$0xff] %v14099_v25  ;;  %v4184_v26 = vmax.f32 %v14095_v42, %v14099_v25  ;;  %v16868_v5 = vld [vmem:[#allocation169_spill] sm:$0xff] }
 0x554   : > { %16864 = vst [vmem:[#allocation54_spill] sm:$0xff] %v14097_v44  ;;  %5211 = vadd.xlane.f32.xlu1 %v5210_v8  ;;  %v14101_v59 = vpop.eup %10568  ;;  %6897 = vmatprep.mubr.f32.mxu1 %v5576_v54  ;;  %v4075_v43 = vpop.xlane.xlu0 %4074  ;;  %v16870_v51 = vld [vmem:[#allocation78_spill] sm:$0xff] }
 0x555   : > { %16866 = vst [vmem:[#allocation157_spill] sm:$0xff] %v14101_v59  ;;  %4179 = vmax.xlane.f32.xlu0 %v4178_v33  ;;  %v10571_v40 = vpop.eup %10570  ;;  %10582 = vpow2.f32 %v4783_v18  ;;  %6898 = vmatmul.mubr.f32.gmra.mrb[222].mxu1 %v5575_v48  ;;  %v4383_v9 = vsub.f32 %v16867_v11, %v4075_v43  ;;  %v4384_v14 = vsub.f32 %v16868_v5, %v4075_v43  ;;  %v14113_v33 = vpop.f32.mrb[62].mxu0  ;;  %v16876_v5 = vld [vmem:[#allocation171_spill] sm:$0xff] }
 0x556   : > { %v5213_v8 = vadd.f32 %v14101_v59, %v14097_v44  ;;  %10584 = vpow2.f32 %v4785_v39  ;;  %v5578_v54 = vmul.f32 %v10571_v40, %v16869_v15  ;;  %v5577_v1 = vmul.f32 %v10571_v40, %v16870_v51  ;;  %16871 = vst [vmem:[#allocation48_spill] sm:$0xff] %v14113_v33  ;;  %v14117_v48 = vpop.f32.mrb[63].mxu0  ;;  %v14121_v43 = vpop.xlane.xlu1 %5109  ;;  %v16875_v40 = vld [vmem:[#allocation8_spill] sm:$0xff] }
 0x557   : > { %v14115_v58 = vpop.eup %10572  ;;  %v4787_v25 = vmul.f32 1.442695, %v4383_v9  ;;  %v4789_v42 = vmul.f32 1.442695, %v4384_v14  ;;  %16873 = vst [vmem:[#allocation162_spill] sm:$0xff] %v14117_v48  ;;  %v4187_v11 = vmax.f32 %v14113_v33, %v14117_v48  ;;  %v16877_v15 = vld [vmem:[#allocation84_spill] sm:$0xff] }
 0x558   : > { %16872 = vst [vmem:[#allocation56_spill] sm:$0xff] %v14115_v58  ;;  %5214 = vadd.xlane.f32.xlu1 %v5213_v8  ;;  %v14119_v18 = vpop.eup %10574  ;;  %6902 = vmatprep.mubr.f32.mxu1 %v5578_v54  ;;  %v4078_v39 = vpop.xlane.xlu0 %4077 }
 0x559   : > { %16874 = vst [vmem:[#allocation88_spill] sm:$0xff] %v14119_v18  ;;  %4182 = vmax.xlane.f32.xlu0 %v4181_v32  ;;  %v14125_v51 = vpop.eup %10576  ;;  %10586 = vpow2.f32 %v4787_v25  ;;  %6903 = vmatmul.mubr.f32.gmra.mrb[224].mxu1 %v5577_v1  ;;  %v4385_v9 = vsub.f32 %v16875_v40, %v4078_v39  ;;  %v4386_v14 = vsub.f32 %v16876_v5, %v4078_v39  ;;  %v14133_v32 = vpop.f32.mrb[64].mxu0  ;;  %v16882_v5 = vld [vmem:[#allocation10_spill] sm:$0xff] }
 0x55a   : > { %v5216_v8 = vadd.f32 %v14119_v18, %v14115_v58  ;;  %10588 = vpow2.f32 %v4789_v42  ;;  %v5580_v54 = vmul.f32 %v14125_v51, %v16877_v15  ;;  %16878 = vst [vmem:[#allocation50_spill] sm:$0xff] %v14133_v32  ;;  %v14137_v25 = vpop.f32.mrb[65].mxu0  ;;  %v14141_v39 = vpop.xlane.xlu1 %5112  ;;  %v16883_v58 = vld [vmem:[#allocation173_spill] sm:$0xff] }
 0x55b   : > { %v14135_v44 = vpop.eup %10578  ;;  %v4791_v59 = vmul.f32 1.442695, %v4385_v9  ;;  %v4793_v48 = vmul.f32 1.442695, %v4386_v14  ;;  %16880 = vst [vmem:[#allocation163_spill] sm:$0xff] %v14137_v25  ;;  %v4190_v42 = vmax.f32 %v14133_v32, %v14137_v25 }
 0x55c   : > { %16879 = vst [vmem:[#allocation57_spill] sm:$0xff] %v14135_v44  ;;  %5217 = vadd.xlane.f32.xlu1 %v5216_v8  ;;  %v14139_v1 = vpop.eup %10580  ;;  %6972 = vmatprep.mubr.f32.mxu1 %v5580_v54  ;;  %v4081_v40 = vpop.xlane.xlu0 %4080 }
 0x55d   : > { %16881 = vst [vmem:[#allocation92_spill] sm:$0xff] %v14139_v1  ;;  %4185 = vmax.xlane.f32.xlu0 %v4184_v26  ;;  %10590 = vpow2.f32 %v4791_v59  ;;  %v4387_v15 = vsub.f32 %v16882_v5, %v4081_v40  ;;  %v4388_v18 = vsub.f32 %v16883_v58, %v4081_v40  ;;  %v5219_v9 = vadd.f32 %v14139_v1, %v14135_v44  ;;  %v14149_v14 = vpop.f32.mrb[66].mxu0  ;;  %v16890_v44 = vld [vmem:[#allocation175_spill] sm:$0xff] }
 0x55e   : > { %10592 = vpow2.f32 %v4793_v48  ;;  %16884 = vst [vmem:[#allocation49_spill] sm:$0xff] %v14149_v14  ;;  %v14153_v26 = vpop.f32.mrb[67].mxu0  ;;  %v14157_v59 = vpop.xlane.xlu1 %5115  ;;  %v16889_v48 = vld [vmem:[#allocation12_spill] sm:$0xff] }
 0x55f   : > { %v14151_v8 = vpop.eup %10582  ;;  %v4795_v54 = vmul.f32 1.442695, %v4387_v15  ;;  %v4797_v33 = vmul.f32 1.442695, %v4388_v18  ;;  %16886 = vst [vmem:[#allocation164_spill] sm:$0xff] %v14153_v26  ;;  %16888 = vst [vmem:[#allocation51_spill] sm:$0xff] %v14157_v59  ;;  %v4193_v58 = vmax.f32 %v14149_v14, %v14153_v26 }
 0x560   : > { %16885 = vst [vmem:[#allocation69_spill] sm:$0xff] %v14151_v8  ;;  %5220 = vadd.xlane.f32.xlu1 %v5219_v9  ;;  %v14155_v0 = vpop.eup %10584  ;;  %v4084_v5 = vpop.xlane.xlu0 %4083 }
 0x561   : > { %16887 = vst [vmem:[#allocation91_spill] sm:$0xff] %v14155_v0  ;;  %4188 = vmax.xlane.f32.xlu0 %v4187_v11  ;;  %10594 = vpow2.f32 %v4795_v54  ;;  %v4389_v40 = vsub.f32 %v16889_v48, %v4084_v5  ;;  %v4390_v1 = vsub.f32 %v16890_v44, %v4084_v5  ;;  %v5222_v18 = vadd.f32 %v14155_v0, %v14151_v8  ;;  %v16894_v48 = vld [vmem:[#allocation14_spill] sm:$0xff]  ;;  %v16895_v5 = vld [vmem:[#allocation177_spill] sm:$0xff] }
 0x562   : > { %10596 = vpow2.f32 %v4797_v33  ;;  %v14167_v32 = vpop.f32.mrb[68].mxu0  ;;  %v14171_v59 = vpop.xlane.xlu1 %5118 }
 0x563   : > { %v14165_v15 = vpop.eup %10586  ;;  %v4799_v9 = vmul.f32 1.442695, %v4389_v40  ;;  %v4801_v25 = vmul.f32 1.442695, %v4390_v1  ;;  %16892 = vst [vmem:[#allocation165_spill] sm:$0xff] %v14167_v32  ;;  %v14175_v8 = vpop.f32.mrb[69].mxu0 }
 0x564   : > { %16891 = vst [vmem:[#allocation75_spill] sm:$0xff] %v14165_v15  ;;  %5223 = vadd.xlane.f32.xlu1 %v5222_v18  ;;  %v14169_v11 = vpop.eup %10588  ;;  %v4087_v54 = vpop.xlane.xlu0 %4086  ;;  %16896 = vst [vmem:[#allocation53_spill] sm:$0xff] %v14175_v8  ;;  %v4196_v1 = vmax.f32 %v14167_v32, %v14175_v8 }
 0x565   : > { %16893 = vst [vmem:[#allocation95_spill] sm:$0xff] %v14169_v11  ;;  %4191 = vmax.xlane.f32.xlu0 %v4190_v42  ;;  %10598 = vpow2.f32 %v4799_v9  ;;  %v4391_v44 = vsub.f32 %v16894_v48, %v4087_v54  ;;  %v4392_v26 = vsub.f32 %v16895_v5, %v4087_v54  ;;  %v5225_v33 = vadd.f32 %v14169_v11, %v14165_v15 }
 0x566   : > { %10600 = vpow2.f32 %v4801_v25  ;;  %v14183_v42 = vpop.f32.mrb[70].mxu0  ;;  %v14187_v48 = vpop.xlane.xlu1 %5121 }
 0x567   : > { %v14181_v40 = vpop.eup %10590  ;;  %v4803_v18 = vmul.f32 1.442695, %v4391_v44  ;;  %v4805_v0 = vmul.f32 1.442695, %v4392_v26  ;;  %16898 = vst [vmem:[#allocation55_spill] sm:$0xff] %v14183_v42  ;;  %16900 = vst [vmem:[#allocation98_spill] sm:$0xff] %v14187_v48 }
 0x568   : > { %16897 = vst [vmem:[#allocation94_spill] sm:$0xff] %v14181_v40  ;;  %5226 = vadd.xlane.f32.xlu1 %v5225_v33  ;;  %v14185_v9 = vpop.eup %10592  ;;  %v14189_v54 = vpop.f32.mrb[71].mxu0  ;;  %v16902_v26 = vld [vmem:[#allocation16_spill] sm:$0xff]  ;;  %v16903_v33 = vld [vmem:[#allocation179_spill] sm:$0xff] }
 0x569   : > { %16899 = vst [vmem:[#allocation87_spill] sm:$0xff] %v14185_v9  ;;  %4194 = vmax.xlane.f32.xlu0 %v4193_v58  ;;  %16901 = vst [vmem:[#allocation66_spill] sm:$0xff] %v14189_v54  ;;  %10602 = vpow2.f32 %v4803_v18  ;;  %v4090_v5 = vpop.xlane.xlu0 %4089  ;;  %v4199_v25 = vmax.f32 %v14183_v42, %v14189_v54  ;;  %v5228_v15 = vadd.f32 %v14185_v9, %v14181_v40 }
 0x56a   : > { %10604 = vpow2.f32 %v4805_v0  ;;  %v4393_v44 = vsub.f32 %v16902_v26, %v4090_v5  ;;  %v4394_v11 = vsub.f32 %v16903_v33, %v4090_v5  ;;  %v14199_v32 = vpop.f32.mrb[72].mxu0 }
 0x56b   : > { %v14197_v8 = vpop.eup %10594  ;;  %16905 = vst [vmem:[#allocation167_spill] sm:$0xff] %v14199_v32  ;;  %v14203_v48 = vpop.xlane.xlu1 %5124 }
 0x56c   : > { %16904 = vst [vmem:[#allocation102_spill] sm:$0xff] %v14197_v8  ;;  %5229 = vadd.xlane.f32.xlu1 %v5228_v15  ;;  %v14201_v58 = vpop.eup %10596  ;;  %v4807_v18 = vmul.f32 1.442695, %v4393_v44  ;;  %v4809_v14 = vmul.f32 1.442695, %v4394_v11  ;;  %v14205_v54 = vpop.f32.mrb[73].mxu0 }
 0x56d   : > { %16906 = vst [vmem:[#allocation97_spill] sm:$0xff] %v14201_v58  ;;  %4197 = vmax.xlane.f32.xlu0 %v4196_v1  ;;  %16907 = vst [vmem:[#allocation72_spill] sm:$0xff] %v14205_v54  ;;  %v4093_v40 = vpop.xlane.xlu0 %4092  ;;  %v4202_v0 = vmax.f32 %v14199_v32, %v14205_v54  ;;  %v5231_v5 = vadd.f32 %v14201_v58, %v14197_v8 }
 0x56e   : > { %10606 = vpow2.f32 %v4807_v18  ;;  %v4395_v15 = vsub.f32 %v13508_v17, %v4093_v40  ;;  %v4396_v26 = vsub.f32 %v13512_v28, %v4093_v40  ;;  %v14215_v11 = vpop.f32.mrb[74].mxu0 }
 0x56f   : > { %v14213_v33 = vpop.eup %10598  ;;  %10608 = vpow2.f32 %v4809_v14  ;;  %16909 = vst [vmem:[#allocation169_spill] sm:$0xff] %v14215_v11  ;;  %v14219_v42 = vpop.xlane.xlu1 %5127  ;;  %v16913_v14 = vld [vmem:[#allocation90_spill] sm:$0xff] }
 0x570   : > { %16908 = vst [vmem:[#allocation6_spill] sm:$0xff] %v14213_v33  ;;  %5232 = vadd.xlane.f32.xlu1 %v5231_v5  ;;  %v14217_v1 = vpop.eup %10600  ;;  %v4811_v44 = vmul.f32 1.442695, %v4395_v15  ;;  %v4813_v9 = vmul.f32 1.442695, %v4396_v26  ;;  %16911 = vst [vmem:[#allocation78_spill] sm:$0xff] %v14219_v42 }
 0x571   : > { %16910 = vst [vmem:[#allocation81_spill] sm:$0xff] %v14217_v1  ;;  %4200 = vmax.xlane.f32.xlu0 %v4199_v25  ;;  %v14221_v54 = vpop.f32.mrb[75].mxu0  ;;  %v4096_v18 = vpop.xlane.xlu0 %4095  ;;  %v5234_v28 = vadd.f32 %v14217_v1, %v14213_v33  ;;  %v16914_v5 = vld [vmem:[#allocation93_spill] sm:$0xff] }
 0x572   : > { %16912 = vst [vmem:[#allocation8_spill] sm:$0xff] %v14221_v54  ;;  %v4205_v17 = vmax.f32 %v14215_v11, %v14221_v54  ;;  %10610 = vpow2.f32 %v4811_v44  ;;  %v4397_v40 = vsub.f32 %v16913_v14, %v4096_v18  ;;  %v4398_v8 = vsub.f32 %v16914_v5, %v4096_v18  ;;  %v14231_v15 = vpop.f32.mrb[76].mxu0  ;;  %v16920_v5 = vld [vmem:[#allocation19_spill] sm:$0xff] }
 0x573   : > { %v14229_v58 = vpop.eup %10602  ;;  %10612 = vpow2.f32 %v4813_v9  ;;  %16916 = vst [vmem:[#allocation84_spill] sm:$0xff] %v14231_v15  ;;  %v14235_v42 = vpop.xlane.xlu1 %5130  ;;  %v16919_v9 = vld [vmem:[#allocation20_spill] sm:$0xff] }
 0x574   : > { %16915 = vst [vmem:[#allocation171_spill] sm:$0xff] %v14229_v58  ;;  %5235 = vadd.xlane.f32.xlu1 %v5234_v28  ;;  %v14233_v25 = vpop.eup %10604  ;;  %v4815_v26 = vmul.f32 1.442695, %v4397_v40  ;;  %v4817_v32 = vmul.f32 1.442695, %v4398_v8  ;;  %v14237_v54 = vpop.f32.mrb[77].mxu0 }
 0x575   : > { %16917 = vst [vmem:[#allocation10_spill] sm:$0xff] %v14233_v25  ;;  %4203 = vmax.xlane.f32.xlu0 %v4202_v0  ;;  %16918 = vst [vmem:[#allocation173_spill] sm:$0xff] %v14237_v54  ;;  %v4099_v44 = vpop.xlane.xlu0 %4098  ;;  %v4208_v14 = vmax.f32 %v14231_v15, %v14237_v54  ;;  %v5237_v18 = vadd.f32 %v14233_v25, %v14229_v58 }
 0x576   : > { %10614 = vpow2.f32 %v4815_v26  ;;  %v4399_v28 = vsub.f32 %v16919_v9, %v4099_v44  ;;  %v4400_v33 = vsub.f32 %v16920_v5, %v4099_v44  ;;  %v14245_v8 = vpop.f32.mrb[78].mxu0 }
 0x577   : > { %10616 = vpow2.f32 %v4817_v32  ;;  %16921 = vst [vmem:[#allocation12_spill] sm:$0xff] %v14245_v8  ;;  %v14251_v54 = vpop.f32.mrb[79].mxu0  ;;  %v16926_v32 = vld [vmem:[#allocation104_spill] sm:$0xff] }
 0x578   : > { %5238 = vadd.xlane.f32.xlu1 %v5237_v18  ;;  %v14247_v40 = vpop.eup %10606  ;;  %v4819_v0 = vmul.f32 1.442695, %v4399_v28  ;;  %v4821_v1 = vmul.f32 1.442695, %v4400_v33  ;;  %v14249_v11 = vpop.xlane.xlu1 %5133  ;;  %16924 = vst [vmem:[#allocation177_spill] sm:$0xff] %v14251_v54  ;;  %v4211_v9 = vmax.f32 %v14245_v8, %v14251_v54  ;;  %v16927_v18 = vld [vmem:[#allocation21_spill] sm:$0xff] }
 0x579   : > { %16922 = vst [vmem:[#allocation175_spill] sm:$0xff] %v14247_v40  ;;  %16923 = vst [vmem:[#allocation14_spill] sm:$0xff] %v14249_v11  ;;  %4206 = vmax.xlane.f32.xlu0 %v4205_v17  ;;  %v14253_v15 = vpop.eup %10608  ;;  %v4102_v26 = vpop.xlane.xlu0 %4101 }
 0x57a   : > { %16925 = vst [vmem:[#allocation16_spill] sm:$0xff] %v14253_v15  ;;  %10618 = vpow2.f32 %v4819_v0  ;;  %v4401_v44 = vsub.f32 %v16926_v32, %v4102_v26  ;;  %v4402_v5 = vsub.f32 %v16927_v18, %v4102_v26  ;;  %v5240_v28 = vadd.f32 %v14253_v15, %v14247_v40  ;;  %v14261_v33 = vpop.f32.mrb[80].mxu0  ;;  %v16934_v40 = vld [vmem:[#allocation23_spill] sm:$0xff] }
 0x57b   : > { %10620 = vpow2.f32 %v4821_v1  ;;  %16928 = vst [vmem:[#allocation179_spill] sm:$0xff] %v14261_v33  ;;  %v14267_v54 = vpop.f32.mrb[81].mxu0  ;;  %v16933_v1 = vld [vmem:[#allocation105_spill] sm:$0xff] }
 0x57c   : > { %v14263_v17 = vpop.eup %10610  ;;  %v4823_v58 = vmul.f32 1.442695, %v4401_v44  ;;  %v4825_v25 = vmul.f32 1.442695, %v4402_v5  ;;  %5241 = vadd.xlane.f32.xlu1 %v5240_v28  ;;  %v14265_v11 = vpop.xlane.xlu1 %5136  ;;  %16931 = vst [vmem:[#allocation20_spill] sm:$0xff] %v14267_v54  ;;  %v4214_v26 = vmax.f32 %v14261_v33, %v14267_v54 }
 0x57d   : > { %16929 = vst [vmem:[#allocation90_spill] sm:$0xff] %v14263_v17  ;;  %16930 = vst [vmem:[#allocation93_spill] sm:$0xff] %v14265_v11  ;;  %4209 = vmax.xlane.f32.xlu0 %v4208_v14  ;;  %v14269_v0 = vpop.eup %10612  ;;  %v4105_v32 = vpop.xlane.xlu0 %4104 }
 0x57e   : > { %16932 = vst [vmem:[#allocation19_spill] sm:$0xff] %v14269_v0  ;;  %10622 = vpow2.f32 %v4823_v58  ;;  %v4403_v18 = vsub.f32 %v16933_v1, %v4105_v32  ;;  %v4404_v15 = vsub.f32 %v16934_v40, %v4105_v32  ;;  %v5243_v44 = vadd.f32 %v14269_v0, %v14263_v17  ;;  %v14277_v5 = vpop.f32.mrb[82].mxu0  ;;  %v16939_v1 = vld [vmem:[#allocation62_spill] sm:$0xff] }
 0x57f   : > { %10624 = vpow2.f32 %v4825_v25  ;;  %16935 = vst [vmem:[#allocation104_spill] sm:$0xff] %v14277_v5  ;;  %v14281_v11 = vpop.f32.mrb[83].mxu0 }
 0x580   : > { %v14279_v14 = vpop.eup %10614  ;;  %v4827_v28 = vmul.f32 1.442695, %v4403_v18  ;;  %v4829_v8 = vmul.f32 1.442695, %v4404_v15  ;;  %5244 = vadd.xlane.f32.xlu1 %v5243_v44  ;;  %16937 = vst [vmem:[#allocation105_spill] sm:$0xff] %v14281_v11  ;;  %v4217_v40 = vmax.f32 %v14277_v5, %v14281_v11  ;;  %v14287_v32 = vpop.xlane.xlu1 %5139 }
 0x581   : > { %16936 = vst [vmem:[#allocation21_spill] sm:$0xff] %v14279_v14  ;;  %4212 = vmax.xlane.f32.xlu0 %v4211_v9  ;;  %v14283_v54 = vpop.eup %10616  ;;  %v4108_v58 = vpop.xlane.xlu0 %4107 }
 0x582   : > { %16938 = vst [vmem:[#allocation23_spill] sm:$0xff] %v14283_v54  ;;  %10626 = vpow2.f32 %v4827_v28  ;;  %v4405_v25 = vsub.f32 %v13608_v60, %v4108_v58  ;;  %v4406_v17 = vsub.f32 %v16939_v1, %v4108_v58  ;;  %v5246_v15 = vadd.f32 %v14283_v54, %v14279_v14  ;;  %v14293_v9 = vpop.f32.mrb[84].mxu0  ;;  %v16944_v58 = vld [vmem:[#allocation28_spill] sm:$0xff] }
 0x583   : > { %10628 = vpow2.f32 %v4829_v8  ;;  %16940 = vst [vmem:[#allocation62_spill] sm:$0xff] %v14293_v9  ;;  %v14297_v11 = vpop.f32.mrb[85].mxu0  ;;  %v16945_v8 = vld [vmem:[#allocation61_spill] sm:$0xff] }
 0x584   : > { %v14295_v18 = vpop.eup %10618  ;;  %v4831_v44 = vmul.f32 1.442695, %v4405_v25  ;;  %v4833_v0 = vmul.f32 1.442695, %v4406_v17  ;;  %5247 = vadd.xlane.f32.xlu1 %v5246_v15  ;;  %16942 = vst [vmem:[#allocation181_spill] sm:$0xff] %v14297_v11  ;;  %v4220_v60 = vmax.f32 %v14293_v9, %v14297_v11  ;;  %v14311_v25 = vpop.xlane.xlu1 %5142 }
 0x585   : > { %16941 = vst [vmem:[#allocation180_spill] sm:$0xff] %v14295_v18  ;;  %4215 = vmax.xlane.f32.xlu0 %v4214_v26  ;;  %v14299_v28 = vpop.eup %10620  ;;  %v4111_v5 = vpop.xlane.xlu0 %4110  ;;  %16948 = vst [vmem:[#allocation183_spill] sm:$0xff] %v14311_v25 }
 0x586   : > { %16943 = vst [vmem:[#allocation182_spill] sm:$0xff] %v14299_v28  ;;  %10630 = vpow2.f32 %v4831_v44  ;;  %v4407_v1 = vsub.f32 %v16944_v58, %v4111_v5  ;;  %v4408_v14 = vsub.f32 %v16945_v8, %v4111_v5  ;;  %v5249_v54 = vadd.f32 %v14299_v28, %v14295_v18  ;;  %v14307_v17 = vpop.f32.mrb[86].mxu0  ;;  %v16952_v18 = vld [vmem:[#allocation29_spill] sm:$0xff] }
 0x587   : > { %10632 = vpow2.f32 %v4833_v0  ;;  %16946 = vst [vmem:[#allocation28_spill] sm:$0xff] %v14307_v17  ;;  %v14313_v11 = vpop.f32.mrb[87].mxu0  ;;  %v16951_v0 = vld [vmem:[#allocation30_spill] sm:$0xff] }
 0x588   : > { %v14309_v26 = vpop.eup %10622  ;;  %v4835_v15 = vmul.f32 1.442695, %v4407_v1  ;;  %v4837_v33 = vmul.f32 1.442695, %v4408_v14  ;;  %5250 = vadd.xlane.f32.xlu1 %v5249_v54  ;;  %16949 = vst [vmem:[#allocation184_spill] sm:$0xff] %v14313_v11  ;;  %v4223_v5 = vmax.f32 %v14307_v17, %v14313_v11 }
 0x589   : > { %16947 = vst [vmem:[#allocation61_spill] sm:$0xff] %v14309_v26  ;;  %4218 = vmax.xlane.f32.xlu0 %v4217_v40  ;;  %v14315_v44 = vpop.eup %10624  ;;  %v4114_v58 = vpop.xlane.xlu0 %4113 }
 0x58a   : > { %16950 = vst [vmem:[#allocation185_spill] sm:$0xff] %v14315_v44  ;;  %10634 = vpow2.f32 %v4835_v15  ;;  %v4409_v8 = vsub.f32 %v16951_v0, %v4114_v58  ;;  %v4410_v28 = vsub.f32 %v16952_v18, %v4114_v58  ;;  %v5252_v9 = vadd.f32 %v14315_v44, %v14309_v26  ;;  %v14323_v14 = vpop.f32.mrb[88].mxu0  ;;  %v14333_v58 = vpop.xlane.xlu1 %5145  ;;  %v16958_v26 = vld [vmem:[#allocation31_spill] sm:$0xff] }
 0x58b   : > { %10636 = vpow2.f32 %v4837_v33  ;;  %16953 = vst [vmem:[#allocation30_spill] sm:$0xff] %v14323_v14  ;;  %v14327_v25 = vpop.f32.mrb[89].mxu0  ;;  %v16957_v33 = vld [vmem:[#allocation108_spill] sm:$0xff] }
 0x58c   : > { %v14325_v54 = vpop.eup %10626  ;;  %v4839_v40 = vmul.f32 1.442695, %v4409_v8  ;;  %v4841_v1 = vmul.f32 1.442695, %v4410_v28  ;;  %5253 = vadd.xlane.f32.xlu1 %v5252_v9  ;;  %16955 = vst [vmem:[#allocation186_spill] sm:$0xff] %v14327_v25  ;;  %v4226_v18 = vmax.f32 %v14323_v14, %v14327_v25 }
 0x58d   : > { %16954 = vst [vmem:[#allocation29_spill] sm:$0xff] %v14325_v54  ;;  %4221 = vmax.xlane.f32.xlu0 %v4220_v60  ;;  %v14329_v11 = vpop.eup %10628  ;;  %v4117_v15 = vpop.xlane.xlu0 %4116 }
 0x58e   : > { %16956 = vst [vmem:[#allocation187_spill] sm:$0xff] %v14329_v11  ;;  %10638 = vpow2.f32 %v4839_v40  ;;  %v4411_v0 = vsub.f32 %v16957_v33, %v4117_v15  ;;  %v4412_v44 = vsub.f32 %v16958_v26, %v4117_v15  ;;  %v5255_v28 = vadd.f32 %v14329_v11, %v14325_v54  ;;  %v14339_v9 = vpop.f32.mrb[90].mxu0 }
 0x58f   : > { %10640 = vpow2.f32 %v4841_v1  ;;  %v14343_v25 = vpop.f32.mrb[91].mxu0 }
 0x590   : > { %v14341_v60 = vpop.eup %10630  ;;  %v4843_v8 = vmul.f32 1.442695, %v4411_v0  ;;  %v4845_v17 = vmul.f32 1.442695, %v4412_v44  ;;  %5256 = vadd.xlane.f32.xlu1 %v5255_v28  ;;  %16960 = vst [vmem:[#allocation31_spill] sm:$0xff] %v14343_v25  ;;  %v4229_v26 = vmax.f32 %v14339_v9, %v14343_v25  ;;  %v14357_v0 = vpop.xlane.xlu1 %5148 }
 0x591   : > { %16959 = vst [vmem:[#allocation108_spill] sm:$0xff] %v14341_v60  ;;  %4224 = vmax.xlane.f32.xlu0 %v4223_v5  ;;  %v14345_v14 = vpop.eup %10632  ;;  %v4120_v40 = vpop.xlane.xlu0 %4119 }
 0x592   : > { %16961 = vst [vmem:[#allocation188_spill] sm:$0xff] %v14345_v14  ;;  %10642 = vpow2.f32 %v4843_v8  ;;  %v4413_v15 = vsub.f32 %v13688_v12, %v4120_v40  ;;  %v4414_v1 = vsub.f32 %v13692_v46, %v4120_v40  ;;  %v5258_v33 = vadd.f32 %v14345_v14, %v14341_v60  ;;  %v14353_v44 = vpop.f32.mrb[92].mxu0 }
 0x593   : > { %10644 = vpow2.f32 %v4845_v17  ;;  %16962 = vst [vmem:[#allocation189_spill] sm:$0xff] %v14353_v44  ;;  %v14359_v11 = vpop.f32.mrb[93].mxu0 }
 0x594   : > { %v14355_v5 = vpop.eup %10634  ;;  %v4847_v28 = vmul.f32 1.442695, %v4413_v15  ;;  %v4849_v54 = vmul.f32 1.442695, %v4414_v1  ;;  %5259 = vadd.xlane.f32.xlu1 %v5258_v33  ;;  %16964 = vst [vmem:[#allocation191_spill] sm:$0xff] %v14359_v11  ;;  %v4232_v46 = vmax.f32 %v14353_v44, %v14359_v11  ;;  %v14373_v44 = vpop.xlane.xlu1 %5151 }
 0x595   : > { %16963 = vst [vmem:[#allocation190_spill] sm:$0xff] %v14355_v5  ;;  %4227 = vmax.xlane.f32.xlu0 %v4226_v18  ;;  %v14361_v8 = vpop.eup %10636  ;;  %v4123_v12 = vpop.xlane.xlu0 %4122 }
 0x596   : > { %16965 = vst [vmem:[#allocation192_spill] sm:$0xff] %v14361_v8  ;;  %10646 = vpow2.f32 %v4847_v28  ;;  %v4415_v17 = vsub.f32 %v13708_v56, %v4123_v12  ;;  %v4416_v40 = vsub.f32 %v13712_v7, %v4123_v12  ;;  %v5261_v60 = vadd.f32 %v14361_v8, %v14355_v5  ;;  %v9503_v15 = vpop.f32.mrb[94].mxu0  ;;  %v17101_v5 = vld [vmem:[#allocation72_spill] sm:$0xff] }
 0x597   : > { %10648 = vpow2.f32 %v4849_v54  ;;  %v6068_v14 = vpop.f32.mrb[95].mxu0 }
 0x598   : > { %v14369_v1 = vpop.eup %10638  ;;  %v4851_v18 = vmul.f32 1.442695, %v4415_v17  ;;  %v4853_v33 = vmul.f32 1.442695, %v4416_v40  ;;  %5262 = vadd.xlane.f32.xlu1 %v5261_v60  ;;  %v9698_v28 = vpack.c.bf16 %v9503_v15, %v6068_v14 }
 0x599   : > { %16966 = vst [vmem:[#allocation193_spill] sm:$0xff] %v14369_v1  ;;  %4230 = vmax.xlane.f32.xlu0 %v4229_v26  ;;  %v14371_v25 = vpop.eup %10640  ;;  %v4126_v11 = vpop.xlane.xlu0 %4125 }
 0x59a   : > { %16967 = vst [vmem:[#allocation194_spill] sm:$0xff] %v14371_v25  ;;  %10650 = vpow2.f32 %v4851_v18  ;;  %v4417_v56 = vsub.f32 %v13728_v20, %v4126_v11  ;;  %v4418_v7 = vsub.f32 %v13732_v37, %v4126_v11  ;;  %v5264_v54 = vadd.f32 %v14371_v25, %v14369_v1  ;;  %v9506_v12 = vpop.f32.mrb[96].mxu0  ;;  %9699 = vmatpush1.bf16.msra.mxu1 %v9698_v28  ;;  %v17100_v25 = vld [vmem:[#allocation167_spill] sm:$0xff] }
 0x59b   : > { %10652 = vpow2.f32 %v4853_v33  ;;  %v6078_v14 = vpop.f32.mrb[97].mxu0  ;;  %v16970_v20 = vmov 0.0|0.0  }
 0x59c   : > { %v14379_v60 = vpop.eup %10642  ;;  %v4855_v26 = vmul.f32 1.442695, %v4417_v56  ;;  %v4857_v17 = vmul.f32 1.442695, %v4418_v7  ;;  %5265 = vadd.xlane.f32.xlu1 %v5264_v54  ;;  %v9701_v18 = vpack.c.bf16 %v9506_v12, %v6078_v14  ;;  %9700 = vmatprep.subr.bf16.mxu1 %v16970_v20 }
 0x59d   : > { %16968 = vst [vmem:[#allocation195_spill] sm:$0xff] %v14379_v60  ;;  %4233 = vmax.xlane.f32.xlu0 %v4232_v46  ;;  %v14381_v40 = vpop.eup %10644  ;;  %v4129_v15 = vpop.xlane.xlu0 %4128 }
 0x59e   : > { %16969 = vst [vmem:[#allocation196_spill] sm:$0xff] %v14381_v40  ;;  %10654 = vpow2.f32 %v4855_v26  ;;  %v4419_v37 = vsub.f32 %v13748_v41, %v4129_v15  ;;  %v4420_v11 = vsub.f32 %v13752_v24, %v4129_v15  ;;  %v5267_v33 = vadd.f32 %v14381_v40, %v14379_v60  ;;  %v9509_v28 = vpop.f32.mrb[98].mxu0  ;;  %9702 = vmatpush1.bf16.msra.mxu1 %v9701_v18  ;;  %v14390_v46 = vpop.xlane.xlu1 %5154  ;;  %v17090_v40 = vld [vmem:[#allocation66_spill] sm:$0xff] }
 0x59f   : > { %10656 = vpow2.f32 %v4857_v17  ;;  %v6088_v12 = vpop.f32.mrb[99].mxu0  ;;  %9703 = vmatprep.subr.bf16.mxu1 %v16970_v20 }
 0x5a0   : > { %v14388_v56 = vpop.eup %10646  ;;  %v4859_v7 = vmul.f32 1.442695, %v4419_v37  ;;  %v4861_v54 = vmul.f32 1.442695, %v4420_v11  ;;  %5268 = vadd.xlane.f32.xlu1 %v5267_v33  ;;  %v9704_v24 = vpack.c.bf16 %v9509_v28, %v6088_v12 }
 0x5a1   : > { %16971 = vst [vmem:[#allocation197_spill] sm:$0xff] %v14388_v56  ;;  %v14393_v26 = vpop.eup %10648  ;;  %v4132_v41 = vpop.xlane.xlu0 %4131 }
 0x5a2   : > { %16972 = vst [vmem:[#allocation198_spill] sm:$0xff] %v14393_v26  ;;  %10658 = vpow2.f32 %v4859_v7  ;;  %v4421_v14 = vsub.f32 %v13768_v55, %v4132_v41  ;;  %v4422_v17 = vsub.f32 %v13772_v13, %v4132_v41  ;;  %v5270_v15 = vadd.f32 %v14393_v26, %v14388_v56  ;;  %v9512_v18 = vpop.f32.mrb[100].mxu0  ;;  %9705 = vmatpush1.bf16.msra.mxu1 %v9704_v24  ;;  %v14404_v12 = vpop.xlane.xlu1 %5157 }
 0x5a3   : > { %10660 = vpow2.f32 %v4861_v54  ;;  %v6098_v60 = vpop.f32.mrb[101].mxu0  ;;  %9706 = vmatprep.subr.bf16.mxu1 %v16970_v20 }
 0x5a4   : > { %v14399_v37 = vpop.eup %10650  ;;  %v4863_v11 = vmul.f32 1.442695, %v4421_v14  ;;  %v4865_v33 = vmul.f32 1.442695, %v4422_v17  ;;  %5271 = vadd.xlane.f32.xlu1 %v5270_v15  ;;  %v9707_v55 = vpack.c.bf16 %v9512_v18, %v6098_v60 }
 0x5a5   : > { %16973 = vst [vmem:[#allocation199_spill] sm:$0xff] %v14399_v37  ;;  %v14402_v28 = vpop.eup %10652  ;;  %v4135_v7 = vpop.xlane.xlu0 %4134 }
 0x5a6   : > { %16974 = vst [vmem:[#allocation200_spill] sm:$0xff] %v14402_v28  ;;  %10662 = vpow2.f32 %v4863_v11  ;;  %v4423_v13 = vsub.f32 %v13788_v63, %v4135_v7  ;;  %v4424_v54 = vsub.f32 %v13792_v34, %v4135_v7  ;;  %v5273_v41 = vadd.f32 %v14402_v28, %v14399_v37  ;;  %v9515_v24 = vpop.f32.mrb[102].mxu0  ;;  %9708 = vmatpush1.bf16.msra.mxu1 %v9707_v55 }
 0x5a7   : > { %10664 = vpow2.f32 %v4865_v33  ;;  %v6108_v56 = vpop.f32.mrb[103].mxu0  ;;  %9709 = vmatprep.subr.bf16.mxu1 %v16970_v20 }
 0x5a8   : > { %v14410_v14 = vpop.eup %10654  ;;  %v4867_v17 = vmul.f32 1.442695, %v4423_v13  ;;  %v4869_v15 = vmul.f32 1.442695, %v4424_v54  ;;  %5274 = vadd.xlane.f32.xlu1 %v5273_v41  ;;  %v9710_v63 = vpack.c.bf16 %v9515_v24, %v6108_v56  ;;  %v14421_v13 = vpop.xlane.xlu1 %5160 }
 0x5a9   : > { %16975 = vst [vmem:[#allocation201_spill] sm:$0xff] %v14410_v14  ;;  %v14413_v60 = vpop.eup %10656 }
 0x5aa   : > { %16976 = vst [vmem:[#allocation202_spill] sm:$0xff] %v14413_v60  ;;  %v4138_v18 = vpop.xlane.xlu0 %4137  ;;  %10666 = vpow2.f32 %v4867_v17  ;;  %v5276_v33 = vadd.f32 %v14413_v60, %v14410_v14  ;;  %v9518_v7 = vpop.f32.mrb[104].mxu0  ;;  %9711 = vmatpush1.bf16.msra.mxu1 %v9710_v63  ;;  %v17071_v14 = vld [vmem:[#allocation164_spill] sm:$0xff] }
 0x5ab   : > { %v4425_v34 = vsub.f32 %v16776_v30, %v4138_v18  ;;  %v4426_v11 = vsub.f32 %v16777_v19, %v4138_v18  ;;  %10668 = vpow2.f32 %v4869_v15  ;;  %v6118_v37 = vpop.f32.mrb[105].mxu0  ;;  %9712 = vmatprep.subr.bf16.mxu1 %v16970_v20 }
 0x5ac   : > { %v14419_v55 = vpop.eup %10658  ;;  %5277 = vadd.xlane.f32.xlu1 %v5276_v33  ;;  %v9713_v19 = vpack.c.bf16 %v9518_v7, %v6118_v37 }
 0x5ad   : > { %16977 = vst [vmem:[#allocation203_spill] sm:$0xff] %v14419_v55  ;;  %v4871_v54 = vmul.f32 1.442695, %v4425_v34  ;;  %v4873_v41 = vmul.f32 1.442695, %v4426_v11  ;;  %v14424_v56 = vpop.eup %10660 }
 0x5ae   : > { %16978 = vst [vmem:[#allocation204_spill] sm:$0xff] %v14424_v56  ;;  %v4141_v30 = vpop.xlane.xlu0 %4140  ;;  %v5279_v15 = vadd.f32 %v14424_v56, %v14419_v55  ;;  %9714 = vmatpush1.bf16.msra.mxu1 %v9713_v19 }
 0x5af   : > { %10670 = vpow2.f32 %v4871_v54  ;;  %v4427_v24 = vsub.f32 %v13808_v35, %v4141_v30  ;;  %v4428_v17 = vsub.f32 %v13812_v27, %v4141_v30  ;;  %9715 = vmatprep.subr.bf16.mxu1 %v16970_v20  ;;  %v14435_v35 = vpop.xlane.xlu1 %5163 }
 0x5b0   : > { %10672 = vpow2.f32 %v4873_v41  ;;  %v14430_v18 = vpop.eup %10662  ;;  %5280 = vadd.xlane.f32.xlu1 %v5279_v15  ;;  %v9521_v11 = vpop.f32.mrb[106].mxu0 }
 0x5b1   : > { %16979 = vst [vmem:[#allocation205_spill] sm:$0xff] %v14430_v18  ;;  %v4875_v63 = vmul.f32 1.442695, %v4427_v24  ;;  %v4877_v34 = vmul.f32 1.442695, %v4428_v17  ;;  %v14433_v33 = vpop.eup %10664  ;;  %v6128_v7 = vpop.f32.mrb[107].mxu0 }
 0x5b2   : > { %16980 = vst [vmem:[#allocation206_spill] sm:$0xff] %v14433_v33  ;;  %v4144_v37 = vpop.xlane.xlu0 %4143  ;;  %v9716_v41 = vpack.c.bf16 %v9521_v11, %v6128_v7  ;;  %v5282_v30 = vadd.f32 %v14433_v33, %v14430_v18  ;;  %v17070_v33 = vld [vmem:[#allocation49_spill] sm:$0xff] }
 0x5b3   : > { %10674 = vpow2.f32 %v4875_v63  ;;  %v4429_v27 = vsub.f32 %v13828_v21, %v4144_v37  ;;  %v4430_v54 = vsub.f32 %v13832_v38, %v4144_v37  ;;  %v14452_v7 = vpop.xlane.xlu1 %5166 }
 0x5b4   : > { %10676 = vpow2.f32 %v4877_v34  ;;  %v14441_v19 = vpop.eup %10666  ;;  %v9524_v15 = vpop.f32.mrb[108].mxu0  ;;  %9717 = vmatpush1.bf16.msra.mxu1 %v9716_v41  ;;  %5283 = vadd.xlane.f32.xlu1 %v5282_v30 }
 0x5b5   : > { %16981 = vst [vmem:[#allocation207_spill] sm:$0xff] %v14441_v19  ;;  %v4879_v24 = vmul.f32 1.442695, %v4429_v27  ;;  %v4881_v17 = vmul.f32 1.442695, %v4430_v54  ;;  %v14443_v55 = vpop.eup %10668  ;;  %v6138_v63 = vpop.f32.mrb[109].mxu0  ;;  %9718 = vmatprep.subr.bf16.mxu1 %v16970_v20 }
 0x5b6   : > { %16982 = vst [vmem:[#allocation208_spill] sm:$0xff] %v14443_v55  ;;  %v4147_v56 = vpop.xlane.xlu0 %4146  ;;  %v9719_v34 = vpack.c.bf16 %v9524_v15, %v6138_v63  ;;  %v5285_v11 = vadd.f32 %v14443_v55, %v14441_v19  ;;  %v17061_v55 = vld [vmem:[#allocation163_spill] sm:$0xff] }
 0x5b7   : > { %10678 = vpow2.f32 %v4879_v24  ;;  %v4431_v21 = vsub.f32 %v13851_v2, %v4147_v56  ;;  %v4432_v38 = vsub.f32 %v13855_v49, %v4147_v56 }
 0x5b8   : > { %10680 = vpow2.f32 %v4881_v17  ;;  %v9527_v41 = vpop.f32.mrb[110].mxu0  ;;  %9720 = vmatpush1.bf16.msra.mxu1 %v9719_v34  ;;  %5286 = vadd.xlane.f32.xlu1 %v5285_v11 }
 0x5b9   : > { %v14450_v37 = vpop.eup %10670  ;;  %v4883_v27 = vmul.f32 1.442695, %v4431_v21  ;;  %v4885_v54 = vmul.f32 1.442695, %v4432_v38  ;;  %v6148_v2 = vpop.f32.mrb[111].mxu0  ;;  %9721 = vmatprep.subr.bf16.mxu1 %v16970_v20 }
 0x5ba   : > { %16983 = vst [vmem:[#allocation209_spill] sm:$0xff] %v14450_v37  ;;  %v14454_v30 = vpop.eup %10672  ;;  %v4150_v24 = vpop.xlane.xlu0 %4149  ;;  %v9722_v17 = vpack.c.bf16 %v9527_v41, %v6148_v2 }
 0x5bb   : > { %16984 = vst [vmem:[#allocation210_spill] sm:$0xff] %v14454_v30  ;;  %10682 = vpow2.f32 %v4883_v27  ;;  %v4433_v49 = vsub.f32 %v13871_v57, %v4150_v24  ;;  %v4434_v56 = vsub.f32 %v13875_v6, %v4150_v24  ;;  %v5288_v15 = vadd.f32 %v14454_v30, %v14450_v37  ;;  %v14466_v57 = vpop.xlane.xlu1 %5169 }
 0x5bc   : > { %10684 = vpow2.f32 %v4885_v54  ;;  %v9530_v34 = vpop.f32.mrb[112].mxu0  ;;  %9723 = vmatpush1.bf16.msra.mxu1 %v9722_v17 }
 0x5bd   : > { %v14461_v63 = vpop.eup %10674  ;;  %v4887_v21 = vmul.f32 1.442695, %v4433_v49  ;;  %v4889_v38 = vmul.f32 1.442695, %v4434_v56  ;;  %5289 = vadd.xlane.f32.xlu1 %v5288_v15  ;;  %v6158_v27 = vpop.f32.mrb[113].mxu0  ;;  %9724 = vmatprep.subr.bf16.mxu1 %v16970_v20 }
 0x5be   : > { %16985 = vst [vmem:[#allocation211_spill] sm:$0xff] %v14461_v63  ;;  %v14463_v11 = vpop.eup %10676  ;;  %v4153_v19 = vpop.xlane.xlu0 %4152  ;;  %v9725_v41 = vpack.c.bf16 %v9530_v34, %v6158_v27 }
 0x5bf   : > { %16986 = vst [vmem:[#allocation212_spill] sm:$0xff] %v14463_v11  ;;  %10686 = vpow2.f32 %v4887_v21  ;;  %v4435_v6 = vsub.f32 %v13891_v31, %v4153_v19  ;;  %v4436_v54 = vsub.f32 %v13895_v29, %v4153_v19  ;;  %v5291_v24 = vadd.f32 %v14463_v11, %v14461_v63  ;;  %v14483_v27 = vpop.xlane.xlu1 %5172 }
 0x5c0   : > { %10688 = vpow2.f32 %v4889_v38  ;;  %v9533_v17 = vpop.f32.mrb[114].mxu0  ;;  %9726 = vmatpush1.bf16.msra.mxu1 %v9725_v41 }
 0x5c1   : > { %v14472_v2 = vpop.eup %10678  ;;  %v4891_v49 = vmul.f32 1.442695, %v4435_v6  ;;  %v4893_v56 = vmul.f32 1.442695, %v4436_v54  ;;  %5292 = vadd.xlane.f32.xlu1 %v5291_v24  ;;  %v6168_v21 = vpop.f32.mrb[115].mxu0  ;;  %9727 = vmatprep.subr.bf16.mxu1 %v16970_v20 }
 0x5c2   : > { %16987 = vst [vmem:[#allocation213_spill] sm:$0xff] %v14472_v2  ;;  %v14474_v15 = vpop.eup %10680  ;;  %v4156_v37 = vpop.xlane.xlu0 %4155  ;;  %v9728_v19 = vpack.c.bf16 %v9533_v17, %v6168_v21 }
 0x5c3   : > { %16988 = vst [vmem:[#allocation214_spill] sm:$0xff] %v14474_v15  ;;  %10690 = vpow2.f32 %v4891_v49  ;;  %v4437_v31 = vsub.f32 %v13911_v50, %v4156_v37  ;;  %v4438_v29 = vsub.f32 %v13915_v52, %v4156_v37  ;;  %v5294_v38 = vadd.f32 %v14474_v15, %v14472_v2  ;;  %v17042_v15 = vld [vmem:[#allocation161_spill] sm:$0xff] }
 0x5c4   : > { %10692 = vpow2.f32 %v4893_v56  ;;  %v9536_v41 = vpop.f32.mrb[116].mxu0  ;;  %9729 = vmatpush1.bf16.msra.mxu1 %v9728_v19 }
 0x5c5   : > { %v14481_v34 = vpop.eup %10682  ;;  %v4895_v6 = vmul.f32 1.442695, %v4437_v31  ;;  %v4897_v54 = vmul.f32 1.442695, %v4438_v29  ;;  %5295 = vadd.xlane.f32.xlu1 %v5294_v38  ;;  %v6178_v50 = vpop.f32.mrb[117].mxu0  ;;  %9730 = vmatprep.subr.bf16.mxu1 %v16970_v20 }
 0x5c6   : > { %16989 = vst [vmem:[#allocation215_spill] sm:$0xff] %v14481_v34  ;;  %v14485_v24 = vpop.eup %10684  ;;  %v4159_v49 = vpop.xlane.xlu0 %4158  ;;  %v9731_v56 = vpack.c.bf16 %v9536_v41, %v6178_v50 }
 0x5c7   : > { %16990 = vst [vmem:[#allocation216_spill] sm:$0xff] %v14485_v24  ;;  %10694 = vpow2.f32 %v4895_v6  ;;  %v4439_v52 = vsub.f32 %v13931_v4, %v4159_v49  ;;  %v4440_v37 = vsub.f32 %v13935_v45, %v4159_v49  ;;  %v5297_v17 = vadd.f32 %v14485_v24, %v14481_v34  ;;  %v14497_v4 = vpop.xlane.xlu1 %5175  ;;  %v17033_v34 = vld [vmem:[#allocation160_spill] sm:$0xff] }
 0x5c8   : > { %10696 = vpow2.f32 %v4897_v54  ;;  %v9539_v19 = vpop.f32.mrb[118].mxu0  ;;  %9732 = vmatpush1.bf16.msra.mxu1 %v9731_v56 }
 0x5c9   : > { %v14492_v21 = vpop.eup %10686  ;;  %v4899_v31 = vmul.f32 1.442695, %v4439_v52  ;;  %v4901_v29 = vmul.f32 1.442695, %v4440_v37  ;;  %5298 = vadd.xlane.f32.xlu1 %v5297_v17  ;;  %v6188_v6 = vpop.f32.mrb[119].mxu0  ;;  %9733 = vmatprep.subr.bf16.mxu1 %v16970_v20 }
 0x5ca   : > { %16991 = vst [vmem:[#allocation217_spill] sm:$0xff] %v14492_v21  ;;  %v14494_v38 = vpop.eup %10688  ;;  %v4162_v2 = vpop.xlane.xlu0 %4161  ;;  %v9734_v41 = vpack.c.bf16 %v9539_v19, %v6188_v6 }
 0x5cb   : > { %16992 = vst [vmem:[#allocation218_spill] sm:$0xff] %v14494_v38  ;;  %10698 = vpow2.f32 %v4899_v31  ;;  %v4441_v45 = vsub.f32 %v13951_v36, %v4162_v2  ;;  %v4442_v54 = vsub.f32 %v13955_v61, %v4162_v2  ;;  %v5300_v49 = vadd.f32 %v14494_v38, %v14492_v21  ;;  %v14516_v6 = vpop.xlane.xlu1 %5178 }
 0x5cc   : > { %10700 = vpow2.f32 %v4901_v29  ;;  %v9542_v56 = vpop.f32.mrb[120].mxu0  ;;  %9735 = vmatpush1.bf16.msra.mxu1 %v9734_v41 }
 0x5cd   : > { %v14503_v50 = vpop.eup %10690  ;;  %10702 = vrcp.f32 %v14085_v16  ;;  %v4903_v52 = vmul.f32 1.442695, %v4441_v45  ;;  %v4905_v37 = vmul.f32 1.442695, %v4442_v54  ;;  %5301 = vadd.xlane.f32.xlu1 %v5300_v49  ;;  %v6198_v36 = vpop.f32.mrb[121].mxu0  ;;  %9736 = vmatprep.subr.bf16.mxu1 %v16970_v20 }
 0x5ce   : > { %16993 = vst [vmem:[#allocation219_spill] sm:$0xff] %v14503_v50  ;;  %v14506_v17 = vpop.eup %10692  ;;  %v4165_v31 = vpop.xlane.xlu0 %4164  ;;  %v9737_v29 = vpack.c.bf16 %v9542_v56, %v6198_v36 }
 0x5cf   : > { %16994 = vst [vmem:[#allocation220_spill] sm:$0xff] %v14506_v17  ;;  %10704 = vpow2.f32 %v4903_v52  ;;  %v4443_v61 = vsub.f32 %v13971_v47, %v4165_v31  ;;  %v4444_v2 = vsub.f32 %v13975_v22, %v4165_v31  ;;  %v5303_v16 = vadd.f32 %v14506_v17, %v14503_v50  ;;  %v17014_v50 = vld [vmem:[#allocation155_spill] sm:$0xff] }
 0x5d0   : > { %10706 = vpow2.f32 %v4905_v37  ;;  %v9545_v41 = vpop.f32.mrb[122].mxu0  ;;  %9738 = vmatpush1.bf16.msra.mxu1 %v9737_v29 }
 0x5d1   : > { %v14513_v19 = vpop.eup %10694  ;;  %10708 = vrcp.f32 %v14103_v62  ;;  %v4907_v45 = vmul.f32 1.442695, %v4443_v61  ;;  %v4909_v54 = vmul.f32 1.442695, %v4444_v2  ;;  %5304 = vadd.xlane.f32.xlu1 %v5303_v16  ;;  %v6208_v22 = vpop.f32.mrb[123].mxu0  ;;  %9739 = vmatprep.subr.bf16.mxu1 %v16970_v20 }
 0x5d2   : > { %16995 = vst [vmem:[#allocation221_spill] sm:$0xff] %v14513_v19  ;;  %v14518_v49 = vpop.eup %10696  ;;  %v4168_v47 = vpop.xlane.xlu0 %4167  ;;  %v9740_v56 = vpack.c.bf16 %v9545_v41, %v6208_v22  ;;  %v16999_v41 = vld [vmem:[#allocation142_spill] sm:$0xff] }
 0x5d3   : > { %16996 = vst [vmem:[#allocation222_spill] sm:$0xff] %v14518_v49  ;;  %10710 = vpow2.f32 %v4907_v45  ;;  %v4445_v52 = vsub.f32 %v13991_v23, %v4168_v47  ;;  %v4446_v37 = vsub.f32 %v13995_v53, %v4168_v47  ;;  %v5306_v62 = vadd.f32 %v14518_v49, %v14513_v19  ;;  %v14531_v45 = vpop.xlane.xlu1 %5181  ;;  %v17013_v49 = vld [vmem:[#allocation40_spill] sm:$0xff] }
 0x5d4   : > { %10712 = vpow2.f32 %v4909_v54  ;;  %v9548_v2 = vpop.f32.mrb[124].mxu0  ;;  %9741 = vmatpush1.bf16.msra.mxu1 %v9740_v56 }
 0x5d5   : > { %v14525_v31 = vpop.eup %10698  ;;  %10714 = vrcp.f32 %v14121_v43  ;;  %v4911_v36 = vmul.f32 1.442695, %v4445_v52  ;;  %v4913_v61 = vmul.f32 1.442695, %v4446_v37  ;;  %5307 = vadd.xlane.f32.xlu1 %v5306_v62  ;;  %v6218_v23 = vpop.f32.mrb[125].mxu0  ;;  %9742 = vmatprep.subr.bf16.mxu1 %v16970_v20 }
 0x5d6   : > { %16997 = vst [vmem:[#allocation223_spill] sm:$0xff] %v14525_v31  ;;  %v14528_v29 = vpop.eup %10700  ;;  %v4171_v16 = vpop.xlane.xlu0 %4170  ;;  %v9743_v43 = vpack.c.bf16 %v9548_v2, %v6218_v23  ;;  %v17002_v2 = vld [vmem:[#allocation100_spill] sm:$0xff] }
 0x5d7   : > { %16998 = vst [vmem:[#allocation224_spill] sm:$0xff] %v14528_v29  ;;  %v10703_v53 = vpop.eup %10702  ;;  %10716 = vpow2.f32 %v4911_v36  ;;  %v4447_v54 = vsub.f32 %v14011_v10, %v4171_v16  ;;  %v4448_v47 = vsub.f32 %v16999_v41, %v4171_v16  ;;  %v5309_v22 = vadd.f32 %v14528_v29, %v14525_v31  ;;  %v17003_v16 = vld [vmem:[#allocation166_spill] sm:$0xff] }
 0x5d8   : > { %10718 = vpow2.f32 %v4913_v61  ;;  %v14540_v62 = vpop.f32.mrb[126].mxu0  ;;  %9744 = vmatpush1.bf16.msra.mxu1 %v9743_v43  ;;  %v5579_v61 = vmul.f32 %v14125_v51, %v17002_v2  ;;  %v5582_v23 = vmul.f32 %v10703_v53, %v17003_v16  ;;  %v17006_v51 = vld [vmem:[#allocation51_spill] sm:$0xff]  ;;  %v14559_v2 = vpop.xlane.xlu1 %5184 }
 0x5d9   : > { %v14537_v52 = vpop.eup %10704  ;;  %10720 = vrcp.f32 %v14141_v39  ;;  %v4915_v37 = vmul.f32 1.442695, %v4447_v54  ;;  %v4917_v56 = vmul.f32 1.442695, %v4448_v47  ;;  %5310 = vadd.xlane.f32.xlu1 %v5309_v22  ;;  %v14544_v36 = vpop.f32.mrb[127].mxu0  ;;  %9745 = vmatprep.subr.bf16.mxu1 %v16970_v20  ;;  %v17004_v54 = vld [vmem:[#allocation152_spill] sm:$0xff] }
 0x5da   : > { %17000 = vst [vmem:[#allocation142_spill] sm:$0xff] %v14537_v52  ;;  %v14542_v19 = vpop.eup %10706  ;;  %v4174_v10 = vpop.xlane.xlu0 %4173 }
 0x5db   : > { %17001 = vst [vmem:[#allocation225_spill] sm:$0xff] %v14542_v19  ;;  %v10709_v41 = vpop.eup %10708  ;;  %10722 = vpow2.f32 %v4915_v37  ;;  %v4449_v39 = vsub.f32 %v14029_v3, %v4174_v10  ;;  %v4450_v47 = vsub.f32 %v17004_v54, %v4174_v10  ;;  %v5312_v22 = vadd.f32 %v14542_v19, %v14537_v52  ;;  %6973 = vmatmul.mubr.f32.vlgmr.msra.gmra.mrb[162].mxu1 %v5579_v61  ;;  %v17007_v3 = vld [vmem:[#allocation68_spill] sm:$0xff]  ;;  %v17008_v10 = vld [vmem:[#allocation109_spill] sm:$0xff]  ;;  %v17011_v52 = vld [vmem:[#allocation99_spill] sm:$0xff] }
 0x5dc   : > { %10724 = vpow2.f32 %v4917_v56  ;;  %v14561_v29 = vpop.f32.mrb[128].mxu0  ;;  %6977 = vmatprep.mubr.f32.mxu1 %v5582_v23  ;;  %v17009_v54 = vpack.c.bf16 %v17007_v3, %v17008_v10  ;;  %v5581_v19 = vmul.f32 %v10703_v53, %v17011_v52 }
 0x5dd   : > { %v14556_v31 = vpop.eup %10710  ;;  %10726 = vrcp.f32 %v17006_v51  ;;  %v4919_v16 = vmul.f32 1.442695, %v4449_v39  ;;  %v4921_v37 = vmul.f32 1.442695, %v4450_v47  ;;  %5313 = vadd.xlane.f32.xlu1 %v5312_v22  ;;  %v14568_v61 = vpop.f32.mrb[129].mxu0  ;;  %v17012_v51 = vld [vmem:[#allocation168_spill] sm:$0xff] }
 0x5de   : > { %17005 = vst [vmem:[#allocation100_spill] sm:$0xff] %v14556_v31  ;;  %9747 = vmatpush1.bf16.msra.mxu1 %v17009_v54  ;;  %v14566_v56 = vpop.eup %10712  ;;  %v4177_v43 = vpop.xlane.xlu0 %4176  ;;  %v5584_v39 = vmul.f32 %v10709_v41, %v17012_v51 }
 0x5df   : > { %17010 = vst [vmem:[#allocation166_spill] sm:$0xff] %v14566_v56  ;;  %9748 = vmatprep.subr.bf16.mxu1 %v16970_v20  ;;  %v10715_v47 = vpop.eup %10714  ;;  %10728 = vpow2.f32 %v4919_v16  ;;  %v4451_v23 = vsub.f32 %v17013_v49, %v4177_v43  ;;  %v4452_v17 = vsub.f32 %v17014_v50, %v4177_v43  ;;  %v5315_v22 = vadd.f32 %v14566_v56, %v14556_v31  ;;  %v17016_v49 = vld [vmem:[#allocation67_spill] sm:$0xff]  ;;  %v17017_v16 = vld [vmem:[#allocation112_spill] sm:$0xff]  ;;  %v14594_v31 = vpop.xlane.xlu1 %5187 }
 0x5e0   : > { %10730 = vpow2.f32 %v4921_v37  ;;  %6978 = vmatmul.mubr.f32.gmra.mrb[164].mxu1 %v5581_v19  ;;  %v14582_v54 = vpop.f32.mrb[130].mxu0  ;;  %v17018_v50 = vpack.c.bf16 %v17016_v49, %v17017_v16  ;;  %v17020_v19 = vld [vmem:[#allocation101_spill] sm:$0xff]  ;;  %v17023_v49 = vld [vmem:[#allocation42_spill] sm:$0xff] }
 0x5e1   : > { %v14579_v10 = vpop.eup %10716  ;;  %10732 = vrcp.f32 %v14171_v59  ;;  %v4923_v53 = vmul.f32 1.442695, %v4451_v23  ;;  %v4925_v52 = vmul.f32 1.442695, %v4452_v17  ;;  %6982 = vmatprep.mubr.f32.mxu1 %v5584_v39  ;;  %5316 = vadd.xlane.f32.xlu1 %v5315_v22  ;;  %v14589_v51 = vpop.f32.mrb[131].mxu0  ;;  %v5583_v3 = vmul.f32 %v10709_v41, %v17020_v19  ;;  %v17021_v59 = vld [vmem:[#allocation170_spill] sm:$0xff] }
 0x5e2   : > { %17015 = vst [vmem:[#allocation152_spill] sm:$0xff] %v14579_v10  ;;  %9750 = vmatpush1.bf16.msra.mxu1 %v17018_v50  ;;  %v14587_v43 = vpop.eup %10718  ;;  %v4180_v37 = vpop.xlane.xlu0 %4179  ;;  %v5586_v23 = vmul.f32 %v10715_v47, %v17021_v59  ;;  %v17022_v39 = vld [vmem:[#allocation158_spill] sm:$0xff] }
 0x5e3   : > { %17019 = vst [vmem:[#allocation51_spill] sm:$0xff] %v14587_v43  ;;  %9751 = vmatprep.subr.bf16.mxu1 %v16970_v20  ;;  %v10721_v17 = vpop.eup %10720  ;;  %10734 = vpow2.f32 %v4923_v53  ;;  %v4453_v56 = vsub.f32 %v17022_v39, %v4180_v37  ;;  %v4454_v16 = vsub.f32 %v17023_v49, %v4180_v37  ;;  %v5318_v50 = vadd.f32 %v14587_v43, %v14579_v10  ;;  %v17025_v19 = vld [vmem:[#allocation98_spill] sm:$0xff]  ;;  %v17026_v53 = vld [vmem:[#allocation71_spill] sm:$0xff]  ;;  %v17032_v43 = vld [vmem:[#allocation44_spill] sm:$0xff] }
 0x5e4   : > { %10736 = vpow2.f32 %v4925_v52  ;;  %6983 = vmatmul.mubr.f32.gmra.mrb[166].mxu1 %v5583_v3  ;;  %v14605_v38 = vpop.f32.mrb[132].mxu0  ;;  %v17027_v39 = vld [vmem:[#allocation115_spill] sm:$0xff]  ;;  %v17030_v3 = vld [vmem:[#allocation5_spill] sm:$0xff] }
 0x5e5   : > { %v14602_v41 = vpop.eup %10722  ;;  %10738 = vrcp.f32 %v17025_v19  ;;  %v4927_v59 = vmul.f32 1.442695, %v4453_v56  ;;  %v4929_v21 = vmul.f32 1.442695, %v4454_v16  ;;  %6987 = vmatprep.mubr.f32.mxu1 %v5586_v23  ;;  %v17028_v37 = vpack.c.bf16 %v17026_v53, %v17027_v39  ;;  %5319 = vadd.xlane.f32.xlu1 %v5318_v50  ;;  %v14612_v22 = vpop.f32.mrb[133].mxu0  ;;  %v17031_v19 = vld [vmem:[#allocation172_spill] sm:$0xff] }
 0x5e6   : > { %17024 = vst [vmem:[#allocation68_spill] sm:$0xff] %v14602_v41  ;;  %v14610_v49 = vpop.eup %10724  ;;  %v4183_v52 = vpop.xlane.xlu0 %4182  ;;  %v5585_v10 = vmul.f32 %v10715_v47, %v17030_v3  ;;  %v5588_v56 = vmul.f32 %v10721_v17, %v17031_v19  ;;  %v17039_v53 = vld [vmem:[#allocation7_spill] sm:$0xff] }
 0x5e7   : > { %9753 = vmatpush1.bf16.msra.mxu1 %v17028_v37  ;;  %17029 = vst [vmem:[#allocation109_spill] sm:$0xff] %v14610_v49  ;;  %v10727_v16 = vpop.eup %10726  ;;  %10740 = vpow2.f32 %v4927_v59  ;;  %v4455_v23 = vsub.f32 %v17032_v43, %v4183_v52  ;;  %v4456_v24 = vsub.f32 %v17033_v34, %v4183_v52  ;;  %v5321_v50 = vadd.f32 %v14610_v49, %v14602_v41  ;;  %v14626_v47 = vpop.xlane.xlu1 %5190  ;;  %v17035_v34 = vld [vmem:[#allocation70_spill] sm:$0xff] }
 0x5e8   : > { %9754 = vmatprep.subr.bf16.mxu1 %v16970_v20  ;;  %10742 = vpow2.f32 %v4929_v21  ;;  %6988 = vmatmul.mubr.f32.gmra.mrb[168].mxu1 %v5585_v10  ;;  %v14628_v3 = vpop.f32.mrb[134].mxu0  ;;  %v17036_v43 = vld [vmem:[#allocation118_spill] sm:$0xff]  ;;  %v5587_v41 = vmul.f32 %v10721_v17, %v17039_v53 }
 0x5e9   : > { %v14623_v39 = vpop.eup %10728  ;;  %10744 = vrcp.f32 %v14203_v48  ;;  %v4931_v37 = vmul.f32 1.442695, %v4455_v23  ;;  %v4933_v59 = vmul.f32 1.442695, %v4456_v24  ;;  %6992 = vmatprep.mubr.f32.mxu1 %v5588_v56  ;;  %v17037_v52 = vpack.c.bf16 %v17035_v34, %v17036_v43  ;;  %5322 = vadd.xlane.f32.xlu0 %v5321_v50  ;;  %v14635_v19 = vpop.f32.mrb[135].mxu0  ;;  %v17040_v48 = vld [vmem:[#allocation174_spill] sm:$0xff] }
 0x5ea   : > { %17034 = vst [vmem:[#allocation99_spill] sm:$0xff] %v14623_v39  ;;  %v14633_v21 = vpop.eup %10730  ;;  %v4186_v10 = vpop.xlane.xlu0 %4185  ;;  %v5590_v23 = vmul.f32 %v10727_v16, %v17040_v48  ;;  %v17041_v49 = vld [vmem:[#allocation46_spill] sm:$0xff] }
 0x5eb   : > { %9756 = vmatpush1.bf16.msra.mxu1 %v17037_v52  ;;  %17038 = vst [vmem:[#allocation168_spill] sm:$0xff] %v14633_v21  ;;  %v10733_v24 = vpop.eup %10732  ;;  %10746 = vpow2.f32 %v4931_v37  ;;  %v4457_v56 = vsub.f32 %v17041_v49, %v4186_v10  ;;  %v4458_v63 = vsub.f32 %v17042_v15, %v4186_v10  ;;  %v5324_v50 = vadd.f32 %v14633_v21, %v14623_v39  ;;  %v17044_v17 = vld [vmem:[#allocation78_spill] sm:$0xff]  ;;  %v17046_v37 = vld [vmem:[#allocation121_spill] sm:$0xff]  ;;  %v14661_v21 = vpop.xlane.xlu1 %5193 }
 0x5ec   : > { %9757 = vmatprep.subr.bf16.mxu1 %v16970_v20  ;;  %10748 = vpow2.f32 %v4933_v59  ;;  %6993 = vmatmul.mubr.f32.gmra.mrb[170].mxu1 %v5587_v41  ;;  %v14649_v48 = vpop.f32.mrb[136].mxu0  ;;  %v17045_v49 = vld [vmem:[#allocation74_spill] sm:$0xff]  ;;  %v17049_v41 = vld [vmem:[#allocation9_spill] sm:$0xff] }
 0x5ed   : > { %v14646_v43 = vpop.eup %10734  ;;  %10750 = vrcp.f32 %v17044_v17  ;;  %v4935_v53 = vmul.f32 1.442695, %v4457_v56  ;;  %v4937_v52 = vmul.f32 1.442695, %v4458_v63  ;;  %6997 = vmatprep.mubr.f32.mxu1 %v5590_v23  ;;  %v17047_v15 = vpack.c.bf16 %v17045_v49, %v17046_v37  ;;  %5325 = vadd.xlane.f32.xlu1 %v5324_v50  ;;  %v14656_v34 = vpop.f32.mrb[137].mxu0  ;;  %v17050_v17 = vld [vmem:[#allocation176_spill] sm:$0xff] }
 0x5ee   : > { %17043 = vst [vmem:[#allocation40_spill] sm:$0xff] %v14646_v43  ;;  %v14654_v10 = vpop.eup %10736  ;;  %v4189_v59 = vpop.xlane.xlu0 %4188  ;;  %v5589_v39 = vmul.f32 %v10727_v16, %v17049_v41  ;;  %v5592_v56 = vmul.f32 %v10733_v24, %v17050_v17  ;;  %v17051_v23 = vld [vmem:[#allocation48_spill] sm:$0xff]  ;;  %v17052_v49 = vld [vmem:[#allocation162_spill] sm:$0xff]  ;;  %v17058_v50 = vld [vmem:[#allocation11_spill] sm:$0xff] }
 0x5ef   : > { %9759 = vmatpush1.bf16.msra.mxu1 %v17047_v15  ;;  %17048 = vst [vmem:[#allocation155_spill] sm:$0xff] %v14654_v10  ;;  %v10739_v63 = vpop.eup %10738  ;;  %10752 = vpow2.f32 %v4935_v53  ;;  %v4459_v11 = vsub.f32 %v17051_v23, %v4189_v59  ;;  %v4460_v37 = vsub.f32 %v17052_v49, %v4189_v59  ;;  %v5327_v16 = vadd.f32 %v14654_v10, %v14646_v43  ;;  %v17054_v53 = vld [vmem:[#allocation73_spill] sm:$0xff]  ;;  %v17055_v23 = vld [vmem:[#allocation124_spill] sm:$0xff]  ;;  %v17060_v10 = vld [vmem:[#allocation50_spill] sm:$0xff] }
 0x5f0   : > { %9760 = vmatprep.subr.bf16.mxu1 %v16970_v20  ;;  %10754 = vpow2.f32 %v4937_v52  ;;  %6998 = vmatmul.mubr.f32.gmra.mrb[172].mxu1 %v5589_v39  ;;  %v14672_v30 = vpop.f32.mrb[138].mxu0  ;;  %v17056_v59 = vpack.c.bf16 %v17054_v53, %v17055_v23  ;;  %v5591_v43 = vmul.f32 %v10733_v24, %v17058_v50  ;;  %v17063_v24 = vld [vmem:[#allocation14_spill] sm:$0xff]  ;;  %v14693_v50 = vpop.xlane.xlu1 %5196 }
 0x5f1   : > { %v14669_v15 = vpop.eup %10740  ;;  %10756 = vrcp.f32 %v14235_v42  ;;  %v4939_v41 = vmul.f32 1.442695, %v4459_v11  ;;  %v4941_v17 = vmul.f32 1.442695, %v4460_v37  ;;  %7002 = vmatprep.mubr.f32.mxu1 %v5592_v56  ;;  %5328 = vadd.xlane.f32.xlu0 %v5327_v16  ;;  %v14679_v52 = vpop.f32.mrb[139].mxu0  ;;  %v17059_v42 = vld [vmem:[#allocation178_spill] sm:$0xff] }
 0x5f2   : > { %17053 = vst [vmem:[#allocation67_spill] sm:$0xff] %v14669_v15  ;;  %v14677_v49 = vpop.eup %10742  ;;  %v4192_v39 = vpop.xlane.xlu0 %4191  ;;  %v5594_v11 = vmul.f32 %v10739_v63, %v17059_v42 }
 0x5f3   : > { %9762 = vmatpush1.bf16.msra.mxu1 %v17056_v59  ;;  %17057 = vst [vmem:[#allocation112_spill] sm:$0xff] %v14677_v49  ;;  %v10745_v37 = vpop.eup %10744  ;;  %10758 = vpow2.f32 %v4939_v41  ;;  %v4461_v56 = vsub.f32 %v17060_v10, %v4192_v39  ;;  %v4462_v18 = vsub.f32 %v17061_v55, %v4192_v39  ;;  %v5330_v16 = vadd.f32 %v14677_v49, %v14669_v15  ;;  %v17064_v55 = vld [vmem:[#allocation77_spill] sm:$0xff]  ;;  %v17065_v10 = vld [vmem:[#allocation127_spill] sm:$0xff] }
 0x5f4   : > { %9763 = vmatprep.subr.bf16.mxu1 %v16970_v20  ;;  %10760 = vpow2.f32 %v4941_v17  ;;  %7003 = vmatmul.mubr.f32.gmra.mrb[174].mxu1 %v5591_v43  ;;  %v14695_v42 = vpop.f32.mrb[140].mxu0  ;;  %v17066_v39 = vpack.c.bf16 %v17064_v55, %v17065_v10  ;;  %v17068_v15 = vld [vmem:[#allocation13_spill] sm:$0xff]  ;;  %v17078_v55 = vld [vmem:[#allocation15_spill] sm:$0xff] }
 0x5f5   : > { %v14690_v23 = vpop.eup %10746  ;;  %10762 = vrcp.f32 %v17063_v24  ;;  %v4943_v59 = vmul.f32 1.442695, %v4461_v56  ;;  %v4945_v41 = vmul.f32 1.442695, %v4462_v18  ;;  %7007 = vmatprep.mubr.f32.mxu1 %v5594_v11  ;;  %5331 = vadd.xlane.f32.xlu1 %v5330_v16  ;;  %v14702_v43 = vpop.f32.mrb[141].mxu0  ;;  %v5593_v49 = vmul.f32 %v10739_v63, %v17068_v15  ;;  %v17069_v24 = vld [vmem:[#allocation18_spill] sm:$0xff] }
 0x5f6   : > { %17062 = vst [vmem:[#allocation101_spill] sm:$0xff] %v14690_v23  ;;  %v14700_v17 = vpop.eup %10748  ;;  %v4195_v53 = vpop.xlane.xlu0 %4194  ;;  %v5596_v56 = vmul.f32 %v10745_v37, %v17069_v24  ;;  %v17073_v63 = vld [vmem:[#allocation93_spill] sm:$0xff] }
 0x5f7   : > { %9765 = vmatpush1.bf16.msra.mxu1 %v17066_v39  ;;  %17067 = vst [vmem:[#allocation170_spill] sm:$0xff] %v14700_v17  ;;  %v10751_v18 = vpop.eup %10750  ;;  %10764 = vpow2.f32 %v4943_v59  ;;  %v4463_v11 = vsub.f32 %v17070_v33, %v4195_v53  ;;  %v4464_v60 = vsub.f32 %v17071_v14, %v4195_v53  ;;  %v5333_v16 = vadd.f32 %v14700_v17, %v14690_v23  ;;  %v17074_v33 = vld [vmem:[#allocation76_spill] sm:$0xff]  ;;  %v17075_v59 = vld [vmem:[#allocation130_spill] sm:$0xff]  ;;  %v14728_v17 = vpop.xlane.xlu1 %5199 }
 0x5f8   : > { %9766 = vmatprep.subr.bf16.mxu1 %v16970_v20  ;;  %10766 = vpow2.f32 %v4945_v41  ;;  %7008 = vmatmul.mubr.f32.gmra.mrb[176].mxu1 %v5593_v49  ;;  %v14716_v24 = vpop.f32.mrb[142].mxu0  ;;  %v17076_v14 = vpack.c.bf16 %v17074_v33, %v17075_v59  ;;  %v5595_v23 = vmul.f32 %v10745_v37, %v17078_v55  ;;  %v17081_v33 = vld [vmem:[#allocation53_spill] sm:$0xff] }
 0x5f9   : > { %v14713_v10 = vpop.eup %10752  ;;  %10768 = vrcp.f32 %v17073_v63  ;;  %v4947_v15 = vmul.f32 1.442695, %v4463_v11  ;;  %v4949_v39 = vmul.f32 1.442695, %v4464_v60  ;;  %7012 = vmatprep.mubr.f32.mxu1 %v5596_v56  ;;  %5334 = vadd.xlane.f32.xlu0 %v5333_v16  ;;  %v14723_v41 = vpop.f32.mrb[143].mxu0  ;;  %v17079_v63 = vld [vmem:[#allocation17_spill] sm:$0xff] }
 0x5fa   : > { %17072 = vst [vmem:[#allocation158_spill] sm:$0xff] %v14713_v10  ;;  %v14721_v53 = vpop.eup %10754  ;;  %v4198_v49 = vpop.xlane.xlu0 %4197  ;;  %v5598_v11 = vmul.f32 %v10751_v18, %v17079_v63  ;;  %v17080_v56 = vld [vmem:[#allocation165_spill] sm:$0xff] }
 0x5fb   : > { %9768 = vmatpush1.bf16.msra.mxu1 %v17076_v14  ;;  %17077 = vst [vmem:[#allocation42_spill] sm:$0xff] %v14721_v53  ;;  %v10757_v60 = vpop.eup %10756  ;;  %10770 = vpow2.f32 %v4947_v15  ;;  %v4465_v28 = vsub.f32 %v17080_v56, %v4198_v49  ;;  %v4466_v59 = vsub.f32 %v17081_v33, %v4198_v49  ;;  %v5336_v14 = vadd.f32 %v14721_v53, %v14713_v10  ;;  %v17083_v15 = vld [vmem:[#allocation80_spill] sm:$0xff]  ;;  %v17084_v56 = vld [vmem:[#allocation135_spill] sm:$0xff] }
 0x5fc   : > { %9769 = vmatprep.subr.bf16.mxu1 %v16970_v20  ;;  %10772 = vpow2.f32 %v4949_v39  ;;  %7013 = vmatmul.mubr.f32.gmra.mrb[178].mxu1 %v5595_v23  ;;  %v14739_v26 = vpop.f32.mrb[144].mxu0  ;;  %v17085_v49 = vpack.c.bf16 %v17083_v15, %v17084_v56  ;;  %v17087_v23 = vld [vmem:[#allocation96_spill] sm:$0xff]  ;;  %v17089_v53 = vld [vmem:[#allocation55_spill] sm:$0xff] }
 0x5fd   : > { %v14736_v37 = vpop.eup %10758  ;;  %10774 = vrcp.f32 %v14287_v32  ;;  %v4951_v55 = vmul.f32 1.442695, %v4465_v28  ;;  %v4953_v63 = vmul.f32 1.442695, %v4466_v59  ;;  %7017 = vmatprep.mubr.f32.mxu1 %v5598_v11  ;;  %5337 = vadd.xlane.f32.xlu1 %v5336_v14  ;;  %v14746_v16 = vpop.f32.mrb[145].mxu0  ;;  %v5597_v10 = vmul.f32 %v10751_v18, %v17087_v23  ;;  %v17088_v32 = vld [vmem:[#allocation22_spill] sm:$0xff] }
 0x5fe   : > { %17082 = vst [vmem:[#allocation98_spill] sm:$0xff] %v14736_v37  ;;  %v14744_v33 = vpop.eup %10760  ;;  %v4201_v39 = vpop.xlane.xlu0 %4200  ;;  %v5600_v28 = vmul.f32 %v10757_v60, %v17088_v32  ;;  %v17092_v18 = vld [vmem:[#allocation183_spill] sm:$0xff] }
 0x5ff   : > { %9771 = vmatpush1.bf16.msra.mxu1 %v17085_v49  ;;  %17086 = vst [vmem:[#allocation71_spill] sm:$0xff] %v14744_v33  ;;  %v10763_v59 = vpop.eup %10762  ;;  %10776 = vpow2.f32 %v4951_v55  ;;  %v4467_v11 = vsub.f32 %v17089_v53, %v4201_v39  ;;  %v4468_v1 = vsub.f32 %v17090_v40, %v4201_v39  ;;  %v5339_v14 = vadd.f32 %v14744_v33, %v14736_v37  ;;  %v14760_v49 = vpop.xlane.xlu1 %5202  ;;  %v17093_v40 = vld [vmem:[#allocation79_spill] sm:$0xff]  ;;  %v17094_v53 = vld [vmem:[#allocation38_spill] sm:$0xff] }
 0x600   : > { %9772 = vmatprep.subr.bf16.mxu1 %v16970_v20  ;;  %10778 = vpow2.f32 %v4953_v63  ;;  %7018 = vmatmul.mubr.f32.gmra.mrb[180].mxu1 %v5597_v10  ;;  %v17095_v39 = vpack.c.bf16 %v17093_v40, %v17094_v53  ;;  %v17098_v37 = vld [vmem:[#allocation103_spill] sm:$0xff] }
 0x601   : > { %v14757_v56 = vpop.eup %10764  ;;  %10780 = vrcp.f32 %v17092_v18  ;;  %v4955_v23 = vmul.f32 1.442695, %v4467_v11  ;;  %v4957_v55 = vmul.f32 1.442695, %v4468_v1  ;;  %v14762_v32 = vpop.f32.mrb[146].mxu0  ;;  %7022 = vmatprep.mubr.f32.mxu1 %v5600_v28  ;;  %5340 = vadd.xlane.f32.xlu0 %v5339_v14  ;;  %v5599_v33 = vmul.f32 %v10757_v60, %v17098_v37  ;;  %v17099_v18 = vld [vmem:[#allocation24_spill] sm:$0xff] }
 0x602   : > { %17091 = vst [vmem:[#allocation115_spill] sm:$0xff] %v14757_v56  ;;  %v14767_v63 = vpop.eup %10766  ;;  %v4204_v10 = vpop.xlane.xlu0 %4203  ;;  %v5602_v11 = vmul.f32 %v10763_v59, %v17099_v18 }
 0x603   : > { %9774 = vmatpush1.bf16.msra.mxu1 %v17095_v39  ;;  %17096 = vst [vmem:[#allocation5_spill] sm:$0xff] %v14767_v63  ;;  %v14769_v15 = vpop.f32.mrb[147].mxu0  ;;  %v10769_v1 = vpop.eup %10768  ;;  %10782 = vpow2.f32 %v4955_v23  ;;  %v4469_v28 = vsub.f32 %v17100_v25, %v4204_v10  ;;  %v4470_v8 = vsub.f32 %v17101_v5, %v4204_v10  ;;  %v5342_v14 = vadd.f32 %v14767_v63, %v14757_v56  ;;  %v17104_v25 = vld [vmem:[#allocation83_spill] sm:$0xff]  ;;  %v17105_v23 = vld [vmem:[#allocation37_spill] sm:$0xff] }
 0x604   : > { %17097 = vst [vmem:[#allocation172_spill] sm:$0xff] %v14769_v15  ;;  %9775 = vmatprep.subr.bf16.mxu1 %v16970_v20  ;;  %10784 = vpow2.f32 %v4957_v55  ;;  %7023 = vmatmul.mubr.f32.gmra.mrb[182].mxu1 %v5599_v33  ;;  %v17106_v5 = vpack.c.bf16 %v17104_v25, %v17105_v23  ;;  %v17109_v33 = vld [vmem:[#allocation59_spill] sm:$0xff]  ;;  %v14795_v56 = vpop.xlane.xlu1 %5205  ;;  %v17112_v25 = vld [vmem:[#allocation8_spill] sm:$0xff] }
 0x605   : > { %v14780_v53 = vpop.eup %10770  ;;  %10786 = vrcp.f32 %v14333_v58  ;;  %v4959_v60 = vmul.f32 1.442695, %v4469_v28  ;;  %v4961_v37 = vmul.f32 1.442695, %v4470_v8  ;;  %v14783_v39 = vpop.f32.mrb[148].mxu0  ;;  %7027 = vmatprep.mubr.f32.mxu1 %v5602_v11  ;;  %5343 = vadd.xlane.f32.xlu1 %v5342_v14  ;;  %v5601_v40 = vmul.f32 %v10763_v59, %v17109_v33  ;;  %v17110_v58 = vld [vmem:[#allocation26_spill] sm:$0xff] }
 0x606   : > { %17102 = vst [vmem:[#allocation44_spill] sm:$0xff] %v14780_v53  ;;  %17103 = vst [vmem:[#allocation160_spill] sm:$0xff] %v14783_v39  ;;  %v14788_v10 = vpop.eup %10772  ;;  %v4207_v55 = vpop.xlane.xlu0 %4206  ;;  %v5604_v28 = vmul.f32 %v10769_v1, %v17110_v58  ;;  %v17111_v11 = vld [vmem:[#allocation169_spill] sm:$0xff] }
 0x607   : > { %9777 = vmatpush1.bf16.msra.mxu1 %v17106_v5  ;;  %17107 = vst [vmem:[#allocation70_spill] sm:$0xff] %v14788_v10  ;;  %v14790_v18 = vpop.f32.mrb[149].mxu0  ;;  %v10775_v8 = vpop.eup %10774  ;;  %10788 = vpow2.f32 %v4959_v60  ;;  %v4471_v63 = vsub.f32 %v17111_v11, %v4207_v55  ;;  %v4472_v23 = vsub.f32 %v17112_v25, %v4207_v55  ;;  %v5345_v59 = vadd.f32 %v14788_v10, %v14780_v53  ;;  %v17115_v60 = vld [vmem:[#allocation82_spill] sm:$0xff]  ;;  %v17116_v11 = vld [vmem:[#allocation39_spill] sm:$0xff]  ;;  %v17120_v53 = vld [vmem:[#allocation25_spill] sm:$0xff] }
 0x608   : > { %17108 = vst [vmem:[#allocation118_spill] sm:$0xff] %v14790_v18  ;;  %9778 = vmatprep.subr.bf16.mxu1 %v16970_v20  ;;  %10790 = vpow2.f32 %v4961_v37  ;;  %7028 = vmatmul.mubr.f32.gmra.mrb[184].mxu1 %v5601_v40  ;;  %v17117_v55 = vpack.c.bf16 %v17115_v60, %v17116_v11  ;;  %v17119_v37 = vld [vmem:[#allocation58_spill] sm:$0xff]  ;;  %v5606_v10 = vmul.f32 %v10775_v8, %v17120_v53  ;;  %v17122_v18 = vld [vmem:[#allocation173_spill] sm:$0xff]  ;;  %v14827_v53 = vpop.xlane.xlu1 %5208 }
 0x609   : > { %v14803_v5 = vpop.eup %10776  ;;  %10792 = vrcp.f32 %v14357_v0  ;;  %v4963_v33 = vmul.f32 1.442695, %v4471_v63  ;;  %v4965_v58 = vmul.f32 1.442695, %v4472_v23  ;;  %v14806_v15 = vpop.f32.mrb[150].mxu0  ;;  %7032 = vmatprep.mubr.f32.mxu1 %v5604_v28  ;;  %5346 = vadd.xlane.f32.xlu0 %v5345_v59  ;;  %v5603_v14 = vmul.f32 %v10769_v1, %v17119_v37  ;;  %v17121_v63 = vld [vmem:[#allocation84_spill] sm:$0xff] }
 0x60a   : > { %17113 = vst [vmem:[#allocation7_spill] sm:$0xff] %v14803_v5  ;;  %17114 = vst [vmem:[#allocation174_spill] sm:$0xff] %v14806_v15  ;;  %v14811_v25 = vpop.eup %10778  ;;  %v4210_v40 = vpop.xlane.xlu0 %4209 }
 0x60b   : > { %9780 = vmatpush1.bf16.msra.mxu1 %v17117_v55  ;;  %17118 = vst [vmem:[#allocation46_spill] sm:$0xff] %v14811_v25  ;;  %v10781_v0 = vpop.eup %10780  ;;  %10794 = vpow2.f32 %v4963_v33  ;;  %v4473_v23 = vsub.f32 %v17121_v63, %v4210_v40  ;;  %v4474_v28 = vsub.f32 %v17122_v18, %v4210_v40  ;;  %v14818_v39 = vpop.f32.mrb[151].mxu0  ;;  %v5348_v60 = vadd.f32 %v14811_v25, %v14803_v5  ;;  %v17127_v40 = vld [vmem:[#allocation86_spill] sm:$0xff]  ;;  %v17131_v5 = vld [vmem:[#allocation27_spill] sm:$0xff] }
 0x60c   : > { %9781 = vmatprep.subr.bf16.mxu1 %v16970_v20  ;;  %17123 = vst [vmem:[#allocation161_spill] sm:$0xff] %v14818_v39  ;;  %10796 = vpow2.f32 %v4965_v58  ;;  %7033 = vmatmul.mubr.f32.gmra.mrb[186].mxu1 %v5603_v14  ;;  %v17128_v58 = vld [vmem:[#allocation41_spill] sm:$0xff]  ;;  %v17130_v14 = vld [vmem:[#allocation106_spill] sm:$0xff]  ;;  %v5608_v25 = vmul.f32 %v10781_v0, %v17131_v5  ;;  %v17132_v39 = vld [vmem:[#allocation12_spill] sm:$0xff] }
 0x60d   : > { %v14824_v1 = vpop.eup %10782  ;;  %10798 = vrcp.f32 %v14373_v44  ;;  %v4967_v33 = vmul.f32 1.442695, %v4473_v23  ;;  %v4969_v11 = vmul.f32 1.442695, %v4474_v28  ;;  %5349 = vadd.xlane.f32.xlu1 %v5348_v60  ;;  %v14829_v18 = vpop.f32.mrb[152].mxu0  ;;  %7037 = vmatprep.mubr.f32.mxu1 %v5606_v10  ;;  %v17129_v37 = vpack.c.bf16 %v17127_v40, %v17128_v58  ;;  %v17133_v28 = vld [vmem:[#allocation177_spill] sm:$0xff] }
 0x60e   : > { %17124 = vst [vmem:[#allocation78_spill] sm:$0xff] %v14824_v1  ;;  %17125 = vst [vmem:[#allocation74_spill] sm:$0xff] %v14829_v18  ;;  %v14831_v55 = vpop.eup %10784  ;;  %v4213_v63 = vpop.xlane.xlu0 %4212  ;;  %v5605_v59 = vmul.f32 %v10775_v8, %v17130_v14 }
 0x60f   : > { %17126 = vst [vmem:[#allocation121_spill] sm:$0xff] %v14831_v55  ;;  %9783 = vmatpush1.bf16.msra.mxu1 %v17129_v37  ;;  %v10787_v44 = vpop.eup %10786  ;;  %10800 = vpow2.f32 %v4967_v33  ;;  %v4475_v23 = vsub.f32 %v17132_v39, %v4213_v63  ;;  %v4476_v60 = vsub.f32 %v17133_v28, %v4213_v63  ;;  %v14840_v15 = vpop.f32.mrb[153].mxu0  ;;  %v5351_v10 = vadd.f32 %v14831_v55, %v14824_v1  ;;  %v17137_v37 = vld [vmem:[#allocation153_spill] sm:$0xff]  ;;  %v17138_v63 = vld [vmem:[#allocation43_spill] sm:$0xff] }
 0x610   : > { %17134 = vst [vmem:[#allocation9_spill] sm:$0xff] %v14840_v15  ;;  %9784 = vmatprep.subr.bf16.mxu1 %v16970_v20  ;;  %10802 = vpow2.f32 %v4969_v11  ;;  %7038 = vmatmul.mubr.f32.gmra.mrb[188].mxu1 %v5605_v59  ;;  %v17139_v14 = vpack.c.bf16 %v17137_v37, %v17138_v63  ;;  %v17140_v28 = vld [vmem:[#allocation107_spill] sm:$0xff]  ;;  %v17141_v59 = vld [vmem:[#allocation32_spill] sm:$0xff]  ;;  %v14859_v15 = vpop.xlane.xlu1 %5211 }
 0x611   : > { %v14847_v8 = vpop.eup %10788  ;;  %10804 = vrcp.f32 %v14390_v46  ;;  %v4971_v5 = vmul.f32 1.442695, %v4475_v23  ;;  %v4973_v39 = vmul.f32 1.442695, %v4476_v60  ;;  %5352 = vadd.xlane.f32.xlu0 %v5351_v10  ;;  %v14850_v33 = vpop.f32.mrb[154].mxu0  ;;  %7042 = vmatprep.mubr.f32.mxu1 %v5608_v25  ;;  %v5607_v40 = vmul.f32 %v10781_v0, %v17140_v28  ;;  %v17142_v46 = vld [vmem:[#allocation179_spill] sm:$0xff] }
 0x612   : > { %17135 = vst [vmem:[#allocation176_spill] sm:$0xff] %v14847_v8  ;;  %v14852_v58 = vpop.eup %10790  ;;  %v4216_v11 = vpop.xlane.xlu0 %4215  ;;  %v5610_v1 = vmul.f32 %v10787_v44, %v17141_v59  ;;  %v17143_v60 = vld [vmem:[#allocation20_spill] sm:$0xff]  ;;  %v17149_v59 = vld [vmem:[#allocation45_spill] sm:$0xff] }
 0x613   : > { %17136 = vst [vmem:[#allocation48_spill] sm:$0xff] %v14852_v58  ;;  %9786 = vmatpush1.bf16.msra.mxu1 %v17139_v14  ;;  %v10793_v55 = vpop.eup %10792  ;;  %10806 = vpow2.f32 %v4971_v5  ;;  %v4477_v23 = vsub.f32 %v17142_v46, %v4216_v11  ;;  %v4478_v10 = vsub.f32 %v17143_v60, %v4216_v11  ;;  %v14863_v25 = vpop.f32.mrb[155].mxu0  ;;  %v5354_v18 = vadd.f32 %v14852_v58, %v14847_v8  ;;  %v17148_v28 = vld [vmem:[#allocation156_spill] sm:$0xff]  ;;  %v17151_v60 = vld [vmem:[#allocation65_spill] sm:$0xff] }
 0x614   : > { %17144 = vst [vmem:[#allocation162_spill] sm:$0xff] %v14863_v25  ;;  %9787 = vmatprep.subr.bf16.mxu1 %v16970_v20  ;;  %10808 = vpow2.f32 %v4973_v39  ;;  %7043 = vmatmul.mubr.f32.gmra.mrb[190].mxu1 %v5607_v40  ;;  %v17150_v46 = vpack.c.bf16 %v17148_v28, %v17149_v59  ;;  %v5609_v0 = vmul.f32 %v10787_v44, %v17151_v60  ;;  %v17152_v40 = vld [vmem:[#allocation34_spill] sm:$0xff]  ;;  %v17157_v60 = vld [vmem:[#allocation159_spill] sm:$0xff] }
 0x615   : > { %v14870_v37 = vpop.eup %10794  ;;  %10810 = vrcp.f32 %v14404_v12  ;;  %v4975_v5 = vmul.f32 1.442695, %v4477_v23  ;;  %v4977_v63 = vmul.f32 1.442695, %v4478_v10  ;;  %5355 = vadd.xlane.f32.xlu1 %v5354_v18  ;;  %v14873_v14 = vpop.f32.mrb[156].mxu0  ;;  %7047 = vmatprep.mubr.f32.mxu1 %v5610_v1  ;;  %v5612_v8 = vmul.f32 %v10793_v55, %v17152_v40  ;;  %v17153_v12 = vld [vmem:[#allocation104_spill] sm:$0xff] }
 0x616   : > { %17145 = vst [vmem:[#allocation73_spill] sm:$0xff] %v14870_v37  ;;  %17146 = vst [vmem:[#allocation124_spill] sm:$0xff] %v14873_v14  ;;  %v14875_v11 = vpop.eup %10796  ;;  %v4219_v39 = vpop.xlane.xlu0 %4218  ;;  %v17154_v10 = vld [vmem:[#allocation105_spill] sm:$0xff]  ;;  %v17158_v40 = vld [vmem:[#allocation47_spill] sm:$0xff] }
 0x617   : > { %17147 = vst [vmem:[#allocation11_spill] sm:$0xff] %v14875_v11  ;;  %9789 = vmatpush1.bf16.msra.mxu1 %v17150_v46  ;;  %v10799_v58 = vpop.eup %10798  ;;  %10812 = vpow2.f32 %v4975_v5  ;;  %v4479_v23 = vsub.f32 %v17153_v12, %v4219_v39  ;;  %v4480_v18 = vsub.f32 %v17154_v10, %v4219_v39  ;;  %v14884_v25 = vpop.f32.mrb[157].mxu0  ;;  %v5357_v1 = vadd.f32 %v14875_v11, %v14870_v37  ;;  %v17160_v10 = vld [vmem:[#allocation64_spill] sm:$0xff]  ;;  %v17163_v14 = vld [vmem:[#allocation181_spill] sm:$0xff] }
 0x618   : > { %17155 = vst [vmem:[#allocation178_spill] sm:$0xff] %v14884_v25  ;;  %9790 = vmatprep.subr.bf16.mxu1 %v16970_v20  ;;  %10814 = vpow2.f32 %v4977_v63  ;;  %7048 = vmatmul.mubr.f32.gmra.mrb[192].mxu1 %v5609_v0  ;;  %v14894_v5 = vpop.xlane.xlu1 %5214  ;;  %v17159_v12 = vpack.c.bf16 %v17157_v60, %v17158_v40  ;;  %v5611_v28 = vmul.f32 %v10793_v55, %v17160_v10  ;;  %v17161_v0 = vld [vmem:[#allocation110_spill] sm:$0xff]  ;;  %v17165_v40 = vld [vmem:[#allocation111_spill] sm:$0xff] }
 0x619   : > { %v14891_v44 = vpop.eup %10800  ;;  %10816 = vrcp.f32 %v14421_v13  ;;  %v4979_v59 = vmul.f32 1.442695, %v4479_v23  ;;  %v4981_v46 = vmul.f32 1.442695, %v4480_v18  ;;  %5358 = vadd.xlane.f32.xlu0 %v5357_v1  ;;  %7052 = vmatprep.mubr.f32.mxu1 %v5612_v8  ;;  %v5614_v37 = vmul.f32 %v10799_v58, %v17161_v0  ;;  %v17162_v13 = vld [vmem:[#allocation62_spill] sm:$0xff] }
 0x61a   : > { %17156 = vst [vmem:[#allocation50_spill] sm:$0xff] %v14891_v44  ;;  %v14896_v39 = vpop.eup %10802  ;;  %v4222_v63 = vpop.xlane.xlu0 %4221 }
 0x61b   : > { %9792 = vmatpush1.bf16.msra.mxu1 %v17159_v12  ;;  %v10805_v11 = vpop.eup %10804  ;;  %10818 = vpow2.f32 %v4979_v59  ;;  %v4481_v25 = vsub.f32 %v17162_v13, %v4222_v63  ;;  %v4482_v23 = vsub.f32 %v17163_v14, %v4222_v63  ;;  %v5360_v8 = vadd.f32 %v14896_v39, %v14891_v44  ;;  %v17166_v12 = vld [vmem:[#allocation36_spill] sm:$0xff] }
 0x61c   : > { %9793 = vmatprep.subr.bf16.mxu1 %v16970_v20  ;;  %10820 = vpow2.f32 %v4981_v46  ;;  %7053 = vmatmul.mubr.f32.gmra.mrb[194].mxu1 %v5611_v28  ;;  %v5613_v14 = vmul.f32 %v10799_v58, %v17165_v40  ;;  %v5616_v63 = vmul.f32 %v10805_v11, %v17166_v12  ;;  %v14915_v0 = vpop.xlane.xlu1 %5217  ;;  %v17167_v28 = vld [vmem:[#allocation28_spill] sm:$0xff]  ;;  %v17171_v12 = vld [vmem:[#allocation113_spill] sm:$0xff] }
 0x61d   : > { %v14908_v18 = vpop.eup %10806  ;;  %10822 = vrcp.f32 %v14435_v35  ;;  %v4983_v55 = vmul.f32 1.442695, %v4481_v25  ;;  %v4985_v1 = vmul.f32 1.442695, %v4482_v23  ;;  %5361 = vadd.xlane.f32.xlu1 %v5360_v8  ;;  %7057 = vmatprep.mubr.f32.mxu1 %v5614_v37  ;;  %v17168_v13 = vld [vmem:[#allocation184_spill] sm:$0xff] }
 0x61e   : > { %17164 = vst [vmem:[#allocation163_spill] sm:$0xff] %v14908_v18  ;;  %v14911_v59 = vpop.eup %10808  ;;  %v4225_v60 = vpop.xlane.xlu0 %4224 }
 0x61f   : > { %v10811_v10 = vpop.eup %10810  ;;  %10824 = vpow2.f32 %v4983_v55  ;;  %v4483_v46 = vsub.f32 %v17167_v28, %v4225_v60  ;;  %v4484_v44 = vsub.f32 %v17168_v13, %v4225_v60  ;;  %v5363_v35 = vadd.f32 %v14911_v59, %v14908_v18  ;;  %v17170_v55 = vld [vmem:[#allocation33_spill] sm:$0xff]  ;;  %v17172_v13 = vld [vmem:[#allocation30_spill] sm:$0xff] }
 0x620   : > { %10826 = vpow2.f32 %v4985_v1  ;;  %7058 = vmatmul.mubr.f32.gmra.mrb[196].mxu1 %v5613_v14  ;;  %v5615_v40 = vmul.f32 %v10805_v11, %v17170_v55  ;;  %v5618_v60 = vmul.f32 %v10811_v10, %v17171_v12  ;;  %v17173_v14 = vld [vmem:[#allocation186_spill] sm:$0xff]  ;;  %v17176_v12 = vld [vmem:[#allocation117_spill] sm:$0xff] }
 0x621   : > { %v14921_v25 = vpop.eup %10812  ;;  %v4987_v37 = vmul.f32 1.442695, %v4483_v46  ;;  %v4989_v23 = vmul.f32 1.442695, %v4484_v44  ;;  %5364 = vadd.xlane.f32.xlu0 %v5363_v35  ;;  %7062 = vmatprep.mubr.f32.mxu1 %v5616_v63  ;;  %10828 = vrcp.f32 %v14452_v7  ;;  %v14934_v46 = vpop.xlane.xlu1 %5220  ;;  %v17175_v55 = vld [vmem:[#allocation114_spill] sm:$0xff] }
 0x622   : > { %17169 = vst [vmem:[#allocation14_spill] sm:$0xff] %v14921_v25  ;;  %v14923_v58 = vpop.eup %10814  ;;  %v4228_v8 = vpop.xlane.xlu0 %4227 }
 0x623   : > { %v10817_v28 = vpop.eup %10816  ;;  %10830 = vpow2.f32 %v4987_v37  ;;  %v4485_v1 = vsub.f32 %v17172_v13, %v4228_v8  ;;  %v4486_v18 = vsub.f32 %v17173_v14, %v4228_v8  ;;  %v5366_v44 = vadd.f32 %v14923_v58, %v14921_v25 }
 0x624   : > { %10832 = vpow2.f32 %v4989_v23  ;;  %7063 = vmatmul.mubr.f32.gmra.mrb[198].mxu1 %v5615_v40  ;;  %v5617_v8 = vmul.f32 %v10811_v10, %v17175_v55  ;;  %v5620_v13 = vmul.f32 %v10817_v28, %v17176_v12  ;;  %v17177_v40 = vld [vmem:[#allocation31_spill] sm:$0xff]  ;;  %v17179_v55 = vld [vmem:[#allocation120_spill] sm:$0xff] }
 0x625   : > { %v14932_v63 = vpop.eup %10818  ;;  %v4991_v7 = vmul.f32 1.442695, %v4485_v1  ;;  %v4993_v35 = vmul.f32 1.442695, %v4486_v18  ;;  %5367 = vadd.xlane.f32.xlu1 %v5366_v44  ;;  %7067 = vmatprep.mubr.f32.mxu1 %v5618_v60  ;;  %10834 = vrcp.f32 %v14466_v57  ;;  %v14952_v12 = vpop.xlane.xlu1 %5223 }
 0x626   : > { %17174 = vst [vmem:[#allocation77_spill] sm:$0xff] %v14932_v63  ;;  %v14936_v11 = vpop.eup %10820  ;;  %v4231_v37 = vpop.xlane.xlu0 %4230 }
 0x627   : > { %v10823_v14 = vpop.eup %10822  ;;  %10836 = vpow2.f32 %v4991_v7  ;;  %v4487_v23 = vsub.f32 %v14339_v9, %v4231_v37  ;;  %v4488_v25 = vsub.f32 %v17177_v40, %v4231_v37  ;;  %v5369_v18 = vadd.f32 %v14936_v11, %v14932_v63  ;;  %v17178_v7 = vld [vmem:[#allocation35_spill] sm:$0xff] }
 0x628   : > { %10838 = vpow2.f32 %v4993_v35  ;;  %7068 = vmatmul.mubr.f32.gmra.mrb[200].mxu1 %v5617_v8  ;;  %v5619_v9 = vmul.f32 %v10817_v28, %v17178_v7  ;;  %v5622_v37 = vmul.f32 %v10823_v14, %v17179_v55  ;;  %v17180_v35 = vld [vmem:[#allocation189_spill] sm:$0xff]  ;;  %v17181_v40 = vld [vmem:[#allocation191_spill] sm:$0xff] }
 0x629   : > { %v14945_v60 = vpop.eup %10824  ;;  %v4995_v1 = vmul.f32 1.442695, %v4487_v23  ;;  %v4997_v57 = vmul.f32 1.442695, %v4488_v25  ;;  %5370 = vadd.xlane.f32.xlu0 %v5369_v18  ;;  %7072 = vmatprep.mubr.f32.mxu1 %v5620_v13  ;;  %10840 = vrcp.f32 %v14483_v27  ;;  %v17183_v55 = vld [vmem:[#allocation123_spill] sm:$0xff] }
 0x62a   : > { %v14947_v10 = vpop.eup %10826  ;;  %v4234_v44 = vpop.xlane.xlu0 %4233 }
 0x62b   : > { %10842 = vpow2.f32 %v4995_v1  ;;  %v4489_v8 = vsub.f32 %v17180_v35, %v4234_v44  ;;  %v4490_v63 = vsub.f32 %v17181_v40, %v4234_v44  ;;  %v5372_v25 = vadd.f32 %v14947_v10, %v14945_v60  ;;  %v10829_v13 = vpop.eup %10828  ;;  %v17182_v1 = vld [vmem:[#allocation116_spill] sm:$0xff] }
 0x62c   : > { %10844 = vpow2.f32 %v4997_v57  ;;  %7073 = vmatmul.mubr.f32.gmra.mrb[202].mxu1 %v5619_v9  ;;  %v5621_v7 = vmul.f32 %v10823_v14, %v17182_v1  ;;  %v5624_v35 = vmul.f32 %v10829_v13, %v17183_v55  ;;  %v17185_v40 = vld [vmem:[#allocation132_spill] sm:$0xff]  ;;  %v17189_v55 = vld [vmem:[#allocation126_spill] sm:$0xff] }
 0x62d   : > { %v14958_v23 = vpop.eup %10830  ;;  %v4999_v27 = vmul.f32 1.442695, %v4489_v8  ;;  %v5001_v18 = vmul.f32 1.442695, %v4490_v63  ;;  %5373 = vadd.xlane.f32.xlu1 %v5372_v25  ;;  %7077 = vmatprep.mubr.f32.mxu1 %v5622_v37  ;;  %10846 = vrcp.f32 %v14497_v4  ;;  %v14969_v63 = vpop.xlane.xlu1 %5226  ;;  %v17184_v4 = vld [vmem:[#allocation119_spill] sm:$0xff] }
 0x62e   : > { %v14960_v28 = vpop.eup %10832  ;;  %v5623_v14 = vmul.f32 %v10829_v13, %v17184_v4 }
 0x62f   : > { %10848 = vpow2.f32 %v4999_v27  ;;  %v5375_v44 = vadd.f32 %v14960_v28, %v14958_v23  ;;  %v10835_v57 = vpop.eup %10834 }
 0x630   : > { %10850 = vpow2.f32 %v5001_v18  ;;  %7078 = vmatmul.mubr.f32.gmra.mrb[204].mxu1 %v5621_v7  ;;  %v5626_v25 = vmul.f32 %v10835_v57, %v17185_v40  ;;  %v17188_v7 = vld [vmem:[#allocation122_spill] sm:$0xff] }
 0x631   : > { %v14967_v9 = vpop.eup %10836  ;;  %5376 = vadd.xlane.f32.xlu0 %v5375_v44  ;;  %7082 = vmatprep.mubr.f32.mxu1 %v5624_v35  ;;  %10852 = vrcp.f32 %v14516_v6  ;;  %v5625_v44 = vmul.f32 %v10835_v57, %v17188_v7  ;;  %v14984_v6 = vpop.xlane.xlu1 %5229 }
 0x632   : > { %v14971_v37 = vpop.eup %10838  ;;  %10854 = vrcp.f32 %v14531_v45  ;;  %v17192_v45 = vld [vmem:[#allocation134_spill] sm:$0xff] }
 0x633   : > { %v5378_v8 = vadd.f32 %v14971_v37, %v14967_v9  ;;  %v10841_v27 = vpop.eup %10840  ;;  %10856 = vrcp.f32 %v14559_v2 }
 0x634   : > { %7083 = vmatmul.mubr.f32.gmra.mrb[206].mxu1 %v5623_v14  ;;  %v5628_v35 = vmul.f32 %v10841_v27, %v17189_v55  ;;  %v5627_v40 = vmul.f32 %v10841_v27, %v17192_v45  ;;  %10858 = vrcp.f32 %v14594_v31  ;;  %v17196_v27 = vld [vmem:[#allocation139_spill] sm:$0xff]  ;;  %v17198_v31 = vld [vmem:[#allocation128_spill] sm:$0xff] }
 0x635   : > { %v14978_v18 = vpop.eup %10842  ;;  %5379 = vadd.xlane.f32.xlu1 %v5378_v8  ;;  %7087 = vmatprep.mubr.f32.mxu1 %v5626_v25  ;;  %v17193_v25 = vld [vmem:[#allocation137_spill] sm:$0xff]  ;;  %v14998_v55 = vpop.xlane.xlu1 %5232  ;;  %10860 = vrcp.f32 %v14626_v47  ;;  %v17200_v47 = vld [vmem:[#allocation143_spill] sm:$0xff] }
 0x636   : > { %17186 = vst [vmem:[#allocation127_spill] sm:$0xff] %v14978_v18  ;;  %v14980_v1 = vpop.eup %10844  ;;  %10862 = vrcp.f32 %v14661_v21  ;;  %v17202_v21 = vld [vmem:[#allocation131_spill] sm:$0xff] }
 0x637   : > { %17187 = vst [vmem:[#allocation13_spill] sm:$0xff] %v14980_v1  ;;  %v5381_v13 = vadd.f32 %v14980_v1, %v14978_v18  ;;  %v10847_v4 = vpop.eup %10846  ;;  %10864 = vrcp.f32 %v14693_v50  ;;  %v17204_v50 = vld [vmem:[#allocation146_spill] sm:$0xff] }
 0x638   : > { %7088 = vmatmul.mubr.f32.gmra.mrb[208].mxu1 %v5625_v44  ;;  %v5630_v7 = vmul.f32 %v10847_v4, %v17193_v25  ;;  %v17194_v44 = vld [vmem:[#allocation125_spill] sm:$0xff]  ;;  %10866 = vrcp.f32 %v14728_v17  ;;  %v17206_v17 = vld [vmem:[#allocation60_spill] sm:$0xff] }
 0x639   : > { %v14989_v14 = vpop.eup %10848  ;;  %5382 = vadd.xlane.f32.xlu0 %v5381_v13  ;;  %7092 = vmatprep.mubr.f32.mxu1 %v5628_v35  ;;  %v5629_v13 = vmul.f32 %v10847_v4, %v17194_v44  ;;  %v17195_v35 = vld [vmem:[#allocation129_spill] sm:$0xff]  ;;  %v15005_v25 = vpop.xlane.xlu1 %5235  ;;  %10868 = vrcp.f32 %v14760_v49  ;;  %v17208_v49 = vld [vmem:[#allocation136_spill] sm:$0xff] }
 0x63a   : > { %17190 = vst [vmem:[#allocation18_spill] sm:$0xff] %v14989_v14  ;;  %v14991_v8 = vpop.eup %10850  ;;  %10870 = vrcp.f32 %v14795_v56  ;;  %v17210_v56 = vpack.c.bf16 %v14540_v62, %v14544_v36  ;;  %v17214_v62 = vld [vmem:[#allocation150_spill] sm:$0xff] }
 0x63b   : > { %17191 = vst [vmem:[#allocation49_spill] sm:$0xff] %v14991_v8  ;;  %v5384_v57 = vadd.f32 %v14991_v8, %v14989_v14  ;;  %v10853_v18 = vpop.eup %10852  ;;  %10872 = vrcp.f32 %v14827_v53  ;;  %v17212_v53 = vld [vmem:[#allocation145_spill] sm:$0xff] }
 0x63c   : > { %7093 = vmatmul.mubr.f32.gmra.mrb[210].mxu1 %v5627_v40  ;;  %v5632_v1 = vmul.f32 %v10853_v18, %v17195_v35  ;;  %v10855_v2 = vpop.eup %10854  ;;  %v5631_v45 = vmul.f32 %v10853_v18, %v17196_v27  ;;  %v17197_v40 = vld [vmem:[#allocation141_spill] sm:$0xff]  ;;  %10874 = vrcp.f32 %v14859_v15 }
 0x63d   : > { %5385 = vadd.xlane.f32.xlu1 %v5384_v57  ;;  %7097 = vmatprep.mubr.f32.mxu1 %v5630_v7  ;;  %v5634_v14 = vmul.f32 %v10855_v2, %v17197_v40  ;;  %v10857_v8 = vpop.eup %10856  ;;  %v5633_v4 = vmul.f32 %v10855_v2, %v17198_v31  ;;  %v17199_v57 = vld [vmem:[#allocation133_spill] sm:$0xff]  ;;  %10876 = vrcp.f32 %v14894_v5 }
 0x63e   : > { %v5636_v7 = vmul.f32 %v10857_v8, %v17199_v57  ;;  %v10859_v44 = vpop.eup %10858  ;;  %v5635_v18 = vmul.f32 %v10857_v8, %v17200_v47  ;;  %v17215_v15 = vld [vmem:[#allocation89_spill] sm:$0xff]  ;;  %10878 = vrcp.f32 %v14915_v0  ;;  %v17221_v0 = vld [vmem:[#allocation154_spill] sm:$0xff] }
 0x63f   : > { %v10861_v27 = vpop.eup %10860  ;;  %10880 = vrcp.f32 %v14934_v46  ;;  %v17224_v46 = vld [vmem:[#allocation157_spill] sm:$0xff] }
 0x640   : > { %7098 = vmatmul.mubr.f32.gmra.mrb[212].mxu1 %v5629_v13  ;;  %v17201_v13 = vld [vmem:[#allocation144_spill] sm:$0xff]  ;;  %v10863_v31 = vpop.eup %10862  ;;  %v5639_v8 = vmul.f32 %v10861_v27, %v17204_v50  ;;  %10882 = vrcp.f32 %v14952_v12 }
 0x641   : > { %7102 = vmatprep.mubr.f32.mxu1 %v5632_v1  ;;  %v15011_v1 = vpop.xlane.xlu1 %5238  ;;  %v5638_v35 = vmul.f32 %v10859_v44, %v17201_v13  ;;  %10884 = vrcp.f32 %v14969_v63  ;;  %v17230_v63 = vld [vmem:[#allocation92_spill] sm:$0xff] }
 0x642   : > { %10886 = vrcp.f32 %v14984_v6  ;;  %v17233_v6 = vld [vmem:[#allocation91_spill] sm:$0xff] }
 0x643   : > { %10888 = vrcp.f32 %v14998_v55 }
 0x644   : > { %7103 = vmatmul.mubr.f32.gmra.mrb[214].mxu1 %v5631_v45  ;;  %v17203_v45 = vld [vmem:[#allocation138_spill] sm:$0xff]  ;;  %10890 = vrcp.f32 %v15005_v25  ;;  %v17239_v25 = vld [vmem:[#allocation87_spill] sm:$0xff] }
 0x645   : > { %7107 = vmatprep.mubr.f32.mxu1 %v5634_v14  ;;  %v5637_v14 = vmul.f32 %v10859_v44, %v17202_v21  ;;  %v15018_v2 = vpop.xlane.xlu1 %5241  ;;  %v5640_v40 = vmul.f32 %v10861_v27, %v17203_v45  ;;  %v5641_v44 = vmul.f32 %v10863_v31, %v17206_v17  ;;  %10892 = vrcp.f32 %v15011_v1  ;;  %v17243_v1 = vld [vmem:[#allocation97_spill] sm:$0xff] }
 0x646   : > { %10894 = vrcp.f32 %v15018_v2 }
 0x648   : > { %7108 = vmatmul.mubr.f32.gmra.mrb[216].mxu1 %v5633_v4  ;;  %v17205_v4 = vld [vmem:[#allocation63_spill] sm:$0xff] }
 0x649   : > { %7112 = vmatprep.mubr.f32.mxu1 %v5636_v7  ;;  %v5642_v57 = vmul.f32 %v10863_v31, %v17205_v4  ;;  %v10865_v7 = vpop.eup %10864  ;;  %v15024_v47 = vpop.xlane.xlu1 %5244  ;;  %v17211_v31 = vld [vmem:[#allocation149_spill] sm:$0xff] }
 0x64a   : > { %v5643_v27 = vmul.f32 %v10865_v7, %v17208_v49  ;;  %10896 = vrcp.f32 %v15024_v47  ;;  %v17252_v47 = vld [vmem:[#allocation6_spill] sm:$0xff] }
 0x64c   : > { %7113 = vmatmul.mubr.f32.gmra.mrb[218].mxu1 %v5635_v18  ;;  %v17207_v18 = vld [vmem:[#allocation147_spill] sm:$0xff] }
 0x64d   : > { %7117 = vmatprep.mubr.f32.mxu1 %v5638_v35  ;;  %v5644_v13 = vmul.f32 %v10865_v7, %v17207_v18  ;;  %v10867_v35 = vpop.eup %10866  ;;  %v15031_v21 = vpop.xlane.xlu1 %5247  ;;  %v17213_v7 = vpack.c.bf16 %v14561_v29, %v14568_v61  ;;  %v17216_v18 = vpack.c.bf16 %v14582_v54, %v14589_v51  ;;  %v17217_v29 = vld [vmem:[#allocation85_spill] sm:$0xff]  ;;  %v17220_v54 = vld [vmem:[#allocation148_spill] sm:$0xff] }
 0x64e   : > { %v5645_v50 = vmul.f32 %v10867_v35, %v17211_v31  ;;  %10898 = vrcp.f32 %v15031_v21 }
 0x650   : > { %7118 = vmatmul.mubr.f32.gmra.mrb[220].mxu1 %v5637_v14  ;;  %v17209_v14 = vld [vmem:[#allocation140_spill] sm:$0xff] }
 0x651   : > { %7122 = vmatprep.mubr.f32.mxu1 %v5640_v40  ;;  %v5646_v45 = vmul.f32 %v10867_v35, %v17209_v14  ;;  %v10869_v40 = vpop.eup %10868 }
 0x652   : > { %v10871_v4 = vpop.eup %10870  ;;  %v5647_v36 = vmul.f32 %v10869_v40, %v17214_v62  ;;  %v17228_v62 = vpack.c.bf16 %v14672_v30, %v14679_v52  ;;  %v17232_v30 = vld [vmem:[#allocation57_spill] sm:$0xff] }
 0x653   : > { %v5650_v17 = vmul.f32 %v10871_v4, %v17215_v15  ;;  %v5649_v61 = vmul.f32 %v10871_v4, %v17217_v29 }
 0x654   : > { %7123 = vmatmul.mubr.f32.gmra.mrb[222].mxu1 %v5639_v8  ;;  %v5648_v8 = vmul.f32 %v10869_v40, %v17212_v53  ;;  %v17225_v53 = vpack.c.bf16 %v14649_v48, %v14656_v34  ;;  %v17229_v34 = vld [vmem:[#allocation56_spill] sm:$0xff] }
 0x655   : > { %7127 = vmatprep.mubr.f32.mxu1 %v5642_v57  ;;  %v15041_v57 = vpop.xlane.xlu1 %5250 }
 0x656   : > { %10900 = vrcp.f32 %v15041_v57 }
 0x658   : > { %7128 = vmatmul.mubr.f32.gmra.mrb[224].mxu1 %v5641_v44  ;;  %v10873_v44 = vpop.eup %10872 }
 0x659   : > { %7197 = vmatprep.mubr.f32.mxu1 %v5644_v13  ;;  %v15056_v5 = vpop.xlane.xlu1 %5253  ;;  %v17218_v13 = vld [vmem:[#allocation151_spill] sm:$0xff]  ;;  %v10875_v49 = vpop.eup %10874  ;;  %v5651_v51 = vmul.f32 %v10873_v44, %v17220_v54 }
 0x65a   : > { %v5652_v35 = vmul.f32 %v10873_v44, %v17218_v13  ;;  %v5654_v14 = vmul.f32 %v10875_v49, %v17221_v0  ;;  %v17231_v44 = vpack.c.bf16 %v14695_v42, %v14702_v43  ;;  %v17235_v42 = vld [vmem:[#allocation69_spill] sm:$0xff]  ;;  %v17236_v13 = vld [vmem:[#allocation95_spill] sm:$0xff]  ;;  %10902 = vrcp.f32 %v15056_v5 }
 0x65c   : > { %7198 = vmatmul.mubr.f32.vlgmr.msra.gmra.mrb[162].mxu1 %v5643_v27  ;;  %v17219_v27 = vpack.c.bf16 %v14605_v38, %v14612_v22  ;;  %v17223_v38 = vld [vmem:[#allocation52_spill] sm:$0xff] }
 0x65d   : > { %9795 = vmatpush1.bf16.msra.mxu1 %v17210_v56  ;;  %7202 = vmatprep.mubr.f32.mxu1 %v5646_v45  ;;  %v10877_v45 = vpop.eup %10876  ;;  %v15066_v40 = vpop.xlane.xlu1 %5256  ;;  %v17222_v56 = vpack.c.bf16 %v14628_v3, %v14635_v19  ;;  %v5653_v22 = vmul.f32 %v10875_v49, %v17223_v38  ;;  %v17226_v3 = vld [vmem:[#allocation54_spill] sm:$0xff] }
 0x65e   : > { %9796 = vmatprep.subr.bf16.mxu1 %v16970_v20  ;;  %v5656_v31 = vmul.f32 %v10877_v45, %v17224_v46  ;;  %v5655_v19 = vmul.f32 %v10877_v45, %v17226_v3  ;;  %v17245_v46 = vld [vmem:[#allocation118_spill] sm:$0xff]  ;;  %10904 = vrcp.f32 %v15066_v40  ;;  %v17270_v40 = vld [vmem:[#allocation180_spill] sm:$0xff] }
 0x660   : > { %7203 = vmatmul.mubr.f32.gmra.mrb[164].mxu1 %v5645_v50  ;;  %v10879_v50 = vpop.eup %10878 }
 0x661   : > { %9798 = vmatpush1.bf16.msra.mxu1 %v17213_v7  ;;  %7207 = vmatprep.mubr.f32.mxu1 %v5648_v8  ;;  %v15081_v12 = vpop.xlane.xlu1 %5259  ;;  %v17227_v8 = vld [vmem:[#allocation88_spill] sm:$0xff]  ;;  %v10881_v7 = vpop.eup %10880  ;;  %v5657_v48 = vmul.f32 %v10879_v50, %v17229_v34  ;;  %v17253_v34 = vld [vmem:[#allocation10_spill] sm:$0xff] }
 0x662   : > { %9799 = vmatprep.subr.bf16.mxu1 %v16970_v20  ;;  %v5658_v4 = vmul.f32 %v10879_v50, %v17227_v8  ;;  %v10883_v15 = vpop.eup %10882  ;;  %v5659_v52 = vmul.f32 %v10881_v7, %v17232_v30  ;;  %v17249_v8 = vld [vmem:[#allocation174_spill] sm:$0xff]  ;;  %10906 = vrcp.f32 %v15081_v12  ;;  %v17272_v12 = vld [vmem:[#allocation61_spill] sm:$0xff] }
 0x663   : > { %v10885_v29 = vpop.eup %10884  ;;  %v5661_v43 = vmul.f32 %v10883_v15, %v17235_v42 }
 0x664   : > { %7208 = vmatmul.mubr.f32.gmra.mrb[166].mxu1 %v5647_v36  ;;  %v5660_v36 = vmul.f32 %v10881_v7, %v17230_v63  ;;  %v10887_v49 = vpop.eup %10886 }
 0x665   : > { %9801 = vmatpush1.bf16.msra.mxu1 %v17216_v18  ;;  %7212 = vmatprep.mubr.f32.mxu1 %v5650_v17  ;;  %v15091_v17 = vpop.xlane.xlu1 %5262  ;;  %v5662_v18 = vmul.f32 %v10883_v15, %v17233_v6  ;;  %v5666_v54 = vmul.f32 %v10887_v49, %v17239_v25  ;;  %v17254_v15 = vld [vmem:[#allocation74_spill] sm:$0xff]  ;;  %v17258_v6 = vld [vmem:[#allocation16_spill] sm:$0xff] }
 0x666   : > { %9802 = vmatprep.subr.bf16.mxu1 %v16970_v20  ;;  %10908 = vrcp.f32 %v15091_v17  ;;  %v17274_v17 = vld [vmem:[#allocation29_spill] sm:$0xff] }
 0x668   : > { %7213 = vmatmul.mubr.f32.gmra.mrb[168].mxu1 %v5649_v61  ;;  %v17234_v61 = vpack.c.bf16 %v14716_v24, %v14723_v41  ;;  %v17238_v24 = vld [vmem:[#allocation75_spill] sm:$0xff] }
 0x669   : > { %9804 = vmatpush1.bf16.msra.mxu1 %v17219_v27  ;;  %7217 = vmatprep.mubr.f32.mxu1 %v5652_v35  ;;  %v15106_v55 = vpop.xlane.xlu1 %5265  ;;  %v5664_v35 = vmul.f32 %v10885_v29, %v17236_v13  ;;  %v17237_v27 = vpack.c.bf16 %v14739_v26, %v14746_v16  ;;  %v5663_v41 = vmul.f32 %v10885_v29, %v17238_v24  ;;  %v17242_v26 = vld [vmem:[#allocation94_spill] sm:$0xff]  ;;  %v17263_v24 = vld [vmem:[#allocation124_spill] sm:$0xff] }
 0x66a   : > { %9805 = vmatprep.subr.bf16.mxu1 %v16970_v20  ;;  %v5665_v16 = vmul.f32 %v10887_v49, %v17242_v26  ;;  %10910 = vrcp.f32 %v15106_v55  ;;  %v17276_v55 = vld [vmem:[#allocation108_spill] sm:$0xff] }
 0x66c   : > { %7218 = vmatmul.mubr.f32.gmra.mrb[170].mxu1 %v5651_v51  ;;  %v10889_v51 = vpop.eup %10888 }
 0x66d   : > { %9807 = vmatpush1.bf16.msra.mxu1 %v17222_v56  ;;  %7222 = vmatprep.mubr.f32.mxu1 %v5654_v14  ;;  %v15116_v0 = vpop.xlane.xlu1 %5268  ;;  %v17240_v14 = vld [vmem:[#allocation172_spill] sm:$0xff]  ;;  %v5668_v56 = vmul.f32 %v10889_v51, %v17243_v1  ;;  %v10891_v38 = vpop.eup %10890 }
 0x66e   : > { %9808 = vmatprep.subr.bf16.mxu1 %v16970_v20  ;;  %v17241_v45 = vpack.c.bf16 %v14762_v32, %v17240_v14  ;;  %v17247_v32 = vld [vmem:[#allocation102_spill] sm:$0xff]  ;;  %10912 = vrcp.f32 %v15116_v0 }
 0x66f   : > { %v5667_v50 = vmul.f32 %v10889_v51, %v17247_v32  ;;  %v17267_v51 = vld [vmem:[#allocation23_spill] sm:$0xff] }
 0x670   : > { %7223 = vmatmul.mubr.f32.gmra.mrb[172].mxu1 %v5653_v22  ;;  %v17244_v22 = vld [vmem:[#allocation160_spill] sm:$0xff] }
 0x671   : > { %9810 = vmatpush1.bf16.msra.mxu1 %v17225_v53  ;;  %7227 = vmatprep.mubr.f32.mxu1 %v5656_v31  ;;  %v17246_v31 = vpack.c.bf16 %v17244_v22, %v17245_v46  ;;  %v15131_v2 = vpop.xlane.xlu1 %5271  ;;  %v17248_v53 = vld [vmem:[#allocation81_spill] sm:$0xff] }
 0x672   : > { %9811 = vmatprep.subr.bf16.mxu1 %v16970_v20  ;;  %v5670_v3 = vmul.f32 %v10891_v38, %v17248_v53  ;;  %v17271_v46 = vld [vmem:[#allocation185_spill] sm:$0xff]  ;;  %v17273_v53 = vld [vmem:[#allocation187_spill] sm:$0xff]  ;;  %10914 = vrcp.f32 %v15131_v2 }
 0x674   : > { %7228 = vmatmul.mubr.f32.gmra.mrb[174].mxu1 %v5655_v19  ;;  %v10893_v19 = vpop.eup %10892 }
 0x675   : > { %9813 = vmatpush1.bf16.msra.mxu1 %v17228_v62  ;;  %7232 = vmatprep.mubr.f32.mxu1 %v5658_v4  ;;  %v17250_v4 = vld [vmem:[#allocation161_spill] sm:$0xff]  ;;  %v5669_v62 = vmul.f32 %v10891_v38, %v17252_v47  ;;  %v10895_v63 = vpop.eup %10894 }
 0x676   : > { %9814 = vmatprep.subr.bf16.mxu1 %v16970_v20  ;;  %v17251_v7 = vpack.c.bf16 %v17249_v8, %v17250_v4  ;;  %v10897_v29 = vpop.eup %10896 }
 0x678   : > { %7233 = vmatmul.mubr.f32.gmra.mrb[176].mxu1 %v5657_v48  ;;  %v5672_v48 = vmul.f32 %v10893_v19, %v17253_v34 }
 0x679   : > { %9816 = vmatpush1.bf16.msra.mxu1 %v17231_v44  ;;  %7237 = vmatprep.mubr.f32.mxu1 %v5660_v36  ;;  %v5275_v36 = vpop.xlane.xlu1 %5274  ;;  %v17255_v44 = vld [vmem:[#allocation9_spill] sm:$0xff] }
 0x67a   : > { %9817 = vmatprep.subr.bf16.mxu1 %v16970_v20  ;;  %v17256_v30 = vpack.c.bf16 %v17254_v15, %v17255_v44  ;;  %10916 = vrcp.f32 %v5275_v36 }
 0x67c   : > { %7238 = vmatmul.mubr.f32.gmra.mrb[178].mxu1 %v5659_v52  ;;  %v17257_v52 = vld [vmem:[#allocation171_spill] sm:$0xff] }
 0x67d   : > { %9819 = vmatpush1.bf16.msra.mxu1 %v17234_v61  ;;  %7242 = vmatprep.mubr.f32.mxu1 %v5662_v18  ;;  %v5671_v21 = vmul.f32 %v10893_v19, %v17257_v52  ;;  %v5674_v18 = vmul.f32 %v10895_v63, %v17258_v6  ;;  %v17259_v61 = vld [vmem:[#allocation162_spill] sm:$0xff]  ;;  %v5278_v57 = vpop.xlane.xlu1 %5277 }
 0x67e   : > { %9820 = vmatprep.subr.bf16.mxu1 %v16970_v20  ;;  %v17260_v42 = vpack.c.bf16 %v14850_v33, %v17259_v61  ;;  %v17266_v33 = vld [vmem:[#allocation90_spill] sm:$0xff]  ;;  %10918 = vrcp.f32 %v5278_v57  ;;  %v17281_v61 = vld [vmem:[#allocation196_spill] sm:$0xff] }
 0x67f   : > { %v17279_v52 = vld [vmem:[#allocation194_spill] sm:$0xff]  ;;  %v17285_v57 = vld [vmem:[#allocation200_spill] sm:$0xff] }
 0x680   : > { %7243 = vmatmul.mubr.f32.gmra.mrb[180].mxu1 %v5661_v43  ;;  %v17261_v43 = vld [vmem:[#allocation175_spill] sm:$0xff] }
 0x681   : > { %9822 = vmatpush1.bf16.msra.mxu1 %v17237_v27  ;;  %7247 = vmatprep.mubr.f32.mxu1 %v5664_v35  ;;  %v5673_v13 = vmul.f32 %v10895_v63, %v17261_v43  ;;  %v17262_v35 = vld [vmem:[#allocation19_spill] sm:$0xff]  ;;  %v10899_v27 = vpop.eup %10898  ;;  %v17277_v63 = vld [vmem:[#allocation192_spill] sm:$0xff] }
 0x682   : > { %9823 = vmatprep.subr.bf16.mxu1 %v16970_v20  ;;  %v5676_v49 = vmul.f32 %v10897_v29, %v17262_v35  ;;  %v5678_v5 = vmul.f32 %v10899_v27, %v17267_v51  ;;  %v10901_v14 = vpop.eup %10900 }
 0x683   : > { %v5679_v38 = vmul.f32 %v10901_v14, %v17270_v40  ;;  %v17289_v40 = vld [vmem:[#allocation204_spill] sm:$0xff] }
 0x684   : > { %7248 = vmatmul.mubr.f32.gmra.mrb[182].mxu1 %v5663_v41  ;;  %v17264_v41 = vld [vmem:[#allocation178_spill] sm:$0xff] }
 0x685   : > { %9825 = vmatpush1.bf16.msra.mxu1 %v17241_v45  ;;  %7252 = vmatprep.mubr.f32.mxu1 %v5666_v54  ;;  %v17265_v25 = vpack.c.bf16 %v17263_v24, %v17264_v41  ;;  %v5675_v54 = vmul.f32 %v10897_v29, %v17266_v33  ;;  %v17268_v45 = vld [vmem:[#allocation21_spill] sm:$0xff] }
 0x686   : > { %9826 = vmatprep.subr.bf16.mxu1 %v16970_v20  ;;  %v5677_v26 = vmul.f32 %v10899_v27, %v17268_v45  ;;  %v17280_v29 = vld [vmem:[#allocation193_spill] sm:$0xff] }
 0x687   : > { %v17284_v41 = vld [vmem:[#allocation197_spill] sm:$0xff] }
 0x688   : > { %7253 = vmatmul.mubr.f32.gmra.mrb[184].mxu1 %v5665_v16  ;;  %v17269_v16 = vld [vmem:[#allocation182_spill] sm:$0xff] }
 0x689   : > { %9828 = vmatpush1.bf16.msra.mxu1 %v17246_v31  ;;  %7257 = vmatprep.mubr.f32.mxu1 %v5668_v56  ;;  %v5680_v1 = vmul.f32 %v10901_v14, %v17269_v16  ;;  %v10903_v56 = vpop.eup %10902  ;;  %v17288_v16 = vld [vmem:[#allocation201_spill] sm:$0xff] }
 0x68a   : > { %9829 = vmatprep.subr.bf16.mxu1 %v16970_v20  ;;  %v5682_v31 = vmul.f32 %v10903_v56, %v17271_v46  ;;  %v10905_v32 = vpop.eup %10904  ;;  %v17290_v46 = vld [vmem:[#allocation203_spill] sm:$0xff] }
 0x68b   : > { %v10907_v19 = vpop.eup %10906  ;;  %v5683_v4 = vmul.f32 %v10905_v32, %v17274_v17 }
 0x68c   : > { %7258 = vmatmul.mubr.f32.gmra.mrb[186].mxu1 %v5667_v50  ;;  %v5681_v50 = vmul.f32 %v10903_v56, %v17272_v12  ;;  %v5685_v34 = vmul.f32 %v10907_v19, %v17276_v55  ;;  %v17295_v55 = vld [vmem:[#allocation210_spill] sm:$0xff] }
 0x68d   : > { %9831 = vmatpush1.bf16.msra.mxu1 %v17251_v7  ;;  %7262 = vmatprep.mubr.f32.mxu1 %v5670_v3  ;;  %v5684_v3 = vmul.f32 %v10905_v32, %v17273_v53  ;;  %v17275_v7 = vld [vmem:[#allocation188_spill] sm:$0xff]  ;;  %v17291_v32 = vld [vmem:[#allocation206_spill] sm:$0xff] }
 0x68e   : > { %9832 = vmatprep.subr.bf16.mxu1 %v16970_v20  ;;  %v5686_v47 = vmul.f32 %v10907_v19, %v17275_v7  ;;  %v17294_v7 = vld [vmem:[#allocation207_spill] sm:$0xff] }
 0x690   : > { %7263 = vmatmul.mubr.f32.gmra.mrb[188].mxu1 %v5669_v62  ;;  %v10909_v62 = vpop.eup %10908 }
 0x691   : > { %9834 = vmatpush1.bf16.msra.mxu1 %v17256_v30  ;;  %7267 = vmatprep.mubr.f32.mxu1 %v5672_v48  ;;  %v5688_v15 = vmul.f32 %v10909_v62, %v17277_v63  ;;  %v10911_v44 = vpop.eup %10910  ;;  %v17278_v30 = vld [vmem:[#allocation190_spill] sm:$0xff]  ;;  %v17296_v63 = vld [vmem:[#allocation209_spill] sm:$0xff] }
 0x692   : > { %9835 = vmatprep.subr.bf16.mxu1 %v16970_v20  ;;  %v5687_v0 = vmul.f32 %v10909_v62, %v17278_v30  ;;  %v10913_v6 = vpop.eup %10912  ;;  %v5689_v2 = vmul.f32 %v10911_v44, %v17280_v29 }
 0x693   : > { %v10915_v43 = vpop.eup %10914 }
 0x694   : > { %7268 = vmatmul.mubr.f32.gmra.mrb[190].mxu1 %v5671_v21  ;;  %v5690_v21 = vmul.f32 %v10911_v44, %v17279_v52  ;;  %v10917_v24 = vpop.eup %10916  ;;  %v17297_v44 = vld [vmem:[#allocation212_spill] sm:$0xff] }
 0x695   : > { %9837 = vmatpush1.bf16.msra.mxu1 %v17260_v42  ;;  %7272 = vmatprep.mubr.f32.mxu1 %v5674_v18  ;;  %v5692_v42 = vmul.f32 %v10913_v6, %v17281_v61  ;;  %v5696_v33 = vmul.f32 %v10917_v24, %v17285_v57  ;;  %v17300_v61 = vld [vmem:[#allocation213_spill] sm:$0xff] }
 0x696   : > { %9838 = vmatprep.subr.bf16.mxu1 %v16970_v20  ;;  %v5281_v20 = vpop.xlane.xlu1 %5280 }
 0x697   : > { %10920 = vrcp.f32 %v5281_v20  ;;  %v17287_v20 = vld [vmem:[#allocation202_spill] sm:$0xff] }
 0x698   : > { %7273 = vmatmul.mubr.f32.gmra.mrb[192].mxu1 %v5673_v13  ;;  %v17282_v13 = vld [vmem:[#allocation195_spill] sm:$0xff] }
 0x699   : > { %9840 = vmatpush1.bf16.msra.mxu1 %v17265_v25  ;;  %7277 = vmatprep.mubr.f32.mxu1 %v5676_v49  ;;  %v5691_v35 = vmul.f32 %v10913_v6, %v17282_v13  ;;  %v17283_v49 = vld [vmem:[#allocation198_spill] sm:$0xff]  ;;  %v5693_v25 = vmul.f32 %v10915_v43, %v17284_v41  ;;  %v17301_v13 = vld [vmem:[#allocation216_spill] sm:$0xff] }
 0x69a   : > { %v5284_v22 = vpop.xlane.xlu1 %5283  ;;  %v5694_v27 = vmul.f32 %v10915_v43, %v17283_v49  ;;  %v17302_v49 = vld [vmem:[#allocation215_spill] sm:$0xff] }
 0x69b   : > { %10922 = vrcp.f32 %v5284_v22 }
 0x69c   : > { %7278 = vmatmul.mubr.f32.gmra.mrb[194].mxu1 %v5675_v54  ;;  %v10919_v54 = vpop.eup %10918 }
 0x69d   : > { %7282 = vmatprep.mubr.f32.mxu1 %v5678_v5  ;;  %v17286_v5 = vld [vmem:[#allocation199_spill] sm:$0xff]  ;;  %v5698_v45 = vmul.f32 %v10919_v54, %v17287_v20 }
 0x69e   : > { %v5287_v8 = vpop.xlane.xlu1 %5286  ;;  %v5695_v14 = vmul.f32 %v10917_v24, %v17286_v5  ;;  %v17303_v24 = vld [vmem:[#allocation218_spill] sm:$0xff]  ;;  %v17306_v20 = vld [vmem:[#allocation219_spill] sm:$0xff] }
 0x69f   : > { %10924 = vrcp.f32 %v5287_v8  ;;  %v17293_v8 = vld [vmem:[#allocation208_spill] sm:$0xff] }
 0x6a0   : > { %7283 = vmatmul.mubr.f32.gmra.mrb[196].mxu1 %v5677_v26 }
 0x6a1   : > { %7287 = vmatprep.mubr.f32.mxu1 %v5680_v1  ;;  %v10921_v26 = vpop.eup %10920  ;;  %v5697_v1 = vmul.f32 %v10919_v54, %v17288_v16  ;;  %v17307_v16 = vld [vmem:[#allocation222_spill] sm:$0xff] }
 0x6a2   : > { %v5290_v48 = vpop.xlane.xlu1 %5289 }
 0x6a3   : > { %10926 = vrcp.f32 %v5290_v48 }
 0x6a4   : > { %7288 = vmatmul.mubr.f32.gmra.mrb[198].mxu1 %v5679_v38  ;;  %v5700_v38 = vmul.f32 %v10921_v26, %v17289_v40  ;;  %v17308_v40 = vld [vmem:[#allocation221_spill] sm:$0xff] }
 0x6a5   : > { %7292 = vmatprep.mubr.f32.mxu1 %v5682_v31  ;;  %v10923_v22 = vpop.eup %10922  ;;  %v5699_v31 = vmul.f32 %v10921_v26, %v17290_v46  ;;  %v17309_v46 = vld [vmem:[#allocation224_spill] sm:$0xff] }
 0x6a6   : > { %v5293_v18 = vpop.xlane.xlu1 %5292  ;;  %v5702_v12 = vmul.f32 %v10923_v22, %v17291_v32 }
 0x6a7   : > { %10928 = vrcp.f32 %v5293_v18  ;;  %v17299_v18 = vld [vmem:[#allocation214_spill] sm:$0xff] }
 0x6a8   : > { %7293 = vmatmul.mubr.f32.gmra.mrb[200].mxu1 %v5681_v50 }
 0x6a9   : > { %7297 = vmatprep.mubr.f32.mxu1 %v5684_v3  ;;  %v10925_v50 = vpop.eup %10924  ;;  %v17292_v3 = vld [vmem:[#allocation205_spill] sm:$0xff] }
 0x6aa   : > { %v5296_v36 = vpop.xlane.xlu1 %5295  ;;  %v5701_v19 = vmul.f32 %v10923_v22, %v17292_v3  ;;  %v5704_v17 = vmul.f32 %v10925_v50, %v17293_v8  ;;  %v5323_v22 = vpop.xlane.xlu0 %5322  ;;  %v17311_v3 = vld [vmem:[#allocation225_spill] sm:$0xff] }
 0x6ab   : > { %10930 = vrcp.f32 %v5296_v36 }
 0x6ac   : > { %7298 = vmatmul.mubr.f32.gmra.mrb[202].mxu1 %v5683_v4 }
 0x6ad   : > { %7302 = vmatprep.mubr.f32.mxu1 %v5686_v47  ;;  %v10927_v4 = vpop.eup %10926  ;;  %v5703_v47 = vmul.f32 %v10925_v50, %v17294_v7 }
 0x6ae   : > { %v5299_v51 = vpop.xlane.xlu1 %5298  ;;  %v5329_v7 = vpop.xlane.xlu0 %5328 }
 0x6af   : > { %10932 = vrcp.f32 %v5299_v51  ;;  %v17305_v51 = vld [vmem:[#allocation220_spill] sm:$0xff] }
 0x6b0   : > { %7303 = vmatmul.mubr.f32.gmra.mrb[204].mxu1 %v5685_v34  ;;  %v5706_v34 = vmul.f32 %v10927_v4, %v17295_v55 }
 0x6b1   : > { %7307 = vmatprep.mubr.f32.mxu1 %v5688_v15  ;;  %v10929_v48 = vpop.eup %10928  ;;  %v5705_v15 = vmul.f32 %v10927_v4, %v17296_v63 }
 0x6b2   : > { %v5302_v56 = vpop.xlane.xlu1 %5301  ;;  %v5708_v30 = vmul.f32 %v10929_v48, %v17297_v44 }
 0x6b3   : > { %10934 = vrcp.f32 %v5302_v56 }
 0x6b4   : > { %7308 = vmatmul.mubr.f32.gmra.mrb[206].mxu1 %v5687_v0 }
 0x6b5   : > { %7312 = vmatprep.mubr.f32.mxu1 %v5690_v21  ;;  %v10931_v0 = vpop.eup %10930  ;;  %v17298_v21 = vld [vmem:[#allocation211_spill] sm:$0xff] }
 0x6b6   : > { %v5305_v53 = vpop.xlane.xlu1 %5304  ;;  %v5707_v6 = vmul.f32 %v10929_v48, %v17298_v21  ;;  %v5710_v29 = vmul.f32 %v10931_v0, %v17299_v18  ;;  %v5335_v21 = vpop.xlane.xlu0 %5334 }
 0x6b7   : > { %10936 = vrcp.f32 %v5305_v53 }
 0x6b8   : > { %7313 = vmatmul.mubr.f32.gmra.mrb[208].mxu1 %v5689_v2 }
 0x6b9   : > { %7317 = vmatprep.mubr.f32.mxu1 %v5692_v42  ;;  %v10933_v2 = vpop.eup %10932  ;;  %v5709_v42 = vmul.f32 %v10931_v0, %v17300_v61  ;;  %v17316_v0 = vld [vmem:[#allocation152_spill] sm:$0xff] }
 0x6ba   : > { %v5308_v62 = vpop.xlane.xlu1 %5307 }
 0x6bb   : > { %10938 = vrcp.f32 %v5308_v62 }
 0x6bc   : > { %7318 = vmatmul.mubr.f32.gmra.mrb[210].mxu1 %v5691_v35  ;;  %v5712_v35 = vmul.f32 %v10933_v2, %v17301_v13 }
 0x6bd   : > { %7322 = vmatprep.mubr.f32.mxu1 %v5694_v27  ;;  %v10935_v36 = vpop.eup %10934  ;;  %v5711_v27 = vmul.f32 %v10933_v2, %v17302_v49  ;;  %v17318_v2 = vld [vmem:[#allocation68_spill] sm:$0xff] }
 0x6be   : > { %v5311_v52 = vpop.xlane.xlu1 %5310  ;;  %v5714_v41 = vmul.f32 %v10935_v36, %v17303_v24  ;;  %v17321_v24 = vld [vmem:[#allocation155_spill] sm:$0xff] }
 0x6bf   : > { %10940 = vrcp.f32 %v5311_v52 }
 0x6c0   : > { %7323 = vmatmul.mubr.f32.gmra.mrb[212].mxu1 %v5693_v25 }
 0x6c1   : > { %7327 = vmatprep.mubr.f32.mxu1 %v5696_v33  ;;  %v10937_v25 = vpop.eup %10936  ;;  %v17304_v33 = vld [vmem:[#allocation217_spill] sm:$0xff] }
 0x6c2   : > { %v5314_v43 = vpop.xlane.xlu1 %5313  ;;  %v5713_v54 = vmul.f32 %v10935_v36, %v17304_v33  ;;  %v5716_v5 = vmul.f32 %v10937_v25, %v17305_v51  ;;  %v17320_v36 = vld [vmem:[#allocation99_spill] sm:$0xff]  ;;  %v17323_v51 = vld [vmem:[#allocation112_spill] sm:$0xff] }
 0x6c3   : > { %10942 = vrcp.f32 %v5314_v43  ;;  %v17319_v43 = vld [vmem:[#allocation168_spill] sm:$0xff] }
 0x6c4   : > { %7328 = vmatmul.mubr.f32.gmra.mrb[214].mxu1 %v5695_v14 }
 0x6c5   : > { %7332 = vmatprep.mubr.f32.mxu1 %v5698_v45  ;;  %v10939_v14 = vpop.eup %10938  ;;  %v5715_v45 = vmul.f32 %v10937_v25, %v17306_v20  ;;  %v17324_v20 = vld [vmem:[#allocation67_spill] sm:$0xff] }
 0x6c6   : > { %v5317_v57 = vpop.xlane.xlu1 %5316 }
 0x6c7   : > { %10944 = vrcp.f32 %v5317_v57  ;;  %v17322_v57 = vld [vmem:[#allocation40_spill] sm:$0xff] }
 0x6c8   : > { %7333 = vmatmul.mubr.f32.gmra.mrb[216].mxu1 %v5697_v1  ;;  %v5718_v1 = vmul.f32 %v10939_v14, %v17307_v16  ;;  %v17325_v16 = vld [vmem:[#allocation170_spill] sm:$0xff] }
 0x6c9   : > { %7337 = vmatprep.mubr.f32.mxu1 %v5700_v38  ;;  %v10941_v56 = vpop.eup %10940  ;;  %v5717_v38 = vmul.f32 %v10939_v14, %v17308_v40  ;;  %v17326_v40 = vld [vmem:[#allocation101_spill] sm:$0xff] }
 0x6ca   : > { %v5320_v26 = vpop.xlane.xlu1 %5319 }
 0x6cb   : > { %10946 = vrcp.f32 %v5320_v26 }
 0x6cc   : > { %7338 = vmatmul.mubr.f32.gmra.mrb[218].mxu1 %v5699_v31  ;;  %v5720_v31 = vmul.f32 %v10941_v56, %v17309_v46  ;;  %10948 = vrcp.f32 %v5323_v22  ;;  %v17327_v46 = vld [vmem:[#allocation42_spill] sm:$0xff] }
 0x6cd   : > { %7342 = vmatprep.mubr.f32.mxu1 %v5702_v12  ;;  %v10943_v32 = vpop.eup %10942  ;;  %v17310_v12 = vld [vmem:[#allocation223_spill] sm:$0xff] }
 0x6ce   : > { %v5719_v50 = vmul.f32 %v10941_v56, %v17310_v12  ;;  %v5326_v53 = vpop.xlane.xlu1 %5325  ;;  %v17328_v12 = vld [vmem:[#allocation158_spill] sm:$0xff] }
 0x6cf   : > { %10950 = vrcp.f32 %v5326_v53 }
 0x6d0   : > { %7343 = vmatmul.mubr.f32.gmra.mrb[220].mxu1 %v5701_v19  ;;  %v5722_v19 = vmul.f32 %v10943_v32, %v17311_v3  ;;  %10952 = vrcp.f32 %v5329_v7  ;;  %v17329_v3 = vld [vmem:[#allocation71_spill] sm:$0xff] }
 0x6d1   : > { %7347 = vmatprep.mubr.f32.mxu1 %v5704_v17  ;;  %v10945_v8 = vpop.eup %10944  ;;  %v17312_v17 = vld [vmem:[#allocation142_spill] sm:$0xff] }
 0x6d2   : > { %v5721_v4 = vmul.f32 %v10943_v32, %v17312_v17  ;;  %v5332_v63 = vpop.xlane.xlu1 %5331  ;;  %v17330_v17 = vld [vmem:[#allocation98_spill] sm:$0xff] }
 0x6d3   : > { %10954 = vrcp.f32 %v5332_v63 }
 0x6d4   : > { %7348 = vmatmul.mubr.f32.gmra.mrb[222].mxu1 %v5703_v47  ;;  %v17313_v47 = vld [vmem:[#allocation166_spill] sm:$0xff]  ;;  %10956 = vrcp.f32 %v5335_v21 }
 0x6d5   : > { %7352 = vmatprep.mubr.f32.mxu1 %v5706_v34  ;;  %v5724_v62 = vmul.f32 %v10945_v8, %v17313_v47  ;;  %v10947_v55 = vpop.eup %10946  ;;  %v17314_v34 = vld [vmem:[#allocation100_spill] sm:$0xff]  ;;  %v17331_v47 = vld [vmem:[#allocation5_spill] sm:$0xff] }
 0x6d6   : > { %v5723_v48 = vmul.f32 %v10945_v8, %v17314_v34  ;;  %v5725_v52 = vmul.f32 %v10947_v55, %v17316_v0  ;;  %v17332_v34 = vld [vmem:[#allocation115_spill] sm:$0xff]  ;;  %v17334_v0 = vld [vmem:[#allocation44_spill] sm:$0xff] }
 0x6d8   : > { %7353 = vmatmul.mubr.f32.gmra.mrb[224].mxu1 %v5705_v15  ;;  %v17315_v15 = vld [vmem:[#allocation51_spill] sm:$0xff] }
 0x6d9   : > { %7422 = vmatprep.mubr.f32.mxu1 %v5708_v30  ;;  %v5726_v44 = vmul.f32 %v10947_v55, %v17315_v15  ;;  %v10949_v30 = vpop.eup %10948  ;;  %v17333_v15 = vld [vmem:[#allocation70_spill] sm:$0xff] }
 0x6da   : > { %v5727_v61 = vmul.f32 %v10949_v30, %v17318_v2  ;;  %v17336_v2 = vld [vmem:[#allocation7_spill] sm:$0xff] }
 0x6dc   : > { %7423 = vmatmul.mubr.f32.vlgmr.msra.gmra.mrb[162].mxu1 %v5707_v6  ;;  %v17317_v6 = vld [vmem:[#allocation109_spill] sm:$0xff] }
 0x6dd   : > { %7427 = vmatprep.mubr.f32.mxu1 %v5710_v29  ;;  %v5728_v18 = vmul.f32 %v10949_v30, %v17317_v6  ;;  %v10951_v29 = vpop.eup %10950  ;;  %v17335_v6 = vld [vmem:[#allocation46_spill] sm:$0xff] }
 0x6de   : > { %v5730_v13 = vmul.f32 %v10951_v29, %v17319_v43  ;;  %v5729_v49 = vmul.f32 %v10951_v29, %v17320_v36  ;;  %v17337_v43 = vld [vmem:[#allocation121_spill] sm:$0xff]  ;;  %v17338_v36 = vld [vmem:[#allocation78_spill] sm:$0xff] }
 0x6e0   : > { %7428 = vmatmul.mubr.f32.gmra.mrb[164].mxu1 %v5709_v42  ;;  %v5338_v42 = vpop.xlane.xlu1 %5337 }
 0x6e1   : > { %7432 = vmatprep.mubr.f32.mxu1 %v5712_v35  ;;  %v10953_v35 = vpop.eup %10952  ;;  %10958 = vrcp.f32 %v5338_v42 }
 0x6e2   : > { %v10955_v25 = vpop.eup %10954  ;;  %v5731_v33 = vmul.f32 %v10953_v35, %v17322_v57  ;;  %v17340_v57 = vld [vmem:[#allocation176_spill] sm:$0xff] }
 0x6e3   : > { %v10957_v14 = vpop.eup %10956 }
 0x6e4   : > { %7433 = vmatmul.mubr.f32.gmra.mrb[166].mxu1 %v5711_v27  ;;  %v5341_v27 = vpop.xlane.xlu0 %5340 }
 0x6e5   : > { %7437 = vmatprep.mubr.f32.mxu1 %v5714_v41  ;;  %v5732_v41 = vmul.f32 %v10953_v35, %v17321_v24  ;;  %10960 = vrcp.f32 %v5341_v27  ;;  %v17339_v24 = vld [vmem:[#allocation48_spill] sm:$0xff] }
 0x6e8   : > { %7438 = vmatmul.mubr.f32.gmra.mrb[168].mxu1 %v5713_v54  ;;  %v5344_v54 = vpop.xlane.xlu1 %5343  ;;  %v5347_v26 = vpop.xlane.xlu0 %5346 }
 0x6e9   : > { %7442 = vmatprep.mubr.f32.mxu1 %v5716_v5  ;;  %v5734_v5 = vmul.f32 %v10955_v25, %v17323_v51  ;;  %10962 = vrcp.f32 %v5344_v54  ;;  %v17341_v51 = vld [vmem:[#allocation11_spill] sm:$0xff] }
 0x6ea   : > { %10964 = vrcp.f32 %v5347_v26 }
 0x6eb   : > { %v10959_v56 = vpop.eup %10958 }
 0x6ec   : > { %7443 = vmatmul.mubr.f32.gmra.mrb[170].mxu1 %v5715_v45  ;;  %v5733_v45 = vmul.f32 %v10955_v25, %v17324_v20  ;;  %v5350_v22 = vpop.xlane.xlu1 %5349  ;;  %v5353_v53 = vpop.xlane.xlu0 %5352  ;;  %v17342_v20 = vld [vmem:[#allocation73_spill] sm:$0xff] }
 0x6ed   : > { %7447 = vmatprep.mubr.f32.mxu1 %v5718_v1  ;;  %v5736_v1 = vmul.f32 %v10957_v14, %v17325_v16  ;;  %10966 = vrcp.f32 %v5350_v22 }
 0x6ee   : > { %10968 = vrcp.f32 %v5353_v53 }
 0x6ef   : > { %v10961_v32 = vpop.eup %10960 }
 0x6f0   : > { %7448 = vmatmul.mubr.f32.gmra.mrb[172].mxu1 %v5717_v38  ;;  %v5735_v38 = vmul.f32 %v10957_v14, %v17326_v40  ;;  %v5356_v7 = vpop.xlane.xlu1 %5355  ;;  %v5359_v63 = vpop.xlane.xlu0 %5358 }
 0x6f1   : > { %7452 = vmatprep.mubr.f32.mxu1 %v5720_v31  ;;  %v5738_v31 = vmul.f32 %v10959_v56, %v17327_v46  ;;  %10970 = vrcp.f32 %v5356_v7 }
 0x6f2   : > { %10972 = vrcp.f32 %v5359_v63 }
 0x6f3   : > { %v10963_v8 = vpop.eup %10962 }
 0x6f4   : > { %7453 = vmatmul.mubr.f32.gmra.mrb[174].mxu1 %v5719_v50  ;;  %v5737_v50 = vmul.f32 %v10959_v56, %v17328_v12  ;;  %v10965_v55 = vpop.eup %10964  ;;  %v5362_v21 = vpop.xlane.xlu1 %5361  ;;  %v17343_v56 = vld [vmem:[#allocation50_spill] sm:$0xff] }
 0x6f5   : > { %7457 = vmatprep.mubr.f32.mxu1 %v5722_v19  ;;  %v5740_v19 = vmul.f32 %v10961_v32, %v17329_v3  ;;  %10974 = vrcp.f32 %v5362_v21  ;;  %v5365_v42 = vpop.xlane.xlu0 %5364  ;;  %v17350_v21 = vld [vmem:[#allocation18_spill] sm:$0xff] }
 0x6f6   : > { %10976 = vrcp.f32 %v5365_v42 }
 0x6f7   : > { %v10967_v30 = vpop.eup %10966 }
 0x6f8   : > { %7458 = vmatmul.mubr.f32.gmra.mrb[176].mxu1 %v5721_v4  ;;  %v5739_v4 = vmul.f32 %v10961_v32, %v17330_v17  ;;  %v10969_v29 = vpop.eup %10968  ;;  %v5368_v27 = vpop.xlane.xlu1 %5367 }
 0x6f9   : > { %7462 = vmatprep.mubr.f32.mxu1 %v5724_v62  ;;  %v5742_v62 = vmul.f32 %v10963_v8, %v17331_v47  ;;  %10978 = vrcp.f32 %v5368_v27  ;;  %v5371_v54 = vpop.xlane.xlu0 %5370 }
 0x6fa   : > { %10980 = vrcp.f32 %v5371_v54 }
 0x6fb   : > { %v10971_v35 = vpop.eup %10970 }
 0x6fc   : > { %7463 = vmatmul.mubr.f32.gmra.mrb[178].mxu1 %v5723_v48  ;;  %v5741_v48 = vmul.f32 %v10963_v8, %v17332_v34  ;;  %v10973_v25 = vpop.eup %10972  ;;  %v5374_v26 = vpop.xlane.xlu1 %5373 }
 0x6fd   : > { %7467 = vmatprep.mubr.f32.mxu1 %v5726_v44  ;;  %v5744_v44 = vmul.f32 %v10965_v55, %v17333_v15  ;;  %10982 = vrcp.f32 %v5374_v26  ;;  %v17347_v15 = vld [vmem:[#allocation13_spill] sm:$0xff] }
 0x6ff   : > { %v10975_v14 = vpop.eup %10974 }
 0x700   : > { %7468 = vmatmul.mubr.f32.gmra.mrb[180].mxu1 %v5725_v52  ;;  %v5743_v52 = vmul.f32 %v10965_v55, %v17334_v0  ;;  %v5754_v16 = vmul.f32 %v10975_v14, %v14896_v39  ;;  %v5753_v40 = vmul.f32 %v10975_v14, %v17343_v56  ;;  %v5380_v12 = vpop.xlane.xlu1 %5379  ;;  %v17345_v39 = vld [vmem:[#allocation14_spill] sm:$0xff] }
 0x701   : > { %7472 = vmatprep.mubr.f32.mxu1 %v5728_v18  ;;  %v5746_v18 = vmul.f32 %v10967_v30, %v17335_v6 }
 0x704   : > { %7473 = vmatmul.mubr.f32.gmra.mrb[182].mxu1 %v5727_v61  ;;  %v5745_v61 = vmul.f32 %v10967_v30, %v17336_v2  ;;  %v5386_v7 = vpop.xlane.xlu1 %5385 }
 0x705   : > { %7477 = vmatprep.mubr.f32.mxu1 %v5730_v13  ;;  %v5748_v13 = vmul.f32 %v10969_v29, %v17337_v43 }
 0x708   : > { %7478 = vmatmul.mubr.f32.gmra.mrb[184].mxu1 %v5729_v49  ;;  %v5747_v49 = vmul.f32 %v10969_v29, %v17338_v36 }
 0x709   : > { %7482 = vmatprep.mubr.f32.mxu1 %v5732_v41  ;;  %v5750_v41 = vmul.f32 %v10971_v35, %v17339_v24 }
 0x70c   : > { %7483 = vmatmul.mubr.f32.gmra.mrb[186].mxu1 %v5731_v33  ;;  %v5749_v33 = vmul.f32 %v10971_v35, %v17340_v57 }
 0x70d   : > { %7487 = vmatprep.mubr.f32.mxu1 %v5734_v5  ;;  %v5752_v5 = vmul.f32 %v10973_v25, %v17341_v51 }
 0x710   : > { %7488 = vmatmul.mubr.f32.gmra.mrb[188].mxu1 %v5733_v45  ;;  %v5751_v45 = vmul.f32 %v10973_v25, %v17342_v20 }
 0x711   : > { %7492 = vmatprep.mubr.f32.mxu1 %v5736_v1  ;;  %v10977_v1 = vpop.eup %10976 }
 0x712   : > { %v5756_v22 = vmul.f32 %v10977_v1, %v14911_v59  ;;  %v10979_v46 = vpop.eup %10978  ;;  %v17346_v59 = vld [vmem:[#allocation77_spill] sm:$0xff] }
 0x713   : > { %v10981_v53 = vpop.eup %10980  ;;  %v5757_v3 = vmul.f32 %v10979_v46, %v17345_v39 }
 0x714   : > { %7493 = vmatmul.mubr.f32.gmra.mrb[190].mxu1 %v5735_v38  ;;  %v5377_v38 = vpop.xlane.xlu0 %5376  ;;  %v5760_v8 = vmul.f32 %v10981_v53, %v14936_v11  ;;  %v10983_v17 = vpop.eup %10982 }
 0x715   : > { %7497 = vmatprep.mubr.f32.mxu1 %v5738_v31  ;;  %10984 = vrcp.f32 %v5377_v38  ;;  %v17344_v31 = vld [vmem:[#allocation163_spill] sm:$0xff]  ;;  %v5762_v47 = vmul.f32 %v10983_v17, %v14947_v10 }
 0x716   : > { %v5755_v32 = vmul.f32 %v10977_v1, %v17344_v31  ;;  %10986 = vrcp.f32 %v5380_v12 }
 0x718   : > { %7498 = vmatmul.mubr.f32.gmra.mrb[192].mxu1 %v5737_v50  ;;  %v5758_v50 = vmul.f32 %v10979_v46, %v14923_v58  ;;  %v5761_v58 = vmul.f32 %v10983_v17, %v14945_v60  ;;  %v17348_v60 = vld [vmem:[#allocation127_spill] sm:$0xff] }
 0x719   : > { %7502 = vmatprep.mubr.f32.mxu1 %v5740_v19  ;;  %v5383_v19 = vpop.xlane.xlu0 %5382 }
 0x71a   : > { %10988 = vrcp.f32 %v5383_v19 }
 0x71b   : > { %10990 = vrcp.f32 %v5386_v7 }
 0x71c   : > { %7503 = vmatmul.mubr.f32.gmra.mrb[194].mxu1 %v5739_v4  ;;  %v5759_v4 = vmul.f32 %v10981_v53, %v17346_v59 }
 0x71d   : > { %7507 = vmatprep.mubr.f32.mxu1 %v5742_v62 }
 0x71f   : > { %v10985_v62 = vpop.eup %10984 }
 0x720   : > { %7508 = vmatmul.mubr.f32.gmra.mrb[196].mxu1 %v5741_v48  ;;  %v5764_v55 = vmul.f32 %v10985_v62, %v14960_v28  ;;  %v10987_v34 = vpop.eup %10986  ;;  %v5763_v11 = vmul.f32 %v10985_v62, %v14958_v23  ;;  %v17349_v28 = vld [vmem:[#allocation49_spill] sm:$0xff] }
 0x721   : > { %7512 = vmatprep.mubr.f32.mxu1 %v5744_v44  ;;  %v5766_v48 = vmul.f32 %v10987_v34, %v14971_v37  ;;  %v5765_v10 = vmul.f32 %v10987_v34, %v14967_v9 }
 0x724   : > { %7513 = vmatmul.mubr.f32.gmra.mrb[198].mxu1 %v5743_v52  ;;  %v10989_v63 = vpop.eup %10988 }
 0x725   : > { %7517 = vmatprep.mubr.f32.mxu1 %v5746_v18  ;;  %v5768_v44 = vmul.f32 %v10989_v63, %v17347_v15  ;;  %v10991_v30 = vpop.eup %10990  ;;  %v5767_v0 = vmul.f32 %v10989_v63, %v17348_v60 }
 0x726   : > { %v5770_v52 = vmul.f32 %v10991_v30, %v17349_v28  ;;  %v5769_v23 = vmul.f32 %v10991_v30, %v17350_v21 }
 0x728   : > { %7518 = vmatmul.mubr.f32.gmra.mrb[200].mxu1 %v5745_v61 }
 0x729   : > { %7522 = vmatprep.mubr.f32.mxu1 %v5748_v13 }
 0x72c   : > { %7523 = vmatmul.mubr.f32.gmra.mrb[202].mxu1 %v5747_v49 }
 0x72d   : > { %7527 = vmatprep.mubr.f32.mxu1 %v5750_v41 }
 0x730   : > { %7528 = vmatmul.mubr.f32.gmra.mrb[204].mxu1 %v5749_v33 }
 0x731   : > { %7532 = vmatprep.mubr.f32.mxu1 %v5752_v5 }
 0x734   : > { %7533 = vmatmul.mubr.f32.gmra.mrb[206].mxu1 %v5751_v45 }
 0x735   : > { %7537 = vmatprep.mubr.f32.mxu1 %v5754_v16 }
 0x738   : > { %7538 = vmatmul.mubr.f32.gmra.mrb[208].mxu1 %v5753_v40 }
 0x739   : > { %7542 = vmatprep.mubr.f32.mxu1 %v5756_v22 }
 0x73c   : > { %7543 = vmatmul.mubr.f32.gmra.mrb[210].mxu1 %v5755_v32 }
 0x73d   : > { %7547 = vmatprep.mubr.f32.mxu1 %v5758_v50 }
 0x740   : > { %7548 = vmatmul.mubr.f32.gmra.mrb[212].mxu1 %v5757_v3 }
 0x741   : > { %7552 = vmatprep.mubr.f32.mxu1 %v5760_v8 }
 0x744   : > { %7553 = vmatmul.mubr.f32.gmra.mrb[214].mxu1 %v5759_v4 }
 0x745   : > { %7557 = vmatprep.mubr.f32.mxu1 %v5762_v47 }
 0x748   : > { %7558 = vmatmul.mubr.f32.gmra.mrb[216].mxu1 %v5761_v58 }
 0x749   : > { %7562 = vmatprep.mubr.f32.mxu1 %v5764_v55 }
 0x74c   : > { %7563 = vmatmul.mubr.f32.gmra.mrb[218].mxu1 %v5763_v11 }
 0x74d   : > { %7567 = vmatprep.mubr.f32.mxu1 %v5766_v48 }
 0x750   : > { %7568 = vmatmul.mubr.f32.gmra.mrb[220].mxu1 %v5765_v10 }
 0x751   : > { %7572 = vmatprep.mubr.f32.mxu1 %v5768_v44 }
 0x754   : > { %7573 = vmatmul.mubr.f32.gmra.mrb[222].mxu1 %v5767_v0 }
 0x755   : > { %7577 = vmatprep.mubr.f32.mxu1 %v5770_v52 }
 0x758   : > { %7578 = vmatmul.mubr.f32.gmra.mrb[224].mxu1 %v5769_v23 }
 0x7af   : > { %v15259_v37 = vpop.f32.mrb[162].mxu1 }
 0x7b0   : > { %v7426_v6 = vpop.f32.mrb[163].mxu1  ;;  %v7680_v9 = vsel %vm7679_vm4, %v15259_v37, 0.0 }
 0x7b1   : > { %7681 = vadd.xlane.f32.xlu0 %v7680_v9 }
 0x7b3   : > { %v15263_v18 = vpop.f32.mrb[164].mxu1 }
 0x7b4   : > { %v7431_v29 = vpop.f32.mrb[165].mxu1  ;;  %v7683_v2 = vsel %vm7679_vm4, %v15263_v18, 0.0 }
 0x7b5   : > { %7684 = vadd.xlane.f32.xlu1 %v7683_v2 }
 0x7b7   : > { %v15267_v61 = vpop.f32.mrb[166].mxu1 }
 0x7b8   : > { %v7436_v42 = vpop.f32.mrb[167].mxu1  ;;  %v7686_v43 = vsel %vm7679_vm4, %v15267_v61, 0.0 }
 0x7b9   : > { %7687 = vadd.xlane.f32.xlu0 %v7686_v43 }
 0x7bb   : > { %v15271_v13 = vpop.f32.mrb[168].mxu1 }
 0x7bc   : > { %v7441_v35 = vpop.f32.mrb[169].mxu1  ;;  %v7689_v36 = vsel %vm7679_vm4, %v15271_v13, 0.0 }
 0x7bd   : > { %7690 = vadd.xlane.f32.xlu1 %v7689_v36 }
 0x7bf   : > { %v15275_v49 = vpop.f32.mrb[170].mxu1 }
 0x7c0   : > { %v7446_v27 = vpop.f32.mrb[171].mxu1  ;;  %v7692_v24 = vsel %vm7679_vm4, %v15275_v49, 0.0 }
 0x7c1   : > { %7693 = vadd.xlane.f32.xlu0 %v7692_v24 }
 0x7c3   : > { %v15279_v41 = vpop.f32.mrb[172].mxu1 }
 0x7c4   : > { %v7451_v25 = vpop.f32.mrb[173].mxu1  ;;  %v7695_v57 = vsel %vm7679_vm4, %v15279_v41, 0.0 }
 0x7c5   : > { %7696 = vadd.xlane.f32.xlu1 %v7695_v57 }
 0x7c7   : > { %v15283_v33 = vpop.f32.mrb[174].mxu1 }
 0x7c8   : > { %v7456_v54 = vpop.f32.mrb[175].mxu1  ;;  %v7698_v51 = vsel %vm7679_vm4, %v15283_v33, 0.0 }
 0x7c9   : > { %7699 = vadd.xlane.f32.xlu0 %v7698_v51 }
 0x7cb   : > { %v15287_v5 = vpop.f32.mrb[176].mxu1 }
 0x7cc   : > { %v7461_v14 = vpop.f32.mrb[177].mxu1  ;;  %v7701_v20 = vsel %vm7679_vm4, %v15287_v5, 0.0 }
 0x7cd   : > { %7702 = vadd.xlane.f32.xlu1 %v7701_v20 }
 0x7cf   : > { %v15291_v45 = vpop.f32.mrb[178].mxu1 }
 0x7d0   : > { %v7466_v26 = vpop.f32.mrb[179].mxu1  ;;  %v7704_v16 = vsel %vm7679_vm4, %v15291_v45, 0.0 }
 0x7d1   : > { %7705 = vadd.xlane.f32.xlu0 %v7704_v16 }
 0x7d3   : > { %v15295_v1 = vpop.f32.mrb[180].mxu1 }
 0x7d4   : > { %v7471_v56 = vpop.f32.mrb[181].mxu1  ;;  %v7707_v40 = vsel %vm7679_vm4, %v15295_v1, 0.0 }
 0x7d5   : > { %7708 = vadd.xlane.f32.xlu1 %v7707_v40 }
 0x7d7   : > { %v15299_v38 = vpop.f32.mrb[182].mxu1 }
 0x7d8   : > { %v7476_v22 = vpop.f32.mrb[183].mxu1  ;;  %v7710_v46 = vsel %vm7679_vm4, %v15299_v38, 0.0 }
 0x7d9   : > { %7711 = vadd.xlane.f32.xlu0 %v7710_v46 }
 0x7db   : > { %v15303_v31 = vpop.f32.mrb[184].mxu1 }
 0x7dc   : > { %v7481_v32 = vpop.f32.mrb[185].mxu1  ;;  %v7713_v12 = vsel %vm7679_vm4, %v15303_v31, 0.0 }
 0x7dd   : > { %7714 = vadd.xlane.f32.xlu1 %v7713_v12 }
 0x7df   : > { %v15307_v50 = vpop.f32.mrb[186].mxu1 }
 0x7e0   : > { %v7486_v53 = vpop.f32.mrb[187].mxu1  ;;  %v7716_v39 = vsel %vm7679_vm4, %v15307_v50, 0.0 }
 0x7e1   : > { %7717 = vadd.xlane.f32.xlu0 %v7716_v39 }
 0x7e3   : > { %v15311_v3 = vpop.f32.mrb[188].mxu1 }
 0x7e4   : > { %v7491_v19 = vpop.f32.mrb[189].mxu1  ;;  %v7719_v8 = vsel %vm7679_vm4, %v15311_v3, 0.0 }
 0x7e5   : > { %7720 = vadd.xlane.f32.xlu1 %v7719_v8 }
 0x7e7   : > { %v15315_v17 = vpop.f32.mrb[190].mxu1 }
 0x7e8   : > { %v7496_v59 = vpop.f32.mrb[191].mxu1  ;;  %v7722_v4 = vsel %vm7679_vm4, %v15315_v17, 0.0 }
 0x7e9   : > { %7723 = vadd.xlane.f32.xlu0 %v7722_v4 }
 0x7eb   : > { %v15319_v7 = vpop.f32.mrb[192].mxu1 }
 0x7ec   : > { %v7501_v47 = vpop.f32.mrb[193].mxu1  ;;  %v7725_v62 = vsel %vm7679_vm4, %v15319_v7, 0.0 }
 0x7ed   : > { %7726 = vadd.xlane.f32.xlu1 %v7725_v62 }
 0x7ef   : > { %v15323_v58 = vpop.f32.mrb[194].mxu1 }
 0x7f0   : > { %v7506_v55 = vpop.f32.mrb[195].mxu1  ;;  %v7728_v34 = vsel %vm7679_vm4, %v15323_v58, 0.0 }
 0x7f1   : > { %7729 = vadd.xlane.f32.xlu0 %v7728_v34 }
 0x7f3   : > { %v15327_v11 = vpop.f32.mrb[196].mxu1 }
 0x7f4   : > { %v7511_v48 = vpop.f32.mrb[197].mxu1  ;;  %v7731_v63 = vsel %vm7679_vm4, %v15327_v11, 0.0 }
 0x7f5   : > { %7732 = vadd.xlane.f32.xlu1 %v7731_v63 }
 0x7f7   : > { %v15331_v10 = vpop.f32.mrb[198].mxu1 }
 0x7f8   : > { %v7516_v15 = vpop.f32.mrb[199].mxu1  ;;  %v7734_v44 = vsel %vm7679_vm4, %v15331_v10, 0.0 }
 0x7f9   : > { %7735 = vadd.xlane.f32.xlu0 %v7734_v44 }
 0x7fb   : > { %v15335_v30 = vpop.f32.mrb[200].mxu1 }
 0x7fc   : > { %v7521_v60 = vpop.f32.mrb[201].mxu1  ;;  %v7737_v0 = vsel %vm7679_vm4, %v15335_v30, 0.0 }
 0x7fd   : > { %7738 = vadd.xlane.f32.xlu1 %v7737_v0 }
 0x7ff   : > { %v15339_v28 = vpop.f32.mrb[202].mxu1 }
 0x800   : > { %v7526_v52 = vpop.f32.mrb[203].mxu1  ;;  %v7740_v21 = vsel %vm7679_vm4, %v15339_v28, 0.0 }
 0x801   : > { %7741 = vadd.xlane.f32.xlu0 %v7740_v21 }
 0x803   : > { %v15343_v23 = vpop.f32.mrb[204].mxu1 }
 0x804   : > { %v7531_v6 = vpop.f32.mrb[205].mxu1  ;;  %v7743_v9 = vsel %vm7679_vm4, %v15343_v23, 0.0 }
 0x805   : > { %7744 = vadd.xlane.f32.xlu1 %v7743_v9 }
 0x807   : > { %v15347_v29 = vpop.f32.mrb[206].mxu1 }
 0x808   : > { %v7536_v2 = vpop.f32.mrb[207].mxu1  ;;  %v7746_v42 = vsel %vm7679_vm4, %v15347_v29, 0.0 }
 0x809   : > { %7747 = vadd.xlane.f32.xlu0 %v7746_v42 }
 0x80b   : > { %v15351_v43 = vpop.f32.mrb[208].mxu1 }
 0x80c   : > { %v7541_v35 = vpop.f32.mrb[209].mxu1  ;;  %v7749_v36 = vsel %vm7679_vm4, %v15351_v43, 0.0 }
 0x80d   : > { %7750 = vadd.xlane.f32.xlu1 %v7749_v36 }
 0x80f   : > { %v15355_v27 = vpop.f32.mrb[210].mxu1 }
 0x810   : > { %v7546_v24 = vpop.f32.mrb[211].mxu1  ;;  %v7752_v25 = vsel %vm7679_vm4, %v15355_v27, 0.0 }
 0x811   : > { %7753 = vadd.xlane.f32.xlu0 %v7752_v25 }
 0x813   : > { %v15359_v57 = vpop.f32.mrb[212].mxu1 }
 0x814   : > { %v7551_v54 = vpop.f32.mrb[213].mxu1  ;;  %v7755_v51 = vsel %vm7679_vm4, %v15359_v57, 0.0 }
 0x815   : > { %7756 = vadd.xlane.f32.xlu1 %v7755_v51 }
 0x817   : > { %v15363_v14 = vpop.f32.mrb[214].mxu1 }
 0x818   : > { %v7556_v20 = vpop.f32.mrb[215].mxu1  ;;  %v7758_v26 = vsel %vm7679_vm4, %v15363_v14, 0.0 }
 0x819   : > { %7759 = vadd.xlane.f32.xlu0 %v7758_v26 }
 0x81b   : > { %v15367_v16 = vpop.f32.mrb[216].mxu1 }
 0x81c   : > { %v7561_v56 = vpop.f32.mrb[217].mxu1  ;;  %v7761_v40 = vsel %vm7679_vm4, %v15367_v16, 0.0 }
 0x81d   : > { %7762 = vadd.xlane.f32.xlu1 %v7761_v40 }
 0x81f   : > { %v15371_v22 = vpop.f32.mrb[218].mxu1 }
 0x820   : > { %v7566_v46 = vpop.f32.mrb[219].mxu1  ;;  %v7764_v32 = vsel %vm7679_vm4, %v15371_v22, 0.0 }
 0x821   : > { %7765 = vadd.xlane.f32.xlu0 %v7764_v32 }
 0x823   : > { %v15375_v12 = vpop.f32.mrb[220].mxu1 }
 0x824   : > { %v7571_v53 = vpop.f32.mrb[221].mxu1  ;;  %v7767_v39 = vsel %vm7679_vm4, %v15375_v12, 0.0 }
 0x825   : > { %7768 = vadd.xlane.f32.xlu1 %v7767_v39 }
 0x827   : > { %v15379_v19 = vpop.f32.mrb[222].mxu1 }
 0x828   : > { %v7576_v8 = vpop.f32.mrb[223].mxu1  ;;  %v7770_v59 = vsel %vm7679_vm4, %v15379_v19, 0.0 }
 0x829   : > { %7771 = vadd.xlane.f32.xlu0 %v7770_v59 }
 0x82b   : > { %v15383_v4 = vpop.f32.mrb[224].mxu1 }
 0x82c   : > { %v7581_v47 = vpop.f32.mrb[225].mxu1  ;;  %v7773_v62 = vsel %vm7679_vm4, %v15383_v4, 0.0 }
 0x82d   : > { %7774 = vadd.xlane.f32.xlu1 %v7773_v62 }
 0x83e   : > { %v7682_v55 = vpop.xlane.xlu0 %7681 }
 0x83f   : > { %v7777_v34 = vmul.f32 0.03125, %v7682_v55 }
 0x841   : > { %v15388_v48 = vsub.f32 %v15259_v37, %v7777_v34 }
 0x842   : > { %v7685_v63 = vpop.xlane.xlu1 %7684 }
 0x843   : > { %v7778_v15 = vmul.f32 0.03125, %v7685_v63  ;;  %v7841_v44 = vmul.f32 %v15388_v48, %v15388_v48 }
 0x845   : > { %v15393_v60 = vsub.f32 %v15263_v18, %v7778_v15  ;;  %v7873_v0 = vsel %vm7679_vm4, %v7841_v44, 0.0 }
 0x846   : > { %7874 = vadd.xlane.f32.xlu0 %v7873_v0  ;;  %v7688_v52 = vpop.xlane.xlu0 %7687 }
 0x847   : > { %v7779_v21 = vmul.f32 0.03125, %v7688_v52  ;;  %v7842_v6 = vmul.f32 %v15393_v60, %v15393_v60 }
 0x849   : > { %v15399_v9 = vsub.f32 %v15267_v61, %v7779_v21  ;;  %v7876_v37 = vsel %vm7679_vm4, %v7842_v6, 0.0 }
 0x84a   : > { %v7691_v2 = vpop.xlane.xlu1 %7690  ;;  %7877 = vadd.xlane.f32.xlu1 %v7876_v37 }
 0x84b   : > { %v7780_v42 = vmul.f32 0.03125, %v7691_v2  ;;  %v7843_v18 = vmul.f32 %v15399_v9, %v15399_v9 }
 0x84d   : > { %v15405_v35 = vsub.f32 %v15271_v13, %v7780_v42  ;;  %v7879_v36 = vsel %vm7679_vm4, %v7843_v18, 0.0 }
 0x84e   : > { %7880 = vadd.xlane.f32.xlu0 %v7879_v36  ;;  %v7694_v24 = vpop.xlane.xlu0 %7693 }
 0x84f   : > { %v7781_v25 = vmul.f32 0.03125, %v7694_v24  ;;  %v7844_v61 = vmul.f32 %v15405_v35, %v15405_v35 }
 0x851   : > { %v15411_v54 = vsub.f32 %v15275_v49, %v7781_v25  ;;  %v7882_v51 = vsel %vm7679_vm4, %v7844_v61, 0.0 }
 0x852   : > { %v7697_v20 = vpop.xlane.xlu1 %7696  ;;  %7883 = vadd.xlane.f32.xlu1 %v7882_v51 }
 0x853   : > { %v7782_v26 = vmul.f32 0.03125, %v7697_v20  ;;  %v7845_v13 = vmul.f32 %v15411_v54, %v15411_v54 }
 0x855   : > { %v15417_v56 = vsub.f32 %v15279_v41, %v7782_v26  ;;  %v7885_v40 = vsel %vm7679_vm4, %v7845_v13, 0.0 }
 0x856   : > { %7886 = vadd.xlane.f32.xlu0 %v7885_v40  ;;  %v7700_v46 = vpop.xlane.xlu0 %7699 }
 0x857   : > { %v7783_v32 = vmul.f32 0.03125, %v7700_v46  ;;  %v7846_v49 = vmul.f32 %v15417_v56, %v15417_v56 }
 0x859   : > { %v15423_v53 = vsub.f32 %v15283_v33, %v7783_v32  ;;  %v7888_v39 = vsel %vm7679_vm4, %v7846_v49, 0.0 }
 0x85a   : > { %v7703_v8 = vpop.xlane.xlu1 %7702  ;;  %7889 = vadd.xlane.f32.xlu1 %v7888_v39 }
 0x85b   : > { %v7784_v59 = vmul.f32 0.03125, %v7703_v8  ;;  %v7847_v41 = vmul.f32 %v15423_v53, %v15423_v53 }
 0x85d   : > { %v15429_v47 = vsub.f32 %v15287_v5, %v7784_v59  ;;  %v7891_v62 = vsel %vm7679_vm4, %v7847_v41, 0.0 }
 0x85e   : > { %7892 = vadd.xlane.f32.xlu0 %v7891_v62  ;;  %v7706_v55 = vpop.xlane.xlu0 %7705 }
 0x85f   : > { %v7785_v34 = vmul.f32 0.03125, %v7706_v55  ;;  %v7848_v33 = vmul.f32 %v15429_v47, %v15429_v47 }
 0x861   : > { %v15435_v63 = vsub.f32 %v15291_v45, %v7785_v34  ;;  %v7894_v15 = vsel %vm7679_vm4, %v7848_v33, 0.0 }
 0x862   : > { %v7709_v44 = vpop.xlane.xlu1 %7708  ;;  %7895 = vadd.xlane.f32.xlu1 %v7894_v15 }
 0x863   : > { %v7786_v0 = vmul.f32 0.03125, %v7709_v44  ;;  %v7849_v5 = vmul.f32 %v15435_v63, %v15435_v63 }
 0x865   : > { %v15441_v52 = vsub.f32 %v15295_v1, %v7786_v0  ;;  %v7897_v21 = vsel %vm7679_vm4, %v7849_v5, 0.0 }
 0x866   : > { %7898 = vadd.xlane.f32.xlu0 %v7897_v21  ;;  %v7712_v6 = vpop.xlane.xlu0 %7711 }
 0x867   : > { %v7787_v37 = vmul.f32 0.03125, %v7712_v6  ;;  %v7850_v45 = vmul.f32 %v15441_v52, %v15441_v52 }
 0x869   : > { %v15447_v2 = vsub.f32 %v15299_v38, %v7787_v37  ;;  %v7900_v42 = vsel %vm7679_vm4, %v7850_v45, 0.0 }
 0x86a   : > { %v7715_v18 = vpop.xlane.xlu1 %7714  ;;  %7901 = vadd.xlane.f32.xlu1 %v7900_v42 }
 0x86b   : > { %v7788_v36 = vmul.f32 0.03125, %v7715_v18  ;;  %v7851_v1 = vmul.f32 %v15447_v2, %v15447_v2 }
 0x86d   : > { %v15453_v24 = vsub.f32 %v15303_v31, %v7788_v36  ;;  %v7903_v25 = vsel %vm7679_vm4, %v7851_v1, 0.0 }
 0x86e   : > { %7904 = vadd.xlane.f32.xlu0 %v7903_v25  ;;  %v7718_v61 = vpop.xlane.xlu0 %7717 }
 0x86f   : > { %v7789_v51 = vmul.f32 0.03125, %v7718_v61  ;;  %v7852_v38 = vmul.f32 %v15453_v24, %v15453_v24 }
 0x871   : > { %v15459_v20 = vsub.f32 %v15307_v50, %v7789_v51  ;;  %v7906_v26 = vsel %vm7679_vm4, %v7852_v38, 0.0 }
 0x872   : > { %v7721_v13 = vpop.xlane.xlu1 %7720  ;;  %7907 = vadd.xlane.f32.xlu1 %v7906_v26 }
 0x873   : > { %v7790_v40 = vmul.f32 0.03125, %v7721_v13  ;;  %v7853_v31 = vmul.f32 %v15459_v20, %v15459_v20 }
 0x875   : > { %v15465_v46 = vsub.f32 %v15311_v3, %v7790_v40  ;;  %v7909_v32 = vsel %vm7679_vm4, %v7853_v31, 0.0 }
 0x876   : > { %7910 = vadd.xlane.f32.xlu0 %v7909_v32  ;;  %v7724_v49 = vpop.xlane.xlu0 %7723 }
 0x877   : > { %v7791_v39 = vmul.f32 0.03125, %v7724_v49  ;;  %v7854_v50 = vmul.f32 %v15465_v46, %v15465_v46 }
 0x879   : > { %v15471_v8 = vsub.f32 %v15315_v17, %v7791_v39  ;;  %v7912_v59 = vsel %vm7679_vm4, %v7854_v50, 0.0 }
 0x87a   : > { %v7727_v41 = vpop.xlane.xlu1 %7726  ;;  %7913 = vadd.xlane.f32.xlu1 %v7912_v59 }
 0x87b   : > { %v7792_v62 = vmul.f32 0.03125, %v7727_v41  ;;  %v7855_v3 = vmul.f32 %v15471_v8, %v15471_v8 }
 0x87d   : > { %v15477_v55 = vsub.f32 %v15319_v7, %v7792_v62  ;;  %v7915_v34 = vsel %vm7679_vm4, %v7855_v3, 0.0 }
 0x87e   : > { %7916 = vadd.xlane.f32.xlu0 %v7915_v34  ;;  %v7730_v33 = vpop.xlane.xlu0 %7729 }
 0x87f   : > { %v7793_v15 = vmul.f32 0.03125, %v7730_v33  ;;  %v7856_v17 = vmul.f32 %v15477_v55, %v15477_v55 }
 0x881   : > { %v15483_v44 = vsub.f32 %v15323_v58, %v7793_v15  ;;  %v7918_v0 = vsel %vm7679_vm4, %v7856_v17, 0.0 }
 0x882   : > { %v7733_v5 = vpop.xlane.xlu1 %7732  ;;  %7919 = vadd.xlane.f32.xlu1 %v7918_v0 }
 0x883   : > { %v7794_v21 = vmul.f32 0.03125, %v7733_v5  ;;  %v7857_v7 = vmul.f32 %v15483_v44, %v15483_v44 }
 0x885   : > { %v15489_v6 = vsub.f32 %v15327_v11, %v7794_v21  ;;  %v7921_v37 = vsel %vm7679_vm4, %v7857_v7, 0.0 }
 0x886   : > { %7922 = vadd.xlane.f32.xlu0 %v7921_v37  ;;  %v7736_v45 = vpop.xlane.xlu0 %7735 }
 0x887   : > { %v7795_v42 = vmul.f32 0.03125, %v7736_v45  ;;  %v7858_v58 = vmul.f32 %v15489_v6, %v15489_v6 }
 0x889   : > { %v15495_v18 = vsub.f32 %v15331_v10, %v7795_v42  ;;  %v7924_v36 = vsel %vm7679_vm4, %v7858_v58, 0.0 }
 0x88a   : > { %v7739_v1 = vpop.xlane.xlu1 %7738  ;;  %7925 = vadd.xlane.f32.xlu1 %v7924_v36 }
 0x88b   : > { %v7796_v25 = vmul.f32 0.03125, %v7739_v1  ;;  %v7859_v11 = vmul.f32 %v15495_v18, %v15495_v18 }
 0x88d   : > { %v15501_v61 = vsub.f32 %v15335_v30, %v7796_v25  ;;  %v7927_v51 = vsel %vm7679_vm4, %v7859_v11, 0.0 }
 0x88e   : > { %7928 = vadd.xlane.f32.xlu0 %v7927_v51  ;;  %v7742_v38 = vpop.xlane.xlu0 %7741 }
 0x88f   : > { %v7797_v26 = vmul.f32 0.03125, %v7742_v38  ;;  %v7860_v10 = vmul.f32 %v15501_v61, %v15501_v61 }
 0x891   : > { %v15507_v13 = vsub.f32 %v15339_v28, %v7797_v26  ;;  %v7930_v40 = vsel %vm7679_vm4, %v7860_v10, 0.0 }
 0x892   : > { %v7745_v31 = vpop.xlane.xlu1 %7744  ;;  %7931 = vadd.xlane.f32.xlu1 %v7930_v40 }
 0x893   : > { %v7798_v32 = vmul.f32 0.03125, %v7745_v31  ;;  %v7861_v30 = vmul.f32 %v15507_v13, %v15507_v13 }
 0x895   : > { %v15513_v49 = vsub.f32 %v15343_v23, %v7798_v32  ;;  %v7933_v39 = vsel %vm7679_vm4, %v7861_v30, 0.0 }
 0x896   : > { %7934 = vadd.xlane.f32.xlu0 %v7933_v39  ;;  %v7748_v50 = vpop.xlane.xlu0 %7747 }
 0x897   : > { %v7799_v59 = vmul.f32 0.03125, %v7748_v50  ;;  %v7862_v28 = vmul.f32 %v15513_v49, %v15513_v49 }
 0x899   : > { %v15519_v41 = vsub.f32 %v15347_v29, %v7799_v59  ;;  %v7936_v62 = vsel %vm7679_vm4, %v7862_v28, 0.0 }
 0x89a   : > { %v7751_v3 = vpop.xlane.xlu1 %7750  ;;  %7937 = vadd.xlane.f32.xlu1 %v7936_v62 }
 0x89b   : > { %v7800_v34 = vmul.f32 0.03125, %v7751_v3  ;;  %v7863_v23 = vmul.f32 %v15519_v41, %v15519_v41 }
 0x89d   : > { %v15525_v33 = vsub.f32 %v15351_v43, %v7800_v34  ;;  %v7939_v15 = vsel %vm7679_vm4, %v7863_v23, 0.0 }
 0x89e   : > { %7940 = vadd.xlane.f32.xlu0 %v7939_v15  ;;  %v7754_v17 = vpop.xlane.xlu0 %7753 }
 0x89f   : > { %v7801_v0 = vmul.f32 0.03125, %v7754_v17  ;;  %v7864_v29 = vmul.f32 %v15525_v33, %v15525_v33 }
 0x8a1   : > { %v15531_v5 = vsub.f32 %v15355_v27, %v7801_v0  ;;  %v7942_v21 = vsel %vm7679_vm4, %v7864_v29, 0.0 }
 0x8a2   : > { %v7757_v7 = vpop.xlane.xlu1 %7756  ;;  %7943 = vadd.xlane.f32.xlu1 %v7942_v21 }
 0x8a3   : > { %v7802_v37 = vmul.f32 0.03125, %v7757_v7  ;;  %v7865_v43 = vmul.f32 %v15531_v5, %v15531_v5 }
 0x8a5   : > { %v15537_v45 = vsub.f32 %v15359_v57, %v7802_v37  ;;  %v7945_v42 = vsel %vm7679_vm4, %v7865_v43, 0.0 }
 0x8a6   : > { %7946 = vadd.xlane.f32.xlu0 %v7945_v42  ;;  %v7760_v58 = vpop.xlane.xlu0 %7759 }
 0x8a7   : > { %v7803_v36 = vmul.f32 0.03125, %v7760_v58  ;;  %v7866_v27 = vmul.f32 %v15537_v45, %v15537_v45 }
 0x8a9   : > { %v15543_v1 = vsub.f32 %v15363_v14, %v7803_v36  ;;  %v7948_v25 = vsel %vm7679_vm4, %v7866_v27, 0.0 }
 0x8aa   : > { %v7763_v11 = vpop.xlane.xlu1 %7762  ;;  %7949 = vadd.xlane.f32.xlu1 %v7948_v25 }
 0x8ab   : > { %v7804_v51 = vmul.f32 0.03125, %v7763_v11  ;;  %v7867_v57 = vmul.f32 %v15543_v1, %v15543_v1 }
 0x8ad   : > { %v15549_v38 = vsub.f32 %v15367_v16, %v7804_v51  ;;  %v7951_v26 = vsel %vm7679_vm4, %v7867_v57, 0.0 }
 0x8ae   : > { %7952 = vadd.xlane.f32.xlu0 %v7951_v26  ;;  %v7766_v10 = vpop.xlane.xlu0 %7765 }
 0x8af   : > { %v7805_v40 = vmul.f32 0.03125, %v7766_v10  ;;  %v7868_v14 = vmul.f32 %v15549_v38, %v15549_v38 }
 0x8b1   : > { %v15555_v31 = vsub.f32 %v15371_v22, %v7805_v40  ;;  %v7954_v32 = vsel %vm7679_vm4, %v7868_v14, 0.0 }
 0x8b2   : > { %v7769_v30 = vpop.xlane.xlu1 %7768  ;;  %7955 = vadd.xlane.f32.xlu1 %v7954_v32 }
 0x8b3   : > { %v7806_v39 = vmul.f32 0.03125, %v7769_v30  ;;  %v7869_v16 = vmul.f32 %v15555_v31, %v15555_v31 }
 0x8b5   : > { %v15561_v50 = vsub.f32 %v15375_v12, %v7806_v39  ;;  %v7957_v59 = vsel %vm7679_vm4, %v7869_v16, 0.0 }
 0x8b6   : > { %7958 = vadd.xlane.f32.xlu0 %v7957_v59  ;;  %v7772_v28 = vpop.xlane.xlu0 %7771 }
 0x8b7   : > { %v7807_v62 = vmul.f32 0.03125, %v7772_v28  ;;  %v7870_v22 = vmul.f32 %v15561_v50, %v15561_v50 }
 0x8b9   : > { %v15567_v3 = vsub.f32 %v15379_v19, %v7807_v62  ;;  %v7960_v34 = vsel %vm7679_vm4, %v7870_v22, 0.0 }
 0x8ba   : > { %7961 = vadd.xlane.f32.xlu1 %v7960_v34  ;;  %v7775_v23 = vpop.xlane.xlu1 %7774 }
 0x8bb   : > { %v7808_v15 = vmul.f32 0.03125, %v7775_v23  ;;  %v7871_v12 = vmul.f32 %v15567_v3, %v15567_v3 }
 0x8bd   : > { %v15573_v17 = vsub.f32 %v15383_v4, %v7808_v15  ;;  %v7963_v0 = vsel %vm7679_vm4, %v7871_v12, 0.0 }
 0x8be   : > { %7964 = vadd.xlane.f32.xlu0 %v7963_v0 }
 0x8bf   : > { %v7872_v29 = vmul.f32 %v15573_v17, %v15573_v17 }
 0x8c1   : > { %v7966_v19 = vsel %vm7679_vm4, %v7872_v29, 0.0 }
 0x8c2   : > { %7967 = vadd.xlane.f32.xlu1 %v7966_v19 }
 0x8d3   : > { %v7875_v21 = vpop.xlane.xlu0 %7874 }
 0x8d4   : > { %v7969_v42 = vmul.f32 0.03125, %v7875_v21 }
 0x8d6   : > { %v8001_v11 = vadd.f32 1e-05, %v7969_v42 }
 0x8d7   : > { %v7878_v7 = vpop.xlane.xlu1 %7877 }
 0x8d8   : > { %v7970_v43 = vmul.f32 0.03125, %v7878_v7 }
 0x8da   : > { %v8002_v25 = vadd.f32 1e-05, %v7970_v43 }
 0x8db   : > { %v7881_v37 = vpop.xlane.xlu0 %7880 }
 0x8dc   : > { %v7971_v36 = vmul.f32 0.03125, %v7881_v37  ;;  %10992 = vrsqrt.f32 %v8002_v25 }
 0x8dd   : > { %10994 = vrsqrt.f32 %v8001_v11 }
 0x8de   : > { %v8003_v57 = vadd.f32 1e-05, %v7971_v36 }
 0x8df   : > { %v7884_v58 = vpop.xlane.xlu1 %7883 }
 0x8e0   : > { %v7972_v4 = vmul.f32 0.03125, %v7884_v58  ;;  %10996 = vrsqrt.f32 %v8003_v57  ;;  %v15584_v57 = vld [vmem:[%s15772_s8] ss:$0 sm:$0xff] }
 0x8e2   : > { %v8004_v40 = vadd.f32 1e-05, %v7972_v4 }
 0x8e3   : > { %v7887_v27 = vpop.xlane.xlu0 %7886 }
 0x8e4   : > { %v7973_v26 = vmul.f32 0.03125, %v7887_v27  ;;  %10998 = vrsqrt.f32 %v8004_v40 }
 0x8e6   : > { %v8005_v30 = vadd.f32 1e-05, %v7973_v26  ;;  %v10993_v29 = vpop.eup %10992 }
 0x8e7   : > { %v7890_v51 = vpop.xlane.xlu1 %7889  ;;  %v10995_v7 = vpop.eup %10994  ;;  %v8066_v36 = vmul.f32 %v10993_v29, %v15393_v60 }
 0x8e8   : > { %v7974_v14 = vmul.f32 0.03125, %v7890_v51  ;;  %11000 = vrsqrt.f32 %v8005_v30  ;;  %v8065_v4 = vmul.f32 %v10995_v7, %v15388_v48 }
 0x8e9   : > { %v8105_v60 = vmul.f32 %v15584_v57, %v8066_v36 }
 0x8ea   : > { %v8006_v59 = vadd.f32 1e-05, %v7974_v14  ;;  %v10997_v43 = vpop.eup %10996 }
 0x8eb   : > { %v7893_v10 = vpop.xlane.xlu0 %7892  ;;  %v8067_v26 = vmul.f32 %v10997_v43, %v15399_v9  ;;  %v15593_v9 = vld [vmem:[%s15773_s9] ss:$0 sm:$0xff] }
 0x8ec   : > { %v7975_v39 = vmul.f32 0.03125, %v7893_v10  ;;  %11002 = vrsqrt.f32 %v8006_v59 }
 0x8ee   : > { %v8007_v22 = vadd.f32 1e-05, %v7975_v39  ;;  %v10999_v25 = vpop.eup %10998 }
 0x8ef   : > { %v7896_v32 = vpop.xlane.xlu1 %7895  ;;  %v8068_v30 = vmul.f32 %v10999_v25, %v15405_v35 }
 0x8f0   : > { %v7976_v28 = vmul.f32 0.03125, %v7896_v32  ;;  %11004 = vrsqrt.f32 %v8007_v22 }
 0x8f2   : > { %v8008_v15 = vadd.f32 1e-05, %v7976_v28  ;;  %v11001_v40 = vpop.eup %11000 }
 0x8f3   : > { %v7899_v16 = vpop.xlane.xlu0 %7898  ;;  %v8069_v22 = vmul.f32 %v11001_v40, %v15411_v54 }
 0x8f4   : > { %v7977_v34 = vmul.f32 0.03125, %v7899_v16  ;;  %11006 = vrsqrt.f32 %v8008_v15  ;;  %v8104_v16 = vmul.f32 %v15584_v57, %v8065_v4 }
 0x8f6   : > { %v8009_v19 = vadd.f32 1e-05, %v7977_v34  ;;  %v11003_v39 = vpop.eup %11002  ;;  %v8143_v7 = vadd.f32 %v15593_v9, %v8104_v16 }
 0x8f7   : > { %v7902_v62 = vpop.xlane.xlu1 %7901  ;;  %v8070_v29 = vmul.f32 %v11003_v39, %v15417_v56 }
 0x8f8   : > { %v7978_v12 = vmul.f32 0.03125, %v7902_v62  ;;  %11008 = vrsqrt.f32 %v8009_v19  ;;  %v8106_v62 = vmul.f32 %v15584_v57, %v8067_v26 }
 0x8fa   : > { %v8010_v42 = vadd.f32 1e-05, %v7978_v12  ;;  %v8144_v12 = vadd.f32 %v15593_v9, %v8105_v60  ;;  %v8145_v54 = vadd.f32 %v15593_v9, %v8106_v62 }
 0x8fb   : > { %v7905_v23 = vpop.xlane.xlu0 %7904 }
 0x8fc   : > { %v7979_v21 = vmul.f32 0.03125, %v7905_v23  ;;  %11010 = vrsqrt.f32 %v8010_v42  ;;  %v11005_v23 = vpop.eup %11004  ;;  %v8108_v42 = vmul.f32 %v15584_v57, %v8069_v22  ;;  %v8176_v56 = vsel %vm7679_vm4, %v8144_v12, 0.0 }
 0x8fd   : > { %v8178_v60 = vsel %vm7679_vm4, %v8145_v54, 0.0 }
 0x8fe   : > { %v8011_v11 = vadd.f32 1e-05, %v7979_v21  ;;  %v11007_v21 = vpop.eup %11006 }
 0x8ff   : > { %v7908_v0 = vpop.xlane.xlu1 %7907  ;;  %v8072_v26 = vmul.f32 %v11007_v21, %v15429_v47 }
 0x900   : > { %v7980_v58 = vmul.f32 0.03125, %v7908_v0  ;;  %11012 = vrsqrt.f32 %v8011_v11  ;;  %v8107_v0 = vmul.f32 %v15584_v57, %v8068_v30  ;;  %v8147_v30 = vadd.f32 %v15593_v9, %v8108_v42 }
 0x902   : > { %v8012_v14 = vadd.f32 1e-05, %v7980_v58  ;;  %v8071_v58 = vmul.f32 %v11005_v23, %v15423_v53  ;;  %v8146_v11 = vadd.f32 %v15593_v9, %v8107_v0  ;;  %v8111_v23 = vmul.f32 %v15584_v57, %v8072_v26 }
 0x903   : > { %v7911_v37 = vpop.xlane.xlu0 %7910 }
 0x904   : > { %v7981_v51 = vmul.f32 0.03125, %v7911_v37  ;;  %11014 = vrsqrt.f32 %v8012_v14  ;;  %v8175_v14 = vsel %vm7679_vm4, %v8143_v7, 0.0  ;;  %v8180_v22 = vsel %vm7679_vm4, %v8146_v11, 0.0 }
 0x906   : > { %v8013_v59 = vadd.f32 1e-05, %v7981_v51  ;;  %v8109_v51 = vmul.f32 %v15584_v57, %v8070_v29 }
 0x907   : > { %v7914_v27 = vpop.xlane.xlu1 %7913 }
 0x908   : > { %v7982_v32 = vmul.f32 0.03125, %v7914_v27  ;;  %11016 = vrsqrt.f32 %v8013_v59  ;;  %v11009_v27 = vpop.eup %11008 }
 0x909   : > { %v11011_v40 = vpop.eup %11010  ;;  %v8073_v39 = vmul.f32 %v11009_v27, %v15435_v63  ;;  %v8150_v27 = vadd.f32 %v15593_v9, %v8111_v23 }
 0x90a   : > { %v8014_v35 = vadd.f32 1e-05, %v7982_v32  ;;  %v11013_v59 = vpop.eup %11012 }
 0x90b   : > { %v7917_v10 = vpop.xlane.xlu0 %7916  ;;  %v8112_v7 = vmul.f32 %v15584_v57, %v8073_v39 }
 0x90c   : > { %v7983_v28 = vmul.f32 0.03125, %v7917_v10  ;;  %11018 = vrsqrt.f32 %v8014_v35  ;;  %v8074_v35 = vmul.f32 %v11011_v40, %v15441_v52 }
 0x90d   : > { %v8151_v40 = vadd.f32 %v15593_v9, %v8112_v7 }
 0x90e   : > { %v8015_v37 = vadd.f32 1e-05, %v7983_v28  ;;  %v8177_v28 = vadd.f32 %v8176_v56, %v8175_v14  ;;  %v11015_v12 = vpop.eup %11014 }
 0x90f   : > { %v7920_v48 = vpop.xlane.xlu1 %7919 }
 0x910   : > { %v7984_v15 = vmul.f32 0.03125, %v7920_v48  ;;  %11020 = vrsqrt.f32 %v8015_v37  ;;  %v8110_v48 = vmul.f32 %v15584_v57, %v8071_v58  ;;  %v8179_v0 = vadd.f32 %v8178_v60, %v8177_v28 }
 0x911   : > { %v8075_v37 = vmul.f32 %v11013_v59, %v15447_v2 }
 0x912   : > { %v8016_v25 = vadd.f32 1e-05, %v7984_v15  ;;  %v8149_v21 = vadd.f32 %v15593_v9, %v8110_v48  ;;  %v11017_v54 = vpop.eup %11016  ;;  %v8181_v42 = vadd.f32 %v8180_v22, %v8179_v0 }
 0x913   : > { %v7923_v34 = vpop.xlane.xlu0 %7922  ;;  %v8114_v14 = vmul.f32 %v15584_v57, %v8075_v37 }
 0x914   : > { %v7985_v43 = vmul.f32 0.03125, %v7923_v34  ;;  %11022 = vrsqrt.f32 %v8016_v25  ;;  %v8148_v34 = vadd.f32 %v15593_v9, %v8109_v51  ;;  %v8113_v25 = vmul.f32 %v15584_v57, %v8074_v35 }
 0x915   : > { %v8153_v23 = vadd.f32 %v15593_v9, %v8114_v14 }
 0x916   : > { %v8017_v32 = vadd.f32 1e-05, %v7985_v43  ;;  %v11019_v11 = vpop.eup %11018  ;;  %v8152_v39 = vadd.f32 %v15593_v9, %v8113_v25 }
 0x917   : > { %v7926_v19 = vpop.xlane.xlu1 %7925  ;;  %v8078_v59 = vmul.f32 %v11019_v11, %v15465_v46 }
 0x918   : > { %v7986_v4 = vmul.f32 0.03125, %v7926_v19  ;;  %11024 = vrsqrt.f32 %v8017_v32  ;;  %v8182_v19 = vsel %vm7679_vm4, %v8147_v30, 0.0  ;;  %v8077_v32 = vmul.f32 %v11017_v54, %v15459_v20 }
 0x919   : > { %v8183_v51 = vadd.f32 %v8182_v19, %v8181_v42  ;;  %v8190_v20 = vsel %vm7679_vm4, %v8151_v40, 0.0  ;;  %v8192_v46 = vsel %vm7679_vm4, %v8152_v39, 0.0  ;;  %v8117_v19 = vmul.f32 %v15584_v57, %v8078_v59 }
 0x91a   : > { %v8018_v47 = vadd.f32 1e-05, %v7986_v4  ;;  %v8076_v4 = vmul.f32 %v11015_v12, %v15453_v24  ;;  %v8188_v24 = vsel %vm7679_vm4, %v8150_v27, 0.0  ;;  %v8116_v35 = vmul.f32 %v15584_v57, %v8077_v32 }
 0x91b   : > { %v7929_v36 = vpop.xlane.xlu0 %7928 }
 0x91c   : > { %v7987_v53 = vmul.f32 0.03125, %v7929_v36  ;;  %11026 = vrsqrt.f32 %v8018_v47  ;;  %v8184_v36 = vsel %vm7679_vm4, %v8148_v34, 0.0 }
 0x91d   : > { %v8185_v60 = vadd.f32 %v8184_v36, %v8183_v51 }
 0x91e   : > { %v8019_v29 = vadd.f32 1e-05, %v7987_v53  ;;  %v11021_v53 = vpop.eup %11020 }
 0x91f   : > { %v7932_v10 = vpop.xlane.xlu1 %7931  ;;  %v11023_v47 = vpop.eup %11022 }
 0x920   : > { %v7988_v62 = vmul.f32 0.03125, %v7932_v10  ;;  %11028 = vrsqrt.f32 %v8019_v29  ;;  %v8186_v10 = vsel %vm7679_vm4, %v8149_v21, 0.0  ;;  %v8080_v21 = vmul.f32 %v11023_v47, %v15477_v55 }
 0x922   : > { %v8020_v58 = vadd.f32 1e-05, %v7988_v62  ;;  %v8187_v62 = vadd.f32 %v8186_v10, %v8185_v60  ;;  %v11025_v12 = vpop.eup %11024  ;;  %v8119_v11 = vmul.f32 %v15584_v57, %v8080_v21 }
 0x923   : > { %v7935_v16 = vpop.xlane.xlu0 %7934  ;;  %v8081_v36 = vmul.f32 %v11025_v12, %v15483_v44 }
 0x924   : > { %v7989_v63 = vmul.f32 0.03125, %v7935_v16  ;;  %11030 = vrsqrt.f32 %v8020_v58  ;;  %v8115_v16 = vmul.f32 %v15584_v57, %v8076_v4  ;;  %v8189_v0 = vadd.f32 %v8188_v24, %v8187_v62 }
 0x925   : > { %v8155_v58 = vadd.f32 %v15593_v9, %v8116_v35  ;;  %v8120_v32 = vmul.f32 %v15584_v57, %v8081_v36 }
 0x926   : > { %v8021_v26 = vadd.f32 1e-05, %v7989_v63  ;;  %v8154_v63 = vadd.f32 %v15593_v9, %v8115_v16  ;;  %v11027_v37 = vpop.eup %11026 }
 0x927   : > { %v7938_v15 = vpop.xlane.xlu1 %7937  ;;  %v8082_v51 = vmul.f32 %v11027_v37, %v15489_v6  ;;  %v8198_v14 = vsel %vm7679_vm4, %v8155_v58, 0.0  ;;  %v8158_v6 = vadd.f32 %v15593_v9, %v8119_v11 }
 0x928   : > { %v7990_v52 = vmul.f32 0.03125, %v7938_v15  ;;  %11032 = vrsqrt.f32 %v8021_v26  ;;  %v8079_v15 = vmul.f32 %v11021_v53, %v15471_v8  ;;  %v8194_v8 = vsel %vm7679_vm4, %v8153_v23, 0.0 }
 0x929   : > { %v8196_v55 = vsel %vm7679_vm4, %v8154_v63, 0.0  ;;  %v8121_v39 = vmul.f32 %v15584_v57, %v8082_v51  ;;  %v8204_v12 = vsel %vm7679_vm4, %v8158_v6, 0.0 }
 0x92a   : > { %v8022_v30 = vadd.f32 1e-05, %v7990_v52  ;;  %v8118_v52 = vmul.f32 %v15584_v57, %v8079_v15  ;;  %v11029_v27 = vpop.eup %11028 }
 0x92b   : > { %v7941_v43 = vpop.xlane.xlu0 %7940  ;;  %v8083_v53 = vmul.f32 %v11029_v27, %v15495_v18  ;;  %v8159_v18 = vadd.f32 %v15593_v9, %v8120_v32 }
 0x92c   : > { %v7991_v2 = vmul.f32 0.03125, %v7941_v43  ;;  %11034 = vrsqrt.f32 %v8022_v30  ;;  %v8191_v43 = vadd.f32 %v8190_v20, %v8189_v0  ;;  %v8157_v44 = vadd.f32 %v15593_v9, %v8118_v52 }
 0x92e   : > { %v8023_v22 = vadd.f32 1e-05, %v7991_v2  ;;  %v8193_v25 = vadd.f32 %v8192_v46, %v8191_v43  ;;  %v11031_v2 = vpop.eup %11030 }
 0x92f   : > { %v7944_v56 = vpop.xlane.xlu1 %7943  ;;  %v8084_v16 = vmul.f32 %v11031_v2, %v15501_v61  ;;  %v8160_v61 = vadd.f32 %v15593_v9, %v8121_v39 }
 0x930   : > { %v7992_v48 = vmul.f32 0.03125, %v7944_v56  ;;  %11036 = vrsqrt.f32 %v8023_v22  ;;  %v8156_v56 = vadd.f32 %v15593_v9, %v8117_v19  ;;  %v8195_v10 = vadd.f32 %v8194_v8, %v8193_v25 }
 0x931   : > { %v8202_v22 = vsel %vm7679_vm4, %v8157_v44, 0.0  ;;  %v8123_v0 = vmul.f32 %v15584_v57, %v8084_v16  ;;  %v8208_v58 = vsel %vm7679_vm4, %v8160_v61, 0.0 }
 0x932   : > { %v8024_v29 = vadd.f32 1e-05, %v7992_v48  ;;  %v11033_v60 = vpop.eup %11032  ;;  %v8197_v30 = vadd.f32 %v8196_v55, %v8195_v10  ;;  %v8200_v24 = vsel %vm7679_vm4, %v8156_v56, 0.0 }
 0x933   : > { %v7947_v28 = vpop.xlane.xlu0 %7946  ;;  %v8085_v20 = vmul.f32 %v11033_v60, %v15507_v13 }
 0x934   : > { %v7993_v34 = vmul.f32 0.03125, %v7947_v28  ;;  %11038 = vrsqrt.f32 %v8024_v29  ;;  %v8199_v47 = vadd.f32 %v8198_v14, %v8197_v30 }
 0x935   : > { %v8124_v37 = vmul.f32 %v15584_v57, %v8085_v20 }
 0x936   : > { %v8025_v54 = vadd.f32 1e-05, %v7993_v34  ;;  %v11035_v28 = vpop.eup %11034  ;;  %v8122_v34 = vmul.f32 %v15584_v57, %v8083_v53  ;;  %v8201_v35 = vadd.f32 %v8200_v24, %v8199_v47 }
 0x937   : > { %v7950_v7 = vpop.xlane.xlu1 %7949  ;;  %v8086_v29 = vmul.f32 %v11035_v28, %v15513_v49  ;;  %v8162_v49 = vadd.f32 %v15593_v9, %v8123_v0 }
 0x938   : > { %v7994_v42 = vmul.f32 0.03125, %v7950_v7  ;;  %11040 = vrsqrt.f32 %v8025_v54  ;;  %v8203_v19 = vadd.f32 %v8202_v22, %v8201_v35  ;;  %v8206_v7 = vsel %vm7679_vm4, %v8159_v18, 0.0 }
 0x939   : > { %v8161_v13 = vadd.f32 %v15593_v9, %v8122_v34  ;;  %v8125_v52 = vmul.f32 %v15584_v57, %v8086_v29 }
 0x93a   : > { %v8026_v4 = vadd.f32 1e-05, %v7994_v42  ;;  %v11037_v23 = vpop.eup %11036  ;;  %v8205_v42 = vadd.f32 %v8204_v12, %v8203_v19 }
 0x93b   : > { %v7953_v26 = vpop.xlane.xlu0 %7952  ;;  %v8087_v43 = vmul.f32 %v11037_v23, %v15519_v41  ;;  %v8210_v56 = vsel %vm7679_vm4, %v8161_v13, 0.0  ;;  %v8163_v41 = vadd.f32 %v15593_v9, %v8124_v37 }
 0x93c   : > { %v7995_v40 = vmul.f32 0.03125, %v7953_v26  ;;  %11042 = vrsqrt.f32 %v8026_v4  ;;  %v8207_v4 = vadd.f32 %v8206_v7, %v8205_v42 }
 0x93d   : > { %v8126_v11 = vmul.f32 %v15584_v57, %v8087_v43  ;;  %v8214_v30 = vsel %vm7679_vm4, %v8163_v41, 0.0 }
 0x93e   : > { %v8027_v48 = vadd.f32 1e-05, %v7995_v40  ;;  %v11039_v63 = vpop.eup %11038  ;;  %v8209_v2 = vadd.f32 %v8208_v58, %v8207_v4  ;;  %v8212_v40 = vsel %vm7679_vm4, %v8162_v49, 0.0 }
 0x93f   : > { %v7956_v59 = vpop.xlane.xlu1 %7955  ;;  %v8088_v36 = vmul.f32 %v11039_v63, %v15525_v33  ;;  %v8164_v33 = vadd.f32 %v15593_v9, %v8125_v52 }
 0x940   : > { %11044 = vrsqrt.f32 %v8027_v48  ;;  %v7996_v62 = vmul.f32 0.03125, %v7956_v59  ;;  %v8211_v53 = vadd.f32 %v8210_v56, %v8209_v2  ;;  %v8165_v48 = vadd.f32 %v15593_v9, %v8126_v11 }
 0x941   : > { %v8127_v14 = vmul.f32 %v15584_v57, %v8088_v36  ;;  %v8216_v59 = vsel %vm7679_vm4, %v8164_v33, 0.0 }
 0x942   : > { %v8028_v15 = vadd.f32 1e-05, %v7996_v62  ;;  %v11041_v54 = vpop.eup %11040  ;;  %v8213_v39 = vadd.f32 %v8212_v40, %v8211_v53  ;;  %v8218_v34 = vsel %vm7679_vm4, %v8165_v48, 0.0 }
 0x943   : > { %v7959_v46 = vpop.xlane.xlu0 %7958  ;;  %v8089_v51 = vmul.f32 %v11041_v54, %v15531_v5  ;;  %v8166_v28 = vadd.f32 %v15593_v9, %v8127_v14 }
 0x944   : > { %11046 = vrsqrt.f32 %v8028_v15  ;;  %v7997_v21 = vmul.f32 0.03125, %v7959_v46  ;;  %v8215_v22 = vadd.f32 %v8214_v30, %v8213_v39 }
 0x945   : > { %v8128_v5 = vmul.f32 %v15584_v57, %v8089_v51  ;;  %v8220_v12 = vsel %vm7679_vm4, %v8166_v28, 0.0 }
 0x946   : > { %v8029_v8 = vadd.f32 1e-05, %v7997_v21  ;;  %v11043_v25 = vpop.eup %11042  ;;  %v8217_v35 = vadd.f32 %v8216_v59, %v8215_v22 }
 0x947   : > { %v7962_v27 = vpop.xlane.xlu1 %7961  ;;  %v8090_v44 = vmul.f32 %v11043_v25, %v15537_v45  ;;  %v8167_v20 = vadd.f32 %v15593_v9, %v8128_v5 }
 0x948   : > { %11048 = vrsqrt.f32 %v8029_v8  ;;  %v7998_v55 = vmul.f32 0.03125, %v7962_v27  ;;  %v8219_v29 = vadd.f32 %v8218_v34, %v8217_v35 }
 0x949   : > { %v8129_v45 = vmul.f32 %v15584_v57, %v8090_v44  ;;  %v8222_v46 = vsel %vm7679_vm4, %v8167_v20, 0.0 }
 0x94a   : > { %v11045_v26 = vpop.eup %11044  ;;  %v8030_v10 = vadd.f32 1e-05, %v7998_v55  ;;  %v8221_v7 = vadd.f32 %v8220_v12, %v8219_v29 }
 0x94b   : > { %v7965_v32 = vpop.xlane.xlu0 %7964  ;;  %v8091_v24 = vmul.f32 %v11045_v26, %v15543_v1  ;;  %v8168_v61 = vadd.f32 %v15593_v9, %v8129_v45 }
 0x94c   : > { %11050 = vrsqrt.f32 %v8030_v10  ;;  %v7999_v60 = vmul.f32 0.03125, %v7965_v32  ;;  %v8223_v54 = vadd.f32 %v8222_v46, %v8221_v7 }
 0x94d   : > { %v8130_v1 = vmul.f32 %v15584_v57, %v8091_v24  ;;  %v8224_v13 = vsel %vm7679_vm4, %v8168_v61, 0.0 }
 0x94e   : > { %v11047_v6 = vpop.eup %11046  ;;  %v8031_v16 = vadd.f32 1e-05, %v7999_v60  ;;  %v8225_v49 = vadd.f32 %v8224_v13, %v8223_v54 }
 0x94f   : > { %v8092_v47 = vmul.f32 %v11047_v6, %v15549_v38  ;;  %v7968_v62 = vpop.xlane.xlu1 %7967  ;;  %v8169_v63 = vadd.f32 %v15593_v9, %v8130_v1 }
 0x950   : > { %11052 = vrsqrt.f32 %v8031_v16  ;;  %v8000_v18 = vmul.f32 0.03125, %v7968_v62 }
 0x951   : > { %v8131_v0 = vmul.f32 %v15584_v57, %v8092_v47  ;;  %v8226_v42 = vsel %vm7679_vm4, %v8169_v63, 0.0 }
 0x952   : > { %v11049_v23 = vpop.eup %11048  ;;  %v8032_v15 = vadd.f32 1e-05, %v8000_v18  ;;  %v8227_v25 = vadd.f32 %v8226_v42, %v8225_v49 }
 0x953   : > { %v8093_v38 = vmul.f32 %v11049_v23, %v15555_v31  ;;  %v8170_v37 = vadd.f32 %v15593_v9, %v8131_v0 }
 0x954   : > { %11054 = vrsqrt.f32 %v8032_v15 }
 0x955   : > { %v8132_v19 = vmul.f32 %v15584_v57, %v8093_v38  ;;  %v8228_v52 = vsel %vm7679_vm4, %v8170_v37, 0.0 }
 0x956   : > { %v11051_v21 = vpop.eup %11050  ;;  %v8229_v56 = vadd.f32 %v8228_v52, %v8227_v25 }
 0x957   : > { %v8094_v43 = vmul.f32 %v11051_v21, %v15561_v50  ;;  %v8171_v31 = vadd.f32 %v15593_v9, %v8132_v19 }
 0x959   : > { %v8133_v8 = vmul.f32 %v15584_v57, %v8094_v43  ;;  %v8230_v4 = vsel %vm7679_vm4, %v8171_v31, 0.0 }
 0x95a   : > { %v11053_v58 = vpop.eup %11052  ;;  %v8231_v26 = vadd.f32 %v8230_v4, %v8229_v56 }
 0x95b   : > { %v8172_v36 = vadd.f32 %v15593_v9, %v8133_v8  ;;  %v8095_v27 = vmul.f32 %v11053_v58, %v15567_v3 }
 0x95d   : > { %v8134_v50 = vmul.f32 %v15584_v57, %v8095_v27  ;;  %v8232_v41 = vsel %vm7679_vm4, %v8172_v36, 0.0 }
 0x95e   : > { %v11055_v55 = vpop.eup %11054  ;;  %v8233_v10 = vadd.f32 %v8232_v41, %v8231_v26 }
 0x95f   : > { %v8173_v11 = vadd.f32 %v15593_v9, %v8134_v50  ;;  %v8096_v51 = vmul.f32 %v11055_v55, %v15573_v17 }
 0x961   : > { %v8135_v2 = vmul.f32 %v15584_v57, %v8096_v51  ;;  %v8234_v3 = vsel %vm7679_vm4, %v8173_v11, 0.0 }
 0x962   : > { %v8235_v33 = vadd.f32 %v8234_v3, %v8233_v10 }
 0x963   : > { %v8174_v40 = vadd.f32 %v15593_v9, %v8135_v2 }
 0x965   : > { %v8236_v14 = vsel %vm7679_vm4, %v8174_v40, 0.0 }
 0x966   : > { %v8237_v44 = vadd.f32 %v8236_v14, %v8235_v33 }
 0x968   : > { %v8238_v32 = vrot.slane %v8237_v44, 4 }
 0x96a   : > { %v8239_v53 = vadd.f32 %v8238_v32, %v8237_v44 }
 0x96c   : > { %v8240_v60 = vrot.slane %v8239_v53, 2 }
 0x96e   : > { %v8241_v30 = vadd.f32 %v8240_v60, %v8239_v53 }
 0x970   : > { %v8242_v48 = vrot.slane %v8241_v30, 1 }
 0x972   : > { %v8243_v17 = vadd.f32 %v8242_v48, %v8241_v30 }
 0x974   : > { %v8245_v57 = vmul.f32 0.00390625, %v8243_v17 }
 0x976   : > { %8247 = vst.msk [vmem:[%s366_s25] sm:$0x1] %vm8246_vm5, %v8245_v57 }
 0x977   : > { %11069 = shalt.err (!%p11066_p3)
}
 0x978   : > { %s11070_s20 = scalar_lea.hbm %s15722_s30, 16  ;;  %s11074_s27 = scalar_lea.hbm %s15774_s10, 32 }
 0x979   : > { %p11071_p4 = scmp.ne.s32.totalorder %s15722_s30, %s11070_s20  ;;  %p11075_p9 = scmp.lt.u32.totalorder %s15722_s30, %s15774_s10 }
 0x97a   : > { %p11076_p10 = scmp.lt.u32.totalorder %s11074_s27, %s11070_s20  ;;  %p11078_p12 = scmp.lt.u32.totalorder %s11070_s20, %s15722_s30 }
 0x97b   : > { %p11072_p7 = pnand %p11071_p4, %p11216_p5 }
 0x97c   : > { %p11077_p11 = por %p11076_p10, %p11075_p9 }
 0x97d   : > { %p11073_p8 = pneg %p11072_p7 }
 0x97e   : > { %p11079_p13 = por %p11078_p12, %p11077_p11 }
 0x980   : > { %p11080_p0 = pnand %p11079_p13, %p11073_p8 }
 0x982   : > { %11083 = shalt.err (!%p11080_p0)
}
 0x983   : > { %10036 = dma.vmem_to_hbm [thread:$0]  (%p11216_p5), %s15724_s26, 16, %s15722_s30, %s8249_s11  }
 0x984 PF: > { %p10042_p1 = scmp.ge.s32.totalorder %s11118_s16, 2  ;;  %s8273_s12 = sand.u32 1, %s11106_s13  }
 0x985   : > { %s8274_s18 = scalar_lea.sflag [#allocation3], %s8273_s12 }
 0x986   : > { %p10039_p2 = pnand %p10042_p1, %p11220_p6 }
 0x988   : > { %11101 = dma.done.wait (!%p10039_p2), %s8274_s18, 16  }
 0x989   : > { %11103 = vsyncadd (!%p10039_p2), %s8274_s18, 4294967280  ;;  %p20_p3 = scmp.ge.s32.totalorder %s11203_s19, 4   ;;  %s17351_s13 = smov %s11110_s14 }
 0x98a   : > { %s17352_s14 = smov %s11114_s15  ;;  %s17353_s15 = smov %s11214_s22 }
 0x98b   : > { %s17354_s16 = smov %s11203_s19  ;;  %22 = sbr.rel (!%p20_p3) target bundleno = 3 (0x3), region = 98 }
 0x992   :  { %8278 = vsyncpa [#allocation3], 1 }
 0x993   :  { %8280 = vsyncpa [#allocation3 + $0x1], 1 }

</bundles_post_ra>
